<compile_context>
chip_gen: v5e
topology: v5e:2x2
jax: 0.10.0
libtpu: 0.0.40
codegen_flags: <defaults>
</compile_context>

<pallas_src>
import functools

import jax
import jax.numpy as jnp
from jax.experimental import pallas as pl
from jax.experimental.pallas import tpu as pltpu

_EPS = 1e-5
_LEAKY_SLOPE = 0.2
_LANE = 128  # vreg / MXU lane width: pad matmul N and channel slabs to this.


def _round_up(v, m=_LANE):
    return ((v + m - 1) // m) * m


def _vmem_limit(pipeline_block_bytes, temp_bytes):
    """Size-derived VMEM limit: double-buffered pipeline blocks + in-kernel
    temporaries + headroom, clamped under the v7x 64 MiB physical ceiling."""
    need = 2 * pipeline_block_bytes + 2 * temp_bytes + (4 << 20)
    return int(min(max(need, 16 << 20), 48 << 20))


# ---------------------------------------------------------------------------
# Kernel A: stride-2 k=4 Conv3d (replication-padded + space-to-depth'd in the
# wrapper) as a single big-K im2col matmul per batch element, with fused
# per-channel BatchNorm statistics partials.
# ---------------------------------------------------------------------------
def _down_conv_kernel(xs_ref, w_ref, o_ref, stats_ref, *, Do, Ho, Wo):
    # xs_ref   : (1, Do+1, Ho+1, Wo+1, Cs2d) f32, space-to-depth'd padded input,
    #            channel slab zero-padded to a 128-lane multiple
    # w_ref    : (8*Cs2d, Cp)                bf16 folded conv weights (lane-dense N)
    # o_ref    : (1, Do*Ho*Wo, Cp)           f32 pre-norm hidden
    # stats_ref: (1, 2, Cp)                  f32 per-channel [sum, sum-of-squares]
    xs = xs_ref[0]
    taps = []
    for qd in range(2):
        for qh in range(2):
            for qw in range(2):
                taps.append(
                    xs[qd:qd + Do, qh:qh + Ho, qw:qw + Wo, :].astype(jnp.bfloat16))
    # Every slab is a full 128-lane multiple -> lane-tile-aligned concat, then a
    # single big-K MXU push (preferred shape on v5e's MRF).
    col = jnp.concatenate(taps, axis=-1)             # (Do, Ho, Wo, 8*Cs2d) bf16
    col = col.reshape(Do * Ho * Wo, col.shape[-1])
    acc = jnp.dot(col, w_ref[...], preferred_element_type=jnp.float32)
    o_ref[0] = acc.astype(o_ref.dtype)
    # Fused BatchNorm batch-statistics partials: avoids a full HBM stats pass.
    s = jnp.sum(acc, axis=0, keepdims=True)
    ss = jnp.sum(acc * acc, axis=0, keepdims=True)
    stats_ref[0] = jnp.concatenate([s, ss], axis=0)


# ---------------------------------------------------------------------------
# Kernel B: fused [BatchNorm-apply + LeakyReLU(0.2)] of the hidden followed by
# the stride-2 k=4 p=1 ConvTranspose3d as ONE matmul producing all 8 output
# parities at once (K = 27*Cp, N = 8*Cout lane-packed/padded), plus fused
# per-lane BatchNorm statistics partials of the up output.
# ---------------------------------------------------------------------------
def _up_conv_kernel(h_ref, s_ref, t_ref, w_ref, o_ref, stats_ref, hz_ref,
                    *, Di, Hi, Wi):
    # h_ref    : (1, Di, Hi, Wi, Cp)    f32 pre-norm hidden (channel-padded)
    # s_ref    : (1, Cp)                folded BN scale (zero on pad channels)
    # t_ref    : (1, Cp)                folded BN shift (zero on pad channels)
    # w_ref    : (27*Cp, Np)            bf16 folded transposed-conv weights
    # o_ref    : (1, Di*Hi*Wi, Np)      f32, 8 output parities lane-packed
    # stats_ref: (1, 2, Np)             f32 per-lane [sum, sum-of-squares]
    # hz_ref   : (Di+2, Hi+2, Wi+2, Cp) f32 scratch: zero-padded activated hidden
    #
    # The 1-voxel halo only ever holds zeros and the interior is fully
    # overwritten below, so zero-fill the persistent scratch only once.  This is
    # safe because the grid axis is "arbitrary" (one core walks all steps).
    @pl.when(pl.program_id(0) == 0)
    def _():
        hz_ref[...] = jnp.zeros_like(hz_ref)

    scale = s_ref[0]
    shift = t_ref[0]
    h = h_ref[0] * scale + shift                      # BatchNorm (folded)
    h = jnp.where(h >= 0, h, _LEAKY_SLOPE * h)        # LeakyReLU(0.2)
    hz_ref[1:Di + 1, 1:Hi + 1, 1:Wi + 1, :] = h

    taps = []
    for od in range(3):
        for oh in range(3):
            for ow in range(3):
                taps.append(
                    hz_ref[od:od + Di, oh:oh + Hi, ow:ow + Wi, :].astype(jnp.bfloat16))
    col = jnp.concatenate(taps, axis=-1)              # lane-tile-aligned slabs
    col = col.reshape(Di * Hi * Wi, col.shape[-1])
    out = jnp.dot(col, w_ref[...], preferred_element_type=jnp.float32)
    o_ref[0] = out.astype(o_ref.dtype)
    s = jnp.sum(out, axis=0, keepdims=True)
    ss = jnp.sum(out * out, axis=0, keepdims=True)
    stats_ref[0] = jnp.concatenate([s, ss], axis=0)


# ---------------------------------------------------------------------------
# Weight folding (wrapper-side, traced once per compile).
# ---------------------------------------------------------------------------
def _fold_down_weight(w_down, c_tap, c_out):
    # Conv3d weight (Cout, Cin, 4, 4, 4) -> (8*c_tap, c_out) bf16.
    # Rows ordered (qd, qh, qw, [rd, rh, rw, Cin] zero-padded to c_tap); kd=2*qd+rd.
    co, ci = w_down.shape[:2]
    w = w_down.reshape(co, ci, 2, 2, 2, 2, 2, 2)       # (co, ci, qd, rd, qh, rh, qw, rw)
    w = jnp.transpose(w, (2, 4, 6, 3, 5, 7, 1, 0))      # (qd, qh, qw, rd, rh, rw, ci, co)
    w = w.reshape(2, 2, 2, 8 * ci, co)
    w = jnp.pad(w, ((0, 0), (0, 0), (0, 0),
                    (0, c_tap - 8 * ci), (0, c_out - co)))
    return w.reshape(8 * c_tap, c_out).astype(jnp.bfloat16)


def _fold_up_weight(w_up, c_in, n_out):
    # ConvTranspose3d weight (Cin, Cout, 4, 4, 4) -> (27*c_in, n_out) bf16.
    # Rows ordered (od, oh, ow, Cin zero-padded to c_in) to match the im2col over
    # the zero-padded hidden; columns ordered (pd, ph, pw, Cout), zero-padded to
    # n_out lanes.  Identity: out[2m + p] = sum_od hz[m + od] * W[k], k = p-2*od+3.
    cu, co = w_up.shape[:2]
    w_big = jnp.zeros((3, 3, 3, cu, 2, 2, 2, co), w_up.dtype)
    for pd in range(2):
        for od in (pd, pd + 1):
            kd = pd - 2 * od + 3
            for ph in range(2):
                for oh in (ph, ph + 1):
                    kh = ph - 2 * oh + 3
                    for pw in range(2):
                        for ow in (pw, pw + 1):
                            kw = pw - 2 * ow + 3
                            w_big = w_big.at[od, oh, ow, :, pd, ph, pw, :].set(
                                w_up[:, :, kd, kh, kw])
    w_big = w_big.reshape(3, 3, 3, cu, 8 * co)
    w_big = jnp.pad(w_big, ((0, 0), (0, 0), (0, 0),
                            (0, c_in - cu), (0, n_out - 8 * co)))
    return w_big.reshape(27 * c_in, n_out).astype(jnp.bfloat16)


# ---------------------------------------------------------------------------
# Full block forward.
# ---------------------------------------------------------------------------
@jax.jit
def unet_skip_block3d(x, w_down, gamma1, beta1, w_up, gamma2, beta2):
    """UnetSkipConnectionBlock3d forward (submodule=None, BatchNorm3d, training-
    mode batch statistics). x: (N, outer_nc, D, H, W) float32."""
    n, cx, d, h, w = x.shape
    cu = w_down.shape[0]               # inner_nc
    co = w_up.shape[1]                 # outer_nc
    do, ho, wo = d // 2, h // 2, w // 2
    spatial = do * ho * wo

    c_s2d = _round_up(8 * cx)          # padded space-to-depth channel slab
    c_in = _round_up(cu)               # padded hidden channels (lane-dense N of A)
    n_up = _round_up(8 * co)           # padded parity-packed up-conv output lanes

    # ---- layout glue (fused by XLA): channels-last + replication pad +
    #      space-to-depth so the strided conv becomes a stride-1 2x2x2 conv;
    #      the channel slab is zero-padded to a 128-lane multiple.
    x_cl = jnp.transpose(x, (0, 2, 3, 4, 1))
    xp = jnp.pad(x_cl, ((0, 0), (1, 1), (1, 1), (1, 1), (0, 0)), mode="edge")
    xs = xp.reshape(n, do + 1, 2, ho + 1, 2, wo + 1, 2, cx)
    xs = jnp.transpose(xs, (0, 1, 3, 5, 2, 4, 6, 7))
    xs = xs.reshape(n, do + 1, ho + 1, wo + 1, 8 * cx)
    xs = jnp.pad(xs, ((0, 0),) * 4 + ((0, c_s2d - 8 * cx),))

    w_down_f = _fold_down_weight(w_down, c_s2d, c_in)           # (8*c_s2d, c_in)

    down_flops = 2 * n * spatial * 8 * c_s2d * c_in
    blk_a = ((do + 1) * (ho + 1) * (wo + 1) * c_s2d * 4
             + 8 * c_s2d * c_in * 2 + spatial * c_in * 4 + 2 * c_in * 4)
    tmp_a = spatial * 8 * c_s2d * 2 + spatial * c_in * 4
    h_pre, stats1 = pl.pallas_call(
        functools.partial(_down_conv_kernel, Do=do, Ho=ho, Wo=wo),
        out_shape=(jax.ShapeDtypeStruct((n, spatial, c_in), jnp.float32),
                   jax.ShapeDtypeStruct((n, 2, c_in), jnp.float32)),
        grid_spec=pltpu.PrefetchScalarGridSpec(
            num_scalar_prefetch=0,
            grid=(n,),
            in_specs=[
                pl.BlockSpec((1, do + 1, ho + 1, wo + 1, c_s2d),
                             lambda b: (b, 0, 0, 0, 0)),
                pl.BlockSpec((8 * c_s2d, c_in), lambda b: (0, 0)),
            ],
            out_specs=[
                pl.BlockSpec((1, spatial, c_in), lambda b: (b, 0, 0)),
                pl.BlockSpec((1, 2, c_in), lambda b: (b, 0, 0)),
            ]),
        compiler_params=pltpu.CompilerParams(
            dimension_semantics=("parallel",),
            vmem_limit_bytes=_vmem_limit(blk_a, tmp_a)),
        cost_estimate=pl.CostEstimate(
            flops=down_flops, transcendentals=0,
            bytes_accessed=4 * (xs.size + n * spatial * c_in) + 2 * w_down_f.size),
    )(xs, w_down_f)

    # ---- BatchNorm3d(inner_nc) from the fused per-batch partial sums (biased
    #      variance, matching PyTorch training-mode normalization).
    cnt1 = n * spatial
    mean1 = jnp.sum(stats1[:, 0, :cu], axis=0) / cnt1
    var1 = jnp.maximum(jnp.sum(stats1[:, 1, :cu], axis=0) / cnt1 - mean1 * mean1, 0.0)
    scale1 = gamma1 / jnp.sqrt(var1 + _EPS)
    shift1 = beta1 - mean1 * scale1
    scale1p = jnp.zeros((1, c_in), jnp.float32).at[0, :cu].set(scale1)
    shift1p = jnp.zeros((1, c_in), jnp.float32).at[0, :cu].set(shift1)

    h_cl = h_pre.reshape(n, do, ho, wo, c_in)                   # row-major, free
    w_up_f = _fold_up_weight(w_up, c_in, n_up)                  # (27*c_in, n_up)

    up_flops = 2 * n * spatial * 27 * c_in * n_up
    blk_b = (spatial * c_in * 4 + 2 * c_in * 4
             + 27 * c_in * n_up * 2 + spatial * n_up * 4 + 2 * n_up * 4)
    tmp_b = (spatial * 27 * c_in * 2 + spatial * n_up * 4
             + (do + 2) * (ho + 2) * (wo + 2) * c_in * 4)
    u_pre, stats2 = pl.pallas_call(
        functools.partial(_up_conv_kernel, Di=do, Hi=ho, Wi=wo),
        out_shape=(jax.ShapeDtypeStruct((n, spatial, n_up), jnp.float32),
                   jax.ShapeDtypeStruct((n, 2, n_up), jnp.float32)),
        grid_spec=pltpu.PrefetchScalarGridSpec(
            num_scalar_prefetch=0,
            grid=(n,),
            in_specs=[
                pl.BlockSpec((1, do, ho, wo, c_in), lambda b: (b, 0, 0, 0, 0)),
                pl.BlockSpec((1, c_in), lambda b: (0, 0)),
                pl.BlockSpec((1, c_in), lambda b: (0, 0)),
                pl.BlockSpec((27 * c_in, n_up), lambda b: (0, 0)),
            ],
            out_specs=[
                pl.BlockSpec((1, spatial, n_up), lambda b: (b, 0, 0)),
                pl.BlockSpec((1, 2, n_up), lambda b: (b, 0, 0)),
            ],
            scratch_shapes=[pltpu.VMEM((do + 2, ho + 2, wo + 2, c_in),
                                       jnp.float32)]),
        compiler_params=pltpu.CompilerParams(
            # "arbitrary": the persistent hz scratch is zero-filled only at grid
            # step 0, which requires one core to execute the whole grid.
            dimension_semantics=("arbitrary",),
            vmem_limit_bytes=_vmem_limit(blk_b, tmp_b)),
        cost_estimate=pl.CostEstimate(
            flops=up_flops, transcendentals=0,
            bytes_accessed=4 * n * spatial * (c_in + n_up) + 2 * w_up_f.size),
    )(h_cl, scale1p, shift1p, w_up_f)

    # ---- BatchNorm3d(outer_nc) from the fused per-batch, per-parity partials.
    cnt2 = n * d * h * w
    sum2 = jnp.sum(stats2[:, 0, :8 * co], axis=0).reshape(8, co).sum(axis=0)
    sq2 = jnp.sum(stats2[:, 1, :8 * co], axis=0).reshape(8, co).sum(axis=0)
    mean2 = sum2 / cnt2
    var2 = jnp.maximum(sq2 / cnt2 - mean2 * mean2, 0.0)
    scale2 = gamma2 / jnp.sqrt(var2 + _EPS)
    shift2 = beta2 - mean2 * scale2

    # ---- BN2-apply + ReLU on the lane-packed parities, depth-to-space, back to
    #      NCDHW, skip concat.
    up = u_pre[..., :8 * co] * jnp.tile(scale2, 8) + jnp.tile(shift2, 8)
    up = jnp.maximum(up, 0.0)
    up = up.reshape(n, do, ho, wo, 2, 2, 2, co)
    up = jnp.transpose(up, (0, 1, 4, 2, 5, 3, 6, 7)).reshape(n, d, h, w, co)
    up_ncdhw = jnp.transpose(up, (0, 4, 1, 2, 3))
    return jnp.concatenate([x, up_ncdhw], axis=1)


# ---------------------------------------------------------------------------
# Pure-JAX f32 reference (lax convolutions) for correctness checking.
# ---------------------------------------------------------------------------
def _reference_forward(x, w_down, gamma1, beta1, w_up, gamma2, beta2):
    xp = jnp.pad(x, ((0, 0), (0, 0), (1, 1), (1, 1), (1, 1)), mode="edge")
    hdn = jax.lax.conv_general_dilated(
        xp, w_down, window_strides=(2, 2, 2), padding="VALID",
        dimension_numbers=("NCDHW", "OIDHW", "NCDHW"))
    m1 = hdn.mean(axis=(0, 2, 3, 4), keepdims=True)
    v1 = hdn.var(axis=(0, 2, 3, 4), keepdims=True)
    hdn = (hdn - m1) / jnp.sqrt(v1 + _EPS)
    hdn = hdn * gamma1.reshape(1, -1, 1, 1, 1) + beta1.reshape(1, -1, 1, 1, 1)
    hdn = jnp.where(hdn >= 0, hdn, _LEAKY_SLOPE * hdn)

    # ConvTranspose3d(k=4, s=2, p=1)  ==  lhs-dilated conv with the flipped kernel.
    w_t = jnp.transpose(jnp.flip(w_up, axis=(2, 3, 4)), (1, 0, 2, 3, 4))
    u = jax.lax.conv_general_dilated(
        hdn, w_t, window_strides=(1, 1, 1),
        padding=((2, 2), (2, 2), (2, 2)), lhs_dilation=(2, 2, 2),
        dimension_numbers=("NCDHW", "OIDHW", "NCDHW"))
    m2 = u.mean(axis=(0, 2, 3, 4), keepdims=True)
    v2 = u.var(axis=(0, 2, 3, 4), keepdims=True)
    u = (u - m2) / jnp.sqrt(v2 + _EPS)
    u = u * gamma2.reshape(1, -1, 1, 1, 1) + beta2.reshape(1, -1, 1, 1, 1)
    u = jnp.maximum(u, 0.0)
    return jnp.concatenate([x, u], axis=1)


if __name__ == "__main__":
    N, outer_nc, inner_nc = 2, 4, 8
    D = H = W = 8

    key = jax.random.PRNGKey(0)
    kx, kwd, kwu, kg1, kb1, kg2, kb2 = jax.random.split(key, 7)

    x = jax.random.normal(kx, (N, outer_nc, D, H, W), dtype=jnp.float32)

    # PyTorch-style uniform(-1/sqrt(fan_in), 1/sqrt(fan_in)) conv weights (bias=False).
    bd = 1.0 / ((outer_nc * 4 * 4 * 4) ** 0.5)
    w_down = jax.random.uniform(kwd, (inner_nc, outer_nc, 4, 4, 4),
                                jnp.float32, -bd, bd)
    bu = 1.0 / ((inner_nc * 4 * 4 * 4) ** 0.5)
    w_up = jax.random.uniform(kwu, (inner_nc, outer_nc, 4, 4, 4),
                              jnp.float32, -bu, bu)

    # Non-trivial BatchNorm affine params so the norm path is actually exercised.
    gamma1 = 1.0 + 0.1 * jax.random.normal(kg1, (inner_nc,), jnp.float32)
    beta1 = 0.1 * jax.random.normal(kb1, (inner_nc,), jnp.float32)
    gamma2 = 1.0 + 0.1 * jax.random.normal(kg2, (outer_nc,), jnp.float32)
    beta2 = 0.1 * jax.random.normal(kb2, (outer_nc,), jnp.float32)

    out = unet_skip_block3d(x, w_down, gamma1, beta1, w_up, gamma2, beta2)
    out = jax.block_until_ready(out)

    ref = _reference_forward(x, w_down, gamma1, beta1, w_up, gamma2, beta2)
    assert out.shape == (N, 2 * outer_nc, D, H, W), out.shape
    # bf16 MXU operands (f32 accumulation) vs f32 reference -> relaxed tolerance;
    # structural/index bugs would produce O(1) errors and still be caught.
    assert jnp.allclose(out, ref, atol=5e-2, rtol=5e-2), float(
        jnp.max(jnp.abs(out - ref)))

    print("KERNEL_OK")
</pallas_src>

<mosaic_0001>
module attributes {stable_mosaic.version = 11 : i64} {
  func.func @_down_conv_kernel(%arg0: i32, %arg1: memref<1x5x5x5x128xf32, #tpu.memory_space<vmem>>, %arg2: memref<1024x128xbf16, #tpu.memory_space<vmem>>, %arg3: memref<1x64x128xf32, #tpu.memory_space<vmem>>, %arg4: memref<1x2x128xf32, #tpu.memory_space<vmem>>) attributes {dimension_semantics = [#tpu.dimension_semantics<parallel>], iteration_bounds = array<i64: 2>, scalar_prefetch = 0 : i64, scratch_operands = 0 : i64, tpu.core_type = #tpu.core_type<tc>, window_params = [{transform_indices = @transform_0, window_bounds = array<i64: 1, 5, 5, 5, 128>}, {pipeline_mode = #tpu.pipeline_mode<synchronous>, transform_indices = @transform_1, window_bounds = array<i64: 1024, 128>}, {transform_indices = @transform_2, window_bounds = array<i64: 1, 64, 128>}, {transform_indices = @transform_3, window_bounds = array<i64: 1, 2, 128>}]} {
    %c0 = arith.constant 0 : index
    %c0_0 = arith.constant 0 : index
    %c0_1 = arith.constant 0 : index
    %c0_2 = arith.constant 0 : index
    %c0_3 = arith.constant 0 : index
    %0 = vector.load %arg1[%c0, %c0_0, %c0_1, %c0_2, %c0_3] : memref<1x5x5x5x128xf32, #tpu.memory_space<vmem>>, vector<1x5x5x5x128xf32>
    %1 = vector.shape_cast %0 : vector<1x5x5x5x128xf32> to vector<5x5x5x128xf32>
    %2 = vector.extract_strided_slice %1 {offsets = [0, 0, 0, 0], sizes = [4, 4, 4, 128], strides = [1, 1, 1, 1]} : vector<5x5x5x128xf32> to vector<4x4x4x128xf32>
    %3 = arith.truncf %2 : vector<4x4x4x128xf32> to vector<4x4x4x128xbf16>
    %4 = vector.extract_strided_slice %1 {offsets = [0, 0, 1, 0], sizes = [4, 4, 4, 128], strides = [1, 1, 1, 1]} : vector<5x5x5x128xf32> to vector<4x4x4x128xf32>
    %5 = arith.truncf %4 : vector<4x4x4x128xf32> to vector<4x4x4x128xbf16>
    %6 = vector.extract_strided_slice %1 {offsets = [0, 1, 0, 0], sizes = [4, 4, 4, 128], strides = [1, 1, 1, 1]} : vector<5x5x5x128xf32> to vector<4x4x4x128xf32>
    %7 = arith.truncf %6 : vector<4x4x4x128xf32> to vector<4x4x4x128xbf16>
    %8 = vector.extract_strided_slice %1 {offsets = [0, 1, 1, 0], sizes = [4, 4, 4, 128], strides = [1, 1, 1, 1]} : vector<5x5x5x128xf32> to vector<4x4x4x128xf32>
    %9 = arith.truncf %8 : vector<4x4x4x128xf32> to vector<4x4x4x128xbf16>
    %10 = vector.extract_strided_slice %1 {offsets = [1, 0, 0, 0], sizes = [4, 4, 4, 128], strides = [1, 1, 1, 1]} : vector<5x5x5x128xf32> to vector<4x4x4x128xf32>
    %11 = arith.truncf %10 : vector<4x4x4x128xf32> to vector<4x4x4x128xbf16>
    %12 = vector.extract_strided_slice %1 {offsets = [1, 0, 1, 0], sizes = [4, 4, 4, 128], strides = [1, 1, 1, 1]} : vector<5x5x5x128xf32> to vector<4x4x4x128xf32>
    %13 = arith.truncf %12 : vector<4x4x4x128xf32> to vector<4x4x4x128xbf16>
    %14 = vector.extract_strided_slice %1 {offsets = [1, 1, 0, 0], sizes = [4, 4, 4, 128], strides = [1, 1, 1, 1]} : vector<5x5x5x128xf32> to vector<4x4x4x128xf32>
    %15 = arith.truncf %14 : vector<4x4x4x128xf32> to vector<4x4x4x128xbf16>
    %16 = vector.extract_strided_slice %1 {offsets = [1, 1, 1, 0], sizes = [4, 4, 4, 128], strides = [1, 1, 1, 1]} : vector<5x5x5x128xf32> to vector<4x4x4x128xf32>
    %17 = arith.truncf %16 : vector<4x4x4x128xf32> to vector<4x4x4x128xbf16>
    %18 = tpu.concatenate %3, %5, %7, %9, %11, %13, %15, %17 in 3 : vector<4x4x4x128xbf16>, vector<4x4x4x128xbf16>, vector<4x4x4x128xbf16>, vector<4x4x4x128xbf16>, vector<4x4x4x128xbf16>, vector<4x4x4x128xbf16>, vector<4x4x4x128xbf16>, vector<4x4x4x128xbf16> -> vector<4x4x4x1024xbf16>
    %19 = vector.shape_cast %18 : vector<4x4x4x1024xbf16> to vector<64x1024xbf16>
    %c0_4 = arith.constant 0 : index
    %c0_5 = arith.constant 0 : index
    %20 = vector.load %arg2[%c0_4, %c0_5] : memref<1024x128xbf16, #tpu.memory_space<vmem>>, vector<1024x128xbf16>
    %cst = arith.constant dense<0.000000e+00> : vector<64x128xf32>
    %21 = tpu.matmul %19, %20, %cst {dimension_numbers = #tpu.dot_dimension_numbers<[1], [0], [0], [1], [0, 0, 1, 1], [], []>} : vector<64x1024xbf16>, vector<1024x128xbf16>, vector<64x128xf32> -> vector<64x128xf32>
    %c0_6 = arith.constant 0 : index
    %c0_7 = arith.constant 0 : index
    %c0_8 = arith.constant 0 : index
    %22 = vector.load %arg3[%c0_6, %c0_7, %c0_8] : memref<1x64x128xf32, #tpu.memory_space<vmem>>, vector<1x64x128xf32>
    %23 = vector.shape_cast %22 : vector<1x64x128xf32> to vector<64x128xf32>
    %24 = vector.shape_cast %21 : vector<64x128xf32> to vector<1x64x128xf32>
    tpu.vector_store %arg3[%c0_6, %c0_7, %c0_8], %24 {strides = array<i32>} : memref<1x64x128xf32, #tpu.memory_space<vmem>>, vector<1x64x128xf32>,
    %cst_9 = arith.constant dense<0.000000e+00> : vector<128xf32>
    %25 = vector.multi_reduction <add>, %21, %cst_9 [0] : vector<64x128xf32> to vector<128xf32>
    %26 = vector.shape_cast %25 : vector<128xf32> to vector<1x128xf32>
    %27 = arith.mulf %21, %21 : vector<64x128xf32>
    %cst_10 = arith.constant dense<0.000000e+00> : vector<128xf32>
    %28 = vector.multi_reduction <add>, %27, %cst_10 [0] : vector<64x128xf32> to vector<128xf32>
    %29 = vector.shape_cast %28 : vector<128xf32> to vector<1x128xf32>
    %30 = tpu.concatenate %26, %29 in 0 : vector<1x128xf32>, vector<1x128xf32> -> vector<2x128xf32>
    %c0_11 = arith.constant 0 : index
    %c0_12 = arith.constant 0 : index
    %c0_13 = arith.constant 0 : index
    %31 = vector.load %arg4[%c0_11, %c0_12, %c0_13] : memref<1x2x128xf32, #tpu.memory_space<vmem>>, vector<1x2x128xf32>
    %32 = vector.shape_cast %31 : vector<1x2x128xf32> to vector<2x128xf32>
    %33 = vector.shape_cast %30 : vector<2x128xf32> to vector<1x2x128xf32>
    tpu.vector_store %arg4[%c0_11, %c0_12, %c0_13], %33 {strides = array<i32>} : memref<1x2x128xf32, #tpu.memory_space<vmem>>, vector<1x2x128xf32>,
    return
  }
  func.func @transform_0(%arg0: i32) -> (i32, i32, i32, i32, i32) {
    %c0_i32 = arith.constant 0 : i32
    %c0_i32_0 = arith.constant 0 : i32
    %c0_i32_1 = arith.constant 0 : i32
    %c0_i32_2 = arith.constant 0 : i32
    %c0_i32_3 = arith.constant 0 : i32
    return %arg0, %c0_i32, %c0_i32_0, %c0_i32_1, %c0_i32_2 : i32, i32, i32, i32, i32
  }
  func.func @transform_1(%arg0: i32) -> (i32, i32) {
    %c0_i32 = arith.constant 0 : i32
    %c0_i32_0 = arith.constant 0 : i32
    %c0_i32_1 = arith.constant 0 : i32
    return %c0_i32, %c0_i32_0 : i32, i32
  }
  func.func @transform_2(%arg0: i32) -> (i32, i32, i32) {
    %c0_i32 = arith.constant 0 : i32
    %c0_i32_0 = arith.constant 0 : i32
    %c0_i32_1 = arith.constant 0 : i32
    return %arg0, %c0_i32, %c0_i32_0 : i32, i32, i32
  }
  func.func @transform_3(%arg0: i32) -> (i32, i32, i32) {
    %c0_i32 = arith.constant 0 : i32
    %c0_i32_0 = arith.constant 0 : i32
    %c0_i32_1 = arith.constant 0 : i32
    return %arg0, %c0_i32, %c0_i32_0 : i32, i32, i32
  }
}

module attributes {stable_mosaic.version = 11 : i64} {
  func.func @_up_conv_kernel(%arg0: i32, %arg1: memref<1x4x4x4x128xf32, #tpu.memory_space<vmem>>, %arg2: memref<1x128xf32, #tpu.memory_space<vmem>>, %arg3: memref<1x128xf32, #tpu.memory_space<vmem>>, %arg4: memref<3456x128xbf16, #tpu.memory_space<vmem>>, %arg5: memref<1x64x128xf32, #tpu.memory_space<vmem>>, %arg6: memref<1x2x128xf32, #tpu.memory_space<vmem>>, %arg7: memref<6x6x6x128xf32, #tpu.memory_space<vmem>>) attributes {dimension_semantics = [#tpu.dimension_semantics<arbitrary>], iteration_bounds = array<i64: 2>, scalar_prefetch = 0 : i64, scratch_operands = 1 : i64, tpu.core_type = #tpu.core_type<tc>, window_params = [{transform_indices = @transform_0, window_bounds = array<i64: 1, 4, 4, 4, 128>}, {pipeline_mode = #tpu.pipeline_mode<synchronous>, transform_indices = @transform_1, window_bounds = array<i64: 1, 128>}, {pipeline_mode = #tpu.pipeline_mode<synchronous>, transform_indices = @transform_2, window_bounds = array<i64: 1, 128>}, {pipeline_mode = #tpu.pipeline_mode<synchronous>, transform_indices = @transform_3, window_bounds = array<i64: 3456, 128>}, {transform_indices = @transform_4, window_bounds = array<i64: 1, 64, 128>}, {transform_indices = @transform_5, window_bounds = array<i64: 1, 2, 128>}]} {
    %c0_i32 = arith.constant 0 : i32
    %0 = arith.cmpi eq, %arg0, %c0_i32 : i32
    %1 = arith.extui %0 : i1 to i32
    %c0_i32_0 = arith.constant 0 : i32
    %2 = arith.cmpi ne, %1, %c0_i32_0 : i32
    scf.if %2 {
      %cst_131 = arith.constant 0.000000e+00 : f32
      %93 = vector.broadcast %cst_131 : f32 to vector<6x6x6x128xf32>
      %c0_132 = arith.constant 0 : index
      %c0_133 = arith.constant 0 : index
      %c0_134 = arith.constant 0 : index
      %c0_135 = arith.constant 0 : index
      %94 = vector.load %arg7[%c0_132, %c0_133, %c0_134, %c0_135] : memref<6x6x6x128xf32, #tpu.memory_space<vmem>>, vector<6x6x6x128xf32>
      tpu.vector_store %arg7[%c0_132, %c0_133, %c0_134, %c0_135], %93 {strides = array<i32>} : memref<6x6x6x128xf32, #tpu.memory_space<vmem>>, vector<6x6x6x128xf32>,
    } else {
    }
    %c0 = arith.constant 0 : index
    %c0_1 = arith.constant 0 : index
    %3 = vector.load %arg2[%c0, %c0_1] : memref<1x128xf32, #tpu.memory_space<vmem>>, vector<1x128xf32>
    %4 = vector.shape_cast %3 : vector<1x128xf32> to vector<128xf32>
    %c0_2 = arith.constant 0 : index
    %c0_3 = arith.constant 0 : index
    %5 = vector.load %arg3[%c0_2, %c0_3] : memref<1x128xf32, #tpu.memory_space<vmem>>, vector<1x128xf32>
    %6 = vector.shape_cast %5 : vector<1x128xf32> to vector<128xf32>
    %c0_4 = arith.constant 0 : index
    %c0_5 = arith.constant 0 : index
    %c0_6 = arith.constant 0 : index
    %c0_7 = arith.constant 0 : index
    %c0_8 = arith.constant 0 : index
    %7 = vector.load %arg1[%c0_4, %c0_5, %c0_6, %c0_7, %c0_8] : memref<1x4x4x4x128xf32, #tpu.memory_space<vmem>>, vector<1x4x4x4x128xf32>
    %8 = vector.shape_cast %7 : vector<1x4x4x4x128xf32> to vector<4x4x4x128xf32>
    %9 = vector.shape_cast %4 : vector<128xf32> to vector<1x1x1x128xf32>
    %10 = vector.broadcast %9 : vector<1x1x1x128xf32> to vector<4x4x4x128xf32>
    %11 = arith.mulf %8, %10 : vector<4x4x4x128xf32>
    %12 = vector.shape_cast %6 : vector<128xf32> to vector<1x1x1x128xf32>
    %13 = vector.broadcast %12 : vector<1x1x1x128xf32> to vector<4x4x4x128xf32>
    %14 = arith.addf %11, %13 : vector<4x4x4x128xf32>
    %cst = arith.constant 0.000000e+00 : f32
    %15 = vector.broadcast %cst : f32 to vector<4x4x4x128xf32>
    %16 = arith.cmpf oge, %14, %15 : vector<4x4x4x128xf32>
    %cst_9 = arith.constant 2.000000e-01 : f32
    %17 = vector.broadcast %cst_9 : f32 to vector<4x4x4x128xf32>
    %18 = arith.mulf %17, %14 : vector<4x4x4x128xf32>
    %19 = arith.select %16, %14, %18 : vector<4x4x4x128xi1>, vector<4x4x4x128xf32>
    %c1 = arith.constant 1 : index
    %c1_10 = arith.constant 1 : index
    %c1_11 = arith.constant 1 : index
    %c0_12 = arith.constant 0 : index
    %20 = vector.load %arg7[%c1, %c1_10, %c1_11, %c0_12] : memref<6x6x6x128xf32, #tpu.memory_space<vmem>>, vector<4x4x4x128xf32>
    tpu.vector_store %arg7[%c1, %c1_10, %c1_11, %c0_12], %19 {strides = array<i32>} : memref<6x6x6x128xf32, #tpu.memory_space<vmem>>, vector<4x4x4x128xf32>,
    %c0_13 = arith.constant 0 : index
    %c0_14 = arith.constant 0 : index
    %c0_15 = arith.constant 0 : index
    %c0_16 = arith.constant 0 : index
    %21 = vector.load %arg7[%c0_13, %c0_14, %c0_15, %c0_16] : memref<6x6x6x128xf32, #tpu.memory_space<vmem>>, vector<4x4x4x128xf32>
    %22 = arith.truncf %21 : vector<4x4x4x128xf32> to vector<4x4x4x128xbf16>
    %c0_17 = arith.constant 0 : index
    %c0_18 = arith.constant 0 : index
    %c1_19 = arith.constant 1 : index
    %c0_20 = arith.constant 0 : index
    %23 = vector.load %arg7[%c0_17, %c0_18, %c1_19, %c0_20] : memref<6x6x6x128xf32, #tpu.memory_space<vmem>>, vector<4x4x4x128xf32>
    %24 = arith.truncf %23 : vector<4x4x4x128xf32> to vector<4x4x4x128xbf16>
    %c0_21 = arith.constant 0 : index
    %c0_22 = arith.constant 0 : index
    %c2 = arith.constant 2 : index
    %c0_23 = arith.constant 0 : index
    %25 = vector.load %arg7[%c0_21, %c0_22, %c2, %c0_23] : memref<6x6x6x128xf32, #tpu.memory_space<vmem>>, vector<4x4x4x128xf32>
    %26 = arith.truncf %25 : vector<4x4x4x128xf32> to vector<4x4x4x128xbf16>
    %c0_24 = arith.constant 0 : index
    %c1_25 = arith.constant 1 : index
    %c0_26 = arith.constant 0 : index
    %c0_27 = arith.constant 0 : index
    %27 = vector.load %arg7[%c0_24, %c1_25, %c0_26, %c0_27] : memref<6x6x6x128xf32, #tpu.memory_space<vmem>>, vector<4x4x4x128xf32>
    %28 = arith.truncf %27 : vector<4x4x4x128xf32> to vector<4x4x4x128xbf16>
    %c0_28 = arith.constant 0 : index
    %c1_29 = arith.constant 1 : index
    %c1_30 = arith.constant 1 : index
    %c0_31 = arith.constant 0 : index
    %29 = vector.load %arg7[%c0_28, %c1_29, %c1_30, %c0_31] : memref<6x6x6x128xf32, #tpu.memory_space<vmem>>, vector<4x4x4x128xf32>
    %30 = arith.truncf %29 : vector<4x4x4x128xf32> to vector<4x4x4x128xbf16>
    %c0_32 = arith.constant 0 : index
    %c1_33 = arith.constant 1 : index
    %c2_34 = arith.constant 2 : index
    %c0_35 = arith.constant 0 : index
    %31 = vector.load %arg7[%c0_32, %c1_33, %c2_34, %c0_35] : memref<6x6x6x128xf32, #tpu.memory_space<vmem>>, vector<4x4x4x128xf32>
    %32 = arith.truncf %31 : vector<4x4x4x128xf32> to vector<4x4x4x128xbf16>
    %c0_36 = arith.constant 0 : index
    %c2_37 = arith.constant 2 : index
    %c0_38 = arith.constant 0 : index
    %c0_39 = arith.constant 0 : index
    %33 = vector.load %arg7[%c0_36, %c2_37, %c0_38, %c0_39] : memref<6x6x6x128xf32, #tpu.memory_space<vmem>>, vector<4x4x4x128xf32>
    %34 = arith.truncf %33 : vector<4x4x4x128xf32> to vector<4x4x4x128xbf16>
    %c0_40 = arith.constant 0 : index
    %c2_41 = arith.constant 2 : index
    %c1_42 = arith.constant 1 : index
    %c0_43 = arith.constant 0 : index
    %35 = vector.load %arg7[%c0_40, %c2_41, %c1_42, %c0_43] : memref<6x6x6x128xf32, #tpu.memory_space<vmem>>, vector<4x4x4x128xf32>
    %36 = arith.truncf %35 : vector<4x4x4x128xf32> to vector<4x4x4x128xbf16>
    %c0_44 = arith.constant 0 : index
    %c2_45 = arith.constant 2 : index
    %c2_46 = arith.constant 2 : index
    %c0_47 = arith.constant 0 : index
    %37 = vector.load %arg7[%c0_44, %c2_45, %c2_46, %c0_47] : memref<6x6x6x128xf32, #tpu.memory_space<vmem>>, vector<4x4x4x128xf32>
    %38 = arith.truncf %37 : vector<4x4x4x128xf32> to vector<4x4x4x128xbf16>
    %c1_48 = arith.constant 1 : index
    %c0_49 = arith.constant 0 : index
    %c0_50 = arith.constant 0 : index
    %c0_51 = arith.constant 0 : index
    %39 = vector.load %arg7[%c1_48, %c0_49, %c0_50, %c0_51] : memref<6x6x6x128xf32, #tpu.memory_space<vmem>>, vector<4x4x4x128xf32>
    %40 = arith.truncf %39 : vector<4x4x4x128xf32> to vector<4x4x4x128xbf16>
    %c1_52 = arith.constant 1 : index
    %c0_53 = arith.constant 0 : index
    %c1_54 = arith.constant 1 : index
    %c0_55 = arith.constant 0 : index
    %41 = vector.load %arg7[%c1_52, %c0_53, %c1_54, %c0_55] : memref<6x6x6x128xf32, #tpu.memory_space<vmem>>, vector<4x4x4x128xf32>
    %42 = arith.truncf %41 : vector<4x4x4x128xf32> to vector<4x4x4x128xbf16>
    %c1_56 = arith.constant 1 : index
    %c0_57 = arith.constant 0 : index
    %c2_58 = arith.constant 2 : index
    %c0_59 = arith.constant 0 : index
    %43 = vector.load %arg7[%c1_56, %c0_57, %c2_58, %c0_59] : memref<6x6x6x128xf32, #tpu.memory_space<vmem>>, vector<4x4x4x128xf32>
    %44 = arith.truncf %43 : vector<4x4x4x128xf32> to vector<4x4x4x128xbf16>
    %c1_60 = arith.constant 1 : index
    %c1_61 = arith.constant 1 : index
    %c0_62 = arith.constant 0 : index
    %c0_63 = arith.constant 0 : index
    %45 = vector.load %arg7[%c1_60, %c1_61, %c0_62, %c0_63] : memref<6x6x6x128xf32, #tpu.memory_space<vmem>>, vector<4x4x4x128xf32>
    %46 = arith.truncf %45 : vector<4x4x4x128xf32> to vector<4x4x4x128xbf16>
    %c1_64 = arith.constant 1 : index
    %c1_65 = arith.constant 1 : index
    %c1_66 = arith.constant 1 : index
    %c0_67 = arith.constant 0 : index
    %47 = vector.load %arg7[%c1_64, %c1_65, %c1_66, %c0_67] : memref<6x6x6x128xf32, #tpu.memory_space<vmem>>, vector<4x4x4x128xf32>
    %48 = arith.truncf %47 : vector<4x4x4x128xf32> to vector<4x4x4x128xbf16>
    %c1_68 = arith.constant 1 : index
    %c1_69 = arith.constant 1 : index
    %c2_70 = arith.constant 2 : index
    %c0_71 = arith.constant 0 : index
    %49 = vector.load %arg7[%c1_68, %c1_69, %c2_70, %c0_71] : memref<6x6x6x128xf32, #tpu.memory_space<vmem>>, vector<4x4x4x128xf32>
    %50 = arith.truncf %49 : vector<4x4x4x128xf32> to vector<4x4x4x128xbf16>
    %c1_72 = arith.constant 1 : index
    %c2_73 = arith.constant 2 : index
    %c0_74 = arith.constant 0 : index
    %c0_75 = arith.constant 0 : index
    %51 = vector.load %arg7[%c1_72, %c2_73, %c0_74, %c0_75] : memref<6x6x6x128xf32, #tpu.memory_space<vmem>>, vector<4x4x4x128xf32>
    %52 = arith.truncf %51 : vector<4x4x4x128xf32> to vector<4x4x4x128xbf16>
    %c1_76 = arith.constant 1 : index
    %c2_77 = arith.constant 2 : index
    %c1_78 = arith.constant 1 : index
    %c0_79 = arith.constant 0 : index
    %53 = vector.load %arg7[%c1_76, %c2_77, %c1_78, %c0_79] : memref<6x6x6x128xf32, #tpu.memory_space<vmem>>, vector<4x4x4x128xf32>
    %54 = arith.truncf %53 : vector<4x4x4x128xf32> to vector<4x4x4x128xbf16>
    %c1_80 = arith.constant 1 : index
    %c2_81 = arith.constant 2 : index
    %c2_82 = arith.constant 2 : index
    %c0_83 = arith.constant 0 : index
    %55 = vector.load %arg7[%c1_80, %c2_81, %c2_82, %c0_83] : memref<6x6x6x128xf32, #tpu.memory_space<vmem>>, vector<4x4x4x128xf32>
    %56 = arith.truncf %55 : vector<4x4x4x128xf32> to vector<4x4x4x128xbf16>
    %c2_84 = arith.constant 2 : index
    %c0_85 = arith.constant 0 : index
    %c0_86 = arith.constant 0 : index
    %c0_87 = arith.constant 0 : index
    %57 = vector.load %arg7[%c2_84, %c0_85, %c0_86, %c0_87] : memref<6x6x6x128xf32, #tpu.memory_space<vmem>>, vector<4x4x4x128xf32>
    %58 = arith.truncf %57 : vector<4x4x4x128xf32> to vector<4x4x4x128xbf16>
    %c2_88 = arith.constant 2 : index
    %c0_89 = arith.constant 0 : index
    %c1_90 = arith.constant 1 : index
    %c0_91 = arith.constant 0 : index
    %59 = vector.load %arg7[%c2_88, %c0_89, %c1_90, %c0_91] : memref<6x6x6x128xf32, #tpu.memory_space<vmem>>, vector<4x4x4x128xf32>
    %60 = arith.truncf %59 : vector<4x4x4x128xf32> to vector<4x4x4x128xbf16>
    %c2_92 = arith.constant 2 : index
    %c0_93 = arith.constant 0 : index
    %c2_94 = arith.constant 2 : index
    %c0_95 = arith.constant 0 : index
    %61 = vector.load %arg7[%c2_92, %c0_93, %c2_94, %c0_95] : memref<6x6x6x128xf32, #tpu.memory_space<vmem>>, vector<4x4x4x128xf32>
    %62 = arith.truncf %61 : vector<4x4x4x128xf32> to vector<4x4x4x128xbf16>
    %c2_96 = arith.constant 2 : index
    %c1_97 = arith.constant 1 : index
    %c0_98 = arith.constant 0 : index
    %c0_99 = arith.constant 0 : index
    %63 = vector.load %arg7[%c2_96, %c1_97, %c0_98, %c0_99] : memref<6x6x6x128xf32, #tpu.memory_space<vmem>>, vector<4x4x4x128xf32>
    %64 = arith.truncf %63 : vector<4x4x4x128xf32> to vector<4x4x4x128xbf16>
    %c2_100 = arith.constant 2 : index
    %c1_101 = arith.constant 1 : index
    %c1_102 = arith.constant 1 : index
    %c0_103 = arith.constant 0 : index
    %65 = vector.load %arg7[%c2_100, %c1_101, %c1_102, %c0_103] : memref<6x6x6x128xf32, #tpu.memory_space<vmem>>, vector<4x4x4x128xf32>
    %66 = arith.truncf %65 : vector<4x4x4x128xf32> to vector<4x4x4x128xbf16>
    %c2_104 = arith.constant 2 : index
    %c1_105 = arith.constant 1 : index
    %c2_106 = arith.constant 2 : index
    %c0_107 = arith.constant 0 : index
    %67 = vector.load %arg7[%c2_104, %c1_105, %c2_106, %c0_107] : memref<6x6x6x128xf32, #tpu.memory_space<vmem>>, vector<4x4x4x128xf32>
    %68 = arith.truncf %67 : vector<4x4x4x128xf32> to vector<4x4x4x128xbf16>
    %c2_108 = arith.constant 2 : index
    %c2_109 = arith.constant 2 : index
    %c0_110 = arith.constant 0 : index
    %c0_111 = arith.constant 0 : index
    %69 = vector.load %arg7[%c2_108, %c2_109, %c0_110, %c0_111] : memref<6x6x6x128xf32, #tpu.memory_space<vmem>>, vector<4x4x4x128xf32>
    %70 = arith.truncf %69 : vector<4x4x4x128xf32> to vector<4x4x4x128xbf16>
    %c2_112 = arith.constant 2 : index
    %c2_113 = arith.constant 2 : index
    %c1_114 = arith.constant 1 : index
    %c0_115 = arith.constant 0 : index
    %71 = vector.load %arg7[%c2_112, %c2_113, %c1_114, %c0_115] : memref<6x6x6x128xf32, #tpu.memory_space<vmem>>, vector<4x4x4x128xf32>
    %72 = arith.truncf %71 : vector<4x4x4x128xf32> to vector<4x4x4x128xbf16>
    %c2_116 = arith.constant 2 : index
    %c2_117 = arith.constant 2 : index
    %c2_118 = arith.constant 2 : index
    %c0_119 = arith.constant 0 : index
    %73 = vector.load %arg7[%c2_116, %c2_117, %c2_118, %c0_119] : memref<6x6x6x128xf32, #tpu.memory_space<vmem>>, vector<4x4x4x128xf32>
    %74 = arith.truncf %73 : vector<4x4x4x128xf32> to vector<4x4x4x128xbf16>
    %75 = tpu.concatenate %22, %24, %26, %28, %30, %32, %34, %36, %38, %40, %42, %44, %46, %48, %50, %52 in 3 : vector<4x4x4x128xbf16>, vector<4x4x4x128xbf16>, vector<4x4x4x128xbf16>, vector<4x4x4x128xbf16>, vector<4x4x4x128xbf16>, vector<4x4x4x128xbf16>, vector<4x4x4x128xbf16>, vector<4x4x4x128xbf16>, vector<4x4x4x128xbf16>, vector<4x4x4x128xbf16>, vector<4x4x4x128xbf16>, vector<4x4x4x128xbf16>, vector<4x4x4x128xbf16>, vector<4x4x4x128xbf16>, vector<4x4x4x128xbf16>, vector<4x4x4x128xbf16> -> vector<4x4x4x2048xbf16>
    %76 = tpu.concatenate %54, %56, %58, %60, %62, %64, %66, %68, %70, %72, %74 in 3 : vector<4x4x4x128xbf16>, vector<4x4x4x128xbf16>, vector<4x4x4x128xbf16>, vector<4x4x4x128xbf16>, vector<4x4x4x128xbf16>, vector<4x4x4x128xbf16>, vector<4x4x4x128xbf16>, vector<4x4x4x128xbf16>, vector<4x4x4x128xbf16>, vector<4x4x4x128xbf16>, vector<4x4x4x128xbf16> -> vector<4x4x4x1408xbf16>
    %77 = tpu.concatenate %75, %76 in 3 : vector<4x4x4x2048xbf16>, vector<4x4x4x1408xbf16> -> vector<4x4x4x3456xbf16>
    %78 = vector.shape_cast %77 : vector<4x4x4x3456xbf16> to vector<64x3456xbf16>
    %c0_120 = arith.constant 0 : index
    %c0_121 = arith.constant 0 : index
    %79 = vector.load %arg4[%c0_120, %c0_121] : memref<3456x128xbf16, #tpu.memory_space<vmem>>, vector<3456x128xbf16>
    %cst_122 = arith.constant dense<0.000000e+00> : vector<64x128xf32>
    %80 = tpu.matmul %78, %79, %cst_122 {dimension_numbers = #tpu.dot_dimension_numbers<[1], [0], [0], [1], [0, 0, 1, 1], [], []>} : vector<64x3456xbf16>, vector<3456x128xbf16>, vector<64x128xf32> -> vector<64x128xf32>
    %c0_123 = arith.constant 0 : index
    %c0_124 = arith.constant 0 : index
    %c0_125 = arith.constant 0 : index
    %81 = vector.load %arg5[%c0_123, %c0_124, %c0_125] : memref<1x64x128xf32, #tpu.memory_space<vmem>>, vector<1x64x128xf32>
    %82 = vector.shape_cast %81 : vector<1x64x128xf32> to vector<64x128xf32>
    %83 = vector.shape_cast %80 : vector<64x128xf32> to vector<1x64x128xf32>
    tpu.vector_store %arg5[%c0_123, %c0_124, %c0_125], %83 {strides = array<i32>} : memref<1x64x128xf32, #tpu.memory_space<vmem>>, vector<1x64x128xf32>,
    %cst_126 = arith.constant dense<0.000000e+00> : vector<128xf32>
    %84 = vector.multi_reduction <add>, %80, %cst_126 [0] : vector<64x128xf32> to vector<128xf32>
    %85 = vector.shape_cast %84 : vector<128xf32> to vector<1x128xf32>
    %86 = arith.mulf %80, %80 : vector<64x128xf32>
    %cst_127 = arith.constant dense<0.000000e+00> : vector<128xf32>
    %87 = vector.multi_reduction <add>, %86, %cst_127 [0] : vector<64x128xf32> to vector<128xf32>
    %88 = vector.shape_cast %87 : vector<128xf32> to vector<1x128xf32>
    %89 = tpu.concatenate %85, %88 in 0 : vector<1x128xf32>, vector<1x128xf32> -> vector<2x128xf32>
    %c0_128 = arith.constant 0 : index
    %c0_129 = arith.constant 0 : index
    %c0_130 = arith.constant 0 : index
    %90 = vector.load %arg6[%c0_128, %c0_129, %c0_130] : memref<1x2x128xf32, #tpu.memory_space<vmem>>, vector<1x2x128xf32>
    %91 = vector.shape_cast %90 : vector<1x2x128xf32> to vector<2x128xf32>
    %92 = vector.shape_cast %89 : vector<2x128xf32> to vector<1x2x128xf32>
    tpu.vector_store %arg6[%c0_128, %c0_129, %c0_130], %92 {strides = array<i32>} : memref<1x2x128xf32, #tpu.memory_space<vmem>>, vector<1x2x128xf32>,
    return
  }
  func.func @transform_0(%arg0: i32) -> (i32, i32, i32, i32, i32) {
    %c0_i32 = arith.constant 0 : i32
    %c0_i32_0 = arith.constant 0 : i32
    %c0_i32_1 = arith.constant 0 : i32
    %c0_i32_2 = arith.constant 0 : i32
    %c0_i32_3 = arith.constant 0 : i32
    return %arg0, %c0_i32, %c0_i32_0, %c0_i32_1, %c0_i32_2 : i32, i32, i32, i32, i32
  }
  func.func @transform_1(%arg0: i32) -> (i32, i32) {
    %c0_i32 = arith.constant 0 : i32
    %c0_i32_0 = arith.constant 0 : i32
    %c0_i32_1 = arith.constant 0 : i32
    return %c0_i32, %c0_i32_0 : i32, i32
  }
  func.func @transform_2(%arg0: i32) -> (i32, i32) {
    %c0_i32 = arith.constant 0 : i32
    %c0_i32_0 = arith.constant 0 : i32
    %c0_i32_1 = arith.constant 0 : i32
    return %c0_i32, %c0_i32_0 : i32, i32
  }
  func.func @transform_3(%arg0: i32) -> (i32, i32) {
    %c0_i32 = arith.constant 0 : i32
    %c0_i32_0 = arith.constant 0 : i32
    %c0_i32_1 = arith.constant 0 : i32
    return %c0_i32, %c0_i32_0 : i32, i32
  }
  func.func @transform_4(%arg0: i32) -> (i32, i32, i32) {
    %c0_i32 = arith.constant 0 : i32
    %c0_i32_0 = arith.constant 0 : i32
    %c0_i32_1 = arith.constant 0 : i32
    return %arg0, %c0_i32, %c0_i32_0 : i32, i32, i32
  }
  func.func @transform_5(%arg0: i32) -> (i32, i32, i32) {
    %c0_i32 = arith.constant 0 : i32
    %c0_i32_0 = arith.constant 0 : i32
    %c0_i32_1 = arith.constant 0 : i32
    return %arg0, %c0_i32, %c0_i32_0 : i32, i32, i32
  }
}

</mosaic_0001>

<bundles_post_ra>
// kernel: unet_skip_block3d.2
= control target key start
LH: loop header
LB: loop body
LE: loop exit
PB: predicated region body
PF: predicated region fallthrough
CT: control target
= control target key end

     0   :  { %s2032_s12 = smov 0   ;;  %s2524_s0 = inlined_call_operand.vmem [shape: f32[2,5,5,5,128], index: 0, kind: input, shape index: {}]   ;;  %s2525_s1 = inlined_call_operand.vmem [shape: bf16[1024,128], index: 1, kind: input, shape index: {}]   ;;  %s2526_s2 = inlined_call_operand.vmem [shape: f32[2,64,128], index: 2, kind: output, shape index: {0}]   ;;  %s2527_s3 = inlined_call_operand.vmem [shape: f32[2,2,128], index: 3, kind: output, shape index: {1}]  }
   0x1 LB: > { %s1663_s13 = sadd.s32 4294967295, %s2010_s12   ;;  %p1667_p0 = scmp.ge.s32.totalorder %s2010_s12, 1  ;;  %s2010_s12 = sphi %s2032_s12, %s14_s12  }
   0x2   : > { %p140_p1 = scmp.lt.s32.totalorder %s2010_s12, 3 }
   0x4   : > { %p141_p2 = pnand %p1667_p0, %p140_p1 }
   0x5   : > { %p168_p3 = scmp.lt.s32.totalorder (!%p141_p2), %s1663_s13, 1 }
   0x6   : > { %144 = sbr.rel (%p141_p2) target bundleno = 325 (0x145), region = 28 }
   0xb   : > { %v1938_v0 = vld [vmem:[%s2525_s1 + $0x38] sm:$0xff]  ;;  %v1937_v4 = vld [vmem:[%s2525_s1 + $0x30] sm:$0xff]  ;;  %s2529_s13 = smov (!%p168_p3, %s1663_s13), 1  ;;  %v1936_v8 = vld [vmem:[%s2525_s1 + $0x28] sm:$0xff]  ;;  %vm542_vm0 = vcmask 1041408   ;;  %vm546_vm1 = vcmask 1045508  }
   0xc   : > { %v1946_v1 = vld [vmem:[%s2525_s1 + $0x78] sm:$0xff]  ;;  %1300 = vmatpush.bf16.msra.mxu0 %v1938_v0  ;;  %v1945_v5 = vld [vmem:[%s2525_s1 + $0x70] sm:$0xff]  ;;  %s1995_s30 = smul.u32 200, %s2529_s13  ;;  %v1944_v9 = vld [vmem:[%s2525_s1 + $0x68] sm:$0xff]  ;;  %vm550_vm2 = vcmask 1043456   ;;  %s1671_s28 = sshll.u32 %s2529_s13, 1 }
   0xd   : > { %v1954_v2 = vld [vmem:[%s2525_s1 + $0xb8] sm:$0xff]  ;;  %1329 = vmatpush.bf16.msra.mxu1 %v1946_v1  ;;  %v1953_v6 = vld [vmem:[%s2525_s1 + $0xb0] sm:$0xff]  ;;  %v1952_v10 = vld [vmem:[%s2525_s1 + $0xa8] sm:$0xff]  ;;  %vm1574_vm3 = vcmask 1040384   ;;  %s181_s4 = scalar_lea.vmem %s2527_s3, %s1671_s28 }
   0xe   : > { %v1962_v3 = vld [vmem:[%s2525_s1 + $0xf8] sm:$0xff]  ;;  %1358 = vmatpush.bf16.msra.mxu2 %v1954_v2  ;;  %v1961_v7 = vld [vmem:[%s2525_s1 + $0xf0] sm:$0xff]  ;;  %v1960_v11 = vld [vmem:[%s2525_s1 + $0xe8] sm:$0xff]  ;;  %s2082_s16 = scalar_lea.vmem %s2524_s0, %s1995_s30 }
   0xf   : > { %1387 = vmatpush.bf16.msra.mxu3 %v1962_v3  ;;  %v1935_v12 = vld [vmem:[%s2525_s1 + $0x20] sm:$0xff]  ;;  %v183_v17 = vld [vmem:[%s2082_s16 + $0x8] sm:$0x1f]  ;;  %v184_v18 = vld [vmem:[%s2082_s16 + $0x10] sm:$0x1f] }
  0x10   : > { %1301 = vmatpush.bf16.msra.mxu0 %v1937_v4  ;;  %v1943_v13 = vld [vmem:[%s2525_s1 + $0x60] sm:$0xff]  ;;  %v185_v19 = vld [vmem:[%s2082_s16 + $0x18] sm:$0x1f]  ;;  %v2103_v22 = vpack.c.bf16 %v183_v17, %v183_v17  ;;  %v2105_v23 = vpack.c.bf16 %v184_v18, %v184_v18  ;;  %v187_v39 = vld [vmem:[%s2082_s16 + $0x28] sm:$0x1f] }
  0x11   : > { %1330 = vmatpush.bf16.msra.mxu1 %v1945_v5  ;;  %v1951_v14 = vld [vmem:[%s2525_s1 + $0xa0] sm:$0xff]  ;;  %v2107_v24 = vpack.c.bf16 %v185_v19, %v185_v19  ;;  %v1934_v27 = vld [vmem:[%s2525_s1 + $0x18] sm:$0xff]  ;;  %v1933_v40 = vld [vmem:[%s2525_s1 + $0x10] sm:$0xff]  ;;  %v2147_v53 = vpack.c.bf16 %v187_v39, %v187_v39 }
  0x12   : > { %1359 = vmatpush.bf16.msra.mxu2 %v1953_v6  ;;  %v1959_v15 = vld [vmem:[%s2525_s1 + $0xe0] sm:$0xff]  ;;  %v1942_v28 = vld [vmem:[%s2525_s1 + $0x58] sm:$0xff]  ;;  %v249_v29 = vunpack.c.l.b16 %v2103_v22  ;;  %v250_v30 = vunpack.c.l.b16 %v2105_v23  ;;  %v483_v32 = vrot.slane %v2103_v22, 4  ;;  %v489_v37 = vrot.slane %v2105_v23, 4  ;;  %v1941_v41 = vld [vmem:[%s2525_s1 + $0x50] sm:$0xff] }
  0x13   : > { %1388 = vmatpush.bf16.msra.mxu3 %v1961_v7  ;;  %v182_v16 = vld [vmem:[%s2082_s16] sm:$0x1f]  ;;  %v251_v31 = vunpack.c.l.b16 %v2107_v24  ;;  %v1950_v33 = vld [vmem:[%s2525_s1 + $0x98] sm:$0xff]  ;;  %v495_v38 = vrot.slane %v2107_v24, 4  ;;  %v1949_v46 = vld [vmem:[%s2525_s1 + $0x90] sm:$0xff]  ;;  %v252_v18 = vunpack.c.l.b16 %v2147_v53 }
  0x14   : > { %1302 = vmatpush.bf16.msra.mxu0 %v1936_v8  ;;  %v2100_v20 = vpack.c.bf16 %v182_v16, %v182_v16  ;;  %v186_v21 = vld [vmem:[%s2082_s16 + $0x20] sm:$0x1f]  ;;  %v1958_v34 = vld [vmem:[%s2525_s1 + $0xd8] sm:$0xff]  ;;  %v265_v42 = vpack.c.b16 %v249_v29, %v249_v29  ;;  %v266_v43 = vpack.c.b16 %v250_v30, %v250_v30  ;;  %v1957_v47 = vld [vmem:[%s2525_s1 + $0xd0] sm:$0xff] }
  0x15   : > { %1331 = vmatpush.bf16.msra.mxu1 %v1944_v9  ;;  %v2109_v25 = vpack.c.bf16 %v186_v21, %v186_v21  ;;  %v267_v44 = vpack.c.b16 %v251_v31, %v251_v31  ;;  %v188_v51 = vld [vmem:[%s2082_s16 + $0x30] sm:$0x1f]  ;;  %v189_v52 = vld [vmem:[%s2082_s16 + $0x38] sm:$0x1f]  ;;  %v190_v58 = vld [vmem:[%s2082_s16 + $0x40] sm:$0x1f] }
  0x16   : > { %1360 = vmatpush.bf16.msra.mxu2 %v1952_v10  ;;  %v248_v26 = vunpack.c.l.b16 %v2100_v20  ;;  %v288_v54 = vshrl.u32 %v265_v42, 16  ;;  %v290_v55 = vshll.u32 %v265_v42, 16  ;;  %v295_v56 = vshrl.u32 %v266_v43, 16  ;;  %v191_v63 = vld [vmem:[%s2082_s16 + $0x48] sm:$0x1f]  ;;  %v1955_v42 = vld [vmem:[%s2525_s1 + $0xc0] sm:$0xff] }
  0x17   : > { %1389 = vmatpush.bf16.msra.mxu3 %v1960_v11  ;;  %v396_v36 = vunpack.c.l.b16 %v2109_v25  ;;  %v501_v45 = vrot.slane %v2109_v25, 4  ;;  %v297_v57 = vshll.u32 %v266_v43, 16  ;;  %v302_v60 = vshrl.u32 %v267_v44, 16  ;;  %v1932_v8 = vld [vmem:[%s2525_s1 + $0x8] sm:$0xff]  ;;  %v1978_v25 = vld [vmem:[%s2525_s1 + $0x178] sm:$0xff] }
  0x18   : > { %1303 = vmatpush.bf16.msra.mxu0 %v1935_v12  ;;  %v264_v35 = vpack.c.b16 %v248_v26, %v248_v26  ;;  %v304_v61 = vshll.u32 %v267_v44, 16  ;;  %v292_v0 = vrot.slane %v290_v55, 1  ;;  %v2151_v3 = vpack.c.bf16 %v188_v51, %v188_v51  ;;  %v1940_v9 = vld [vmem:[%s2525_s1 + $0x48] sm:$0xff] }
  0x19   : > { %1332 = vmatpush.bf16.msra.mxu1 %v1943_v13  ;;  %v400_v50 = vpack.c.b16 %v396_v36, %v396_v36  ;;  %v299_v1 = vrot.slane %v297_v57, 1  ;;  %v2153_v6 = vpack.c.bf16 %v189_v52, %v189_v52  ;;  %v2155_v7 = vpack.c.bf16 %v190_v58, %v190_v58  ;;  %v1985_v52 = vld [vmem:[%s2525_s1 + $0x1b0] sm:$0xff] }
  0x1a   : > { %1361 = vmatpush.bf16.msra.mxu2 %v1951_v14  ;;  %v281_v48 = vshrl.u32 %v264_v35, 16  ;;  %v283_v49 = vshll.u32 %v264_v35, 16  ;;  %v306_v5 = vrot.slane %v304_v61, 1  ;;  %v293_v10 = vor.u32 %v292_v0, %v288_v54  ;;  %v1948_v14 = vld [vmem:[%s2525_s1 + $0x88] sm:$0xff]  ;;  %v1939_v35 = vld [vmem:[%s2525_s1 + $0x40] sm:$0xff]  ;;  %v1969_v54 = vld [vmem:[%s2525_s1 + $0x130] sm:$0xff] }
  0x1b   : > { %1390 = vmatpush.bf16.msra.mxu3 %v1959_v15  ;;  %v405_v62 = vshrl.u32 %v400_v50, 16  ;;  %v407_v2 = vshll.u32 %v400_v50, 16  ;;  %v300_v11 = vor.u32 %v299_v1, %v295_v56  ;;  %v2163_v13 = vpack.c.bf16 %v191_v63, %v191_v63  ;;  %v1956_v15 = vld [vmem:[%s2525_s1 + $0xc8] sm:$0xff]  ;;  %v1993_v58 = vld [vmem:[%s2525_s1 + $0x1f0] sm:$0xff] }
  0x1c   : > { %1304 = vmatpush.bf16.msra.mxu0 %v1934_v27  ;;  %v285_v59 = vrot.slane %v283_v49, 1  ;;  %v307_v16 = vor.u32 %v306_v5, %v302_v60  ;;  %v253_v19 = vunpack.c.l.b16 %v2151_v3  ;;  %v484_v26 = vrot.slane %v293_v10, 2  ;;  %v1977_v5 = vld [vmem:[%s2525_s1 + $0x170] sm:$0xff] }
  0x1d   : > { %1333 = vmatpush.bf16.msra.mxu1 %v1942_v28  ;;  %v409_v12 = vrot.slane %v407_v2, 1  ;;  %v488_v27 = vrot.slane %v293_v10, 6  ;;  %v490_v28 = vrot.slane %v300_v11, 2  ;;  %v494_v29 = vrot.slane %v300_v11, 6 }
  0x1e   : > { %1362 = vmatpush.bf16.msra.mxu2 %v1950_v33  ;;  %v286_v4 = vor.u32 %v285_v59, %v281_v48  ;;  %v496_v30 = vrot.slane %v307_v16, 2  ;;  %v500_v31 = vrot.slane %v307_v16, 6  ;;  %v549_v39 = vsel %vm546_vm1, %v483_v32, %v484_v26  ;;  %v1986_v48 = vld [vmem:[%s2525_s1 + $0x1b8] sm:$0xff] }
  0x1f   : > { %1391 = vmatpush.bf16.msra.mxu3 %v1958_v34  ;;  %v410_v21 = vor.u32 %v409_v12, %v405_v62  ;;  %v1931_v34 = vld [vmem:[%s2525_s1] sm:$0xff]  ;;  %v254_v44 = vunpack.c.l.b16 %v2153_v6  ;;  %v255_v49 = vunpack.c.l.b16 %v2155_v7  ;;  %v269_v51 = vpack.c.b16 %v253_v19, %v253_v19  ;;  %v193_v12 = vld [vmem:[%s2082_s16 + $0x58] sm:$0x1f] }
  0x20   : > { %1305 = vmatpush.bf16.msra.mxu0 %v1933_v40  ;;  %v482_v17 = vrot.slane %v286_v4, 6  ;;  %v561_v40 = vsel %vm542_vm0, %v2103_v22, %v488_v27  ;;  %v575_v22 = vsel %vm542_vm0, %v2105_v23, %v494_v29  ;;  %v1970_v23 = vld [vmem:[%s2525_s1 + $0x138] sm:$0xff]  ;;  %v397_v57 = vunpack.c.l.b16 %v2163_v13  ;;  %v192_v4 = vld [vmem:[%s2082_s16 + $0x50] sm:$0x1f] }
  0x21   : > { %1334 = vmatpush.bf16.msra.mxu1 %v1941_v41  ;;  %v502_v36 = vrot.slane %v410_v21, 2  ;;  %v1947_v41 = vld [vmem:[%s2525_s1 + $0x80] sm:$0xff]  ;;  %v270_v55 = vpack.c.b16 %v254_v44, %v254_v44  ;;  %v271_v56 = vpack.c.b16 %v255_v49, %v255_v49  ;;  %v316_v61 = vshrl.u32 %v269_v51, 16  ;;  %v196_v29 = vld [vmem:[%s2082_s16 + $0x70] sm:$0x1f] }
  0x22   : > { %1363 = vmatpush.bf16.msra.mxu2 %v1949_v46  ;;  %v545_v33 = vsel %vm542_vm0, %v2100_v20, %v482_v17  ;;  %v564_v20 = vsel %vm546_vm1, %v489_v37, %v490_v28  ;;  %v578_v37 = vsel %vm546_vm1, %v495_v38, %v496_v30  ;;  %v589_v46 = vsel %vm542_vm0, %v2107_v24, %v500_v31  ;;  %v1994_v24 = vld [vmem:[%s2525_s1 + $0x1f8] sm:$0xff]  ;;  %v195_v28 = vld [vmem:[%s2082_s16 + $0x68] sm:$0x1f] }
  0x23   : > { %1392 = vmatpush.bf16.msra.mxu3 %v1957_v47  ;;  %v551_v43 = vsel %vm550_vm2, %v545_v33, %v549_v39  ;;  %v565_v32 = vsel %vm550_vm2, %v561_v40, %v564_v20  ;;  %v592_v47 = vsel %vm546_vm1, %v501_v45, %v502_v36  ;;  %v579_v38 = vsel %vm550_vm2, %v575_v22, %v578_v37 }
  0x24   : > { %1306 = vmatpush.bf16.msra.mxu0 %v1932_v8  ;;  %813 = vst [vmem:[#allocation1] ss:$4 sm:$0xff] %v551_v43  ;;  %v593_v50 = vsel %vm550_vm2, %v589_v46, %v592_v47  ;;  %v268_v45 = vpack.c.b16 %v252_v18, %v252_v18  ;;  %v318_v62 = vshll.u32 %v269_v51, 16  ;;  %v323_v63 = vshrl.u32 %v270_v55, 16  ;;  %v194_v18 = vld [vmem:[%s2082_s16 + $0x60] sm:$0x1f] }
  0x25   : > { %1335 = vmatpush.bf16.msra.mxu1 %v1940_v9  ;;  %815 = vst [vmem:[#allocation1 + $0x1] ss:$4 sm:$0xff] %v565_v32  ;;  %v325_v0 = vshll.u32 %v270_v55, 16  ;;  %v330_v1 = vshrl.u32 %v271_v56, 16  ;;  %v332_v2 = vshll.u32 %v271_v56, 16  ;;  %v401_v10 = vpack.c.b16 %v397_v57, %v397_v57  ;;  %v1967_v56 = vld [vmem:[%s2525_s1 + $0x120] sm:$0xff] }
  0x26   : > { %1364 = vmatpush.bf16.msra.mxu2 %v1948_v14  ;;  %817 = vst [vmem:[#allocation1 + $0x2] ss:$4 sm:$0xff] %v579_v38  ;;  %v309_v59 = vshrl.u32 %v268_v45, 16  ;;  %v311_v60 = vshll.u32 %v268_v45, 16  ;;  %v320_v9 = vrot.slane %v318_v62, 1  ;;  %v486_v11 = vrot.slane %v2151_v3, 4 }
  0x27   : > { %1393 = vmatpush.bf16.msra.mxu3 %v1956_v15  ;;  %819 = vst [vmem:[#allocation1 + $0x3] ss:$4 sm:$0xff] %v593_v50  ;;  %v327_v14 = vrot.slane %v325_v0, 1  ;;  %v334_v15 = vrot.slane %v332_v2, 1  ;;  %v492_v16 = vrot.slane %v2153_v6, 4  ;;  %v498_v17 = vrot.slane %v2155_v7, 4 }
  0x28   : > { %1307 = vmatpush.bf16.msra.mxu0 %v1931_v34  ;;  %v313_v8 = vrot.slane %v311_v60, 1  ;;  %v321_v21 = vor.u32 %v320_v9, %v316_v61  ;;  %v412_v26 = vshrl.u32 %v401_v10, 16  ;;  %v414_v27 = vshll.u32 %v401_v10, 16  ;;  %v1984_v34 = vld [vmem:[%s2525_s1 + $0x1a8] sm:$0xff]  ;;  %v1991_v0 = vld [vmem:[%s2525_s1 + $0x1e0] sm:$0xff] }
  0x29   : > { %1336 = vmatpush.bf16.msra.mxu1 %v1939_v35  ;;  %v328_v30 = vor.u32 %v327_v14, %v323_v63  ;;  %v335_v31 = vor.u32 %v334_v15, %v330_v1  ;;  %v504_v33 = vrot.slane %v2163_v13, 4  ;;  %v1968_v35 = vld [vmem:[%s2525_s1 + $0x128] sm:$0xff]  ;;  %v2251_v36 = vpack.c.bf16 %v192_v4, %v192_v4  ;;  %v197_v14 = vld [vmem:[%s2082_s16 + $0x78] sm:$0x1f] }
  0x2a   : > { %1365 = vmatpush.bf16.msra.mxu2 %v1947_v41  ;;  %v314_v19 = vor.u32 %v313_v8, %v309_v59  ;;  %v416_v39 = vrot.slane %v414_v27, 1  ;;  %v487_v20 = vrot.slane %v321_v21, 2  ;;  %v491_v41 = vrot.slane %v321_v21, 6  ;;  %v1992_v13 = vld [vmem:[%s2525_s1 + $0x1e8] sm:$0xff]  ;;  %v1974_v21 = vld [vmem:[%s2525_s1 + $0x158] sm:$0xff] }
  0x2b   : > { %1394 = vmatpush.bf16.msra.mxu3 %v1955_v42  ;;  %v1976_v42 = vld [vmem:[%s2525_s1 + $0x168] sm:$0xff]  ;;  %v2259_v22 = vpack.c.bf16 %v193_v12, %v193_v12  ;;  %v2261_v44 = vpack.c.bf16 %v194_v18, %v194_v18  ;;  %v2263_v37 = vpack.c.bf16 %v195_v28, %v195_v28  ;;  %v2265_v46 = vpack.c.bf16 %v196_v29, %v196_v29  ;;  %v1966_v12 = vld [vmem:[%s2525_s1 + $0x118] sm:$0xff] }
  0x2c   : > { %1416 = vmatpush.bf16.msrb.mxu0 %v1970_v23  ;;  %v485_v40 = vrot.slane %v314_v19, 6  ;;  %v417_v23 = vor.u32 %v416_v39, %v412_v26  ;;  %v557_v38 = vsel %vm546_vm1, %v486_v11, %v487_v20  ;;  %v256_v50 = vunpack.c.l.b16 %v2251_v36  ;;  %v1982_v11 = vld [vmem:[%s2525_s1 + $0x198] sm:$0xff]  ;;  %v198_v26 = vld [vmem:[%s2082_s16 + $0x80] sm:$0x1f] }
  0x2d   : > { %1445 = vmatpush.bf16.msrb.mxu1 %v1978_v25  ;;  %v497_v25 = vrot.slane %v328_v30, 6  ;;  %v499_v45 = vrot.slane %v335_v31, 2  ;;  %v503_v51 = vrot.slane %v335_v31, 6  ;;  %v568_v55 = vsel %vm542_vm0, %v2151_v3, %v491_v41  ;;  %v1990_v19 = vld [vmem:[%s2525_s1 + $0x1d8] sm:$0xff]  ;;  %v1981_v31 = vld [vmem:[%s2525_s1 + $0x190] sm:$0xff] }
  0x2e   : > { %1474 = vmatpush.bf16.msrb.mxu2 %v1986_v48  ;;  %v828_v43 = vld.sshfl [vmem:[#allocation1] sm:$0xff pattern:$0x73625140]  ;;  %v829_v32 = vld.sshfl [vmem:[#allocation1 + $0x8] sm:$0xff pattern:$0x73625140]  ;;  %v554_v49 = vsel %vm542_vm0, %v2147_v53, %v485_v40  ;;  %v257_v57 = vunpack.c.l.b16 %v2259_v22  ;;  %v258_v1 = vunpack.c.l.b16 %v2261_v44  ;;  %v259_v2 = vunpack.c.l.b16 %v2263_v37 }
  0x2f   : > { %1503 = vmatpush.bf16.msrb.mxu3 %v1994_v24  ;;  %1308 = vmatmul.bf16.vlgmr.msra.gmra.mxu0 %v828_v43  ;;  %v830_v47 = vld.sshfl [vmem:[#allocation1 + $0x10] sm:$0xff pattern:$0x73625140]  ;;  %v831_v48 = vld.sshfl [vmem:[#allocation1 + $0x18] sm:$0xff pattern:$0x73625140]  ;;  %v582_v59 = vsel %vm542_vm0, %v2153_v6, %v497_v25  ;;  %v585_v60 = vsel %vm546_vm1, %v498_v17, %v499_v45  ;;  %v596_v3 = vsel %vm542_vm0, %v2155_v7, %v503_v51  ;;  %v398_v8 = vunpack.c.l.b16 %v2265_v46 }
  0x30   : > { %1417 = vmatpush.bf16.msrb.mxu0 %v1969_v54  ;;  %1337 = vmatmul.bf16.vlgmr.msra.gmra.mxu1 %v829_v32  ;;  %v493_v24 = vrot.slane %v328_v30, 2  ;;  %v558_v54 = vsel %vm550_vm2, %v554_v49, %v557_v38  ;;  %v1983_v53 = vld [vmem:[%s2525_s1 + $0x1a0] sm:$0xff]  ;;  %v586_v62 = vsel %vm550_vm2, %v582_v59, %v585_v60  ;;  %v272_v4 = vpack.c.b16 %v256_v50, %v256_v50  ;;  %v1989_v25 = vld [vmem:[%s2525_s1 + $0x1d0] sm:$0xff]  ;;  %v201_v51 = vld [vmem:[%s2082_s16 + $0x98] sm:$0x1f] }
  0x31   : > { %1446 = vmatpush.bf16.msrb.mxu1 %v1977_v5  ;;  %1366 = vmatmul.bf16.vlgmr.msra.gmra.mxu2 %v830_v47  ;;  %821 = vst [vmem:[#allocation1 + $0x20] ss:$4 sm:$0xff] %v558_v54  ;;  %v1975_v6 = vld [vmem:[%s2525_s1 + $0x160] sm:$0xff]  ;;  %v273_v5 = vpack.c.b16 %v257_v57, %v257_v57  ;;  %v507_v9 = vrot.slane %v2259_v22, 4  ;;  %v510_v10 = vrot.slane %v2261_v44, 4  ;;  %v274_v15 = vpack.c.b16 %v258_v1, %v258_v1  ;;  %v1973_v45 = vld [vmem:[%s2525_s1 + $0x150] sm:$0xff] }
  0x32   : > { %1475 = vmatpush.bf16.msrb.mxu2 %v1985_v52  ;;  %1395 = vmatmul.bf16.vlgmr.msra.gmra.mxu3 %v831_v48  ;;  %v505_v52 = vrot.slane %v417_v23, 2  ;;  %836 = vst [vmem:[#allocation1] ss:$4 sm:$0xff] %v558_v54  ;;  %v337_v17 = vshrl.u32 %v272_v4, 16  ;;  %v339_v18 = vshll.u32 %v272_v4, 16  ;;  %v402_v29 = vpack.c.b16 %v398_v8, %v398_v8 }
  0x33   : > { %1504 = vmatpush.bf16.msrb.mxu3 %v1993_v58  ;;  %v571_v58 = vsel %vm546_vm1, %v492_v16, %v493_v24  ;;  %825 = vst [vmem:[#allocation1 + $0x22] ss:$4 sm:$0xff] %v586_v62  ;;  %v275_v16 = vpack.c.b16 %v259_v2, %v259_v2  ;;  %v344_v27 = vshrl.u32 %v273_v5, 16  ;;  %v346_v28 = vshll.u32 %v273_v5, 16 }
  0x34   : > { %1418 = vmatpush.bf16.msrb.mxu0 %v1968_v35  ;;  %v572_v61 = vsel %vm550_vm2, %v568_v55, %v571_v58  ;;  %v599_v63 = vsel %vm546_vm1, %v504_v33, %v505_v52  ;;  %v513_v30 = vrot.slane %v2263_v37, 4  ;;  %v1965_v33 = vld [vmem:[%s2525_s1 + $0x110] sm:$0xff]  ;;  %838 = vst [vmem:[#allocation1 + $0x2] ss:$4 sm:$0xff] %v586_v62  ;;  %v341_v39 = vrot.slane %v339_v18, 1  ;;  %v1980_v18 = vld [vmem:[%s2525_s1 + $0x188] sm:$0xff] }
  0x35   : > { %1447 = vmatpush.bf16.msrb.mxu1 %v1976_v42  ;;  %v600_v7 = vsel %vm550_vm2, %v596_v3, %v599_v63  ;;  %823 = vst [vmem:[#allocation1 + $0x21] ss:$4 sm:$0xff] %v572_v61  ;;  %v200_v35 = vld [vmem:[%s2082_s16 + $0x90] sm:$0x1f]  ;;  %v351_v40 = vshrl.u32 %v274_v15, 16  ;;  %v353_v20 = vshll.u32 %v274_v15, 16  ;;  %v2326_v49 = vpack.c.bf16 %v197_v14, %v197_v14 }
  0x36   : > { %1476 = vmatpush.bf16.msrb.mxu2 %v1984_v34  ;;  %827 = vst [vmem:[#allocation1 + $0x23] ss:$4 sm:$0xff] %v600_v7  ;;  %v199_v34 = vld [vmem:[%s2082_s16 + $0x88] sm:$0x1f]  ;;  %v358_v41 = vshrl.u32 %v275_v16, 16  ;;  %v360_v42 = vshll.u32 %v275_v16, 16  ;;  %v342_v47 = vor.u32 %v341_v39, %v337_v17  ;;  %v2335_v52 = vpack.c.bf16 %v198_v26, %v198_v26 }
  0x37   : > { %1505 = vmatpush.bf16.msrb.mxu3 %v1992_v13  ;;  %837 = vst [vmem:[#allocation1 + $0x1] ss:$4 sm:$0xff] %v572_v61  ;;  %v348_v13 = vrot.slane %v346_v28, 1  ;;  %v419_v43 = vshrl.u32 %v402_v29, 16  ;;  %v421_v32 = vshll.u32 %v402_v29, 16  ;;  %v355_v48 = vrot.slane %v353_v20, 1 }
  0x38   : > { %1419 = vmatpush.bf16.msrb.mxu0 %v1967_v56  ;;  %839 = vst [vmem:[#allocation1 + $0x3] ss:$4 sm:$0xff] %v600_v7  ;;  %v516_v23 = vrot.slane %v2265_v46, 4  ;;  %v362_v50 = vrot.slane %v360_v42, 1  ;;  %v506_v46 = vrot.slane %v342_v47, 6  ;;  %v2337_v55 = vpack.c.bf16 %v199_v34, %v199_v34  ;;  %v1972_v29 = vld [vmem:[%s2525_s1 + $0x148] sm:$0xff] }
  0x39   : > { %1448 = vmatpush.bf16.msrb.mxu1 %v1975_v6  ;;  %v349_v38 = vor.u32 %v348_v13, %v344_v27  ;;  %v423_v24 = vrot.slane %v421_v32, 1  ;;  %v356_v54 = vor.u32 %v355_v48, %v351_v40  ;;  %v2343_v62 = vpack.c.bf16 %v201_v51, %v201_v51  ;;  %v1963_v34 = vld [vmem:[%s2525_s1 + $0x100] sm:$0xff] }
  0x3a   : > { %1477 = vmatpush.bf16.msrb.mxu2 %v1983_v53  ;;  %v2339_v53 = vpack.c.bf16 %v200_v35, %v200_v35  ;;  %v363_v56 = vor.u32 %v362_v50, %v358_v41  ;;  %v603_v61 = vsel %vm542_vm0, %v2251_v36, %v506_v46  ;;  %v261_v16 = vunpack.c.l.b16 %v2335_v52  ;;  %v1987_v41 = vld [vmem:[%s2525_s1 + $0x1c0] sm:$0xff] }
  0x3b   : > { %1506 = vmatpush.bf16.msrb.mxu3 %v1991_v0  ;;  %v424_v57 = vor.u32 %v423_v24, %v419_v43  ;;  %v508_v58 = vrot.slane %v349_v38, 2  ;;  %v509_v59 = vrot.slane %v349_v38, 6  ;;  %v511_v60 = vrot.slane %v356_v54, 2  ;;  %v1971_v13 = vld [vmem:[%s2525_s1 + $0x140] sm:$0xff] }
  0x3c   : > { %1420 = vmatpush.bf16.msrb.mxu0 %v1966_v12  ;;  %v512_v3 = vrot.slane %v356_v54, 6  ;;  %v514_v63 = vrot.slane %v363_v56, 2  ;;  %v515_v0 = vrot.slane %v363_v56, 6  ;;  %v262_v17 = vunpack.c.l.b16 %v2337_v55 }
  0x3d   : > { %1449 = vmatpush.bf16.msrb.mxu1 %v1974_v21  ;;  %v517_v6 = vrot.slane %v424_v57, 2  ;;  %v606_v7 = vsel %vm546_vm1, %v507_v9, %v508_v58  ;;  %v610_v5 = vsel %vm542_vm0, %v2259_v22, %v509_v59  ;;  %v613_v36 = vsel %vm546_vm1, %v510_v10, %v511_v60 }
  0x3e   : > { %1478 = vmatpush.bf16.msrb.mxu2 %v1982_v11  ;;  %v2349_v4 = vsel %vm550_vm2, %v603_v61, %v606_v7  ;;  %v617_v8 = vsel %vm542_vm0, %v2261_v44, %v512_v3  ;;  %v2359_v12 = vsel %vm550_vm2, %v610_v5, %v613_v36  ;;  %v620_v14 = vsel %vm546_vm1, %v513_v30, %v514_v63 }
  0x3f   : > { %1507 = vmatpush.bf16.msrb.mxu3 %v1990_v19  ;;  %v844_v1 = vld.sshfl [vmem:[#allocation1] sm:$0xff pattern:$0x73625140]  ;;  %v845_v2 = vld.sshfl [vmem:[#allocation1 + $0x8] sm:$0xff pattern:$0x73625140]  ;;  %v624_v15 = vsel %vm542_vm0, %v2263_v37, %v515_v0  ;;  %v260_v22 = vunpack.c.l.b16 %v2326_v49  ;;  %v2366_v10 = vsel %vm550_vm2, %v617_v8, %v620_v14  ;;  %v627_v44 = vsel %vm546_vm1, %v516_v23, %v517_v6 }
  0x40   : > { %1421 = vmatpush.bf16.msrb.mxu0 %v1965_v33  ;;  %1342 = vmatmul.bf16.gmra.mxu1 %v845_v2  ;;  %v846_v9 = vld.sshfl [vmem:[#allocation1 + $0x10] sm:$0xff pattern:$0x73625140]  ;;  %v847_v11 = vld.sshfl [vmem:[#allocation1 + $0x18] sm:$0xff pattern:$0x73625140]  ;;  %v2382_v21 = vsel %vm550_vm2, %v624_v15, %v627_v44  ;;  %v263_v26 = vunpack.c.l.b16 %v2339_v53  ;;  %v399_v28 = vunpack.c.l.b16 %v2343_v62  ;;  %v277_v30 = vpack.c.b16 %v261_v16, %v261_v16 }
  0x41   : > { %1450 = vmatpush.bf16.msrb.mxu1 %v1973_v45  ;;  %1313 = vmatmul.bf16.gmra.mxu0 %v844_v1  ;;  %852 = vst [vmem:[#allocation1] ss:$4 sm:$0xff] %v2349_v4  ;;  %v1964_v37 = vld [vmem:[%s2525_s1 + $0x108] sm:$0xff]  ;;  %v276_v27 = vpack.c.b16 %v260_v22, %v260_v22  ;;  %v1979_v33 = vld [vmem:[%s2525_s1 + $0x180] sm:$0xff]  ;;  %v519_v60 = vrot.slane %v2335_v52, 4  ;;  %v522_v63 = vrot.slane %v2337_v55, 4 }
  0x42   : > { %1479 = vmatpush.bf16.msrb.mxu2 %v1981_v31  ;;  %1400 = vmatmul.bf16.gmra.mxu3 %v847_v11  ;;  %v1988_v19 = vld [vmem:[%s2525_s1 + $0x1c8] sm:$0xff]  ;;  %853 = vst [vmem:[#allocation1 + $0x1] ss:$4 sm:$0xff] %v2359_v12  ;;  %v278_v31 = vpack.c.b16 %v262_v17, %v262_v17  ;;  %v279_v35 = vpack.c.b16 %v263_v26, %v263_v26  ;;  %v372_v42 = vshrl.u32 %v277_v30, 16  ;;  %v374_v43 = vshll.u32 %v277_v30, 16 }
  0x43   : > { %1508 = vmatpush.bf16.msrb.mxu3 %v1989_v25  ;;  %1371 = vmatmul.bf16.gmra.mxu2 %v846_v9  ;;  %854 = vst [vmem:[#allocation1 + $0x2] ss:$4 sm:$0xff] %v2366_v10  ;;  %v365_v39 = vshrl.u32 %v276_v27, 16  ;;  %v367_v40 = vshll.u32 %v276_v27, 16  ;;  %v403_v20 = vpack.c.b16 %v399_v28, %v399_v28  ;;  %v525_v0 = vrot.slane %v2339_v53, 4 }
  0x44   : > { %1422 = vmatpush.bf16.msrb.mxu0 %v1964_v37  ;;  %855 = vst [vmem:[#allocation1 + $0x3] ss:$4 sm:$0xff] %v2382_v21  ;;  %v379_v32 = vshrl.u32 %v278_v31, 16  ;;  %v381_v47 = vshll.u32 %v278_v31, 16  ;;  %v386_v23 = vshrl.u32 %v279_v35, 16  ;;  %v388_v38 = vshll.u32 %v279_v35, 16 }
  0x45   : > { %1451 = vmatpush.bf16.msrb.mxu1 %v1972_v29  ;;  %v369_v48 = vrot.slane %v367_v40, 1  ;;  %v376_v50 = vrot.slane %v374_v43, 1  ;;  %v426_v25 = vshrl.u32 %v403_v20, 16  ;;  %v428_v45 = vshll.u32 %v403_v20, 16  ;;  %v204_v40 = vld [vmem:[%s2082_s16 + $0xb0] sm:$0x1f] }
  0x46   : > { %1480 = vmatpush.bf16.msrb.mxu2 %v1980_v18  ;;  %v383_v24 = vrot.slane %v381_v47, 1  ;;  %v390_v54 = vrot.slane %v388_v38, 1  ;;  %v528_v6 = vrot.slane %v2343_v62, 4  ;;  %v832_v27 = vld.sshfl [vmem:[#allocation1 + $0x20] sm:$0xff pattern:$0x73625140]  ;;  %v229_v43 = vpack.c.bf16 %v204_v40, %v204_v40 }
  0x47   : > { %1509 = vmatpush.bf16.msrb.mxu3 %v1988_v19  ;;  %v370_v51 = vor.u32 %v369_v48, %v365_v39  ;;  %v377_v46 = vor.u32 %v376_v50, %v372_v42  ;;  %v430_v57 = vrot.slane %v428_v45, 1  ;;  %v833_v28 = vld.sshfl [vmem:[#allocation1 + $0x28] sm:$0xff pattern:$0x73625140]  ;;  %v205_v20 = vld [vmem:[%s2082_s16 + $0xb8] sm:$0x1f] }
  0x48   : > { %1423 = vmatpush.bf16.msrb.mxu0 %v1963_v34  ;;  %v384_v56 = vor.u32 %v383_v24, %v379_v32  ;;  %v391_v58 = vor.u32 %v390_v54, %v386_v23  ;;  %v834_v29 = vld.sshfl [vmem:[#allocation1 + $0x30] sm:$0xff pattern:$0x73625140]  ;;  %v835_v30 = vld.sshfl [vmem:[#allocation1 + $0x38] sm:$0xff pattern:$0x73625140]  ;;  %v230_v32 = vpack.c.bf16 %v205_v20, %v205_v20  ;;  %v438_v38 = vunpack.c.l.b16 %v229_v43 }
  0x49   : > { %1452 = vmatpush.bf16.msrb.mxu1 %v1971_v13  ;;  %v518_v59 = vrot.slane %v370_v51, 6  ;;  %v431_v61 = vor.u32 %v430_v57, %v426_v25  ;;  %v520_v5 = vrot.slane %v377_v46, 2  ;;  %v521_v36 = vrot.slane %v377_v46, 6  ;;  %840 = vst [vmem:[#allocation1 + $0x20] ss:$4 sm:$0xff] %v2349_v4 }
  0x4a   : > { %1481 = vmatpush.bf16.msrb.mxu2 %v1979_v33  ;;  %v523_v8 = vrot.slane %v384_v56, 2  ;;  %v524_v9 = vrot.slane %v384_v56, 6  ;;  %v526_v14 = vrot.slane %v391_v58, 2  ;;  %v527_v15 = vrot.slane %v391_v58, 6  ;;  %841 = vst [vmem:[#allocation1 + $0x21] ss:$4 sm:$0xff] %v2359_v12 }
  0x4b   : > { %1510 = vmatpush.bf16.msrb.mxu3 %v1987_v41  ;;  %v860_v3 = vld.sshfl [vmem:[#allocation1] sm:$0xff pattern:$0x73625140]  ;;  %v861_v7 = vld.sshfl [vmem:[#allocation1 + $0x8] sm:$0xff pattern:$0x73625140]  ;;  %v631_v2 = vsel %vm542_vm0, %v2326_v49, %v518_v59  ;;  %v634_v44 = vsel %vm546_vm1, %v519_v60, %v520_v5  ;;  %v638_v16 = vsel %vm542_vm0, %v2335_v52, %v521_v36  ;;  %v439_v50 = vunpack.c.l.b16 %v230_v32 }
  0x4c   : > { %v862_v1 = vld.sshfl [vmem:[#allocation1 + $0x10] sm:$0xff pattern:$0x73625140]  ;;  %v863_v11 = vld.sshfl [vmem:[#allocation1 + $0x18] sm:$0xff pattern:$0x73625140]  ;;  %v641_v62 = vsel %vm546_vm1, %v522_v63, %v523_v8  ;;  %v645_v17 = vsel %vm542_vm0, %v2337_v55, %v524_v9  ;;  %v635_v49 = vsel %vm550_vm2, %v631_v2, %v634_v44  ;;  %v648_v37 = vsel %vm546_vm1, %v525_v0, %v526_v14 }
  0x4d   : > { %v529_v22 = vrot.slane %v431_v61, 2  ;;  %v642_v18 = vsel %vm550_vm2, %v638_v16, %v641_v62  ;;  %v649_v19 = vsel %vm550_vm2, %v645_v17, %v648_v37  ;;  %v652_v52 = vsel %vm542_vm0, %v2339_v53, %v527_v15  ;;  %868 = vst [vmem:[#allocation1] ss:$4 sm:$0xff] %v635_v49  ;;  %v203_v39 = vld [vmem:[%s2082_s16 + $0xa8] sm:$0x1f] }
  0x4e   : > { %869 = vst [vmem:[#allocation1 + $0x1] ss:$4 sm:$0xff] %v642_v18  ;;  %v206_v41 = vld [vmem:[%s2082_s16 + $0xc0] sm:$0x1f]  ;;  %v228_v42 = vpack.c.bf16 %v203_v39, %v203_v39  ;;  %v442_v51 = vpack.c.b16 %v438_v38, %v438_v38  ;;  %v443_v54 = vpack.c.b16 %v439_v50, %v439_v50  ;;  %v537_v44 = vrot.slane %v230_v32, 4 }
  0x4f   : > { %v655_v26 = vsel %vm546_vm1, %v528_v6, %v529_v22  ;;  %870 = vst [vmem:[#allocation1 + $0x2] ss:$4 sm:$0xff] %v649_v19  ;;  %v2441_v47 = vpack.c.bf16 %v206_v41, %v206_v41 }
  0x50   : > { %1347 = vmatmul.bf16.gmra.mxu1 %v861_v7  ;;  %v656_v55 = vsel %vm550_vm2, %v652_v52, %v655_v26  ;;  %842 = vst [vmem:[#allocation1 + $0x22] ss:$4 sm:$0xff] %v2366_v10  ;;  %v437_v23 = vunpack.c.l.b16 %v228_v42  ;;  %v461_v57 = vshll.u32 %v442_v51, 16  ;;  %v459_v63 = vshrl.u32 %v442_v51, 16 }
  0x51   : > { %1318 = vmatmul.bf16.gmra.mxu0 %v860_v3  ;;  %871 = vst [vmem:[#allocation1 + $0x3] ss:$4 sm:$0xff] %v656_v55  ;;  %v473_v24 = vunpack.c.l.b16 %v2441_v47  ;;  %v466_v6 = vshrl.u32 %v443_v54, 16  ;;  %v531_v9 = vrot.slane %v228_v42, 4  ;;  %v540_v52 = vrot.slane %v2441_v47, 4 }
  0x52   : > { %1405 = vmatmul.bf16.gmra.mxu3 %v863_v11  ;;  %843 = vst [vmem:[#allocation1 + $0x23] ss:$4 sm:$0xff] %v2382_v21  ;;  %v202_v21 = vld [vmem:[%s2082_s16 + $0xa0] sm:$0x1f]  ;;  %v441_v45 = vpack.c.b16 %v437_v23, %v437_v23  ;;  %v463_v0 = vrot.slane %v461_v57, 1  ;;  %v534_v11 = vrot.slane %v229_v43, 4 }
  0x53   : > { %1376 = vmatmul.bf16.gmra.mxu2 %v862_v1  ;;  %v227_v13 = vpack.c.bf16 %v202_v21, %v202_v21  ;;  %v474_v58 = vpack.c.b16 %v473_v24, %v473_v24  ;;  %v468_v1 = vshll.u32 %v443_v54, 16  ;;  %s1930_s16 = sshll.u32 %s2529_s13, 6 }
  0x54   : > { %v454_v56 = vshll.u32 %v441_v45, 16  ;;  %v452_v3 = vshrl.u32 %v441_v45, 16  ;;  %v464_v8 = vor.u32 %v463_v0, %v459_v63  ;;  %s2489_s27 = scalar_lea.vmem %s2526_s2, %s1930_s16 }
  0x55   : > { %v436_v48 = vunpack.c.l.b16 %v227_v13  ;;  %v476_v2 = vshrl.u32 %v474_v58, 16  ;;  %v478_v5 = vshll.u32 %v474_v58, 16  ;;  %v470_v14 = vrot.slane %v468_v1, 1 }
  0x56   : > { %v456_v61 = vrot.slane %v454_v56, 1  ;;  %v535_v17 = vrot.slane %v464_v8, 2 }
  0x57   : > { %v440_v25 = vpack.c.b16 %v436_v48, %v436_v48  ;;  %v480_v15 = vrot.slane %v478_v5, 1  ;;  %v471_v37 = vor.u32 %v470_v14, %v466_v6 }
  0x58   : > { %v876_v53 = vld.sshfl [vmem:[#allocation1] sm:$0xff pattern:$0x73625140]  ;;  %v877_v31 = vld.sshfl [vmem:[#allocation1 + $0x8] sm:$0xff pattern:$0x73625140]  ;;  %v457_v36 = vor.u32 %v456_v61, %v452_v3 }
  0x59   : > { %v878_v33 = vld.sshfl [vmem:[#allocation1 + $0x10] sm:$0xff pattern:$0x73625140]  ;;  %v879_v34 = vld.sshfl [vmem:[#allocation1 + $0x18] sm:$0xff pattern:$0x73625140] }
  0x5a   : > { %v2428_v35 = vld.sshfl [vmem:[#allocation1 + $0x20] sm:$0xff pattern:$0x73625140]  ;;  %v2430_v4 = vld.sshfl [vmem:[#allocation1 + $0x28] sm:$0xff pattern:$0x73625140] }
  0x5b   : > { %v2432_v12 = vld.sshfl [vmem:[#allocation1 + $0x30] sm:$0xff pattern:$0x73625140]  ;;  %v2434_v10 = vld.sshfl [vmem:[#allocation1 + $0x38] sm:$0xff pattern:$0x73625140] }
  0x5c   : > { %856 = vst [vmem:[#allocation1 + $0x20] ss:$4 sm:$0xff] %v635_v49  ;;  %v447_v46 = vshll.u32 %v440_v25, 16  ;;  %v445_v59 = vshrl.u32 %v440_v25, 16  ;;  %v532_v16 = vrot.slane %v457_v36, 2  ;;  %v533_v62 = vrot.slane %v457_v36, 6 }
  0x5d   : > { %857 = vst [vmem:[#allocation1 + $0x21] ss:$4 sm:$0xff] %v642_v18  ;;  %v536_v49 = vrot.slane %v464_v8, 6 }
  0x5e   : > { %858 = vst [vmem:[#allocation1 + $0x22] ss:$4 sm:$0xff] %v649_v19  ;;  %v449_v60 = vrot.slane %v447_v46, 1  ;;  %v481_v19 = vor.u32 %v480_v15, %v476_v2 }
  0x5f   : > { %859 = vst [vmem:[#allocation1 + $0x23] ss:$4 sm:$0xff] %v656_v55 }
  0x60   : > { %1352 = vmatmul.bf16.gmra.mxu1 %v877_v31  ;;  %v450_v7 = vor.u32 %v449_v60, %v445_v59  ;;  %v541_v21 = vrot.slane %v481_v19, 2 }
  0x61   : > { %1323 = vmatmul.bf16.gmra.mxu0 %v876_v53  ;;  %v673_v53 = vsel %vm542_vm0, %v229_v43, %v536_v49 }
  0x62   : > { %1410 = vmatmul.bf16.gmra.mxu3 %v879_v34  ;;  %v530_v22 = vrot.slane %v450_v7, 6  ;;  %v539_v34 = vrot.slane %v471_v37, 6 }
  0x63   : > { %1381 = vmatmul.bf16.gmra.mxu2 %v878_v33  ;;  %v538_v33 = vrot.slane %v471_v37, 2 }
  0x64   : > { %v659_v26 = vsel %vm542_vm0, %v227_v13, %v530_v22  ;;  %v680_v41 = vsel %vm542_vm0, %v230_v32, %v539_v34  ;;  %v683_v13 = vsel %vm546_vm1, %v540_v52, %v541_v21 }
  0x65   : > { %v676_v20 = vsel %vm546_vm1, %v537_v44, %v538_v33  ;;  %v684_v43 = vsel %vm550_vm2, %v680_v41, %v683_v13 }
  0x66   : > { %v864_v18 = vld.sshfl [vmem:[#allocation1 + $0x20] sm:$0xff pattern:$0x73625140]  ;;  %v865_v55 = vld.sshfl [vmem:[#allocation1 + $0x28] sm:$0xff pattern:$0x73625140] }
  0x67   : > { %v867_v31 = vld.sshfl [vmem:[#allocation1 + $0x38] sm:$0xff pattern:$0x73625140] }
  0x70   : > { %1453 = vmatmul.bf16.vlgmr.msrb.gmra.mxu1 %v833_v28  ;;  %v662_v28 = vsel %vm546_vm1, %v531_v9, %v532_v16 }
  0x71   : > { %1424 = vmatmul.bf16.vlgmr.msrb.gmra.mxu0 %v832_v27  ;;  %v866_v27 = vld.sshfl [vmem:[#allocation1 + $0x30] sm:$0xff pattern:$0x73625140]  ;;  %v663_v39 = vsel %vm550_vm2, %v659_v26, %v662_v28 }
  0x72   : > { %1511 = vmatmul.bf16.vlgmr.msrb.gmra.mxu3 %v835_v30  ;;  %v669_v30 = vsel %vm546_vm1, %v534_v11, %v535_v17  ;;  %872 = vst [vmem:[#allocation1 + $0x20] ss:$4 sm:$0xff] %v663_v39 }
  0x73   : > { %1482 = vmatmul.bf16.vlgmr.msrb.gmra.mxu2 %v834_v29  ;;  %v666_v29 = vsel %vm542_vm0, %v228_v42, %v533_v62  ;;  %v677_v42 = vsel %vm550_vm2, %v673_v53, %v676_v20  ;;  %875 = vst [vmem:[#allocation1 + $0x23] ss:$4 sm:$0xff] %v684_v43 }
  0x74   : > { %v670_v40 = vsel %vm550_vm2, %v666_v29, %v669_v30  ;;  %874 = vst [vmem:[#allocation1 + $0x22] ss:$4 sm:$0xff] %v677_v42 }
  0x75   : > { %873 = vst [vmem:[#allocation1 + $0x21] ss:$4 sm:$0xff] %v670_v40 }
  0x7c   : > { %v880_v32 = vld.sshfl [vmem:[#allocation1 + $0x20] sm:$0xff pattern:$0x73625140]  ;;  %v881_v47 = vld.sshfl [vmem:[#allocation1 + $0x28] sm:$0xff pattern:$0x73625140] }
  0x7d   : > { %v882_v48 = vld.sshfl [vmem:[#allocation1 + $0x30] sm:$0xff pattern:$0x73625140]  ;;  %v883_v23 = vld.sshfl [vmem:[#allocation1 + $0x38] sm:$0xff pattern:$0x73625140] }
  0x80   : > { %1458 = vmatmul.bf16.gmra.mxu1 %v2430_v4 }
  0x81   : > { %1429 = vmatmul.bf16.gmra.mxu0 %v2428_v35 }
  0x82   : > { %1516 = vmatmul.bf16.gmra.mxu3 %v2434_v10 }
  0x83   : > { %1487 = vmatmul.bf16.gmra.mxu2 %v2432_v12 }
  0x90   : > { %1463 = vmatmul.bf16.gmra.mxu1 %v865_v55 }
  0x91   : > { %1434 = vmatmul.bf16.gmra.mxu0 %v864_v18 }
  0x92   : > { %1521 = vmatmul.bf16.gmra.mxu3 %v867_v31 }
  0x93   : > { %1492 = vmatmul.bf16.gmra.mxu2 %v866_v27 }
  0xa0   : > { %1468 = vmatmul.bf16.gmra.mxu1 %v881_v47 }
  0xa1   : > { %1439 = vmatmul.bf16.gmra.mxu0 %v880_v32 }
  0xa2   : > { %1526 = vmatmul.bf16.gmra.mxu3 %v883_v23 }
  0xa3   : > { %1497 = vmatmul.bf16.gmra.mxu2 %v882_v48 }
  0xac   : > { %v1309_v38 = vpop.f32.mrf.mxu0 }
  0xad   : > { %v1338_v35 = vpop.f32.mrf.mxu1 }
  0xae   : > { %v1339_v14 = vadd.f32 %v1338_v35, %v1309_v38 }
  0xb4   : > { %v1367_v50 = vpop.f32.mrf.mxu2  ;;  %v1311_v24 = vpop.f32.mrf.mxu0 }
  0xb5   : > { %v1396_v4 = vpop.f32.mrf.mxu3  ;;  %v1340_v12 = vpop.f32.mrf.mxu1  ;;  %v1368_v15 = vadd.f32 %v1367_v50, %v1339_v14 }
  0xb6   : > { %v1341_v49 = vadd.f32 %v1340_v12, %v1311_v24 }
  0xb7   : > { %v1397_v16 = vadd.f32 %v1396_v4, %v1368_v15 }
  0xbc   : > { %v1369_v25 = vpop.f32.mrf.mxu2 }
  0xbd   : > { %v1398_v10 = vpop.f32.mrf.mxu3  ;;  %v1343_v51 = vpop.f32.mrf.mxu1  ;;  %v1370_v37 = vadd.f32 %v1369_v25, %v1341_v49 }
  0xbe   : > { %v1314_v45 = vpop.f32.mrf.mxu0 }
  0xbf   : > { %v1399_v55 = vadd.f32 %v1398_v10, %v1370_v37  ;;  %v1344_v30 = vadd.f32 %v1343_v51, %v1314_v45 }
  0xc5   : > { %v1401_v46 = vpop.f32.mrf.mxu3  ;;  %v1345_v57 = vpop.f32.mrf.mxu1 }
  0xc6   : > { %v1372_v54 = vpop.f32.mrf.mxu2  ;;  %v1316_v56 = vpop.f32.mrf.mxu0 }
  0xc7   : > { %v1373_v33 = vadd.f32 %v1372_v54, %v1344_v30  ;;  %v1346_v42 = vadd.f32 %v1345_v57, %v1316_v56 }
  0xc9   : > { %v1402_v40 = vadd.f32 %v1401_v46, %v1373_v33 }
  0xcd   : > { %v1403_v59 = vpop.f32.mrf.mxu3  ;;  %v1348_v3 = vpop.f32.mrf.mxu1 }
  0xce   : > { %v1374_v58 = vpop.f32.mrf.mxu2  ;;  %v1319_v60 = vpop.f32.mrf.mxu0 }
  0xcf   : > { %v1375_v47 = vadd.f32 %v1374_v58, %v1346_v42  ;;  %v1349_v12 = vadd.f32 %v1348_v3, %v1319_v60 }
  0xd1   : > { %v1404_v35 = vadd.f32 %v1403_v59, %v1375_v47 }
  0xd5   : > { %v1406_v63 = vpop.f32.mrf.mxu3  ;;  %v2463_v6 = vpop.f32.mrf.mxu1 }
  0xd6   : > { %v1377_v61 = vpop.f32.mrf.mxu2  ;;  %v2461_v0 = vpop.f32.mrf.mxu0 }
  0xd7   : > { %v1378_v45 = vadd.f32 %v1377_v61, %v1349_v12  ;;  %v1351_v15 = vadd.f32 %v2463_v6, %v2461_v0 }
  0xd9   : > { %v1407_v56 = vadd.f32 %v1406_v63, %v1378_v45 }
  0xdd   : > { %v2467_v1 = vpop.f32.mrf.mxu3  ;;  %v2471_v5 = vpop.f32.mrf.mxu1 }
  0xde   : > { %v2465_v7 = vpop.f32.mrf.mxu2  ;;  %v2469_v2 = vpop.f32.mrf.mxu0 }
  0xdf   : > { %v1380_v60 = vadd.f32 %v2465_v7, %v1351_v15  ;;  %v1354_v37 = vadd.f32 %v2471_v5, %v2469_v2 }
  0xe5   : > { %v2475_v8 = vpop.f32.mrf.mxu3  ;;  %v2479_v11 = vpop.f32.mrf.mxu1 }
  0xe6   : > { %v2473_v36 = vpop.f32.mrf.mxu2  ;;  %v2477_v9 = vpop.f32.mrf.mxu0 }
  0xe7   : > { %v1383_v6 = vadd.f32 %v2473_v36, %v1354_v37 }
  0xed   : > { %v2483_v44 = vpop.f32.mrf.mxu3  ;;  %v1454_v17 = vpop.f32.mrf.mxu1 }
  0xee   : > { %v2481_v22 = vpop.f32.mrf.mxu2  ;;  %v1425_v62 = vpop.f32.mrf.mxu0 }
  0xef   : > { %v1426_v18 = vadd.f32 %v1425_v62, %v1397_v16 }
  0xf1   : > { %v1455_v19 = vadd.f32 %v1454_v17, %v1426_v18  ;;  %v1409_v17 = vadd.f32 %v2467_v1, %v1380_v60  ;;  %v1356_v1 = vadd.f32 %v2479_v11, %v2477_v9 }
  0xf3   : > { %v1385_v2 = vadd.f32 %v2481_v22, %v1356_v1 }
  0xf5   : > { %v1512_v26 = vpop.f32.mrf.mxu3  ;;  %v1456_v29 = vpop.f32.mrf.mxu1 }
  0xf6   : > { %v1483_v52 = vpop.f32.mrf.mxu2  ;;  %v1427_v28 = vpop.f32.mrf.mxu0 }
  0xf7   : > { %v1484_v27 = vadd.f32 %v1483_v52, %v1455_v19  ;;  %v1428_v31 = vadd.f32 %v1427_v28, %v1399_v55  ;;  %v1412_v55 = vadd.f32 %v2475_v8, %v1383_v6  ;;  %v1414_v8 = vadd.f32 %v2483_v44, %v1385_v2 }
  0xf9   : > { %v2491_v53 = vadd.f32 %v1512_v26, %v1484_v27  ;;  %v1457_v34 = vadd.f32 %v1456_v29, %v1428_v31 }
  0xfb   : > { %1532 = vst [vmem:[%s2489_s27] sm:$0xff] %v2491_v53  ;;  %v1553_v36 = vmul.f32 %v2491_v53, %v2491_v53 }
  0xfd   : > { %v1514_v39 = vpop.f32.mrf.mxu3  ;;  %v1459_v13 = vpop.f32.mrf.mxu1 }
  0xfe   : > { %v1485_v21 = vpop.f32.mrf.mxu2  ;;  %v1430_v41 = vpop.f32.mrf.mxu0 }
  0xff   : > { %v1486_v20 = vadd.f32 %v1485_v21, %v1457_v34  ;;  %v1431_v32 = vadd.f32 %v1430_v41, %v1402_v40 }
 0x101   : > { %v1515_v43 = vadd.f32 %v1514_v39, %v1486_v20  ;;  %v1460_v48 = vadd.f32 %v1459_v13, %v1431_v32 }
 0x103   : > { %1533 = vst [vmem:[%s2489_s27 + $0x8] sm:$0xff] %v1515_v43  ;;  %v1554_v5 = vmul.f32 %v1515_v43, %v1515_v43  ;;  %v1540_v39 = vadd.f32 %v1515_v43, %v2491_v53 }
 0x105   : > { %v1517_v38 = vpop.f32.mrf.mxu3  ;;  %v1461_v24 = vpop.f32.mrf.mxu1  ;;  %v1561_v20 = vadd.f32 %v1554_v5, %v1553_v36 }
 0x106   : > { %v1488_v23 = vpop.f32.mrf.mxu2  ;;  %v1432_v4 = vpop.f32.mrf.mxu0 }
 0x107   : > { %v1489_v50 = vadd.f32 %v1488_v23, %v1460_v48  ;;  %v1433_v10 = vadd.f32 %v1432_v4, %v1404_v35 }
 0x109   : > { %v1518_v25 = vadd.f32 %v1517_v38, %v1489_v50  ;;  %v1462_v51 = vadd.f32 %v1461_v24, %v1433_v10 }
 0x10b   : > { %1534 = vst [vmem:[%s2489_s27 + $0x10] sm:$0xff] %v1518_v25  ;;  %v1555_v40 = vmul.f32 %v1518_v25, %v1518_v25  ;;  %v1541_v41 = vadd.f32 %v1540_v39, %v1518_v25 }
 0x10d   : > { %v1519_v46 = vpop.f32.mrf.mxu3  ;;  %v1464_v14 = vpop.f32.mrf.mxu1  ;;  %v1562_v32 = vadd.f32 %v1561_v20, %v1555_v40 }
 0x10e   : > { %v1490_v54 = vpop.f32.mrf.mxu2  ;;  %v1435_v58 = vpop.f32.mrf.mxu0 }
 0x10f   : > { %v1491_v57 = vadd.f32 %v1490_v54, %v1462_v51  ;;  %v1436_v16 = vadd.f32 %v1435_v58, %v1407_v56 }
 0x111   : > { %v1520_v59 = vadd.f32 %v1519_v46, %v1491_v57  ;;  %v1465_v3 = vadd.f32 %v1464_v14, %v1436_v16 }
 0x113   : > { %1535 = vst [vmem:[%s2489_s27 + $0x18] sm:$0xff] %v1520_v59  ;;  %v1556_v13 = vmul.f32 %v1520_v59, %v1520_v59  ;;  %v1542_v47 = vadd.f32 %v1541_v41, %v1520_v59 }
 0x115   : > { %v1522_v61 = vpop.f32.mrf.mxu3  ;;  %v1466_v63 = vpop.f32.mrf.mxu1  ;;  %v1563_v38 = vadd.f32 %v1562_v32, %v1556_v13 }
 0x116   : > { %v1493_v62 = vpop.f32.mrf.mxu2  ;;  %v1437_v18 = vpop.f32.mrf.mxu0 }
 0x117   : > { %v1494_v49 = vadd.f32 %v1493_v62, %v1465_v3  ;;  %v1438_v0 = vadd.f32 %v1437_v18, %v1409_v17 }
 0x119   : > { %v1523_v19 = vadd.f32 %v1522_v61, %v1494_v49  ;;  %v1467_v52 = vadd.f32 %v1466_v63, %v1438_v0 }
 0x11b   : > { %1536 = vst [vmem:[%s2489_s27 + $0x20] sm:$0xff] %v1523_v19  ;;  %v1557_v48 = vmul.f32 %v1523_v19, %v1523_v19  ;;  %v1543_v35 = vadd.f32 %v1542_v47, %v1523_v19 }
 0x11d   : > { %v1524_v26 = vpop.f32.mrf.mxu3  ;;  %v1469_v31 = vpop.f32.mrf.mxu1  ;;  %v1564_v53 = vadd.f32 %v1563_v38, %v1557_v48 }
 0x11e   : > { %v1495_v7 = vpop.f32.mrf.mxu2  ;;  %v1440_v28 = vpop.f32.mrf.mxu0 }
 0x11f   : > { %v1496_v27 = vadd.f32 %v1495_v7, %v1467_v52  ;;  %v1441_v30 = vadd.f32 %v1440_v28, %v1412_v55 }
 0x121   : > { %v1525_v29 = vadd.f32 %v1524_v26, %v1496_v27  ;;  %v1470_v33 = vadd.f32 %v1469_v31, %v1441_v30 }
 0x123   : > { %1537 = vst [vmem:[%s2489_s27 + $0x28] sm:$0xff] %v1525_v29  ;;  %v1558_v50 = vmul.f32 %v1525_v29, %v1525_v29  ;;  %v1544_v43 = vadd.f32 %v1543_v35, %v1525_v29 }
 0x125   : > { %v1527_v21 = vpop.f32.mrf.mxu3  ;;  %v1471_v23 = vpop.f32.mrf.mxu1  ;;  %v1565_v25 = vadd.f32 %v1564_v53, %v1558_v50 }
 0x126   : > { %v1498_v34 = vpop.f32.mrf.mxu2  ;;  %v1442_v11 = vpop.f32.mrf.mxu0 }
 0x127   : > { %v1499_v9 = vadd.f32 %v1498_v34, %v1470_v33  ;;  %v1443_v42 = vadd.f32 %v1442_v11, %v1414_v8 }
 0x129   : > { %v1528_v22 = vadd.f32 %v1527_v21, %v1499_v9  ;;  %v1472_v44 = vadd.f32 %v1471_v23, %v1443_v42 }
 0x12b   : > { %1538 = vst [vmem:[%s2489_s27 + $0x30] sm:$0xff] %v1528_v22  ;;  %v1559_v24 = vmul.f32 %v1528_v22, %v1528_v22  ;;  %v1545_v45 = vadd.f32 %v1544_v43, %v1528_v22 }
 0x12d   : > { %v1529_v10 = vpop.f32.mrf.mxu3  ;;  %v1566_v54 = vadd.f32 %v1565_v25, %v1559_v24 }
 0x12e   : > { %v1500_v4 = vpop.f32.mrf.mxu2 }
 0x12f   : > { %v1501_v12 = vadd.f32 %v1500_v4, %v1472_v44 }
 0x131   : > { %v1530_v51 = vadd.f32 %v1529_v10, %v1501_v12 }
 0x133   : > { %1539 = vst [vmem:[%s2489_s27 + $0x38] sm:$0xff] %v1530_v51  ;;  %v1546_v46 = vadd.f32 %v1545_v45, %v1530_v51  ;;  %v1560_v56 = vmul.f32 %v1530_v51, %v1530_v51 }
 0x135   : > { %v1547_v57 = vrot.slane %v1546_v46, 4  ;;  %v1567_v58 = vadd.f32 %v1566_v54, %v1560_v56 }
 0x137   : > { %v1548_v14 = vadd.f32 %v1547_v57, %v1546_v46  ;;  %v1568_v15 = vrot.slane %v1567_v58, 4 }
 0x139   : > { %v1549_v59 = vrot.slane %v1548_v14, 2  ;;  %v1569_v16 = vadd.f32 %v1568_v15, %v1567_v58 }
 0x13b   : > { %v1550_v60 = vadd.f32 %v1549_v59, %v1548_v14  ;;  %v1570_v3 = vrot.slane %v1569_v16, 2 }
 0x13d   : > { %v1551_v62 = vrot.slane %v1550_v60, 1  ;;  %v1571_v61 = vadd.f32 %v1570_v3, %v1569_v16 }
 0x13f   : > { %v1572_v17 = vrot.slane %v1571_v61, 1  ;;  %v1552_v49 = vadd.f32 %v1551_v62, %v1550_v60 }
 0x141   : > { %v1573_v18 = vadd.f32 %v1572_v17, %v1571_v61 }
 0x143   : > { %v1575_v63 = vsel %vm1574_vm3, %v1552_v49, %v1573_v18 }
 0x144   : > { %1576 = vst [vmem:[%s181_s4] sm:$0x3] %v1575_v63 }
 0x145 PF: > { %s14_s12 = sadd.s32 1, %s2010_s12  }
 0x146   : > { %p11_p4 = scmp.ge.s32.totalorder %s14_s12, 4  }
 0x148   :  { %13 = sbr.rel (!%p11_p4) target bundleno = 1 (0x1), region = 77 }

// kernel: tile.13
= control target key start
LH: loop header
LB: loop body
LE: loop exit
PB: predicated region body
PF: predicated region fallthrough
CT: control target
= control target key end

     0   :  { %s22_s0 = inlined_call_operand.vmem [shape: f32[4], index: 0, kind: input, shape index: {}]   ;;  %s23_s1 = inlined_call_operand.vmem [shape: f32[8,4], index: 1, kind: output, shape index: {}]  }
   0x1   :  { %v4_v0 = vld [vmem:[%s22_s0] ss:$0 sm:$0xff] }
   0x2   :  { %5 = vst [vmem:[%s23_s1] sm:$0xff] %v4_v0 }

// kernel: mul.13
= control target key start
LH: loop header
LB: loop body
LE: loop exit
PB: predicated region body
PF: predicated region fallthrough
CT: control target
= control target key end

     0   :  { %s67_s10 = smov 28   ;;  %s68_s11 = smov 20   ;;  %vm3_vm0 = vcmask 31744   ;;  %vm9_vm1 = vcmask 261344   ;;  %vm15_vm2 = vcmask 228544   ;;  %vm21_vm3 = vcmask 195744   ;;  %s111_s0 = inlined_call_operand.vmem [shape: f32[8,4], index: 0, kind: input, shape index: {}]   ;;  %s112_s1 = inlined_call_operand.vmem [shape: f32[32], index: 1, kind: output, shape index: {}]  }
   0x1   :  { %v53_v0 = vld [vmem:[%s111_s0 + $0x7] sm:$0x1]   ;;  %v55_v1 = vld [vmem:[%s111_s0 + $0x5] sm:$0x1]   ;;  %v57_v2 = vld [vmem:[%s111_s0 + $0x3] sm:$0x1]  }
   0x2   :  { %7 = vrot.lane.b32.xlu0 %v53_v0, %s67_s10  ;;  %19 = vrot.lane.b32.xlu1 %v55_v1, %s68_s11  ;;  %s69_s14 = smov 12   ;;  %v54_v3 = vld [vmem:[%s111_s0 + $0x6] sm:$0x1]   ;;  %v56_v4 = vld [vmem:[%s111_s0 + $0x4] sm:$0x1]   ;;  %s70_s21 = smov 24  }
   0x3   :  { %31 = vrot.lane.b32.xlu2 %v57_v2, %s69_s14  ;;  %v58_v5 = vld [vmem:[%s111_s0 + $0x2] sm:$0x1]   ;;  %s71_s22 = smov 16   ;;  %s72_s23 = smov 8   ;;  %v59_v6 = vld [vmem:[%s111_s0 + $0x1] sm:$0x1]  }
   0x4   :  { %s73_s26 = smov 4   ;;  %v2_v7 = vld [vmem:[%s111_s0] sm:$0x1]   ;;  %vm27_vm4 = vcmask 162944   ;;  %vm33_vm5 = vcmask 130144   ;;  %vm39_vm6 = vcmask 97344  }
   0x5   :  { %4 = vst.msk [vmem:[#allocation0] sm:$0x1] %vm3_vm0, %v2_v7   ;;  %vm45_vm7 = vcmask 64544  }
   0xa   :  { %13 = vrot.lane.b32.xlu0 %v54_v3, %s70_s21  ;;  %25 = vrot.lane.b32.xlu1 %v56_v4, %s71_s22 }
   0xb   :  { %37 = vrot.lane.b32.xlu2 %v58_v5, %s72_s23 }
  0x12   :  { %43 = vrot.lane.b32.xlu0 %v59_v6, %s73_s26 }
  0x5d   :  { %v32_v8 = vpop.permute.xlu2 %31  }
  0x65   :  { %v38_v9 = vpop.permute.xlu2 %37  }
  0x74   :  { %v8_v10 = vpop.permute.xlu0 %7   ;;  %v20_v11 = vpop.permute.xlu1 %19  }
  0x75   :  { %10 = vst.msk [vmem:[#allocation0] sm:$0x1] %vm9_vm1, %v8_v10  }
  0x7c   :  { %v14_v12 = vpop.permute.xlu0 %13   ;;  %v26_v13 = vpop.permute.xlu1 %25  }
  0x7d   :  { %16 = vst.msk [vmem:[#allocation0] sm:$0x1] %vm15_vm2, %v14_v12  }
  0x7e   :  { %22 = vst.msk [vmem:[#allocation0] sm:$0x1] %vm21_vm3, %v20_v11  }
  0x7f   :  { %28 = vst.msk [vmem:[#allocation0] sm:$0x1] %vm27_vm4, %v26_v13  }
  0x80   :  { %34 = vst.msk [vmem:[#allocation0] sm:$0x1] %vm33_vm5, %v32_v8  }
  0x81   :  { %40 = vst.msk [vmem:[#allocation0] sm:$0x1] %vm39_vm6, %v38_v9  }
  0x84   :  { %v44_v14 = vpop.permute.xlu0 %43  }
  0x85   :  { %46 = vst.msk [vmem:[#allocation0] sm:$0x1] %vm45_vm7, %v44_v14  }
  0x8c   :  { %v49_v15 = vld [vmem:[#allocation0] sm:$0x1] }
  0x8d   :  { %52 = vst [vmem:[%s112_s1] sm:$0x1] %v49_v15 }

// kernel: unet_skip_block3d.3
= control target key start
LH: loop header
LB: loop body
LE: loop exit
PB: predicated region body
PF: predicated region fallthrough
CT: control target
= control target key end

     0   :  { %s6811_s18 = smov 0   ;;  %s10150_s0 = inlined_call_operand.vmem [shape: f32[2,4,4,4,128], index: 0, kind: input, shape index: {}]   ;;  %s10151_s1 = inlined_call_operand.vmem [shape: f32[1,128], index: 1, kind: input, shape index: {}]   ;;  %s10152_s2 = inlined_call_operand.vmem [shape: f32[1,128], index: 2, kind: input, shape index: {}]   ;;  %s10153_s3 = inlined_call_operand.vmem [shape: bf16[3456,128], index: 3, kind: input, shape index: {}]   ;;  %s10154_s4 = inlined_call_operand.vmem [shape: f32[2,64,128], index: 4, kind: output, shape index: {0}]   ;;  %s10155_s5 = inlined_call_operand.vmem [shape: f32[2,2,128], index: 5, kind: output, shape index: {1}]  }
   0x1 LB: > { %s5640_s19 = sadd.s32 4294967295, %s6778_s18   ;;  %p5644_p0 = scmp.ge.s32.totalorder %s6778_s18, 1  ;;  %s6778_s18 = sphi %s6811_s18, %s16_s18  }
   0x2   : > { %p190_p1 = scmp.lt.s32.totalorder %s6778_s18, 3 }
   0x4   : > { %p191_p2 = pnand %p5644_p0, %p190_p1 }
   0x6   : > { %194 = sbr.rel (%p191_p2) target bundleno = 954 (0x3ba), region = 36 }
   0xb   : > { %p222_p3 = scmp.lt.s32.totalorder %s5640_s19, 1  ;;  %p5650_p4 = scmp.ne.s32.totalorder %s5640_s19, 0 }
   0xd   : > { %s223_s20 = scalar_select %p222_p3, %s5640_s19, 1 }
   0xe   : > { %239 = sbr.rel (%p5650_p4) target bundleno = 56 (0x38), region = 40 }
   0xf   : > { %s6517_s21 = sshll.u32 %s223_s20, 6  ;;  %s5649_s22 = sshll.u32 %s223_s20, 1 }
  0x10   : > { %s6822_s25 = scalar_lea.vmem %s10150_s0, %s6517_s21  ;;  %s6827_s28 = scalar_lea.vmem %s10154_s4, %s6517_s21 }
  0x11   : > { %s6832_s6 = scalar_lea.vmem %s10155_s5, %s5649_s22 }
  0x13   : > { %v6780_v0 = vmov 0.0  }
  0x14   : > { %240 = vst [vmem:[#allocation2] sm:$0x3f] %v6780_v0 }
  0x15   : > { %241 = vst [vmem:[#allocation2 + $0x8] sm:$0x3f] %v6780_v0 }
  0x16   : > { %242 = vst [vmem:[#allocation2 + $0x10] sm:$0x3f] %v6780_v0 }
  0x17   : > { %243 = vst [vmem:[#allocation2 + $0x18] sm:$0x3f] %v6780_v0 }
  0x18   : > { %244 = vst [vmem:[#allocation2 + $0x20] sm:$0x3f] %v6780_v0 }
  0x19   : > { %245 = vst [vmem:[#allocation2 + $0x28] sm:$0x3f] %v6780_v0 }
  0x1a   : > { %246 = vst [vmem:[#allocation2 + $0x30] sm:$0x3f] %v6780_v0 }
  0x1b   : > { %247 = vst [vmem:[#allocation2 + $0x38] sm:$0x3f] %v6780_v0 }
  0x1c   : > { %248 = vst [vmem:[#allocation2 + $0x40] sm:$0x3f] %v6780_v0 }
  0x1d   : > { %249 = vst [vmem:[#allocation2 + $0x48] sm:$0x3f] %v6780_v0 }
  0x1e   : > { %250 = vst [vmem:[#allocation2 + $0x50] sm:$0x3f] %v6780_v0 }
  0x1f   : > { %251 = vst [vmem:[#allocation2 + $0x58] sm:$0x3f] %v6780_v0 }
  0x20   : > { %252 = vst [vmem:[#allocation2 + $0x60] sm:$0x3f] %v6780_v0 }
  0x21   : > { %253 = vst [vmem:[#allocation2 + $0x68] sm:$0x3f] %v6780_v0 }
  0x22   : > { %254 = vst [vmem:[#allocation2 + $0x70] sm:$0x3f] %v6780_v0 }
  0x23   : > { %255 = vst [vmem:[#allocation2 + $0x78] sm:$0x3f] %v6780_v0 }
  0x24   : > { %256 = vst [vmem:[#allocation2 + $0x80] sm:$0x3f] %v6780_v0 }
  0x25   : > { %257 = vst [vmem:[#allocation2 + $0x88] sm:$0x3f] %v6780_v0 }
  0x26   : > { %258 = vst [vmem:[#allocation2 + $0x90] sm:$0x3f] %v6780_v0 }
  0x27   : > { %259 = vst [vmem:[#allocation2 + $0x98] sm:$0x3f] %v6780_v0 }
  0x28   : > { %260 = vst [vmem:[#allocation2 + $0xa0] sm:$0x3f] %v6780_v0 }
  0x29   : > { %261 = vst [vmem:[#allocation2 + $0xa8] sm:$0x3f] %v6780_v0 }
  0x2a   : > { %262 = vst [vmem:[#allocation2 + $0xb0] sm:$0x3f] %v6780_v0 }
  0x2b   : > { %263 = vst [vmem:[#allocation2 + $0xb8] sm:$0x3f] %v6780_v0 }
  0x2c   : > { %264 = vst [vmem:[#allocation2 + $0xc0] sm:$0x3f] %v6780_v0 }
  0x2d   : > { %265 = vst [vmem:[#allocation2 + $0xc8] sm:$0x3f] %v6780_v0 }
  0x2e   : > { %266 = vst [vmem:[#allocation2 + $0xd0] sm:$0x3f] %v6780_v0 }
  0x2f   : > { %267 = vst [vmem:[#allocation2 + $0xd8] sm:$0x3f] %v6780_v0 }
  0x30   : > { %268 = vst [vmem:[#allocation2 + $0xe0] sm:$0x3f] %v6780_v0 }
  0x31   : > { %269 = vst [vmem:[#allocation2 + $0xe8] sm:$0x3f] %v6780_v0 }
  0x32   : > { %270 = vst [vmem:[#allocation2 + $0xf0] sm:$0x3f] %v6780_v0 }
  0x33   : > { %271 = vst [vmem:[#allocation2 + $0xf8] sm:$0x3f] %v6780_v0 }
  0x34   : > { %272 = vst [vmem:[#allocation2 + $0x100] sm:$0x3f] %v6780_v0 }
  0x35   : > { %273 = vst [vmem:[#allocation2 + $0x108] sm:$0x3f] %v6780_v0 }
  0x36   : > { %274 = vst [vmem:[#allocation2 + $0x110] sm:$0x3f] %v6780_v0 }
  0x37   : > { %275 = vst [vmem:[#allocation2 + $0x118] sm:$0x3f] %v6780_v0 }
  0x38 PF: > { %v6526_v1 = vld [vmem:[%s10153_s3 + $0x38] sm:$0xff]  ;;  %v6525_v3 = vld [vmem:[%s10153_s3 + $0x30] sm:$0xff]  ;;  %v6524_v6 = vld [vmem:[%s10153_s3 + $0x28] sm:$0xff]  ;;  %vm1908_vm0 = vcmask 1041408   ;;  %vm1912_vm1 = vcmask 1045508   ;;  %vm1916_vm2 = vcmask 1043456  }
  0x39   : > { %v6542_v2 = vld [vmem:[%s10153_s3 + $0xb8] sm:$0xff]  ;;  %4726 = vmatpush.bf16.msra.mxu0 %v6526_v1  ;;  %6735 = vmatpush.bf16.msra.mxu3 %v6526_v1  ;;  %v6541_v5 = vld [vmem:[%s10153_s3 + $0xb0] sm:$0xff]  ;;  %v6540_v8 = vld [vmem:[%s10153_s3 + $0xa8] sm:$0xff] }
  0x3a   : > { %v6534_v4 = vld [vmem:[%s10153_s3 + $0x78] sm:$0xff]  ;;  %4784 = vmatpush.bf16.msra.mxu2 %v6542_v2  ;;  %v6533_v7 = vld [vmem:[%s10153_s3 + $0x70] sm:$0xff]  ;;  %v397_v9 = vld [vmem:[#allocation2] sm:$0xf] }
  0x3b   : > { %4755 = vmatpush.bf16.msra.mxu1 %v6534_v4  ;;  %v398_v10 = vld [vmem:[#allocation2 + $0x8] sm:$0xf]  ;;  %v6858_v11 = vld [vmem:[#allocation2 + $0x10] sm:$0xf]  ;;  %v6532_v12 = vld [vmem:[%s10153_s3 + $0x68] sm:$0xff]  ;;  %v413_v16 = vpack.c.bf16 %v397_v9, %v397_v9 }
  0x3c   : > { %v6863_v13 = vld [vmem:[#allocation2 + $0x18] sm:$0xf]  ;;  %v429_v14 = vld [vmem:[#allocation2 + $0x1] sm:$0xf]  ;;  %v430_v15 = vld [vmem:[#allocation2 + $0x9] sm:$0xf]  ;;  %v414_v17 = vpack.c.bf16 %v398_v10, %v398_v10  ;;  %v415_v23 = vpack.c.bf16 %v6858_v11, %v6858_v11 }
  0x3d   : > { %4727 = vmatpush.bf16.msra.mxu0 %v6525_v3  ;;  %6736 = vmatpush.bf16.msra.mxu3 %v6525_v3  ;;  %v431_v18 = vld [vmem:[#allocation2 + $0x11] sm:$0xf]  ;;  %v432_v19 = vld [vmem:[#allocation2 + $0x19] sm:$0xf]  ;;  %v445_v20 = vpack.c.bf16 %v429_v14, %v429_v14  ;;  %v446_v21 = vpack.c.bf16 %v430_v15, %v430_v15  ;;  %v461_v22 = vld [vmem:[#allocation2 + $0x2] sm:$0xf]  ;;  %v416_v24 = vpack.c.bf16 %v6863_v13, %v6863_v13 }
  0x3e   : > { %4785 = vmatpush.bf16.msra.mxu2 %v6541_v5  ;;  %v447_v25 = vpack.c.bf16 %v431_v18, %v431_v18  ;;  %v462_v26 = vld [vmem:[#allocation2 + $0xa] sm:$0xf]  ;;  %v463_v27 = vld [vmem:[#allocation2 + $0x12] sm:$0xf]  ;;  %v464_v28 = vld [vmem:[#allocation2 + $0x1a] sm:$0xf]  ;;  %v477_v29 = vpack.c.bf16 %v461_v22, %v461_v22  ;;  %v448_v30 = vpack.c.bf16 %v432_v19, %v432_v19 }
  0x3f   : > { %4756 = vmatpush.bf16.msra.mxu1 %v6533_v7  ;;  %v478_v31 = vpack.c.bf16 %v462_v26, %v462_v26  ;;  %v479_v32 = vpack.c.bf16 %v463_v27, %v463_v27  ;;  %v480_v33 = vpack.c.bf16 %v464_v28, %v464_v28  ;;  %v494_v34 = vld [vmem:[#allocation2 + $0x8] sm:$0xf]  ;;  %v495_v35 = vld [vmem:[#allocation2 + $0x10] sm:$0xf]  ;;  %v496_v36 = vld [vmem:[#allocation2 + $0x18] sm:$0xf] }
  0x40   : > { %v6523_v37 = vld [vmem:[%s10153_s3 + $0x20] sm:$0xff]  ;;  %v497_v38 = vld [vmem:[#allocation2 + $0x20] sm:$0xf]  ;;  %v510_v39 = vpack.c.bf16 %v494_v34, %v494_v34  ;;  %v511_v40 = vpack.c.bf16 %v495_v35, %v495_v35  ;;  %v512_v41 = vpack.c.bf16 %v496_v36, %v496_v36  ;;  %v1588_v42 = vrot.slane %v445_v20, 6  ;;  %v6522_v57 = vld [vmem:[%s10153_s3 + $0x18] sm:$0xff] }
  0x41   : > { %4728 = vmatpush.bf16.msra.mxu0 %v6524_v6  ;;  %6737 = vmatpush.bf16.msra.mxu3 %v6524_v6  ;;  %v6539_v43 = vld [vmem:[%s10153_s3 + $0xa0] sm:$0xff]  ;;  %v513_v44 = vpack.c.bf16 %v497_v38, %v497_v38  ;;  %v1589_v45 = vrot.slane %v477_v29, 4  ;;  %v1608_v46 = vrot.slane %v446_v21, 6  ;;  %v1609_v47 = vrot.slane %v478_v31, 4  ;;  %v6538_v2 = vld [vmem:[%s10153_s3 + $0x98] sm:$0xff]  ;;  %v6521_v7 = vld [vmem:[%s10153_s3 + $0x10] sm:$0xff] }
  0x42   : > { %4786 = vmatpush.bf16.msra.mxu2 %v6540_v8  ;;  %v1590_v48 = vrot.slane %v510_v39, 2  ;;  %v1610_v49 = vrot.slane %v511_v40, 2  ;;  %v1628_v50 = vrot.slane %v447_v25, 6  ;;  %v1629_v51 = vrot.slane %v479_v32, 4  ;;  %v6531_v52 = vld [vmem:[%s10153_s3 + $0x60] sm:$0xff]  ;;  %v6530_v6 = vld [vmem:[%s10153_s3 + $0x58] sm:$0xff] }
  0x43   : > { %4757 = vmatpush.bf16.msra.mxu1 %v6532_v12  ;;  %v1630_v53 = vrot.slane %v512_v41, 2  ;;  %v1648_v54 = vrot.slane %v448_v30, 6  ;;  %v1649_v55 = vrot.slane %v480_v33, 4  ;;  %v1650_v56 = vrot.slane %v513_v44, 2  ;;  %v6537_v9 = vld [vmem:[%s10153_s3 + $0x90] sm:$0xff]  ;;  %v6520_v21 = vld [vmem:[%s10153_s3 + $0x8] sm:$0xff] }
  0x44   : > { %v1911_v58 = vsel %vm1908_vm0, %v413_v16, %v1588_v42  ;;  %v1915_v59 = vsel %vm1912_vm1, %v1589_v45, %v1590_v48  ;;  %v1960_v60 = vsel %vm1908_vm0, %v414_v17, %v1608_v46  ;;  %v1963_v61 = vsel %vm1912_vm1, %v1609_v47, %v1610_v49  ;;  %v278_v10 = vld [vmem:[%s6822_s25] sm:$0xf]  ;;  %v6529_v11 = vld [vmem:[%s10153_s3 + $0x50] sm:$0xff]  ;;  %v279_v12 = vld [vmem:[%s6822_s25 + $0x4] sm:$0xf] }
  0x45   : > { %4729 = vmatpush.bf16.msra.mxu0 %v6523_v37  ;;  %v1917_v62 = vsel %vm1916_vm2, %v1911_v58, %v1915_v59  ;;  %v1964_v63 = vsel %vm1916_vm2, %v1960_v60, %v1963_v61  ;;  %v2007_v0 = vsel %vm1908_vm0, %v415_v23, %v1628_v50  ;;  %v2010_v1 = vsel %vm1912_vm1, %v1629_v51, %v1630_v53  ;;  %v280_v13 = vld [vmem:[%s6822_s25 + $0x8] sm:$0xf]  ;;  %v281_v14 = vld [vmem:[%s6822_s25 + $0xc] sm:$0xf]  ;;  %v282_v15 = vld [vmem:[%s6822_s25 + $0x10] sm:$0xf] }
  0x46   : > { %4787 = vmatpush.bf16.msra.mxu2 %v6539_v43  ;;  %v2011_v3 = vsel %vm1916_vm2, %v2007_v0, %v2010_v1  ;;  %v2054_v4 = vsel %vm1908_vm0, %v416_v24, %v1648_v54  ;;  %v2057_v5 = vsel %vm1912_vm1, %v1649_v55, %v1650_v56  ;;  %3095 = vst [vmem:[#allocation1] ss:$4 sm:$0xff] %v1917_v62  ;;  %v283_v16 = vld [vmem:[%s6822_s25 + $0x14] sm:$0xf]  ;;  %v6917_v17 = vld [vmem:[%s10151_s1] ss:$0 sm:$0xff] }
  0x47   : > { %4758 = vmatpush.bf16.msra.mxu1 %v6531_v52  ;;  %6738 = vmatpush.bf16.msra.mxu3 %v6523_v37  ;;  %v2058_v8 = vsel %vm1916_vm2, %v2054_v4, %v2057_v5  ;;  %3097 = vst [vmem:[#allocation1 + $0x1] ss:$4 sm:$0xff] %v1964_v63  ;;  %v6922_v18 = vld [vmem:[%s10152_s2] ss:$0 sm:$0xff]  ;;  %v284_v19 = vld [vmem:[%s6822_s25 + $0x18] sm:$0xf]  ;;  %v297_v22 = vmul.f32 %v6917_v17, %v278_v10 }
  0x48   : > { %3099 = vst [vmem:[#allocation1 + $0x2] ss:$4 sm:$0xff] %v2011_v3  ;;  %v285_v20 = vld [vmem:[%s6822_s25 + $0x1c] sm:$0xf]  ;;  %v298_v23 = vmul.f32 %v6917_v17, %v279_v12  ;;  %v299_v24 = vmul.f32 %v6917_v17, %v280_v13  ;;  %v300_v25 = vmul.f32 %v6917_v17, %v281_v14  ;;  %v6536_v26 = vld [vmem:[%s10153_s3 + $0x88] sm:$0xff]  ;;  %v301_v28 = vmul.f32 %v6917_v17, %v282_v15  ;;  %v6519_v38 = vld [vmem:[%s10153_s3] sm:$0xff] }
  0x49   : > { %4730 = vmatpush.bf16.msra.mxu0 %v6522_v57  ;;  %3101 = vst [vmem:[#allocation1 + $0x3] ss:$4 sm:$0xff] %v2058_v8  ;;  %v287_v27 = vld [vmem:[%s6822_s25 + $0x24] sm:$0xf]  ;;  %v302_v29 = vmul.f32 %v6917_v17, %v283_v16  ;;  %v6528_v30 = vld [vmem:[%s10153_s3 + $0x48] sm:$0xff]  ;;  %v303_v32 = vmul.f32 %v6917_v17, %v284_v19  ;;  %v304_v33 = vmul.f32 %v6917_v17, %v285_v20  ;;  %v6558_v41 = vld [vmem:[%s10153_s3 + $0x138] sm:$0xff] }
  0x4a   : > { %4788 = vmatpush.bf16.msra.mxu2 %v6538_v2  ;;  %10252 = vst [vmem:[#allocation3_spill] sm:$0xff] %v6917_v17  ;;  %v293_v31 = vld [vmem:[%s6822_s25 + $0x3c] sm:$0xf]  ;;  %v316_v34 = vadd.f32 %v6922_v18, %v297_v22  ;;  %v317_v35 = vadd.f32 %v6922_v18, %v298_v23  ;;  %v318_v36 = vadd.f32 %v6922_v18, %v299_v24  ;;  %v6535_v42 = vld [vmem:[%s10153_s3 + $0x80] sm:$0xff]  ;;  %v6557_v47 = vld [vmem:[%s10153_s3 + $0x130] sm:$0xff] }
  0x4b   : > { %4759 = vmatpush.bf16.msra.mxu1 %v6530_v6  ;;  %10253 = vst [vmem:[#allocation4_spill] sm:$0xff] %v6922_v18  ;;  %6739 = vmatpush.bf16.msra.mxu3 %v6522_v57  ;;  %v319_v37 = vadd.f32 %v6922_v18, %v300_v25  ;;  %v306_v39 = vmul.f32 %v6917_v17, %v287_v27  ;;  %v6556_v1 = vld [vmem:[%s10153_s3 + $0x128] sm:$0xff]  ;;  %v6982_v10 = vld [vmem:[#allocation2 + $0x32] sm:$0xf]  ;;  %v6988_v13 = vld [vmem:[#allocation2 + $0x19] sm:$0xf] }
  0x4c   : > { %v320_v40 = vadd.f32 %v6922_v18, %v301_v28  ;;  %v312_v43 = vmul.f32 %v6917_v17, %v293_v31  ;;  %v321_v44 = vadd.f32 %v6922_v18, %v302_v29  ;;  %v322_v45 = vadd.f32 %v6922_v18, %v303_v32  ;;  %10255 = vst [vmem:[#allocation6_spill] sm:$0xff] %v6982_v10  ;;  %v6986_v12 = vld [vmem:[#allocation2 + $0x11] sm:$0xf]  ;;  %v6990_v14 = vld [vmem:[#allocation2 + $0x21] sm:$0xf] }
  0x4d   : > { %4731 = vmatpush.bf16.msra.mxu0 %v6521_v7  ;;  %v323_v46 = vadd.f32 %v6922_v18, %v304_v33  ;;  %vm332_vm3 = vcmp.ge.f32.partialorder %v316_v34, 0.0  ;;  %vm333_vm4 = vcmp.ge.f32.partialorder %v317_v35, 0.0  ;;  %vm334_vm5 = vcmp.ge.f32.partialorder %v318_v36, 0.0  ;;  %v6992_v15 = vld [vmem:[#allocation2 + $0xa] sm:$0xf] }
  0x4e   : > { %4789 = vmatpush.bf16.msra.mxu2 %v6537_v9  ;;  %vm335_vm6 = vcmp.ge.f32.partialorder %v319_v37, 0.0  ;;  %v348_v48 = vmul.f32 0.2, %v316_v34  ;;  %v349_v49 = vmul.f32 0.2, %v317_v35  ;;  %v325_v50 = vadd.f32 %v6922_v18, %v306_v39 }
  0x4f   : > { %4760 = vmatpush.bf16.msra.mxu1 %v6529_v11  ;;  %6740 = vmatpush.bf16.msra.mxu3 %v6521_v7  ;;  %v350_v51 = vmul.f32 0.2, %v318_v36  ;;  %v351_v52 = vmul.f32 0.2, %v319_v37  ;;  %v352_v53 = vmul.f32 0.2, %v320_v40  ;;  %v331_v55 = vadd.f32 %v6922_v18, %v312_v43 }
  0x50   : > { %v3110_v54 = vld.sshfl [vmem:[#allocation1] sm:$0xff pattern:$0x73625140]  ;;  %vm336_vm7 = vcmp.ge.f32.partialorder %v320_v40, 0.0  ;;  %v353_v56 = vmul.f32 0.2, %v321_v44  ;;  %v364_v57 = vsel %vm332_vm3, %v316_v34, %v348_v48  ;;  %v365_v59 = vsel %vm333_vm4, %v317_v35, %v349_v49 }
  0x51   : > { %4732 = vmatpush.bf16.msra.mxu0 %v6520_v21  ;;  %vm337_vm8 = vcmp.ge.f32.partialorder %v321_v44, 0.0  ;;  %v354_v58 = vmul.f32 0.2, %v322_v45  ;;  %v366_v60 = vsel %vm334_vm5, %v318_v36, %v350_v51  ;;  %381 = vst [vmem:[#allocation2 + $0x39] sm:$0xf] %v364_v57  ;;  %vm338_vm9 = vcmp.ge.f32.partialorder %v322_v45, 0.0 }
  0x52   : > { %4790 = vmatpush.bf16.msra.mxu2 %v6536_v26  ;;  %v355_v61 = vmul.f32 0.2, %v323_v46  ;;  %v367_v62 = vsel %vm335_vm6, %v319_v37, %v351_v52  ;;  %vm339_vm10 = vcmp.ge.f32.partialorder %v323_v46, 0.0  ;;  %v357_v63 = vmul.f32 0.2, %v325_v50  ;;  %v6555_v7 = vld [vmem:[%s10153_s3 + $0x120] sm:$0xff] }
  0x53   : > { %4761 = vmatpush.bf16.msra.mxu1 %v6528_v30  ;;  %6741 = vmatpush.bf16.msra.mxu3 %v6520_v21  ;;  %v368_v0 = vsel %vm336_vm7, %v320_v40, %v352_v53  ;;  %382 = vst [vmem:[#allocation2 + $0x41] sm:$0xf] %v365_v59  ;;  %vm341_vm11 = vcmp.ge.f32.partialorder %v325_v50, 0.0  ;;  %v363_v2 = vmul.f32 0.2, %v331_v55  ;;  %v369_v3 = vsel %vm337_vm8, %v321_v44, %v353_v56 }
  0x54   : > { %383 = vst [vmem:[#allocation2 + $0x49] sm:$0xf] %v366_v60  ;;  %vm347_vm12 = vcmp.ge.f32.partialorder %v331_v55, 0.0  ;;  %v370_v4 = vsel %vm338_vm9, %v322_v45, %v354_v58  ;;  %v371_v5 = vsel %vm339_vm10, %v323_v46, %v355_v61  ;;  %v373_v6 = vsel %vm341_vm11, %v325_v50, %v357_v63  ;;  %v6980_v9 = vld [vmem:[#allocation2 + $0x31] sm:$0xf] }
  0x55   : > { %4733 = vmatpush.bf16.msra.mxu0 %v6519_v38  ;;  %384 = vst [vmem:[#allocation2 + $0x51] sm:$0xf] %v367_v62  ;;  %v379_v8 = vsel %vm347_vm12, %v331_v55, %v363_v2  ;;  %v6984_v11 = vld [vmem:[#allocation2 + $0x9] sm:$0xf]  ;;  %v6994_v16 = vld [vmem:[#allocation2 + $0x12] sm:$0xf] }
  0x56   : > { %4791 = vmatpush.bf16.msra.mxu2 %v6535_v42  ;;  %385 = vst [vmem:[#allocation2 + $0x69] sm:$0xf] %v368_v0  ;;  %v6996_v19 = vld [vmem:[#allocation2 + $0x1a] sm:$0xf]  ;;  %v6998_v20 = vld [vmem:[#allocation2 + $0x22] sm:$0xf] }
  0x57   : > { %6742 = vmatpush.bf16.msra.mxu3 %v6519_v38  ;;  %386 = vst [vmem:[#allocation2 + $0x71] sm:$0xf] %v369_v3  ;;  %v7000_v21 = vld [vmem:[#allocation2 + $0x10] sm:$0xf]  ;;  %v7002_v22 = vld [vmem:[#allocation2 + $0x18] sm:$0xf] }
  0x58   : > { %4734 = vmatmul.bf16.vlgmr.msra.gmra.mxu0 %v3110_v54  ;;  %387 = vst [vmem:[#allocation2 + $0x79] sm:$0xf] %v370_v4  ;;  %v7004_v23 = vld [vmem:[#allocation2 + $0x20] sm:$0xf]  ;;  %v7006_v24 = vld [vmem:[#allocation2 + $0x28] sm:$0xf] }
  0x59   : > { %4842 = vmatpush.bf16.msrb.mxu0 %v6558_v41  ;;  %388 = vst [vmem:[#allocation2 + $0x81] sm:$0xf] %v371_v5  ;;  %v7008_v25 = vld [vmem:[#allocation2 + $0x11] sm:$0xf]  ;;  %v7010_v26 = vld [vmem:[#allocation2 + $0x19] sm:$0xf] }
  0x5a   : > { %390 = vst [vmem:[#allocation2 + $0xa1] sm:$0xf] %v373_v6  ;;  %v7014_v28 = vld [vmem:[#allocation2 + $0x21] sm:$0xf]  ;;  %v7016_v29 = vld [vmem:[#allocation2 + $0x29] sm:$0xf] }
  0x5b   : > { %396 = vst [vmem:[#allocation2 + $0xe1] sm:$0xf] %v379_v8  ;;  %v7018_v30 = vld [vmem:[#allocation2 + $0x12] sm:$0xf]  ;;  %v7020_v31 = vld [vmem:[#allocation2 + $0x39] sm:$0xf] }
  0x5c   : > { %10254 = vst [vmem:[#allocation5_spill] sm:$0xff] %v6980_v9  ;;  %v7022_v32 = vld [vmem:[#allocation2 + $0x3a] sm:$0xf]  ;;  %v7036_v39 = vld [vmem:[#allocation2 + $0x22] sm:$0xf] }
  0x5d   : > { %4843 = vmatpush.bf16.msrb.mxu0 %v6557_v47  ;;  %10256 = vst [vmem:[#allocation7_spill] sm:$0xff] %v7020_v31  ;;  %v7026_v34 = vld [vmem:[#allocation2 + $0x38] sm:$0xf]  ;;  %v7038_v40 = vld [vmem:[#allocation2 + $0x41] sm:$0xf] }
  0x5e   : > { %10257 = vst [vmem:[#allocation8_spill] sm:$0xff] %v7022_v32  ;;  %v7034_v38 = vld [vmem:[#allocation2 + $0x1a] sm:$0xf]  ;;  %v7040_v41 = vld [vmem:[#allocation2 + $0x42] sm:$0xf] }
  0x5f   : > { %10258 = vst [vmem:[#allocation9_spill] sm:$0xff] %v7026_v34  ;;  %v7042_v42 = vld [vmem:[#allocation2 + $0x40] sm:$0xf]  ;;  %v7052_v47 = vld [vmem:[#allocation2 + $0x2a] sm:$0xf]  ;;  %v10287_v34 = vpack.c.bf16 %v7008_v25, %v7008_v25 }
  0x60   : > { %10259 = vst [vmem:[#allocation10_spill] sm:$0xff] %v7038_v40  ;;  %v7054_v48 = vld [vmem:[#allocation2 + $0x30] sm:$0xf]  ;;  %v7056_v49 = vld [vmem:[#allocation2 + $0x48] sm:$0xf] }
  0x61   : > { %4844 = vmatpush.bf16.msrb.mxu0 %v6556_v1  ;;  %10260 = vst [vmem:[#allocation11_spill] sm:$0xff] %v7040_v41  ;;  %v7066_v54 = vld [vmem:[#allocation2 + $0x38] sm:$0xf]  ;;  %v7068_v55 = vld [vmem:[#allocation2 + $0x40] sm:$0xf] }
  0x62   : > { %10261 = vst [vmem:[#allocation12_spill] sm:$0xff] %v7042_v42  ;;  %v7070_v56 = vld [vmem:[#allocation2 + $0x31] sm:$0xf]  ;;  %v7080_v61 = vld [vmem:[#allocation2 + $0x48] sm:$0xf] }
  0x63   : > { %10262 = vst [vmem:[#allocation13_spill] sm:$0xff] %v7056_v49  ;;  %v7082_v62 = vld [vmem:[#allocation2 + $0x39] sm:$0xf]  ;;  %v7084_v63 = vld [vmem:[#allocation2 + $0x41] sm:$0xf] }
  0x64   : > { %v7086_v0 = vld [vmem:[#allocation2 + $0x49] sm:$0xf]  ;;  %v7096_v5 = vld [vmem:[#allocation2 + $0x32] sm:$0xf]  ;;  %v7098_v6 = vld [vmem:[#allocation2 + $0x3a] sm:$0xf] }
  0x65   : > { %4845 = vmatpush.bf16.msrb.mxu0 %v6555_v7  ;;  %v7100_v7 = vld [vmem:[#allocation2 + $0x42] sm:$0xf]  ;;  %v7102_v8 = vld [vmem:[#allocation2 + $0x4a] sm:$0xf]  ;;  %v7112_v43 = vld [vmem:[#allocation2 + $0x38] sm:$0xf] }
  0x66   : > { %10263 = vst [vmem:[#allocation14_spill] sm:$0xff] %v7112_v43  ;;  %v7114_v37 = vld [vmem:[#allocation2 + $0x40] sm:$0xf]  ;;  %v7116_v3 = vld [vmem:[#allocation2 + $0x48] sm:$0xf] }
  0x67   : > { %10264 = vst [vmem:[#allocation15_spill] sm:$0xff] %v7114_v37  ;;  %v7118_v57 = vld [vmem:[#allocation2 + $0x50] sm:$0xf]  ;;  %v7128_v33 = vld [vmem:[#allocation2 + $0x39] sm:$0xf]  ;;  %v10286_v37 = vpack.c.bf16 %v7000_v21, %v7000_v21  ;;  %v10290_v21 = vpack.c.bf16 %v7096_v5, %v7096_v5 }
  0x68   : > { %10265 = vst [vmem:[#allocation16_spill] sm:$0xff] %v7116_v3  ;;  %v7130_v36 = vld [vmem:[#allocation2 + $0x41] sm:$0xf]  ;;  %v7132_v60 = vld [vmem:[#allocation2 + $0x49] sm:$0xf] }
  0x69   : > { %10266 = vst [vmem:[#allocation17_spill] sm:$0xff] %v7118_v57  ;;  %v7134_v53 = vld [vmem:[#allocation2 + $0x51] sm:$0xf]  ;;  %v7144_v4 = vld [vmem:[#allocation2 + $0x3a] sm:$0xf]  ;;  %v1592_v9 = vrot.slane %v10286_v37, 4 }
  0x6a   : > { %10267 = vst [vmem:[#allocation18_spill] sm:$0xff] %v7134_v53  ;;  %v7146_v35 = vld [vmem:[#allocation2 + $0x42] sm:$0xf]  ;;  %v7148_v59 = vld [vmem:[#allocation2 + $0x4a] sm:$0xf]  ;;  %v1596_v37 = vrot.slane %v10290_v21, 2 }
  0x6b   : > { %v7150_v52 = vld [vmem:[#allocation2 + $0x52] sm:$0xf]  ;;  %v7160_v46 = vld [vmem:[#allocation2 + $0x40] sm:$0xf]  ;;  %v7162_v27 = vld [vmem:[#allocation2 + $0x48] sm:$0xf] }
  0x6c   : > { %10268 = vst [vmem:[#allocation19_spill] sm:$0xff] %v7150_v52  ;;  %v7164_v58 = vld [vmem:[#allocation2 + $0x50] sm:$0xf]  ;;  %v7174_v44 = vld [vmem:[#allocation2 + $0x58] sm:$0xf] }
  0x6d   : > { %10269 = vst [vmem:[#allocation20_spill] sm:$0xff] %v7164_v58  ;;  %v7176_v45 = vld [vmem:[#allocation2 + $0x41] sm:$0xf]  ;;  %v7178_v49 = vld [vmem:[#allocation2 + $0x49] sm:$0xf] }
  0x6e   : > { %10270 = vst [vmem:[#allocation21_spill] sm:$0xff] %v7174_v44  ;;  %v7188_v40 = vld [vmem:[#allocation2 + $0x51] sm:$0xf]  ;;  %v7190_v50 = vld [vmem:[#allocation2 + $0x59] sm:$0xf] }
  0x6f   : > { %10271 = vst [vmem:[#allocation22_spill] sm:$0xff] %v7176_v45  ;;  %v7192_v42 = vld [vmem:[#allocation2 + $0x42] sm:$0xf]  ;;  %v7202_v32 = vld [vmem:[#allocation2 + $0x4a] sm:$0xf]  ;;  %v10288_v45 = vpack.c.bf16 %v7054_v48, %v7054_v48 }
  0x70   : > { %10272 = vst [vmem:[#allocation23_spill] sm:$0xff] %v7178_v49  ;;  %v7204_v2 = vld [vmem:[#allocation2 + $0x52] sm:$0xf]  ;;  %v7206_v31 = vld [vmem:[#allocation2 + $0x5a] sm:$0xf] }
  0x71   : > { %10273 = vst [vmem:[#allocation24_spill] sm:$0xff] %v7188_v40  ;;  %v7216_v17 = vld [vmem:[#allocation2 + $0x60] sm:$0xf]  ;;  %v7218_v1 = vld [vmem:[#allocation2 + $0x68] sm:$0xf] }
  0x72   : > { %10274 = vst [vmem:[#allocation25_spill] sm:$0xff] %v7190_v50  ;;  %v7220_v10 = vld [vmem:[#allocation2 + $0x70] sm:$0xf]  ;;  %v7230_v57 = vld [vmem:[#allocation2 + $0x78] sm:$0xf] }
  0x73   : > { %10275 = vst [vmem:[#allocation26_spill] sm:$0xff] %v7204_v2  ;;  %v7232_v51 = vld [vmem:[#allocation2 + $0x61] sm:$0xf]  ;;  %v7234_v3 = vld [vmem:[#allocation2 + $0x69] sm:$0xf]  ;;  %v10293_v2 = vpack.c.bf16 %v7002_v22, %v7002_v22  ;;  %v10298_v22 = vpack.c.bf16 %v6984_v11, %v6984_v11 }
  0x74   : > { %10276 = vst [vmem:[#allocation27_spill] sm:$0xff] %v7206_v31  ;;  %v7244_v43 = vld [vmem:[#allocation2 + $0x71] sm:$0xf]  ;;  %v7246_v41 = vld [vmem:[#allocation2 + $0x79] sm:$0xf] }
  0x75   : > { %10277 = vst [vmem:[#allocation28_spill] sm:$0xff] %v7220_v10  ;;  %v7248_v44 = vld [vmem:[#allocation2 + $0x62] sm:$0xf]  ;;  %v7258_v40 = vld [vmem:[#allocation2 + $0x68] sm:$0xf] }
  0x76   : > { %10278 = vst [vmem:[#allocation29_spill] sm:$0xff] %v7230_v57  ;;  %v7260_v18 = vld [vmem:[#allocation2 + $0x70] sm:$0xf]  ;;  %v7262_v50 = vld [vmem:[#allocation2 + $0x78] sm:$0xf] }
  0x77   : > { %10279 = vst [vmem:[#allocation30_spill] sm:$0xff] %v7244_v43  ;;  %v7280_v53 = vld [vmem:[#allocation2 + $0x80] sm:$0xf]  ;;  %v7282_v52 = vld [vmem:[#allocation2 + $0x69] sm:$0xf] }
  0x78   : > { %10280 = vst [vmem:[#allocation31_spill] sm:$0xff] %v7246_v41  ;;  %v7292_v31 = vld [vmem:[#allocation2 + $0x71] sm:$0xf]  ;;  %v7294_v57 = vld [vmem:[#allocation2 + $0x79] sm:$0xf]  ;;  %v10285_v41 = vpack.c.bf16 %v6992_v15, %v6992_v15  ;;  %v10289_v15 = vpack.c.bf16 %v7070_v56, %v7070_v56 }
  0x79   : > { %10281 = vst [vmem:[#allocation32_spill] sm:$0xff] %v7248_v44  ;;  %v7296_v49 = vld [vmem:[#allocation2 + $0x6a] sm:$0xf]  ;;  %v1593_v44 = vrot.slane %v10287_v34, 2  ;;  %v7326_v48 = vld [vmem:[#allocation2 + $0x72] sm:$0xf] }
  0x7a   : > { %10282 = vst [vmem:[#allocation33_spill] sm:$0xff] %v7262_v50  ;;  %v1591_v43 = vrot.slane %v10285_v41, 6  ;;  %v1594_v50 = vrot.slane %v10288_v45, 6  ;;  %v1595_v41 = vrot.slane %v10289_v15, 4  ;;  %v7328_v10 = vld [vmem:[#allocation2 + $0x7a] sm:$0xf]  ;;  %v1155_v56 = vpack.c.bf16 %v7296_v49, %v7296_v49 }
  0x7b   : > { %10283 = vst [vmem:[#allocation34_spill] sm:$0xff] %v7280_v53  ;;  %v7320_v25 = vld.sshfl [vmem:[#allocation1 + $0x18] sm:$0xff pattern:$0x73625140]  ;;  %v10292_v15 = vpack.c.bf16 %v6994_v16, %v6994_v16  ;;  %v7335_v21 = vld [vmem:[#allocation2 + $0x81] sm:$0xf]  ;;  %v10294_v45 = vpack.c.bf16 %v7010_v26, %v7010_v26  ;;  %v10295_v53 = vpack.c.bf16 %v7066_v54, %v7066_v54  ;;  %v10296_v49 = vpack.c.bf16 %v7082_v62, %v7082_v62 }
  0x7c   : > { %10284 = vst [vmem:[#allocation35_spill] sm:$0xff] %v7294_v57  ;;  %v1612_v34 = vrot.slane %v10293_v2, 4  ;;  %v10297_v16 = vpack.c.bf16 %v7098_v6, %v7098_v6  ;;  %v1920_v2 = vsel %vm1908_vm0, %v10298_v22, %v1591_v43  ;;  %v1923_v26 = vsel %vm1912_vm1, %v1592_v9, %v1593_v44  ;;  %v7361_v54 = vld.sshfl [vmem:[#allocation1 + $0x8] sm:$0xff pattern:$0x73625140] }
  0x7d   : > { %10291 = vst [vmem:[#allocation36_spill] sm:$0xff] %v7320_v25  ;;  %v1611_v5 = vrot.slane %v10292_v15, 6  ;;  %v1613_v25 = vrot.slane %v10294_v45, 2  ;;  %v1614_v57 = vrot.slane %v10295_v53, 6  ;;  %v1615_v58 = vrot.slane %v10296_v49, 4 }
  0x7e   : > { %v1616_v15 = vrot.slane %v10297_v16, 2  ;;  %v10299_v45 = vpack.c.bf16 %v7018_v30, %v7018_v30  ;;  %v1156_v62 = vpack.c.bf16 %v7326_v48, %v7326_v48  ;;  %v1157_v6 = vpack.c.bf16 %v7328_v10, %v7328_v10  ;;  %v3112_v43 = vld.sshfl [vmem:[#allocation1 + $0x10] sm:$0xff pattern:$0x73625140]  ;;  %v7371_v44 = vld [vmem:[#allocation2 + $0x82] sm:$0xf] }
  0x7f   : > { %v1924_v49 = vsel %vm1916_vm2, %v1920_v2, %v1923_v26  ;;  %v1930_v11 = vsel %vm1912_vm1, %v1595_v41, %v1596_v37  ;;  %v1222_v9 = vpack.c.bf16 %v7335_v21, %v7335_v21  ;;  %v10300_v30 = vpack.c.bf16 %v6996_v19, %v6996_v19  ;;  %4792 = vmatmul.bf16.vlgmr.msra.gmra.mxu2 %v3112_v43  ;;  %v10360_v10 = vld [vmem:[#allocation29_spill] sm:$0xff] }
  0x80   : > { %v1927_v53 = vsel %vm1908_vm0, %v10299_v45, %v1594_v50  ;;  %v10301_v48 = vpack.c.bf16 %v7004_v23, %v7004_v23  ;;  %3103 = vst [vmem:[#allocation1 + $0x20] ss:$4 sm:$0xff] %v1924_v49  ;;  %v10302_v41 = vpack.c.bf16 %v7014_v28, %v7014_v28  ;;  %v10303_v2 = vpack.c.bf16 %v7068_v55, %v7068_v55 }
  0x81   : > { %v1631_v50 = vrot.slane %v10300_v30, 6  ;;  %v1931_v22 = vsel %vm1916_vm2, %v1927_v53, %v1930_v11  ;;  %v10304_v45 = vpack.c.bf16 %v7084_v63, %v7084_v63  ;;  %v10305_v30 = vpack.c.bf16 %v6986_v12, %v6986_v12 }
  0x82   : > { %v1632_v16 = vrot.slane %v10301_v48, 4  ;;  %v1633_v37 = vrot.slane %v10302_v41, 2  ;;  %v1634_v26 = vrot.slane %v10303_v2, 6  ;;  %3118 = vst [vmem:[#allocation1] ss:$4 sm:$0xff] %v1931_v22  ;;  %v10306_v53 = vpack.c.bf16 %v7100_v7, %v7100_v7 }
  0x83   : > { %v1635_v19 = vrot.slane %v10304_v45, 4  ;;  %v1967_v23 = vsel %vm1908_vm0, %v10305_v30, %v1611_v5  ;;  %v1970_v28 = vsel %vm1912_vm1, %v1612_v34, %v1613_v25  ;;  %v10307_v55 = vpack.c.bf16 %v7034_v38, %v7034_v38 }
  0x84   : > { %v1636_v49 = vrot.slane %v10306_v53, 2  ;;  %v1977_v63 = vsel %vm1912_vm1, %v1615_v58, %v1616_v15  ;;  %v1254_v12 = vpack.c.bf16 %v7371_v44, %v7371_v44  ;;  %v10308_v5 = vpack.c.bf16 %v7128_v33, %v7128_v33 }
  0x85   : > { %v1974_v11 = vsel %vm1908_vm0, %v10307_v55, %v1614_v57  ;;  %v1971_v7 = vsel %vm1916_vm2, %v1967_v23, %v1970_v28  ;;  %v10309_v25 = vpack.c.bf16 %v7144_v4, %v7144_v4  ;;  %v10310_v57 = vpack.c.bf16 %v6998_v20, %v6998_v20 }
  0x86   : > { %v1597_v48 = vrot.slane %v10308_v5, 6  ;;  %v1978_v22 = vsel %vm1916_vm2, %v1974_v11, %v1977_v63  ;;  %v10311_v34 = vpack.c.bf16 %v7006_v24, %v7006_v24  ;;  %v10312_v33 = vpack.c.bf16 %v7016_v29, %v7016_v29  ;;  %3105 = vst [vmem:[#allocation1 + $0x21] ss:$4 sm:$0xff] %v1971_v7 }
  0x87   : > { %v1598_v38 = vrot.slane %v10309_v25, 4  ;;  %v1651_v58 = vrot.slane %v10310_v57, 6  ;;  %v10313_v41 = vpack.c.bf16 %v7080_v61, %v7080_v61  ;;  %v10314_v4 = vpack.c.bf16 %v7086_v0, %v7086_v0  ;;  %3119 = vst [vmem:[#allocation1 + $0x1] ss:$4 sm:$0xff] %v1978_v22 }
  0x88   : > { %v1652_v15 = vrot.slane %v10311_v34, 4  ;;  %v1653_v43 = vrot.slane %v10312_v33, 2  ;;  %v10315_v20 = vpack.c.bf16 %v6988_v13, %v6988_v13  ;;  %v2017_v24 = vsel %vm1912_vm1, %v1632_v16, %v1633_v37 }
  0x89   : > { %v1654_v2 = vrot.slane %v10313_v41, 6  ;;  %v1655_v45 = vrot.slane %v10314_v4, 4  ;;  %v10316_v29 = vpack.c.bf16 %v7102_v8, %v7102_v8  ;;  %v10317_v61 = vpack.c.bf16 %v7036_v39, %v7036_v39 }
  0x8a   : > { %v2014_v30 = vsel %vm1908_vm0, %v10315_v20, %v1631_v50  ;;  %v2024_v28 = vsel %vm1912_vm1, %v1635_v19, %v1636_v49  ;;  %v10318_v13 = vpack.c.bf16 %v7160_v46, %v7160_v46  ;;  %v10319_v16 = vpack.c.bf16 %v7192_v42, %v7192_v42 }
  0x8b   : > { %v1656_v23 = vrot.slane %v10316_v29, 2  ;;  %v2018_v53 = vsel %vm1916_vm2, %v2014_v30, %v2017_v24  ;;  %v2021_v0 = vsel %vm1908_vm0, %v10317_v61, %v1634_v26  ;;  %v10320_v8 = vpack.c.bf16 %v7216_v17, %v7216_v17  ;;  %v10336_v24 = vld [vmem:[#allocation20_spill] sm:$0xff] }
  0x8c   : > { %v1599_v50 = vrot.slane %v10318_v13, 2  ;;  %v1600_v37 = vrot.slane %v10319_v16, 6  ;;  %v2025_v11 = vsel %vm1916_vm2, %v2021_v0, %v2024_v28  ;;  %3107 = vst [vmem:[#allocation1 + $0x22] ss:$4 sm:$0xff] %v2018_v53  ;;  %v10321_v39 = vpack.c.bf16 %v7232_v51, %v7232_v51  ;;  %v10340_v61 = vld [vmem:[#allocation28_spill] sm:$0xff]  ;;  %v10344_v16 = vld [vmem:[#allocation18_spill] sm:$0xff] }
  0x8d   : > { %v1601_v55 = vrot.slane %v10320_v8, 4  ;;  %v10322_v19 = vpack.c.bf16 %v7258_v40, %v7258_v40  ;;  %v10323_v42 = vpack.c.bf16 %v7282_v52, %v7282_v52  ;;  %v7464_v63 = vrot.slane %v1155_v56, 2  ;;  %3120 = vst [vmem:[#allocation1 + $0x2] ss:$4 sm:$0xff] %v2025_v11  ;;  %v10346_v11 = vld [vmem:[#allocation19_spill] sm:$0xff] }
  0x8e   : > { %v1602_v26 = vrot.slane %v10321_v39, 2  ;;  %v10324_v17 = vpack.c.bf16 %v7130_v36, %v7130_v36  ;;  %v10325_v51 = vpack.c.bf16 %v7146_v35, %v7146_v35  ;;  %v10326_v40 = vpack.c.bf16 %v7162_v27, %v7162_v27 }
  0x8f   : > { %v7457_v46 = vrot.slane %v10322_v19, 6  ;;  %v7462_v49 = vrot.slane %v10323_v42, 4  ;;  %v10327_v52 = vpack.c.bf16 %v6990_v14, %v6990_v14  ;;  %v10328_v56 = vpack.c.bf16 %v7202_v32, %v7202_v32  ;;  %v10348_v42 = vld [vmem:[#allocation21_spill] sm:$0xff] }
  0x90   : > { %v1617_v5 = vrot.slane %v10324_v17, 6  ;;  %v1618_v7 = vrot.slane %v10325_v51, 4  ;;  %v1619_v22 = vrot.slane %v10326_v40, 2  ;;  %v2064_v36 = vsel %vm1912_vm1, %v1652_v15, %v1653_v43  ;;  %v10350_v40 = vld [vmem:[#allocation33_spill] sm:$0xff] }
  0x91   : > { %v2061_v25 = vsel %vm1908_vm0, %v10327_v52, %v1651_v58  ;;  %v1620_v57 = vrot.slane %v10328_v56, 6  ;;  %v10329_v34 = vpack.c.bf16 %v7052_v47, %v7052_v47  ;;  %v2071_v33 = vsel %vm1912_vm1, %v1655_v45, %v1656_v23  ;;  %v10338_v23 = vld [vmem:[#allocation26_spill] sm:$0xff]  ;;  %v10352_v56 = vld [vmem:[#allocation35_spill] sm:$0xff] }
  0x92   : > { %v10330_v27 = vpack.c.bf16 %v7218_v1, %v7218_v1  ;;  %v10331_v14 = vpack.c.bf16 %v7234_v3, %v7234_v3  ;;  %v2065_v32 = vsel %vm1916_vm2, %v2061_v25, %v2064_v36  ;;  %v10332_v15 = vpack.c.bf16 %v7260_v18, %v7260_v18 }
  0x93   : > { %v2068_v35 = vsel %vm1908_vm0, %v10329_v34, %v1654_v2  ;;  %v10333_v43 = vpack.c.bf16 %v7292_v31, %v7292_v31  ;;  %v7506_v1 = vrot.slane %v1156_v62, 2  ;;  %v10334_v3 = vpack.c.bf16 %v7132_v60, %v7132_v60  ;;  %3109 = vst [vmem:[#allocation1 + $0x23] ss:$4 sm:$0xff] %v2065_v32  ;;  %v10342_v60 = vld [vmem:[#allocation30_spill] sm:$0xff]  ;;  %v1110_v32 = vld [vmem:[#allocation2 + $0x81] sm:$0xf] }
  0x94   : > { %v1621_v41 = vrot.slane %v10330_v27, 4  ;;  %v1622_v58 = vrot.slane %v10331_v14, 2  ;;  %v2072_v4 = vsel %vm1916_vm2, %v2068_v35, %v2071_v33  ;;  %v7499_v47 = vrot.slane %v10332_v15, 6  ;;  %v10354_v35 = vld [vmem:[#allocation14_spill] sm:$0xff] }
  0x95   : > { %v7504_v2 = vrot.slane %v10333_v43, 4  ;;  %v1637_v45 = vrot.slane %v10334_v3, 6  ;;  %v10335_v20 = vpack.c.bf16 %v7148_v59, %v7148_v59  ;;  %v10337_v18 = vpack.c.bf16 %v10336_v24, %v10336_v24  ;;  %3121 = vst [vmem:[#allocation1 + $0x3] ss:$4 sm:$0xff] %v2072_v4  ;;  %v10356_v43 = vld [vmem:[#allocation15_spill] sm:$0xff] }
  0x96   : > { %v10339_v31 = vpack.c.bf16 %v10338_v23, %v10338_v23  ;;  %v10341_v62 = vpack.c.bf16 %v10340_v61, %v10340_v61  ;;  %v10343_v28 = vpack.c.bf16 %v10342_v60, %v10342_v60  ;;  %v10345_v59 = vpack.c.bf16 %v10344_v16, %v10344_v16  ;;  %v1142_v24 = vld [vmem:[#allocation2 + $0x82] sm:$0xf]  ;;  %v10366_v16 = vld [vmem:[#allocation17_spill] sm:$0xff] }
  0x97   : > { %v1638_v30 = vrot.slane %v10335_v20, 4  ;;  %v1639_v29 = vrot.slane %v10337_v18, 2  ;;  %v10347_v39 = vpack.c.bf16 %v10346_v11, %v10346_v11  ;;  %v10349_v17 = vpack.c.bf16 %v10348_v42, %v10348_v42  ;;  %v10368_v42 = vld [vmem:[#allocation22_spill] sm:$0xff] }
  0x98   : > { %v1640_v53 = vrot.slane %v10339_v31, 6  ;;  %v1641_v0 = vrot.slane %v10341_v62, 4  ;;  %v1642_v13 = vrot.slane %v10343_v28, 2  ;;  %v1657_v8 = vrot.slane %v10345_v59, 6  ;;  %v10362_v31 = vld [vmem:[#allocation16_spill] sm:$0xff] }
  0x99   : > { %v1658_v19 = vrot.slane %v10347_v39, 4  ;;  %v1659_v51 = vrot.slane %v10349_v17, 2  ;;  %v10351_v52 = vpack.c.bf16 %v10350_v40, %v10350_v40  ;;  %v10353_v36 = vpack.c.bf16 %v10352_v56, %v10352_v56  ;;  %v7576_v62 = vld [vmem:[#allocation2 + $0x6a] sm:$0xf]  ;;  %v7589_v39 = vld [vmem:[#allocation2 + $0x7a] sm:$0xf] }
  0x9a   : > { %v10355_v33 = vpack.c.bf16 %v10354_v35, %v10354_v35  ;;  %v1937_v14 = vsel %vm1912_vm1, %v1598_v38, %v1599_v50  ;;  %v7553_v4 = vrot.slane %v1157_v6, 2  ;;  %v7558_v15 = vrot.slane %v1222_v9, 6  ;;  %v10358_v38 = vld [vmem:[#allocation27_spill] sm:$0xff] }
  0x9b   : > { %v7538_v25 = vrot.slane %v10351_v52, 6  ;;  %v7543_v34 = vrot.slane %v10353_v36, 4  ;;  %v10357_v3 = vpack.c.bf16 %v10356_v43, %v10356_v43  ;;  %v10359_v50 = vpack.c.bf16 %v10358_v38, %v10358_v38  ;;  %v7599_v36 = vld.sshfl [vmem:[#allocation1 + $0x20] sm:$0xff pattern:$0x73625140]  ;;  %v10375_v43 = vld [vmem:[#allocation24_spill] sm:$0xff] }
  0x9c   : > { %v1934_v27 = vsel %vm1908_vm0, %v10355_v33, %v1597_v48  ;;  %v1984_v48 = vsel %vm1912_vm1, %v1618_v7, %v1619_v22  ;;  %v10361_v6 = vpack.c.bf16 %v10360_v10, %v10360_v10  ;;  %v10363_v21 = vpack.c.bf16 %v10362_v31, %v10362_v31  ;;  %v10364_v7 = vld [vmem:[#allocation31_spill] sm:$0xff] }
  0x9d   : > { %v1981_v20 = vsel %vm1908_vm0, %v10357_v3, %v1617_v5  ;;  %v1660_v18 = vrot.slane %v10359_v50, 6  ;;  %v2031_v61 = vsel %vm1912_vm1, %v1638_v30, %v1639_v29  ;;  %v7578_v5 = vld [vmem:[#allocation2 + $0x72] sm:$0xf]  ;;  %v10365_v22 = vpack.c.bf16 %v10364_v7, %v10364_v7  ;;  %v7591_v29 = vld [vmem:[#allocation2 + $0x80] sm:$0xf] }
  0x9e   : > { %v1661_v23 = vrot.slane %v10361_v6, 4  ;;  %v2028_v9 = vsel %vm1908_vm0, %v10363_v21, %v1637_v45  ;;  %v1938_v28 = vsel %vm1916_vm2, %v1934_v27, %v1937_v14  ;;  %v10367_v59 = vpack.c.bf16 %v10366_v16, %v10366_v16  ;;  %v10387_v16 = vld [vmem:[#allocation6_spill] sm:$0xff] }
  0x9f   : > { %v1662_v60 = vrot.slane %v10365_v22, 2  ;;  %v2078_v45 = vsel %vm1912_vm1, %v1658_v19, %v1659_v51  ;;  %v1126_v30 = vpack.c.bf16 %v1110_v32, %v1110_v32  ;;  %v10369_v17 = vpack.c.bf16 %v10368_v42, %v10368_v42  ;;  %v10371_v51 = vld [vmem:[#allocation23_spill] sm:$0xff] }
  0xa0   : > { %v2075_v11 = vsel %vm1908_vm0, %v10367_v59, %v1657_v8  ;;  %v1944_v52 = vsel %vm1912_vm1, %v1601_v55, %v1602_v26  ;;  %v1985_v56 = vsel %vm1916_vm2, %v1981_v20, %v1984_v48  ;;  %v7601_v8 = vld.sshfl [vmem:[#allocation1 + $0x28] sm:$0xff pattern:$0x73625140]  ;;  %v1158_v19 = vpack.c.bf16 %v1142_v24, %v1142_v24  ;;  %v7611_v55 = vld.sshfl [vmem:[#allocation1 + $0x38] sm:$0xff pattern:$0x73625140] }
  0xa1   : > { %v1941_v40 = vsel %vm1908_vm0, %v10369_v17, %v1600_v37  ;;  %10370 = vst [vmem:[#allocation20_spill] sm:$0xff] %v7601_v8  ;;  %v10372_v35 = vpack.c.bf16 %v10371_v51, %v10371_v51  ;;  %v1991_v27 = vsel %vm1912_vm1, %v1621_v41, %v1622_v58  ;;  %v2032_v14 = vsel %vm1916_vm2, %v2028_v9, %v2031_v61  ;;  %v7609_v37 = vld.sshfl [vmem:[#allocation1 + $0x30] sm:$0xff pattern:$0x73625140]  ;;  %v286_v26 = vld [vmem:[%s6822_s25 + $0x20] sm:$0xf] }
  0xa2   : > { %10373 = vst [vmem:[#allocation26_spill] sm:$0xff] %v7609_v37  ;;  %v7617_v32 = vrot.slane %v1254_v12, 4  ;;  %v10376_v3 = vpack.c.bf16 %v10375_v43, %v10375_v43  ;;  %v2079_v41 = vsel %vm1916_vm2, %v2075_v11, %v2078_v45  ;;  %v7625_v58 = vld.sshfl [vmem:[#allocation1] sm:$0xff pattern:$0x73625140]  ;;  %v1945_v44 = vsel %vm1916_vm2, %v1941_v40, %v1944_v52  ;;  %v10380_v12 = vld [vmem:[#allocation25_spill] sm:$0xff] }
  0xa3   : > { %v1988_v33 = vsel %vm1908_vm0, %v10372_v35, %v1620_v57  ;;  %10374 = vst [vmem:[#allocation28_spill] sm:$0xff] %v7611_v55  ;;  %v2038_v57 = vsel %vm1912_vm1, %v1641_v0, %v1642_v13  ;;  %v288_v48 = vld [vmem:[%s6822_s25 + $0x28] sm:$0xf]  ;;  %v10378_v24 = vld [vmem:[#allocation34_spill] sm:$0xff]  ;;  %v10381_v10 = vpack.c.bf16 %v10380_v12, %v10380_v12  ;;  %v1059_v13 = vpack.c.bf16 %v7576_v62, %v7576_v62  ;;  %v7666_v17 = vld [vmem:[#allocation2 + $0x30] sm:$0xf] }
  0xa4   : > { %v2035_v20 = vsel %vm1908_vm0, %v10376_v3, %v1640_v53  ;;  %3122 = vst [vmem:[#allocation1 + $0x20] ss:$4 sm:$0xff] %v1938_v28  ;;  %v10379_v38 = vpack.c.bf16 %v10378_v24, %v10378_v24  ;;  %v2085_v53 = vsel %vm1912_vm1, %v1661_v23, %v1662_v60  ;;  %v7637_v0 = vld.sshfl [vmem:[#allocation1 + $0x8] sm:$0xff pattern:$0x73625140]  ;;  %v1060_v31 = vpack.c.bf16 %v7578_v5, %v7578_v5  ;;  %v10385_v60 = vld [vmem:[#allocation5_spill] sm:$0xff] }
  0xa5   : > { %10377 = vst [vmem:[#allocation30_spill] sm:$0xff] %v7625_v58  ;;  %v2082_v6 = vsel %vm1908_vm0, %v10381_v10, %v1660_v18  ;;  %v1664_v21 = vrot.slane %v1126_v30, 4  ;;  %v1992_v9 = vsel %vm1916_vm2, %v1988_v33, %v1991_v27  ;;  %v7644_v61 = vld.sshfl [vmem:[#allocation1 + $0x10] sm:$0xff pattern:$0x73625140]  ;;  %v1061_v18 = vpack.c.bf16 %v7589_v39, %v7589_v39  ;;  %v10389_v30 = vld [vmem:[#allocation3_spill] sm:$0xff] }
  0xa6   : > { %v1663_v50 = vrot.slane %v10379_v38, 6  ;;  %3123 = vst [vmem:[#allocation1 + $0x21] ss:$4 sm:$0xff] %v1985_v56  ;;  %v1190_v23 = vpack.c.bf16 %v7591_v29, %v7591_v29  ;;  %v1665_v7 = vrot.slane %v1158_v19, 2  ;;  %v2039_v22 = vsel %vm1916_vm2, %v2035_v20, %v2038_v57  ;;  %v289_v39 = vld [vmem:[%s6822_s25 + $0x2c] sm:$0xf] }
  0xa7   : > { %10382 = vst [vmem:[#allocation18_spill] sm:$0xff] %v7637_v0  ;;  %v7651_v62 = vld.sshfl [vmem:[#allocation1 + $0x18] sm:$0xff pattern:$0x73625140]  ;;  %v10386_v5 = vpack.c.bf16 %v10385_v60, %v10385_v60  ;;  %v10388_v59 = vpack.c.bf16 %v10387_v16, %v10387_v16  ;;  %v2086_v45 = vsel %vm1916_vm2, %v2082_v6, %v2085_v53  ;;  %v305_v42 = vmul.f32 %v10389_v30, %v286_v26  ;;  %v7668_v40 = vld [vmem:[#allocation2 + $0x38] sm:$0xf] }
  0xa8   : > { %3124 = vst [vmem:[#allocation1 + $0x22] ss:$4 sm:$0xff] %v2032_v14  ;;  %v7670_v52 = vld [vmem:[#allocation2 + $0x40] sm:$0xf]  ;;  %v10390_v56 = vld [vmem:[#allocation32_spill] sm:$0xff]  ;;  %v1951_v35 = vsel %vm1912_vm1, %v7462_v49, %v7464_v63  ;;  %v307_v33 = vmul.f32 %v10389_v30, %v288_v48  ;;  %v308_v27 = vmul.f32 %v10389_v30, %v289_v39  ;;  %v10392_v14 = vld [vmem:[#allocation9_spill] sm:$0xff]  ;;  %v1995_v53 = vsel %vm1908_vm0, %v1059_v13, %v7499_v47 }
  0xa9   : > { %10383 = vst [vmem:[#allocation19_spill] sm:$0xff] %v7644_v61  ;;  %v7656_v28 = vrot.slane %v10386_v5, 6  ;;  %v7661_v11 = vrot.slane %v10388_v59, 4  ;;  %v10391_v19 = vpack.c.bf16 %v10390_v56, %v10390_v56  ;;  %v10393_v26 = vpack.c.bf16 %v10392_v14, %v10392_v14  ;;  %v10394_v3 = vld [vmem:[#allocation7_spill] sm:$0xff]  ;;  %v10398_v49 = vld [vmem:[#allocation4_spill] sm:$0xff]  ;;  %v10401_v12 = vld [vmem:[#allocation10_spill] sm:$0xff] }
  0xaa   : > { %3125 = vst [vmem:[#allocation1 + $0x23] ss:$4 sm:$0xff] %v2079_v41  ;;  %v10395_v20 = vpack.c.bf16 %v10394_v3, %v10394_v3  ;;  %v7698_v63 = vadd.f32 %v10398_v49, %v305_v42  ;;  %v10399_v48 = vld [vmem:[#allocation12_spill] sm:$0xff]  ;;  %v10402_v10 = vpack.c.bf16 %v10401_v12, %v10401_v12  ;;  %v6554_v60 = vld [vmem:[%s10153_s3 + $0x118] sm:$0xff]  ;;  %v2089_v13 = vsel %vm1908_vm0, %v1061_v18, %v1663_v50  ;;  %v7734_v39 = vld [vmem:[#allocation2 + $0x60] sm:$0xf] }
  0xab   : > { %10384 = vst [vmem:[#allocation21_spill] sm:$0xff] %v7651_v62  ;;  %v1948_v51 = vsel %vm1908_vm0, %v10391_v19, %v7457_v46  ;;  %v7685_v43 = vrot.slane %v10393_v26, 2  ;;  %v10396_v46 = vld [vmem:[#allocation8_spill] sm:$0xff]  ;;  %v10400_v38 = vpack.c.bf16 %v10399_v48, %v10399_v48  ;;  %v7736_v30 = vld [vmem:[#allocation2 + $0x61] sm:$0xf]  ;;  %v2092_v42 = vsel %vm1912_vm1, %v1664_v21, %v1665_v7  ;;  %4846 = vmatpush.bf16.msrb.mxu0 %v6554_v60 }
  0xac   : > { %3134 = vst [vmem:[#allocation1] ss:$4 sm:$0xff] %v1945_v44  ;;  %v7690_v57 = vrot.slane %v10395_v20, 6  ;;  %v10397_v41 = vpack.c.bf16 %v10396_v46, %v10396_v46  ;;  %v7708_v6 = vrot.slane %v10402_v10, 6  ;;  %v7721_v5 = vld [vmem:[#allocation2 + $0x48] sm:$0xf]  ;;  %v1952_v47 = vsel %vm1916_vm2, %v1948_v51, %v1951_v35 }
  0xad   : > { %3135 = vst [vmem:[#allocation1 + $0x1] ss:$4 sm:$0xff] %v1992_v9  ;;  %v7703_v44 = vrot.slane %v10400_v38, 2  ;;  %v1998_v9 = vsel %vm1912_vm1, %v7504_v2, %v7506_v1  ;;  %v7723_v16 = vld [vmem:[#allocation2 + $0x49] sm:$0xf]  ;;  %v2042_v2 = vsel %vm1908_vm0, %v1060_v31, %v7538_v25  ;;  %v2045_v1 = vsel %vm1912_vm1, %v7543_v34, %v7553_v4  ;;  %v10407_v48 = vld [vmem:[#allocation11_spill] sm:$0xff] }
  0xae   : > { %v7695_v24 = vrot.slane %v10397_v41, 4  ;;  %3136 = vst [vmem:[#allocation1 + $0x2] ss:$4 sm:$0xff] %v2039_v22  ;;  %v6527_v22 = vld [vmem:[%s10153_s3 + $0x40] sm:$0xff]  ;;  %v7725_v59 = vld [vmem:[#allocation2 + $0x4a] sm:$0xf]  ;;  %v326_v25 = vadd.f32 %v10398_v49, %v307_v33  ;;  %v7744_v31 = vadd.f32 %v10398_v49, %v308_v27  ;;  %v417_v4 = vpack.c.bf16 %v7666_v17, %v7666_v17 }
  0xaf   : > { %3137 = vst [vmem:[#allocation1 + $0x3] ss:$4 sm:$0xff] %v2086_v45  ;;  %v501_v45 = vld [vmem:[#allocation2 + $0x50] sm:$0xf]  ;;  %4762 = vmatpush.bf16.msra.mxu1 %v6527_v22  ;;  %v6553_v56 = vld [vmem:[%s10153_s3 + $0x110] sm:$0xff]  ;;  %v418_v50 = vpack.c.bf16 %v7668_v40, %v7668_v40  ;;  %v419_v21 = vpack.c.bf16 %v7670_v52, %v7670_v52  ;;  %v1999_v19 = vsel %vm1916_vm2, %v1995_v53, %v1998_v9  ;;  %vm340_vm13 = vcmp.ge.f32.partialorder %v7698_v63, 0.0 }
  0xb0   : > { %v356_v34 = vmul.f32 0.2, %v7698_v63  ;;  %v7753_v18 = vld [vmem:[#allocation2 + $0x42] sm:$0xf]  ;;  %v7755_v7 = vld [vmem:[#allocation2 + $0x4a] sm:$0xf]  ;;  %v420_v33 = vpack.c.bf16 %v7721_v5, %v7721_v5  ;;  %v452_v17 = vpack.c.bf16 %v7723_v16, %v7723_v16  ;;  %v2046_v20 = vsel %vm1916_vm2, %v2042_v2, %v2045_v1  ;;  %4847 = vmatpush.bf16.msrb.mxu0 %v6553_v56 }
  0xb1   : > { %v7758_v51 = vld.sshfl [vmem:[#allocation1 + $0x20] sm:$0xff pattern:$0x73625140]  ;;  %v7760_v35 = vld.sshfl [vmem:[#allocation1 + $0x28] sm:$0xff pattern:$0x73625140]  ;;  %v2049_v46 = vsel %vm1908_vm0, %v1190_v23, %v7558_v15  ;;  %v10408_v38 = vpack.c.bf16 %v10407_v48, %v10407_v48  ;;  %v2093_v22 = vsel %vm1916_vm2, %v2089_v13, %v2092_v42  ;;  %v484_v29 = vpack.c.bf16 %v7725_v59, %v7725_v59 }
  0xb2   : > { %10403 = vst [vmem:[#allocation33_spill] sm:$0xff] %v7758_v51  ;;  %v7766_v27 = vld [vmem:[#allocation2 + $0x68] sm:$0xf]  ;;  %v7768_v14 = vld [vmem:[#allocation2 + $0x70] sm:$0xf]  ;;  %4763 = vmatmul.bf16.vlgmr.msra.gmra.mxu1 %v7361_v54  ;;  %v6552_v15 = vld [vmem:[%s10153_s3 + $0x108] sm:$0xff]  ;;  %v517_v23 = vpack.c.bf16 %v501_v45, %v501_v45  ;;  %v740_v54 = vpack.c.bf16 %v7736_v30, %v7736_v30  ;;  %v2051_v1 = vsel %vm1916_vm2, %v2049_v46, %v7617_v32 }
  0xb3   : > { %10404 = vst [vmem:[#allocation35_spill] sm:$0xff] %v7760_v35  ;;  %v7770_v26 = vld [vmem:[#allocation2 + $0x78] sm:$0xf]  ;;  %v7772_v3 = vld [vmem:[#allocation2 + $0x69] sm:$0xf]  ;;  %v1709_v12 = vrot.slane %v10408_v38, 4  ;;  %v675_v59 = vpack.c.bf16 %v7753_v18, %v7753_v18  ;;  %v676_v45 = vpack.c.bf16 %v7755_v7, %v7755_v7  ;;  %v372_v30 = vsel %vm340_vm13, %v7698_v63, %v356_v34 }
  0xb4   : > { %v7780_v41 = vld.sshfl [vmem:[#allocation1 + $0x30] sm:$0xff pattern:$0x73625140]  ;;  %v7782_v49 = vld.sshfl [vmem:[#allocation1 + $0x38] sm:$0xff pattern:$0x73625140]  ;;  %v709_v32 = vpack.c.bf16 %v7766_v27, %v7766_v27  ;;  %v710_v42 = vpack.c.bf16 %v7768_v14, %v7768_v14  ;;  %v711_v56 = vpack.c.bf16 %v7770_v26, %v7770_v26  ;;  %4848 = vmatpush.bf16.msrb.mxu0 %v6552_v15 }
  0xb5   : > { %10405 = vst [vmem:[#allocation14_spill] sm:$0xff] %v7780_v41  ;;  %v10409_v10 = vld [vmem:[#allocation13_spill] sm:$0xff]  ;;  %v358_v60 = vmul.f32 0.2, %v326_v25  ;;  %v359_v16 = vmul.f32 0.2, %v7744_v31 }
  0xb6   : > { %10406 = vst [vmem:[#allocation15_spill] sm:$0xff] %v7782_v49  ;;  %v10410_v53 = vpack.c.bf16 %v10409_v10, %v10409_v10  ;;  %v7803_v2 = vld [vmem:[#allocation2 + $0x62] sm:$0xf]  ;;  %v7807_v13 = vld.sshfl [vmem:[#allocation1] sm:$0xff pattern:$0x73625140] }
  0xb7   : > { %3138 = vst [vmem:[#allocation1 + $0x20] ss:$4 sm:$0xff] %v1952_v47  ;;  %v708_v47 = vpack.c.bf16 %v7734_v39, %v7734_v39  ;;  %vm342_vm14 = vcmp.ge.f32.partialorder %v326_v25, 0.0  ;;  %v7813_v39 = vld.sshfl [vmem:[#allocation1 + $0x8] sm:$0xff pattern:$0x73625140] }
  0xb8   : > { %v1710_v9 = vrot.slane %v10410_v53, 2  ;;  %3139 = vst [vmem:[#allocation1 + $0x21] ss:$4 sm:$0xff] %v1999_v19  ;;  %vm343_vm15 = vcmp.ge.f32.partialorder %v7744_v31, 0.0  ;;  %v741_v19 = vpack.c.bf16 %v7772_v3, %v7772_v3  ;;  %v1728_v48 = vrot.slane %v452_v17, 6  ;;  %v6551_v34 = vld [vmem:[%s10153_s3 + $0x100] sm:$0xff] }
  0xb9   : > { %3140 = vst [vmem:[#allocation1 + $0x22] ss:$4 sm:$0xff] %v2046_v20  ;;  %v7827_v20 = vld.sshfl [vmem:[#allocation1 + $0x10] sm:$0xff pattern:$0x73625140]  ;;  %v1729_v38 = vrot.slane %v484_v29, 4  ;;  %v374_v10 = vsel %vm342_vm14, %v326_v25, %v358_v60  ;;  %v2101_v17 = vsel %vm1908_vm0, %v417_v4, %v7656_v28  ;;  %v2104_v29 = vsel %vm1912_vm1, %v7661_v11, %v7685_v43  ;;  %4849 = vmatpush.bf16.msrb.mxu0 %v6551_v34 }
  0xba   : > { %10411 = vst [vmem:[#allocation27_spill] sm:$0xff] %v7807_v13  ;;  %v7829_v46 = vld.sshfl [vmem:[#allocation1 + $0x18] sm:$0xff pattern:$0x73625140]  ;;  %v1730_v63 = vrot.slane %v517_v23, 2  ;;  %v375_v15 = vsel %vm343_vm15, %v7744_v31, %v359_v16  ;;  %v772_v23 = vpack.c.bf16 %v7803_v2, %v7803_v2  ;;  %v2148_v25 = vsel %vm1908_vm0, %v418_v50, %v7690_v57 }
  0xbb   : > { %3141 = vst [vmem:[#allocation1 + $0x23] ss:$4 sm:$0xff] %v2093_v22  ;;  %v7835_v53 = vld [vmem:[#allocation2 + $0x71] sm:$0xf]  ;;  %v7837_v22 = vrot.slane %v708_v47, 6  ;;  %v2151_v28 = vsel %vm1912_vm1, %v7695_v24, %v7703_v44  ;;  %v2195_v11 = vsel %vm1908_vm0, %v419_v21, %v7708_v6  ;;  %v2198_v40 = vsel %vm1912_vm1, %v1709_v12, %v1710_v9 }
  0xbc   : > { %10412 = vst [vmem:[#allocation29_spill] sm:$0xff] %v7813_v39  ;;  %v290_v43 = vld [vmem:[%s6822_s25 + $0x30] sm:$0xf]  ;;  %v291_v31 = vld [vmem:[%s6822_s25 + $0x34] sm:$0xf]  ;;  %v2105_v6 = vsel %vm1916_vm2, %v2101_v17, %v2104_v29  ;;  %v2242_v21 = vsel %vm1908_vm0, %v420_v33, %v1728_v48  ;;  %v2245_v12 = vsel %vm1912_vm1, %v1729_v38, %v1730_v63  ;;  %v2152_v9 = vsel %vm1916_vm2, %v2148_v25, %v2151_v28 }
  0xbd   : > { %10413 = vst [vmem:[#allocation16_spill] sm:$0xff] %v7827_v20  ;;  %v292_v4 = vld [vmem:[%s6822_s25 + $0x38] sm:$0xf]  ;;  %v727_v60 = vld [vmem:[#allocation2 + $0x79] sm:$0xf]  ;;  %v742_v5 = vpack.c.bf16 %v7835_v53, %v7835_v53  ;;  %v2199_v38 = vsel %vm1916_vm2, %v2195_v11, %v2198_v40  ;;  %v2246_v25 = vsel %vm1916_vm2, %v2242_v21, %v2245_v12  ;;  %v1694_v11 = vrot.slane %v709_v32, 6 }
  0xbe   : > { %10414 = vst [vmem:[#allocation31_spill] sm:$0xff] %v7829_v46  ;;  %v757_v16 = vld [vmem:[#allocation2 + $0x6a] sm:$0xf]  ;;  %v758_v47 = vld [vmem:[#allocation2 + $0x72] sm:$0xf]  ;;  %v743_v28 = vpack.c.bf16 %v727_v60, %v727_v60  ;;  %v1734_v3 = vrot.slane %v711_v56, 6  ;;  %v2115_v14 = vsel %vm1908_vm0, %v675_v59, %v7837_v22 }
  0xbf   : > { %3152 = vst [vmem:[#allocation1 + $0x2] ss:$4 sm:$0xff] %v2051_v1  ;;  %v6770_v57 = vld [vmem:[%s10151_s1] ss:$0 sm:$0xff]  ;;  %v661_v2 = vld [vmem:[#allocation2 + $0x52] sm:$0xf]  ;;  %v773_v33 = vpack.c.bf16 %v757_v16, %v757_v16  ;;  %v774_v48 = vpack.c.bf16 %v758_v47, %v758_v47 }
  0xc0   : > { %389 = vst [vmem:[#allocation2 + $0x99] sm:$0xf] %v372_v30  ;;  %v309_v50 = vmul.f32 %v6770_v57, %v290_v43  ;;  %v310_v24 = vmul.f32 %v6770_v57, %v291_v31  ;;  %v311_v44 = vmul.f32 %v6770_v57, %v292_v4  ;;  %v759_v52 = vld [vmem:[#allocation2 + $0x7a] sm:$0xf]  ;;  %v1675_v1 = vrot.slane %v740_v54, 4 }
  0xc1   : > { %391 = vst [vmem:[#allocation2 + $0xa9] sm:$0xf] %v374_v10  ;;  %v6771_v54 = vld [vmem:[%s10152_s2] ss:$0 sm:$0xff]  ;;  %v775_v31 = vpack.c.bf16 %v759_v52, %v759_v52  ;;  %v677_v16 = vpack.c.bf16 %v661_v2, %v661_v2  ;;  %v1676_v47 = vrot.slane %v772_v23, 2  ;;  %v1695_v57 = vrot.slane %v741_v19, 4 }
  0xc2   : > { %392 = vst [vmem:[#allocation2 + $0xb1] sm:$0xf] %v375_v15  ;;  %v7876_v30 = vld.sshfl [vmem:[#allocation1 + $0x20] sm:$0xff pattern:$0x73625140]  ;;  %v328_v10 = vadd.f32 %v6771_v54, %v309_v50  ;;  %v329_v17 = vadd.f32 %v6771_v54, %v310_v24  ;;  %v330_v29 = vadd.f32 %v6771_v54, %v311_v44  ;;  %v1696_v50 = vrot.slane %v773_v33, 2 }
  0xc3   : > { %10415 = vst [vmem:[#allocation17_spill] sm:$0xff] %v7876_v30  ;;  %v7878_v43 = vld.sshfl [vmem:[#allocation1 + $0x28] sm:$0xff pattern:$0x73625140]  ;;  %v662_v15 = vld [vmem:[#allocation2 + $0x5a] sm:$0xf] }
  0xc4   : > { %10416 = vst [vmem:[#allocation22_spill] sm:$0xff] %v7878_v43  ;;  %v7886_v63 = vld.sshfl [vmem:[#allocation1 + $0x30] sm:$0xff pattern:$0x73625140]  ;;  %vm344_vm3 = vcmp.ge.f32.partialorder %v328_v10, 0.0  ;;  %vm345_vm4 = vcmp.ge.f32.partialorder %v329_v17, 0.0  ;;  %v678_v32 = vpack.c.bf16 %v662_v15, %v662_v15  ;;  %v2165_v26 = vsel %vm1912_vm1, %v1695_v57, %v1696_v50 }
  0xc5   : > { %10417 = vst [vmem:[#allocation23_spill] sm:$0xff] %v7886_v63  ;;  %v7888_v34 = vld.sshfl [vmem:[#allocation1 + $0x38] sm:$0xff pattern:$0x73625140]  ;;  %vm346_vm5 = vcmp.ge.f32.partialorder %v330_v29, 0.0  ;;  %v1714_v23 = vrot.slane %v710_v42, 6  ;;  %v2118_v42 = vsel %vm1912_vm1, %v1675_v1, %v1676_v47 }
  0xc6   : > { %10418 = vst [vmem:[#allocation24_spill] sm:$0xff] %v7888_v34  ;;  %v360_v4 = vmul.f32 0.2, %v328_v10  ;;  %v361_v53 = vmul.f32 0.2, %v329_v17  ;;  %v1715_v44 = vrot.slane %v742_v5, 4  ;;  %v2119_v12 = vsel %vm1916_vm2, %v2115_v14, %v2118_v42 }
  0xc7   : > { %3154 = vst [vmem:[#allocation1 + $0x20] ss:$4 sm:$0xff] %v2105_v6  ;;  %v362_v40 = vmul.f32 0.2, %v330_v29  ;;  %v1716_v2 = vrot.slane %v774_v48, 2  ;;  %v1735_v19 = vrot.slane %v743_v28, 4  ;;  %v2162_v6 = vsel %vm1908_vm0, %v676_v45, %v1694_v11 }
  0xc8   : > { %3155 = vst [vmem:[#allocation1 + $0x21] ss:$4 sm:$0xff] %v2152_v9  ;;  %v376_v60 = vsel %vm344_vm3, %v328_v10, %v360_v4  ;;  %v377_v24 = vsel %vm345_vm4, %v329_v17, %v361_v53  ;;  %v1736_v52 = vrot.slane %v775_v31, 2  ;;  %v2209_v56 = vsel %vm1908_vm0, %v677_v16, %v1714_v23  ;;  %v7927_v17 = vld [vmem:[#allocation2 + $0x39] sm:$0xf] }
  0xc9   : > { %3156 = vst [vmem:[#allocation1 + $0x22] ss:$4 sm:$0xff] %v2199_v38  ;;  %v378_v27 = vsel %vm346_vm5, %v330_v29, %v362_v40  ;;  %v2212_v21 = vsel %vm1912_vm1, %v1715_v44, %v1716_v2  ;;  %v2256_v18 = vsel %vm1908_vm0, %v678_v32, %v1734_v3  ;;  %v2166_v22 = vsel %vm1916_vm2, %v2162_v6, %v2165_v26  ;;  %v7929_v29 = vld [vmem:[#allocation2 + $0x41] sm:$0xf]  ;;  %v7931_v5 = vld [vmem:[#allocation2 + $0x58] sm:$0xf] }
  0xca   : > { %3157 = vst [vmem:[#allocation1 + $0x23] ss:$4 sm:$0xff] %v2246_v25  ;;  %v2259_v59 = vsel %vm1912_vm1, %v1735_v19, %v1736_v52  ;;  %v2213_v7 = vsel %vm1916_vm2, %v2209_v56, %v2212_v21  ;;  %v7933_v33 = vld [vmem:[#allocation2 + $0x59] sm:$0xf]  ;;  %v7935_v48 = vld [vmem:[#allocation2 + $0x49] sm:$0xf] }
  0xcb   : > { %393 = vst [vmem:[#allocation2 + $0xc9] sm:$0xf] %v376_v60  ;;  %v2260_v10 = vsel %vm1916_vm2, %v2256_v18, %v2259_v59  ;;  %v7937_v38 = vld [vmem:[#allocation2 + $0x51] sm:$0xf]  ;;  %v562_v15 = vld [vmem:[#allocation2 + $0x3a] sm:$0xf] }
  0xcc   : > { %394 = vst [vmem:[#allocation2 + $0xd1] sm:$0xf] %v377_v24  ;;  %v7939_v25 = vld [vmem:[#allocation2 + $0x42] sm:$0xf]  ;;  %v7941_v28 = vld [vmem:[#allocation2 + $0x4a] sm:$0xf]  ;;  %v578_v19 = vpack.c.bf16 %v562_v15, %v562_v15 }
  0xcd   : > { %395 = vst [vmem:[#allocation2 + $0xd9] sm:$0xf] %v378_v27  ;;  %v7943_v31 = vld [vmem:[#allocation2 + $0x52] sm:$0xf]  ;;  %v595_v4 = vld [vmem:[#allocation2 + $0x40] sm:$0xf]  ;;  %v579_v52 = vpack.c.bf16 %v7939_v25, %v7939_v25  ;;  %v580_v26 = vpack.c.bf16 %v7941_v28, %v7941_v28 }
  0xce   : > { %v7945_v53 = vld [vmem:[#allocation2 + $0x48] sm:$0xf]  ;;  %v7947_v16 = vld [vmem:[#allocation2 + $0x50] sm:$0xf]  ;;  %v627_v47 = vld [vmem:[#allocation2 + $0x41] sm:$0xf]  ;;  %v581_v56 = vpack.c.bf16 %v7943_v31, %v7943_v31  ;;  %v611_v21 = vpack.c.bf16 %v595_v4, %v595_v4 }
  0xcf   : > { %v628_v11 = vld [vmem:[#allocation2 + $0x49] sm:$0xf]  ;;  %v7949_v40 = vld [vmem:[#allocation2 + $0x51] sm:$0xf]  ;;  %v7951_v57 = vld [vmem:[#allocation2 + $0xa0] sm:$0xf] }
  0xd0   : > { %v7961_v44 = vld [vmem:[#allocation2 + $0xa1] sm:$0xf]  ;;  %v7965_v27 = vld [vmem:[#allocation2 + $0x68] sm:$0xf]  ;;  %v854_v18 = vld [vmem:[#allocation2 + $0x7a] sm:$0xf]  ;;  %v714_v28 = vpack.c.bf16 %v7951_v57, %v7951_v57 }
  0xd1   : > { %v3161_v1 = vld.sshfl [vmem:[#allocation1 + $0x20] sm:$0xff pattern:$0x73625140]  ;;  %v3162_v9 = vld.sshfl [vmem:[#allocation1 + $0x28] sm:$0xff pattern:$0x73625140]  ;;  %v746_v31 = vpack.c.bf16 %v7961_v44, %v7961_v44  ;;  %v870_v50 = vpack.c.bf16 %v854_v18, %v854_v18 }
  0xd2   : > { %v3163_v54 = vld.sshfl [vmem:[#allocation1 + $0x30] sm:$0xff pattern:$0x73625140]  ;;  %v7924_v45 = vld.sshfl [vmem:[#allocation1 + $0x38] sm:$0xff pattern:$0x73625140]  ;;  %4739 = vmatmul.bf16.gmra.mxu0 %v3161_v1  ;;  %4768 = vmatmul.bf16.gmra.mxu1 %v3162_v9  ;;  %v613_v1 = vpack.c.bf16 %v7947_v16, %v7947_v16  ;;  %v643_v9 = vpack.c.bf16 %v627_v47, %v627_v47 }
  0xd3   : > { %10419 = vst [vmem:[#allocation34_spill] sm:$0xff] %v7924_v45  ;;  %4797 = vmatmul.bf16.gmra.mxu2 %v3163_v54  ;;  %v7963_v2 = vld [vmem:[#allocation2 + $0xa2] sm:$0xf]  ;;  %v820_v14 = vld [vmem:[#allocation2 + $0x69] sm:$0xf]  ;;  %v645_v54 = vpack.c.bf16 %v7949_v40, %v7949_v40  ;;  %v1671_v46 = vrot.slane %v578_v19, 6 }
  0xd4   : > { %3169 = vst [vmem:[#allocation1 + $0x20] ss:$4 sm:$0xff] %v2119_v12  ;;  %v823_v42 = vld [vmem:[#allocation2 + $0x81] sm:$0xf]  ;;  %v852_v6 = vld [vmem:[#allocation2 + $0x6a] sm:$0xf]  ;;  %v612_v12 = vpack.c.bf16 %v7945_v53, %v7945_v53 }
  0xd5   : > { %3170 = vst [vmem:[#allocation1 + $0x21] ss:$4 sm:$0xff] %v2166_v22  ;;  %v855_v59 = vld [vmem:[#allocation2 + $0x82] sm:$0xf]  ;;  %v885_v22 = vld [vmem:[#allocation2 + $0x70] sm:$0xf]  ;;  %v839_v40 = vpack.c.bf16 %v823_v42, %v823_v42  ;;  %v868_v3 = vpack.c.bf16 %v852_v6, %v852_v6 }
  0xd6   : > { %3171 = vst [vmem:[#allocation1 + $0x22] ss:$4 sm:$0xff] %v2213_v7  ;;  %v644_v7 = vpack.c.bf16 %v628_v11, %v628_v11  ;;  %v888_v15 = vld [vmem:[#allocation2 + $0x88] sm:$0xf]  ;;  %v951_v25 = vld [vmem:[#allocation2 + $0x82] sm:$0xf]  ;;  %v836_v11 = vpack.c.bf16 %v820_v14, %v820_v14  ;;  %v901_v32 = vpack.c.bf16 %v885_v22, %v885_v22  ;;  %v871_v23 = vpack.c.bf16 %v855_v59, %v855_v59 }
  0xd7   : > { %3172 = vst [vmem:[#allocation1 + $0x23] ss:$4 sm:$0xff] %v2260_v10  ;;  %v887_v10 = vld [vmem:[#allocation2 + $0x80] sm:$0xf]  ;;  %v904_v24 = vpack.c.bf16 %v888_v15, %v888_v15  ;;  %v967_v34 = vpack.c.bf16 %v951_v25, %v951_v25  ;;  %v1672_v30 = vrot.slane %v611_v21, 4  ;;  %v1673_v4 = vrot.slane %v643_v9, 2 }
  0xd8   : > { %v984_v53 = vld [vmem:[#allocation2 + $0xa0] sm:$0xf]  ;;  %v903_v57 = vpack.c.bf16 %v887_v10, %v887_v10  ;;  %v1677_v39 = vrot.slane %v836_v11, 6  ;;  %v1678_v20 = vrot.slane %v868_v3, 4  ;;  %v1679_v49 = vrot.slane %v901_v32, 2 }
  0xd9   : > { %v1016_v16 = vld [vmem:[#allocation2 + $0xa1] sm:$0xf]  ;;  %v1000_v44 = vpack.c.bf16 %v984_v53, %v984_v53  ;;  %v1691_v14 = vrot.slane %v579_v52, 6  ;;  %v1692_v6 = vrot.slane %v612_v12, 4  ;;  %v1693_v22 = vrot.slane %v644_v7, 2 }
  0xda   : > { %v1214_v47 = vld [vmem:[#allocation2 + $0xe1] sm:$0xf]  ;;  %v1032_v43 = vpack.c.bf16 %v1016_v16, %v1016_v16  ;;  %v1711_v13 = vrot.slane %v580_v26, 6  ;;  %v1712_v18 = vrot.slane %v613_v1, 4  ;;  %v1713_v10 = vrot.slane %v645_v54, 2 }
  0xdb   : > { %v1246_v60 = vld [vmem:[#allocation2 + $0xe2] sm:$0xf]  ;;  %v1230_v63 = vpack.c.bf16 %v1214_v47, %v1214_v47  ;;  %v7994_v15 = vrot.slane %v870_v50, 4  ;;  %v7996_v25 = vrot.slane %v903_v57, 2  ;;  %v1721_v21 = vrot.slane %v1000_v44, 4 }
  0xdc   : > { %v665_v42 = vld [vmem:[#allocation2 + $0x82] sm:$0xf]  ;;  %v1722_v9 = vrot.slane %v1032_v43, 2  ;;  %v1731_v53 = vrot.slane %v581_v56, 6  ;;  %v10420_v32 = vpack.c.bf16 %v7931_v5, %v7931_v5  ;;  %v10421_v26 = vpack.c.bf16 %v7933_v33, %v7933_v33  ;;  %v8200_v41 = vld [vmem:[#allocation2 + $0xb0] sm:$0xf] }
  0xdd   : > { %v7992_v59 = vld [vmem:[#allocation2 + $0x80] sm:$0xf]  ;;  %v8006_v1 = vrot.slane %v839_v40, 6  ;;  %v8008_v50 = vrot.slane %v871_v23, 4  ;;  %v8010_v7 = vrot.slane %v904_v24, 2  ;;  %v1795_v54 = vrot.slane %v746_v31, 4 }
  0xde   : > { %v919_v19 = vld [vmem:[#allocation2 + $0x81] sm:$0xf]  ;;  %v1732_v3 = vrot.slane %v10420_v32, 4  ;;  %v1733_v12 = vrot.slane %v10421_v26, 2  ;;  %v10422_v43 = vpack.c.bf16 %v7927_v17, %v7927_v17  ;;  %v2111_v56 = vsel %vm1912_vm1, %v1672_v30, %v1673_v4  ;;  %v1204_v40 = vld [vmem:[#allocation2 + $0x71] sm:$0xf] }
  0xdf   : > { %v8001_v52 = vld [vmem:[#allocation2 + $0xe0] sm:$0xf]  ;;  %v681_v16 = vpack.c.bf16 %v665_v42, %v665_v42  ;;  %v807_v33 = vpack.c.bf16 %v7992_v59, %v7992_v59  ;;  %v1806_v11 = vrot.slane %v1230_v63, 6  ;;  %v1205_v23 = vld [vmem:[#allocation2 + $0x79] sm:$0xf]  ;;  %v935_v57 = vpack.c.bf16 %v919_v19, %v919_v19  ;;  %10443 = vst [vmem:[#allocation40_spill] sm:$0xff] %v8200_v41 }
  0xe0   : > { %v2108_v5 = vsel %vm1908_vm0, %v10422_v43, %v1671_v46  ;;  %v1198_v24 = vpack.c.bf16 %v8001_v52, %v8001_v52  ;;  %v2158_v46 = vsel %vm1912_vm1, %v1692_v6, %v1693_v22  ;;  %v1207_v30 = vld [vmem:[#allocation2 + $0x89] sm:$0xf]  ;;  %v1236_v31 = vld [vmem:[#allocation2 + $0x72] sm:$0xf]  ;;  %v1237_v4 = vld [vmem:[#allocation2 + $0x7a] sm:$0xf]  ;;  %v2205_v59 = vsel %vm1912_vm1, %v1712_v18, %v1713_v10 }
  0xe1   : > { %v8029_v63 = vsel %vm1916_vm2, %v2108_v5, %v2111_v56  ;;  %v1220_v22 = vpack.c.bf16 %v1204_v40, %v1204_v40  ;;  %v1221_v19 = vpack.c.bf16 %v1205_v23, %v1205_v23  ;;  %v1173_v52 = vld [vmem:[#allocation2 + $0x78] sm:$0xf]  ;;  %v1252_v26 = vpack.c.bf16 %v1236_v31, %v1236_v31  ;;  %v1175_v43 = vld [vmem:[#allocation2 + $0x88] sm:$0xf]  ;;  %v8198_v35 = vld [vmem:[#allocation2 + $0xa0] sm:$0xf] }
  0xe2   : > { %4850 = vmatmul.bf16.vlgmr.msrb.gmra.mxu0 %v7599_v36  ;;  %v778_v36 = vpack.c.bf16 %v7963_v2, %v7963_v2  ;;  %v1262_v2 = vpack.c.bf16 %v1246_v60, %v1246_v60  ;;  %v1720_v60 = vrot.slane %v967_v34, 6  ;;  %v1794_v34 = vrot.slane %v714_v28, 6  ;;  %v8202_v62 = vld [vmem:[#allocation2 + $0xaa] sm:$0xf]  ;;  %v8214_v51 = vld [vmem:[#allocation2 + $0xba] sm:$0xf] }
  0xe3   : > { %v10423_v28 = vpack.c.bf16 %v7929_v29, %v7929_v29  ;;  %v1239_v29 = vld [vmem:[#allocation2 + $0x8a] sm:$0xf]  ;;  %v1253_v18 = vpack.c.bf16 %v1237_v4, %v1237_v4  ;;  %v2252_v56 = vsel %vm1912_vm1, %v1732_v3, %v1733_v12  ;;  %v1191_v3 = vpack.c.bf16 %v1175_v43, %v1175_v43  ;;  %v8083_v4 = vld [vmem:[#allocation2 + $0x60] sm:$0xf]  ;;  %10444 = vst [vmem:[#allocation41_spill] sm:$0xff] %v8214_v51 }
  0xe4   : > { %v1796_v47 = vrot.slane %v778_v36, 2  ;;  %v8026_v44 = vrot.slane %v1262_v2, 4  ;;  %v10425_v36 = vpack.c.bf16 %v7935_v48, %v7935_v48  ;;  %v8043_v2 = vsel %vm1912_vm1, %v1678_v20, %v1679_v49  ;;  %v1172_v48 = vld [vmem:[#allocation2 + $0x70] sm:$0xf]  ;;  %10429 = vst [vmem:[#allocation6_spill] sm:$0xff] %v8083_v4 }
  0xe5   : > { %v2155_v17 = vsel %vm1908_vm0, %v10423_v28, %v1691_v14  ;;  %v10426_v14 = vpack.c.bf16 %v7965_v27, %v7965_v27  ;;  %v2223_v27 = vsel %vm1908_vm0, %v935_v57, %v1720_v60  ;;  %v1255_v49 = vpack.c.bf16 %v1239_v29, %v1239_v29  ;;  %v8060_v28 = vld [vmem:[#allocation2 + $0x70] sm:$0xf]  ;;  %v8132_v43 = vld [vmem:[#allocation2 + $0x68] sm:$0xf]  ;;  %v8228_v55 = vld [vmem:[#allocation2 + $0xd8] sm:$0xf] }
  0xe6   : > { %10424 = vst [vmem:[#allocation25_spill] sm:$0xff] %v8026_v44  ;;  %v2202_v42 = vsel %vm1908_vm0, %v10425_v36, %v1711_v13  ;;  %v8046_v32 = vsel %vm1916_vm2, %v2155_v17, %v2158_v46  ;;  %v1223_v13 = vpack.c.bf16 %v1207_v30, %v1207_v30  ;;  %v10427_v20 = vpack.c.bf16 %v7937_v38, %v7937_v38  ;;  %v8062_v17 = vld [vmem:[#allocation2 + $0x78] sm:$0xf]  ;;  %v8064_v60 = vld [vmem:[#allocation2 + $0x71] sm:$0xf] }
  0xe7   : > { %v8040_v6 = vsel %vm1908_vm0, %v10426_v14, %v1677_v39  ;;  %v8049_v10 = vsel %vm1916_vm2, %v2202_v42, %v2205_v59  ;;  %v2226_v39 = vsel %vm1912_vm1, %v1721_v21, %v1722_v9  ;;  %v2397_v40 = vsel %vm1908_vm0, %v681_v16, %v1794_v34  ;;  %v8066_v30 = vld [vmem:[#allocation2 + $0x79] sm:$0xf]  ;;  %v8068_v38 = vld [vmem:[#allocation2 + $0x72] sm:$0xf]  ;;  %v8085_v36 = vld [vmem:[#allocation2 + $0x68] sm:$0xf] }
  0xe8   : > { %v2249_v5 = vsel %vm1908_vm0, %v10427_v20, %v1731_v53  ;;  %v2400_v23 = vsel %vm1912_vm1, %v1795_v54, %v1796_v47  ;;  %v1188_v21 = vpack.c.bf16 %v1172_v48, %v1172_v48  ;;  %v1189_v9 = vpack.c.bf16 %v1173_v52, %v1173_v52  ;;  %v8070_v53 = vld [vmem:[#allocation2 + $0x78] sm:$0xf]  ;;  %10430 = vst [vmem:[#allocation3_spill] sm:$0xff] %v8085_v36  ;;  %v8087_v42 = vld [vmem:[#allocation2 + $0x92] sm:$0xf] }
  0xe9   : > { %v1606_v57 = vrot.slane %v1220_v22, 6  ;;  %v1626_v46 = vrot.slane %v1221_v19, 6  ;;  %v1607_v12 = vrot.slane %v1252_v26, 4  ;;  %v1627_v34 = vrot.slane %v1253_v18, 4  ;;  %v8089_v59 = vld [vmem:[#allocation2 + $0xa2] sm:$0xf] }
  0xea   : > { %v1666_v54 = vrot.slane %v1223_v13, 6  ;;  %v8075_v16 = vsel %vm1912_vm1, %v7994_v15, %v7996_v25  ;;  %v8078_v47 = vsel %vm1916_vm2, %v2223_v27, %v2226_v39  ;;  %v8081_v31 = vsel %vm1916_vm2, %v2249_v5, %v2252_v56  ;;  %10431 = vst [vmem:[#allocation32_spill] sm:$0xff] %v8089_v59  ;;  %v8106_v19 = vld [vmem:[#allocation2 + $0x70] sm:$0xf]  ;;  %v8108_v48 = vld [vmem:[#allocation2 + $0x78] sm:$0xf] }
  0xeb   : > { %10428 = vst [vmem:[#allocation5_spill] sm:$0xff] %v8078_v47  ;;  %v1667_v29 = vrot.slane %v1255_v49, 4  ;;  %v8093_v14 = vsel %vm1908_vm0, %v807_v33, %v8006_v1  ;;  %v8098_v15 = vsel %vm1912_vm1, %v8008_v50, %v8010_v7  ;;  %v8101_v25 = vsel %vm1916_vm2, %v2397_v40, %v2400_v23  ;;  %v8110_v52 = vld [vmem:[#allocation2 + $0x61] sm:$0xf]  ;;  %v8112_v13 = vld [vmem:[#allocation2 + $0x69] sm:$0xf] }
  0xec   : > { %10432 = vst [vmem:[#allocation9_spill] sm:$0xff] %v8101_v25  ;;  %v8104_v22 = vsel %vm1908_vm0, %v1198_v24, %v1806_v11  ;;  %v8114_v1 = vld [vmem:[#allocation2 + $0x71] sm:$0xf]  ;;  %v8116_v33 = vld [vmem:[#allocation2 + $0x79] sm:$0xf]  ;;  %v1955_v26 = vsel %vm1908_vm0, %v1188_v21, %v1606_v57  ;;  %v2002_v18 = vsel %vm1908_vm0, %v1189_v9, %v1626_v46  ;;  %v2096_v40 = vsel %vm1908_vm0, %v1191_v3, %v1666_v54 }
  0xed   : > { %10433 = vst [vmem:[#allocation7_spill] sm:$0xff] %v8104_v22  ;;  %v8118_v50 = vld [vmem:[#allocation2 + $0x62] sm:$0xf]  ;;  %v8120_v7 = vld [vmem:[#allocation2 + $0x6a] sm:$0xf]  ;;  %v1957_v5 = vsel %vm1916_vm2, %v1955_v26, %v1607_v12  ;;  %v2004_v56 = vsel %vm1916_vm2, %v2002_v18, %v1627_v34  ;;  %v2098_v34 = vsel %vm1916_vm2, %v2096_v40, %v1667_v29 }
  0xee   : > { %10434 = vst [vmem:[#allocation8_spill] sm:$0xff] %v8106_v19  ;;  %v8128_v27 = vld [vmem:[#allocation2 + $0x72] sm:$0xf]  ;;  %v8130_v39 = vld [vmem:[#allocation2 + $0x7a] sm:$0xf]  ;;  %v8289_v19 = vsel %vm1916_vm2, %v8040_v6, %v8043_v2 }
  0xef   : > { %10435 = vst [vmem:[#allocation4_spill] sm:$0xff] %v8108_v48  ;;  %v8134_v49 = vld [vmem:[#allocation2 + $0x70] sm:$0xf]  ;;  %v8141_v23 = vld [vmem:[#allocation2 + $0x78] sm:$0xf] }
  0xf0   : > { %v8143_v21 = vld [vmem:[#allocation2 + $0x80] sm:$0xf]  ;;  %v8145_v9 = vld [vmem:[#allocation2 + $0x7a] sm:$0xf]  ;;  %3150 = vst [vmem:[#allocation1] ss:$4 sm:$0xff] %v1957_v5 }
  0xf1   : > { %10436 = vst [vmem:[#allocation12_spill] sm:$0xff] %v8143_v21  ;;  %v8147_v57 = vld [vmem:[#allocation2 + $0x98] sm:$0xf]  ;;  %v8180_v24 = vld [vmem:[#allocation2 + $0xa9] sm:$0xf] }
  0xf2   : > { %10437 = vst [vmem:[#allocation10_spill] sm:$0xff] %v8145_v9  ;;  %v8160_v26 = vld [vmem:[#allocation2 + $0x99] sm:$0xf]  ;;  %v8182_v20 = vld [vmem:[#allocation2 + $0xb1] sm:$0xf] }
  0xf3   : > { %v8162_v18 = vld [vmem:[#allocation2 + $0x9a] sm:$0xf]  ;;  %3151 = vst [vmem:[#allocation1 + $0x1] ss:$4 sm:$0xff] %v2004_v56  ;;  %v8186_v29 = vld [vmem:[#allocation2 + $0xaa] sm:$0xf] }
  0xf4   : > { %v8164_v11 = vld [vmem:[#allocation2 + $0x98] sm:$0xf]  ;;  %10439 = vst [vmem:[#allocation13_spill] sm:$0xff] %v8180_v24  ;;  %v8196_v54 = vld [vmem:[#allocation2 + $0xb2] sm:$0xf] }
  0xf5   : > { %10438 = vst [vmem:[#allocation11_spill] sm:$0xff] %v8164_v11  ;;  %v8166_v46 = vld [vmem:[#allocation2 + $0x99] sm:$0xf]  ;;  %v8212_v5 = vld [vmem:[#allocation2 + $0xb2] sm:$0xf] }
  0xf6   : > { %10440 = vst [vmem:[#allocation37_spill] sm:$0xff] %v8182_v20  ;;  %v8184_v12 = vld [vmem:[#allocation2 + $0x9a] sm:$0xf]  ;;  %v8216_v0 = vld [vmem:[#allocation2 + $0xc8] sm:$0xf] }
  0xf7   : > { %10441 = vst [vmem:[#allocation38_spill] sm:$0xff] %v8186_v29  ;;  %v8218_v61 = vld [vmem:[#allocation2 + $0xd0] sm:$0xf]  ;;  %v8230_v45 = vld [vmem:[#allocation2 + $0xc9] sm:$0xf] }
  0xf8   : > { %3153 = vst [vmem:[#allocation1 + $0x3] ss:$4 sm:$0xff] %v2098_v34  ;;  %v8232_v58 = vld [vmem:[#allocation2 + $0xd1] sm:$0xf]  ;;  %v1079_v37 = vld [vmem:[#allocation2 + $0x98] sm:$0xf] }
  0xf9   : > { %10442 = vst [vmem:[#allocation39_spill] sm:$0xff] %v8196_v54  ;;  %v8242_v3 = vld [vmem:[#allocation2 + $0xa0] sm:$0xf]  ;;  %v8244_v22 = vld [vmem:[#allocation2 + $0xa8] sm:$0xf] }
  0xfa   : > { %10445 = vst [vmem:[#allocation42_spill] sm:$0xff] %v8228_v55  ;;  %v8246_v44 = vld [vmem:[#allocation2 + $0xb0] sm:$0xf]  ;;  %v8256_v56 = vld [vmem:[#allocation2 + $0xc8] sm:$0xf]  ;;  %v1097_v41 = vpack.c.bf16 %v8244_v22, %v8244_v22 }
  0xfb   : > { %v1111_v11 = vld [vmem:[#allocation2 + $0x99] sm:$0xf]  ;;  %v1112_v47 = vld [vmem:[#allocation2 + $0xa1] sm:$0xf]  ;;  %v1113_v34 = vld [vmem:[#allocation2 + $0xa9] sm:$0xf]  ;;  %v1098_v9 = vpack.c.bf16 %v8246_v44, %v8246_v44  ;;  %v1099_v6 = vpack.c.bf16 %v8256_v56, %v8256_v56  ;;  %v10449_v56 = vpack.c.bf16 %v8064_v60, %v8064_v60 }
  0xfc   : > { %v1114_v20 = vld [vmem:[#allocation2 + $0xb1] sm:$0xf]  ;;  %v8266_v24 = vld [vmem:[#allocation2 + $0xc9] sm:$0xf]  ;;  %v1143_v40 = vld [vmem:[#allocation2 + $0x9a] sm:$0xf]  ;;  %v1127_v2 = vpack.c.bf16 %v1111_v11, %v1111_v11  ;;  %v1128_v4 = vpack.c.bf16 %v1112_v47, %v1112_v47  ;;  %v10450_v47 = vpack.c.bf16 %v8068_v38, %v8068_v38 }
  0xfd   : > { %v1144_v48 = vld [vmem:[#allocation2 + $0xa2] sm:$0xf]  ;;  %v1145_v36 = vld [vmem:[#allocation2 + $0xaa] sm:$0xf]  ;;  %v1146_v29 = vld [vmem:[#allocation2 + $0xb2] sm:$0xf]  ;;  %v1130_v55 = vpack.c.bf16 %v1114_v20, %v1114_v20  ;;  %v1131_v22 = vpack.c.bf16 %v8266_v24, %v8266_v24 }
  0xfe   : > { %v1212_v59 = vld [vmem:[#allocation2 + $0xd1] sm:$0xf]  ;;  %v1160_v44 = vpack.c.bf16 %v1144_v48, %v1144_v48  ;;  %v1697_v11 = vrot.slane %v10449_v56, 6  ;;  %v1162_v24 = vpack.c.bf16 %v1146_v29, %v1146_v29  ;;  %v8319_v21 = vld [vmem:[#allocation2 + $0xd9] sm:$0xf]  ;;  %v8323_v38 = vrot.slane %v1127_v2, 4 }
  0xff   : > { %v8276_v54 = vld.sshfl [vmem:[#allocation1] sm:$0xff pattern:$0x73625140]  ;;  %v8278_v8 = vld.sshfl [vmem:[#allocation1 + $0x8] sm:$0xff pattern:$0x73625140]  ;;  %v10454_v2 = vpack.c.bf16 %v8060_v28, %v8060_v28 }
 0x100   : > { %10446 = vst [vmem:[#allocation43_spill] sm:$0xff] %v8276_v54  ;;  %v8291_v25 = vld.sshfl [vmem:[#allocation1 + $0x10] sm:$0xff pattern:$0x73625140]  ;;  %v1095_v54 = vpack.c.bf16 %v1079_v37, %v1079_v37  ;;  %v1159_v37 = vpack.c.bf16 %v1143_v40, %v1143_v40  ;;  %v1244_v51 = vld [vmem:[#allocation2 + $0xd2] sm:$0xf] }
 0x101   : > { %10447 = vst [vmem:[#allocation44_spill] sm:$0xff] %v8278_v8  ;;  %v1096_v8 = vpack.c.bf16 %v8242_v3, %v8242_v3  ;;  %v1129_v3 = vpack.c.bf16 %v1113_v34, %v1113_v34  ;;  %v1698_v40 = vrot.slane %v10450_v47, 4  ;;  %v1228_v34 = vpack.c.bf16 %v1212_v59, %v1212_v59  ;;  %v1084_v29 = vld [vmem:[#allocation2 + $0xd0] sm:$0xf] }
 0x102   : > { %10448 = vst [vmem:[#allocation45_spill] sm:$0xff] %v8291_v25  ;;  %v1147_v25 = vld [vmem:[#allocation2 + $0xca] sm:$0xf]  ;;  %v1260_v60 = vpack.c.bf16 %v1244_v51, %v1244_v51  ;;  %v8321_v56 = vrot.slane %v1095_v54, 6  ;;  %v8325_v47 = vrot.slane %v1159_v37, 2  ;;  %v8333_v59 = vrot.slane %v1160_v44, 2 }
 0x103   : > { %3165 = vst [vmem:[#allocation1] ss:$4 sm:$0xff] %v8029_v63  ;;  %v1161_v63 = vpack.c.bf16 %v1145_v36, %v1145_v36  ;;  %v1163_v48 = vpack.c.bf16 %v1147_v25, %v1147_v25  ;;  %v8335_v25 = vrot.slane %v1097_v41, 6  ;;  %v8339_v51 = vrot.slane %v1129_v3, 4 }
 0x104   : > { %3166 = vst [vmem:[#allocation1 + $0x1] ss:$4 sm:$0xff] %v8046_v32  ;;  %v10451_v32 = vpack.c.bf16 %v8070_v53, %v8070_v53  ;;  %v8327_v53 = vld [vmem:[#allocation2 + $0x9a] sm:$0xf]  ;;  %v2169_v37 = vsel %vm1908_vm0, %v10454_v2, %v1697_v11  ;;  %v8350_v44 = vrot.slane %v1130_v55, 4  ;;  %v8352_v41 = vrot.slane %v1162_v24, 2 }
 0x105   : > { %3167 = vst [vmem:[#allocation1 + $0x2] ss:$4 sm:$0xff] %v8049_v10  ;;  %v10452_v10 = vpack.c.bf16 %v8066_v30, %v8066_v30  ;;  %v8337_v30 = vld [vmem:[#allocation2 + $0xaa] sm:$0xf]  ;;  %v8341_v54 = vrot.slane %v1161_v63, 2  ;;  %v10455_v3 = vpack.c.bf16 %v8062_v17, %v8062_v17  ;;  %v10457_v11 = vpack.c.bf16 %v8118_v50, %v8118_v50 }
 0x106   : > { %v1699_v20 = vrot.slane %v10451_v32, 2  ;;  %3168 = vst [vmem:[#allocation1 + $0x3] ss:$4 sm:$0xff] %v8081_v31  ;;  %v8329_v32 = vrot.slane %v1096_v8, 6  ;;  %v8331_v31 = vrot.slane %v1128_v4, 4  ;;  %v10458_v55 = vpack.c.bf16 %v8132_v43, %v8132_v43 }
 0x107   : > { %v1717_v36 = vrot.slane %v10452_v10, 6  ;;  %10453 = vst [vmem:[#allocation46_spill] sm:$0xff] %v8339_v51  ;;  %v1116_v4 = vld [vmem:[#allocation2 + $0xd1] sm:$0xf]  ;;  %v8348_v10 = vrot.slane %v1098_v9, 6  ;;  %v10456_v51 = vpack.c.bf16 %v8110_v52, %v8110_v52  ;;  %v10459_v17 = vpack.c.bf16 %v8166_v46, %v8166_v46 }
 0x108   : > { %v2172_v8 = vsel %vm1912_vm1, %v1698_v40, %v1699_v20  ;;  %v8366_v40 = vrot.slane %v10457_v11, 4  ;;  %v8371_v9 = vrot.slane %v10458_v55, 2  ;;  %v1037_v52 = vpack.c.bf16 %v8319_v21, %v8319_v21 }
 0x109   : > { %v2216_v63 = vsel %vm1908_vm0, %v10455_v3, %v1717_v36  ;;  %v8361_v28 = vrot.slane %v10456_v51, 6  ;;  %v8376_v20 = vrot.slane %v10459_v17, 6  ;;  %v1063_v24 = vpack.c.bf16 %v8327_v53, %v8327_v53 }
 0x10a   : > { %v1065_v50 = vpack.c.bf16 %v8337_v30, %v8337_v30  ;;  %v2173_v36 = vsel %vm1916_vm2, %v2169_v37, %v2172_v8  ;;  %v1100_v2 = vpack.c.bf16 %v1084_v29, %v1084_v29  ;;  %v1132_v3 = vpack.c.bf16 %v1116_v4, %v1116_v4 }
 0x10b   : > { %v2220_v46 = vsel %vm1916_vm2, %v2216_v63, %v8075_v16  ;;  %v2267_v21 = vsel %vm1916_vm2, %v8093_v14, %v8098_v15  ;;  %v10462_v30 = vpack.c.bf16 %v8184_v12, %v8184_v12  ;;  %v10463_v29 = vpack.c.bf16 %v8198_v35, %v8198_v35 }
 0x10c   : > { %v8406_v16 = vrot.slane %v1099_v6, 6  ;;  %v8408_v4 = vrot.slane %v1131_v22, 4  ;;  %v8411_v14 = vrot.slane %v1163_v48, 2  ;;  %v8413_v15 = vrot.slane %v1228_v34, 6 }
 0x10d   : > { %v3173_v51 = vld.sshfl [vmem:[#allocation1] sm:$0xff pattern:$0x73625140]  ;;  %v8385_v43 = vld.sshfl [vmem:[#allocation1 + $0x8] sm:$0xff pattern:$0x73625140]  ;;  %v10464_v12 = vpack.c.bf16 %v8112_v13, %v8112_v13  ;;  %v10465_v35 = vpack.c.bf16 %v8120_v7, %v8120_v7  ;;  %v10466_v22 = vpack.c.bf16 %v8134_v49, %v8134_v49  ;;  %v10467_v48 = vpack.c.bf16 %v8147_v57, %v8147_v57 }
 0x10e   : > { %10460 = vst [vmem:[#allocation47_spill] sm:$0xff] %v8385_v43  ;;  %v8392_v11 = vld.sshfl [vmem:[#allocation1 + $0x10] sm:$0xff pattern:$0x73625140]  ;;  %4855 = vmatmul.bf16.gmra.mxu0 %v3173_v51  ;;  %v8399_v37 = vrot.slane %v10462_v30, 4  ;;  %v8404_v8 = vrot.slane %v10463_v29, 2  ;;  %v10469_v17 = vpack.c.bf16 %v8162_v18, %v8162_v18  ;;  %v10471_v57 = vpack.c.bf16 %v8216_v0, %v8216_v0 }
 0x10f   : > { %v8394_v53 = vld.sshfl [vmem:[#allocation1 + $0x18] sm:$0xff pattern:$0x73625140]  ;;  %v8415_v63 = vrot.slane %v1260_v60, 4  ;;  %v8420_v55 = vrot.slane %v10464_v12, 6  ;;  %v1769_v6 = vrot.slane %v10465_v35, 4  ;;  %v10468_v60 = vpack.c.bf16 %v8160_v26, %v8160_v26 }
 0x110   : > { %10461 = vst [vmem:[#allocation48_spill] sm:$0xff] %v8394_v53  ;;  %v8431_v34 = vrot.slane %v10467_v48, 6  ;;  %v1776_v7 = vrot.slane %v10469_v17, 2  ;;  %v8449_v51 = vrot.slane %v10471_v57, 4  ;;  %v10472_v26 = vpack.c.bf16 %v8230_v45, %v8230_v45  ;;  %v6574_v35 = vld [vmem:[%s10153_s3 + $0x1b8] sm:$0xff] }
 0x111   : > { %3181 = vst [vmem:[#allocation1] ss:$4 sm:$0xff] %v8289_v19  ;;  %v1770_v19 = vrot.slane %v10466_v22, 2  ;;  %v8436_v13 = vrot.slane %v10468_v60, 4  ;;  %v8458_v18 = vrot.slane %v1132_v3, 4  ;;  %v10474_v12 = vpack.c.bf16 %v8128_v27, %v8128_v27  ;;  %4900 = vmatpush.bf16.msrb.mxu2 %v6574_v35 }
 0x112   : > { %3182 = vst [vmem:[#allocation1 + $0x1] ss:$4 sm:$0xff] %v2173_v36  ;;  %v10470_v36 = vpack.c.bf16 %v8202_v62, %v8202_v62  ;;  %v8454_v30 = vrot.slane %v10472_v26, 2  ;;  %v10473_v62 = vpack.c.bf16 %v8114_v1, %v8114_v1  ;;  %v10475_v45 = vpack.c.bf16 %v8141_v23, %v8141_v23  ;;  %v8487_v60 = vld [vmem:[#allocation2 + $0xb8] sm:$0xf] }
 0x113   : > { %3183 = vst [vmem:[#allocation1 + $0x2] ss:$4 sm:$0xff] %v2220_v46  ;;  %v8456_v46 = vrot.slane %v1100_v2, 6  ;;  %v1789_v0 = vrot.slane %v10474_v12, 4  ;;  %v10476_v2 = vpack.c.bf16 %v8212_v5, %v8212_v5  ;;  %v10477_v1 = vpack.c.bf16 %v8218_v61, %v8218_v61  ;;  %v8489_v17 = vld [vmem:[#allocation2 + $0xa9] sm:$0xf] }
 0x114   : > { %v8444_v49 = vrot.slane %v10470_v36, 6  ;;  %3184 = vst [vmem:[#allocation1 + $0x3] ss:$4 sm:$0xff] %v2267_v21  ;;  %v1788_v29 = vrot.slane %v10473_v62, 6  ;;  %v1790_v21 = vrot.slane %v10475_v45, 2  ;;  %v10478_v27 = vpack.c.bf16 %v8232_v58, %v8232_v58  ;;  %v10482_v12 = vld [vmem:[#allocation12_spill] sm:$0xff] }
 0x115   : > { %v8475_v3 = vrot.slane %v10476_v2, 6  ;;  %v8480_v22 = vrot.slane %v10477_v1, 4  ;;  %v10479_v23 = vpack.c.bf16 %v8116_v33, %v8116_v33  ;;  %v10480_v36 = vpack.c.bf16 %v8130_v39, %v8130_v39  ;;  %v8509_v62 = vld [vmem:[#allocation2 + $0xb1] sm:$0xf]  ;;  %v8511_v33 = vld [vmem:[#allocation2 + $0xb9] sm:$0xf] }
 0x116   : > { %v8485_v48 = vrot.slane %v10478_v27, 2  ;;  %v10481_v58 = vpack.c.bf16 %v8087_v42, %v8087_v42  ;;  %v2139_v26 = vsel %vm1912_vm1, %v8323_v38, %v8325_v47  ;;  %v10483_v39 = vpack.c.bf16 %v10482_v12, %v10482_v12  ;;  %v10484_v2 = vld [vmem:[#allocation41_spill] sm:$0xff]  ;;  %v8530_v35 = vld [vmem:[#allocation2 + $0xd9] sm:$0xf]  ;;  %v10488_v12 = vld [vmem:[#allocation32_spill] sm:$0xff] }
 0x117   : > { %v8494_v5 = vrot.slane %v10479_v23, 6  ;;  %v8499_v61 = vrot.slane %v10480_v36, 4  ;;  %v10485_v1 = vpack.c.bf16 %v10484_v2, %v10484_v2  ;;  %v2186_v38 = vsel %vm1912_vm1, %v8331_v31, %v8333_v59  ;;  %v8528_v47 = vld [vmem:[#allocation2 + $0xd2] sm:$0xf]  ;;  %v10486_v27 = vld [vmem:[#allocation42_spill] sm:$0xff] }
 0x118   : > { %v2136_v57 = vsel %vm1908_vm0, %v10481_v58, %v8321_v56  ;;  %v8516_v45 = vrot.slane %v10483_v39, 2  ;;  %v2183_v56 = vsel %vm1908_vm0, %v1063_v24, %v8329_v32  ;;  %v10487_v23 = vpack.c.bf16 %v10486_v27, %v10486_v27  ;;  %v10490_v24 = vld [vmem:[#allocation46_spill] sm:$0xff]  ;;  %v949_v27 = vld [vmem:[#allocation2 + $0x72] sm:$0xf]  ;;  %v8657_v43 = vld [vmem:[#allocation2 + $0xa2] sm:$0xf] }
 0x119   : > { %v8521_v42 = vrot.slane %v10485_v1, 6  ;;  %v8537_v58 = vrot.slane %v1037_v52, 2  ;;  %v10489_v39 = vpack.c.bf16 %v10488_v12, %v10488_v12  ;;  %v2233_v31 = vsel %vm1912_vm1, %v10490_v24, %v8341_v54  ;;  %v1014_v12 = vld [vmem:[#allocation2 + $0x91] sm:$0xf] }
 0x11a   : > { %v8535_v36 = vrot.slane %v10487_v23, 4  ;;  %v2140_v2 = vsel %vm1916_vm2, %v2136_v57, %v2139_v26  ;;  %v2277_v1 = vsel %vm1908_vm0, %v1065_v50, %v8348_v10  ;;  %v2280_v52 = vsel %vm1912_vm1, %v8350_v44, %v8352_v41  ;;  %v982_v23 = vld [vmem:[#allocation2 + $0x90] sm:$0xf]  ;;  %v950_v50 = vld [vmem:[#allocation2 + $0x7a] sm:$0xf] }
 0x11b   : > { %v2230_v32 = vsel %vm1908_vm0, %v10489_v39, %v8335_v25  ;;  %v938_v25 = vpack.c.bf16 %v8489_v17, %v8489_v17  ;;  %v2187_v57 = vsel %vm1916_vm2, %v2183_v56, %v2186_v38  ;;  %v8562_v26 = vld.sshfl [vmem:[#allocation1] sm:$0xff pattern:$0x73625140]  ;;  %v8564_v10 = vld.sshfl [vmem:[#allocation1 + $0x8] sm:$0xff pattern:$0x73625140]  ;;  %v2292_v56 = vsel %vm1912_vm1, %v8366_v40, %v8371_v9 }
 0x11c   : > { %10491 = vst [vmem:[#allocation12_spill] sm:$0xff] %v8562_v26  ;;  %v2234_v41 = vsel %vm1916_vm2, %v2230_v32, %v2233_v31  ;;  %v10493_v17 = vld [vmem:[#allocation6_spill] sm:$0xff]  ;;  %v8577_v38 = vld.sshfl [vmem:[#allocation1 + $0x10] sm:$0xff pattern:$0x73625140]  ;;  %v2281_v44 = vsel %vm1916_vm2, %v2277_v1, %v2280_v52  ;;  %v10497_v32 = vld [vmem:[#allocation3_spill] sm:$0xff]  ;;  %v2353_v1 = vsel %vm1912_vm1, %v8436_v13, %v1776_v7 }
 0x11d   : > { %10492 = vst [vmem:[#allocation41_spill] sm:$0xff] %v8564_v10  ;;  %v10494_v24 = vpack.c.bf16 %v10493_v17, %v10493_v17  ;;  %v8579_v39 = vld.sshfl [vmem:[#allocation1 + $0x18] sm:$0xff pattern:$0x73625140]  ;;  %v10498_v31 = vpack.c.bf16 %v10497_v32, %v10497_v32  ;;  %v1015_v40 = vld [vmem:[#allocation2 + $0x99] sm:$0xf] }
 0x11e   : > { %10495 = vst [vmem:[#allocation42_spill] sm:$0xff] %v8577_v38  ;;  %v10499_v9 = vld [vmem:[#allocation10_spill] sm:$0xff]  ;;  %v10501_v52 = vld [vmem:[#allocation8_spill] sm:$0xff]  ;;  %v1030_v38 = vpack.c.bf16 %v1014_v12, %v1014_v12  ;;  %v917_v7 = vld [vmem:[#allocation2 + $0x71] sm:$0xf] }
 0x11f   : > { %v2289_v59 = vsel %vm1908_vm0, %v10494_v24, %v8361_v28  ;;  %10496 = vst [vmem:[#allocation32_spill] sm:$0xff] %v8579_v39  ;;  %v2336_v17 = vsel %vm1908_vm0, %v10498_v31, %v8420_v55  ;;  %v2339_v28 = vsel %vm1912_vm1, %v1769_v6, %v1770_v19  ;;  %v983_v24 = vld [vmem:[#allocation2 + $0x98] sm:$0xf]  ;;  %v10500_v39 = vpack.c.bf16 %v10499_v9, %v10499_v9  ;;  %v952_v6 = vld [vmem:[#allocation2 + $0x8a] sm:$0xf] }
 0x120   : > { %3197 = vst [vmem:[#allocation1] ss:$4 sm:$0xff] %v2140_v2  ;;  %v10502_v54 = vpack.c.bf16 %v10501_v52, %v10501_v52  ;;  %v2386_v55 = vsel %vm1912_vm1, %v1789_v0, %v1790_v21  ;;  %v985_v19 = vld [vmem:[#allocation2 + $0xa8] sm:$0xf]  ;;  %v8603_v2 = vsel %vm1916_vm2, %v2289_v59, %v2292_v56  ;;  %v696_v31 = vld [vmem:[#allocation2 + $0x90] sm:$0xf]  ;;  %v965_v9 = vpack.c.bf16 %v949_v27, %v949_v27 }
 0x121   : > { %v2350_v10 = vsel %vm1908_vm0, %v10500_v39, %v8431_v34  ;;  %3198 = vst [vmem:[#allocation1 + $0x1] ss:$4 sm:$0xff] %v2187_v57  ;;  %v998_v34 = vpack.c.bf16 %v982_v23, %v982_v23  ;;  %v1017_v39 = vld [vmem:[#allocation2 + $0xa9] sm:$0xf]  ;;  %v8606_v13 = vsel %vm1916_vm2, %v2336_v17, %v2339_v28  ;;  %v1031_v0 = vpack.c.bf16 %v1015_v40, %v1015_v40  ;;  %v918_v12 = vld [vmem:[#allocation2 + $0x79] sm:$0xf] }
 0x122   : > { %v2383_v32 = vsel %vm1908_vm0, %v10502_v54, %v1788_v29  ;;  %3199 = vst [vmem:[#allocation1 + $0x2] ss:$4 sm:$0xff] %v2234_v41  ;;  %v966_v29 = vpack.c.bf16 %v950_v50, %v950_v50  ;;  %v999_v54 = vpack.c.bf16 %v983_v24, %v983_v24  ;;  %v8609_v21 = vsel %vm1916_vm2, %v2350_v10, %v2353_v1  ;;  %v728_v50 = vld [vmem:[#allocation2 + $0x91] sm:$0xf]  ;;  %v8623_v17 = vld [vmem:[#allocation2 + $0x89] sm:$0xf] }
 0x123   : > { %3200 = vst [vmem:[#allocation1 + $0x3] ss:$4 sm:$0xff] %v2281_v44  ;;  %v8613_v59 = vsel %vm1908_vm0, %v938_v25, %v8444_v49  ;;  %v8618_v27 = vsel %vm1912_vm1, %v8449_v51, %v8454_v30  ;;  %v8621_v23 = vsel %vm1916_vm2, %v2383_v32, %v2386_v55  ;;  %v712_v57 = vpack.c.bf16 %v696_v31, %v696_v31  ;;  %v760_v44 = vld [vmem:[#allocation2 + $0x92] sm:$0xf]  ;;  %v699_v40 = vld [vmem:[#allocation2 + $0xa8] sm:$0xf] }
 0x124   : > { %v968_v41 = vpack.c.bf16 %v952_v6, %v952_v6  ;;  %v1001_v56 = vpack.c.bf16 %v985_v19, %v985_v19  ;;  %v1033_v10 = vpack.c.bf16 %v1017_v39, %v1017_v39  ;;  %v933_v28 = vpack.c.bf16 %v917_v7, %v917_v7  ;;  %v6550_v51 = vld [vmem:[%s10153_s3 + $0xf8] sm:$0xff]  ;;  %v8628_v1 = vld [vmem:[#allocation2 + $0xa1] sm:$0xf]  ;;  %v10503_v6 = vld [vmem:[#allocation4_spill] sm:$0xff] }
 0x125   : > { %v1680_v49 = vrot.slane %v965_v9, 6  ;;  %v1681_v25 = vrot.slane %v998_v34, 4  ;;  %v1682_v24 = vrot.slane %v1030_v38, 2  ;;  %v934_v30 = vpack.c.bf16 %v918_v12, %v918_v12  ;;  %v8638_v9 = vld [vmem:[#allocation2 + $0x72] sm:$0xf]  ;;  %4813 = vmatpush.bf16.msrb.mxu3 %v6550_v51 }
 0x126   : > { %v1700_v52 = vrot.slane %v966_v29, 6  ;;  %v1701_v32 = vrot.slane %v999_v54, 4  ;;  %v1702_v55 = vrot.slane %v1031_v0, 2  ;;  %v10504_v19 = vpack.c.bf16 %v10503_v6, %v10503_v6  ;;  %v731_v34 = vld [vmem:[#allocation2 + $0xa9] sm:$0xf] }
 0x127   : > { %v2433_v38 = vsel %vm1912_vm1, %v8499_v61, %v8516_v45  ;;  %v744_v39 = vpack.c.bf16 %v728_v50, %v728_v50  ;;  %v776_v7 = vpack.c.bf16 %v760_v44, %v760_v44  ;;  %v8640_v12 = vld [vmem:[#allocation2 + $0xa9] sm:$0xf]  ;;  %v1754_v0 = vrot.slane %v712_v57, 6  ;;  %v8644_v26 = vld [vmem:[#allocation2 + $0xb1] sm:$0xf] }
 0x128   : > { %v2430_v31 = vsel %vm1908_vm0, %v10504_v19, %v8494_v5  ;;  %v8642_v29 = vld [vmem:[#allocation2 + $0x8a] sm:$0xf]  ;;  %v1740_v6 = vrot.slane %v968_v41, 6  ;;  %v1741_v5 = vrot.slane %v1001_v56, 4  ;;  %v1742_v19 = vrot.slane %v1033_v10, 2 }
 0x129   : > { %v763_v54 = vld [vmem:[#allocation2 + $0xaa] sm:$0xf]  ;;  %v10505_v61 = vpack.c.bf16 %v8509_v62, %v8509_v62  ;;  %v715_v53 = vpack.c.bf16 %v699_v40, %v699_v40  ;;  %v8659_v57 = vld [vmem:[#allocation2 + $0xc0] sm:$0xf]  ;;  %v2129_v41 = vsel %vm1908_vm0, %v933_v28, %v1680_v49  ;;  %v2132_v56 = vsel %vm1912_vm1, %v1681_v25, %v1682_v24 }
 0x12a   : > { %v8653_v50 = vld.sshfl [vmem:[#allocation1] sm:$0xff pattern:$0x73625140]  ;;  %v8655_v44 = vld.sshfl [vmem:[#allocation1 + $0x8] sm:$0xff pattern:$0x73625140]  ;;  %v2434_v10 = vsel %vm1916_vm2, %v2430_v31, %v2433_v38  ;;  %v2176_v40 = vsel %vm1908_vm0, %v934_v30, %v1700_v52  ;;  %v747_v49 = vpack.c.bf16 %v731_v34, %v731_v34  ;;  %v779_v25 = vpack.c.bf16 %v763_v54, %v763_v54 }
 0x12b   : > { %v8651_v45 = vsel %vm1908_vm0, %v10505_v61, %v8475_v3  ;;  %10506 = vst [vmem:[#allocation46_spill] sm:$0xff] %v8653_v50  ;;  %v8664_v51 = vld.sshfl [vmem:[#allocation1 + $0x10] sm:$0xff pattern:$0x73625140]  ;;  %v936_v3 = vpack.c.bf16 %v8623_v17, %v8623_v17  ;;  %v8670_v61 = vld [vmem:[#allocation2 + $0xb9] sm:$0xf]  ;;  %v1224_v38 = vpack.c.bf16 %v8628_v1, %v8628_v1  ;;  %v679_v52 = vpack.c.bf16 %v8638_v9, %v8638_v9 }
 0x12c   : > { %10507 = vst [vmem:[#allocation6_spill] sm:$0xff] %v8655_v44  ;;  %v8666_v62 = vld.sshfl [vmem:[#allocation1 + $0x18] sm:$0xff pattern:$0x73625140]  ;;  %v2179_v44 = vsel %vm1912_vm1, %v1701_v32, %v1702_v55  ;;  %v1018_v24 = vld [vmem:[#allocation2 + $0xc1] sm:$0xf]  ;;  %v1225_v34 = vpack.c.bf16 %v8640_v12, %v8640_v12  ;;  %v2133_v54 = vsel %vm1916_vm2, %v2129_v41, %v2132_v56  ;;  %v1226_v9 = vpack.c.bf16 %v8644_v26, %v8644_v26 }
 0x12d   : > { %10508 = vst [vmem:[#allocation3_spill] sm:$0xff] %v8664_v51  ;;  %v8674_v50 = vld.sshfl [vmem:[#allocation1 + $0x20] sm:$0xff pattern:$0x73625140]  ;;  %v1755_v31 = vrot.slane %v744_v39, 4  ;;  %v6549_v17 = vld [vmem:[%s10153_s3 + $0xf0] sm:$0xff]  ;;  %v2180_v12 = vsel %vm1916_vm2, %v2176_v40, %v2179_v44  ;;  %v969_v41 = vpack.c.bf16 %v8657_v43, %v8657_v43  ;;  %v1002_v56 = vpack.c.bf16 %v8659_v57, %v8659_v57 }
 0x12e   : > { %10509 = vst [vmem:[#allocation10_spill] sm:$0xff] %v8666_v62  ;;  %v8676_v28 = vld.sshfl [vmem:[#allocation1 + $0x28] sm:$0xff pattern:$0x73625140]  ;;  %v1756_v32 = vrot.slane %v776_v7, 2  ;;  %v1814_v1 = vrot.slane %v715_v53, 6  ;;  %4814 = vmatpush.bf16.msrb.mxu3 %v6549_v17  ;;  %v2270_v53 = vsel %vm1908_vm0, %v936_v3, %v1740_v6  ;;  %v1034_v44 = vpack.c.bf16 %v1018_v24, %v1018_v24 }
 0x12f   : > { %3212 = vst [vmem:[#allocation1] ss:$4 sm:$0xff] %v8603_v2  ;;  %v1240_v30 = vld [vmem:[#allocation2 + $0xa2] sm:$0xf]  ;;  %v8689_v2 = vld [vmem:[#allocation2 + $0xa8] sm:$0xf]  ;;  %v1227_v43 = vpack.c.bf16 %v8670_v61, %v8670_v61  ;;  %v2303_v57 = vsel %vm1908_vm0, %v679_v52, %v1754_v0 }
 0x130   : > { %3213 = vst [vmem:[#allocation1 + $0x1] ss:$4 sm:$0xff] %v8606_v13  ;;  %v8687_v55 = vld [vmem:[#allocation2 + $0xa0] sm:$0xf]  ;;  %v8693_v39 = vld [vmem:[#allocation2 + $0xaa] sm:$0xf]  ;;  %v682_v13 = vpack.c.bf16 %v8642_v29, %v8642_v29  ;;  %v2273_v29 = vsel %vm1912_vm1, %v1741_v5, %v1742_v19  ;;  %v2306_v51 = vsel %vm1912_vm1, %v1755_v31, %v1756_v32  ;;  %v1256_v3 = vpack.c.bf16 %v1240_v30, %v1240_v30 }
 0x131   : > { %v8696_v62 = vld.sshfl [vmem:[#allocation1 + $0x30] sm:$0xff pattern:$0x73625140]  ;;  %3214 = vst [vmem:[#allocation1 + $0x2] ss:$4 sm:$0xff] %v8621_v23  ;;  %v6548_v23 = vld [vmem:[%s10153_s3 + $0xe8] sm:$0xff]  ;;  %v1193_v24 = vpack.c.bf16 %v8689_v2, %v8689_v2  ;;  %v1257_v52 = vpack.c.bf16 %v8693_v39, %v8693_v39 }
 0x132   : > { %v8703_v7 = vld [vmem:[#allocation2 + $0xb2] sm:$0xf]  ;;  %3215 = vst [vmem:[#allocation1 + $0x3] ss:$4 sm:$0xff] %v2434_v10  ;;  %v8717_v17 = vld [vmem:[#allocation2 + $0xa1] sm:$0xf]  ;;  %4815 = vmatpush.bf16.msrb.mxu3 %v6548_v23  ;;  %v2444_v23 = vsel %vm1908_vm0, %v682_v13, %v1814_v1 }
 0x133   : > { %v8715_v26 = vld.sshfl [vmem:[#allocation1 + $0x38] sm:$0xff pattern:$0x73625140]  ;;  %v1815_v10 = vrot.slane %v747_v49, 4  ;;  %v1816_v40 = vrot.slane %v779_v25, 2  ;;  %v6573_v5 = vld [vmem:[%s10153_s3 + $0x1b0] sm:$0xff]  ;;  %v2274_v49 = vsel %vm1916_vm2, %v2270_v53, %v2273_v29  ;;  %v1192_v25 = vpack.c.bf16 %v8687_v55, %v8687_v55 }
 0x134   : > { %10510 = vst [vmem:[#allocation8_spill] sm:$0xff] %v8715_v26  ;;  %v6566_v6 = vld [vmem:[%s10153_s3 + $0x178] sm:$0xff]  ;;  %v8732_v61 = vld [vmem:[#allocation2 + $0x6a] sm:$0xf]  ;;  %v8734_v0 = vld [vmem:[#allocation2 + $0xb8] sm:$0xf]  ;;  %v1258_v30 = vpack.c.bf16 %v8703_v7, %v8703_v7  ;;  %v937_v32 = vpack.c.bf16 %v8717_v17, %v8717_v17  ;;  %4901 = vmatpush.bf16.msrb.mxu2 %v6573_v5  ;;  %v2307_v29 = vsel %vm1916_vm2, %v2303_v57, %v2306_v51 }
 0x135   : > { %3185 = vst [vmem:[#allocation1 + $0x20] ss:$4 sm:$0xff] %v2133_v54  ;;  %v8729_v19 = vld [vmem:[#allocation2 + $0xb0] sm:$0xf]  ;;  %v1243_v31 = vld [vmem:[#allocation2 + $0xba] sm:$0xf]  ;;  %4871 = vmatpush.bf16.msrb.mxu1 %v6566_v6  ;;  %v2447_v39 = vsel %vm1912_vm1, %v1815_v10, %v1816_v40  ;;  %v8759_v6 = vsel %vm1912_vm1, %v8480_v22, %v8485_v48  ;;  %v10512_v51 = vpack.c.bf16 %v8511_v33, %v8511_v33 }
 0x136   : > { %3186 = vst [vmem:[#allocation1 + $0x21] ss:$4 sm:$0xff] %v2180_v12  ;;  %v1760_v54 = vrot.slane %v969_v41, 6  ;;  %v1761_v12 = vrot.slane %v1002_v56, 4  ;;  %v8747_v55 = vld [vmem:[#allocation2 + $0x72] sm:$0xf]  ;;  %v8779_v22 = vsel %vm1912_vm1, %v8535_v36, %v8537_v58  ;;  %v2448_v58 = vsel %vm1916_vm2, %v2444_v23, %v2447_v39 }
 0x137   : > { %v10511_v53 = vld [vmem:[#allocation5_spill] sm:$0xff]  ;;  %v1762_v2 = vrot.slane %v1034_v44, 2  ;;  %v8752_v26 = vld [vmem:[#allocation2 + $0x7a] sm:$0xf]  ;;  %v1686_v7 = vrot.slane %v1224_v38, 6  ;;  %v1687_v41 = vrot.slane %v1256_v3, 4  ;;  %v8766_v44 = vsel %vm1908_vm0, %v10512_v51, %v8521_v42 }
 0x138   : > { %3187 = vst [vmem:[#allocation1 + $0x22] ss:$4 sm:$0xff] %v10511_v53  ;;  %v8754_v17 = vld [vmem:[#allocation2 + $0x82] sm:$0xf]  ;;  %v1706_v56 = vrot.slane %v1225_v34, 6  ;;  %v1726_v13 = vrot.slane %v1226_v9, 6  ;;  %v1194_v9 = vpack.c.bf16 %v8729_v19, %v8729_v19  ;;  %v582_v42 = vpack.c.bf16 %v8732_v61, %v8732_v61 }
 0x139   : > { %3188 = vst [vmem:[#allocation1 + $0x23] ss:$4 sm:$0xff] %v2274_v49  ;;  %v1746_v1 = vrot.slane %v1227_v43, 6  ;;  %v3220_v38 = vld.sshfl [vmem:[#allocation1] sm:$0xff pattern:$0x73625140]  ;;  %v1259_v43 = vpack.c.bf16 %v1243_v31, %v1243_v31  ;;  %v583_v57 = vpack.c.bf16 %v8747_v55, %v8747_v55  ;;  %v1195_v19 = vpack.c.bf16 %v8734_v0, %v8734_v0 }
 0x13a   : > { %v8768_v10 = vld.sshfl [vmem:[#allocation1 + $0x18] sm:$0xff pattern:$0x73625140]  ;;  %4744 = vmatmul.bf16.vlgmr.msra.gmra.mxu3 %v3220_v38  ;;  %v3222_v48 = vld.sshfl [vmem:[#allocation1 + $0x10] sm:$0xff pattern:$0x73625140]  ;;  %v10513_v49 = vpack.c.bf16 %v8528_v47, %v8528_v47  ;;  %v2143_v55 = vsel %vm1908_vm0, %v1192_v25, %v1686_v7  ;;  %v2317_v51 = vsel %vm1908_vm0, %v937_v32, %v1760_v54  ;;  %v584_v47 = vpack.c.bf16 %v8752_v26, %v8752_v26 }
 0x13b   : > { %v8770_v40 = vld [vmem:[#allocation2 + $0x70] sm:$0xf]  ;;  %v3221_v33 = vld.sshfl [vmem:[#allocation1 + $0x8] sm:$0xff pattern:$0x73625140]  ;;  %4802 = vmatmul.bf16.gmra.mxu2 %v3222_v48  ;;  %v1707_v53 = vrot.slane %v1257_v52, 4  ;;  %v2320_v39 = vsel %vm1912_vm1, %v1761_v12, %v1762_v2  ;;  %v585_v25 = vpack.c.bf16 %v8754_v17, %v8754_v17  ;;  %v2237_v54 = vsel %vm1908_vm0, %v1194_v9, %v1726_v13 }
 0x13c   : > { %v8772_v34 = vld [vmem:[#allocation2 + $0x71] sm:$0xf]  ;;  %v600_v5 = vld [vmem:[#allocation2 + $0x78] sm:$0xf]  ;;  %v8785_v3 = vld [vmem:[#allocation2 + $0x80] sm:$0xf]  ;;  %4773 = vmatmul.bf16.gmra.mxu1 %v3221_v33  ;;  %v615_v7 = vpack.c.bf16 %v8770_v40, %v8770_v40 }
 0x13d   : > { %v8792_v36 = vrot.slane %v10513_v49, 2  ;;  %3228 = vst [vmem:[#allocation1] ss:$4 sm:$0xff] %v2307_v29  ;;  %v602_v61 = vld [vmem:[#allocation2 + $0x88] sm:$0xf]  ;;  %v1727_v23 = vrot.slane %v1258_v30, 4  ;;  %v2190_v29 = vsel %vm1908_vm0, %v1193_v24, %v1706_v56  ;;  %v647_v26 = vpack.c.bf16 %v8772_v34, %v8772_v34 }
 0x13e   : > { %v632_v31 = vld [vmem:[#allocation2 + $0x79] sm:$0xf]  ;;  %3229 = vst [vmem:[#allocation1 + $0x1] ss:$4 sm:$0xff] %v8609_v21  ;;  %v8798_v0 = vld [vmem:[#allocation2 + $0x69] sm:$0xf]  ;;  %v2145_v24 = vsel %vm1916_vm2, %v2143_v55, %v1687_v41  ;;  %v2284_v30 = vsel %vm1908_vm0, %v1195_v19, %v1746_v1  ;;  %v616_v2 = vpack.c.bf16 %v600_v5, %v600_v5  ;;  %v617_v17 = vpack.c.bf16 %v8785_v3, %v8785_v3 }
 0x13f   : > { %v8800_v38 = vld [vmem:[#allocation2 + $0x71] sm:$0xf]  ;;  %v633_v48 = vld [vmem:[#allocation2 + $0x81] sm:$0xf]  ;;  %v634_v32 = vld [vmem:[#allocation2 + $0x89] sm:$0xf]  ;;  %v648_v56 = vpack.c.bf16 %v632_v31, %v632_v31  ;;  %v2192_v13 = vsel %vm1916_vm2, %v2190_v29, %v1707_v53  ;;  %v618_v33 = vpack.c.bf16 %v602_v61, %v602_v61  ;;  %v2239_v1 = vsel %vm1916_vm2, %v2237_v54, %v1727_v23 }
 0x140   : > { %v10514_v52 = vld [vmem:[#allocation9_spill] sm:$0xff]  ;;  %v1747_v21 = vrot.slane %v1259_v43, 4  ;;  %3231 = vst [vmem:[#allocation1 + $0x3] ss:$4 sm:$0xff] %v2448_v58  ;;  %v8825_v40 = vld [vmem:[#allocation2 + $0xd8] sm:$0xf]  ;;  %v649_v41 = vpack.c.bf16 %v633_v48, %v633_v48  ;;  %v650_v49 = vpack.c.bf16 %v634_v32, %v634_v32  ;;  %v2321_v58 = vsel %vm1916_vm2, %v2317_v51, %v2320_v39 }
 0x141   : > { %3230 = vst [vmem:[#allocation1 + $0x2] ss:$4 sm:$0xff] %v10514_v52  ;;  %v8816_v12 = vld.sshfl [vmem:[#allocation1 + $0x20] sm:$0xff pattern:$0x73625140]  ;;  %v550_v55 = vpack.c.bf16 %v8798_v0, %v8798_v0  ;;  %v551_v61 = vpack.c.bf16 %v8800_v38, %v8800_v38  ;;  %v1751_v29 = vrot.slane %v582_v42, 6  ;;  %v1101_v42 = vpack.c.bf16 %v8825_v40, %v8825_v40 }
 0x142   : > { %10515 = vst [vmem:[#allocation4_spill] sm:$0xff] %v8816_v12  ;;  %v8821_v9 = vld.sshfl [vmem:[#allocation1 + $0x28] sm:$0xff pattern:$0x73625140]  ;;  %v1245_v34 = vld [vmem:[#allocation2 + $0xda] sm:$0xf]  ;;  %v2286_v48 = vsel %vm1916_vm2, %v2284_v30, %v1747_v21 }
 0x143   : > { %10516 = vst [vmem:[#allocation5_spill] sm:$0xff] %v8821_v9  ;;  %v8823_v43 = vld.sshfl [vmem:[#allocation1 + $0x30] sm:$0xff pattern:$0x73625140]  ;;  %v8830_v5 = vld [vmem:[#allocation2 + $0xe0] sm:$0xf] }
 0x144   : > { %10517 = vst [vmem:[#allocation9_spill] sm:$0xff] %v8823_v43  ;;  %v8828_v19 = vld.sshfl [vmem:[#allocation1 + $0x38] sm:$0xff pattern:$0x73625140]  ;;  %v8832_v3 = vld [vmem:[#allocation2 + $0xd9] sm:$0xf] }
 0x145   : > { %10518 = vst [vmem:[#allocation49_spill] sm:$0xff] %v8828_v19  ;;  %v536_v31 = vld [vmem:[#allocation2 + $0x79] sm:$0xf]  ;;  %v8835_v53 = vld [vmem:[#allocation2 + $0x81] sm:$0xf]  ;;  %v1752_v52 = vrot.slane %v615_v7, 4  ;;  %v1261_v7 = vpack.c.bf16 %v1245_v34, %v1245_v34 }
 0x146   : > { %3201 = vst [vmem:[#allocation1 + $0x20] ss:$4 sm:$0xff] %v2145_v24  ;;  %v8842_v23 = vld [vmem:[#allocation2 + $0xd0] sm:$0xf]  ;;  %v1753_v32 = vrot.slane %v647_v26, 2  ;;  %v1771_v54 = vrot.slane %v583_v57, 6  ;;  %v2368_v57 = vsel %vm1916_vm2, %v8613_v59, %v8618_v27  ;;  %v552_v30 = vpack.c.bf16 %v536_v31, %v536_v31 }
 0x147   : > { %3202 = vst [vmem:[#allocation1 + $0x21] ss:$4 sm:$0xff] %v2192_v13  ;;  %v8844_v51 = vld [vmem:[#allocation2 + $0xe1] sm:$0xf]  ;;  %v1772_v39 = vrot.slane %v616_v2, 4  ;;  %v1773_v19 = vrot.slane %v648_v56, 2  ;;  %v1102_v2 = vpack.c.bf16 %v8830_v5, %v8830_v5  ;;  %v2415_v56 = vsel %vm1916_vm2, %v8651_v45, %v8759_v6 }
 0x148   : > { %v1791_v9 = vrot.slane %v584_v47, 6  ;;  %v1792_v43 = vrot.slane %v617_v17, 4  ;;  %3203 = vst [vmem:[#allocation1 + $0x22] ss:$4 sm:$0xff] %v2239_v1  ;;  %v8846_v0 = vld [vmem:[#allocation2 + $0xd8] sm:$0xf]  ;;  %v553_v27 = vpack.c.bf16 %v8835_v53, %v8835_v53  ;;  %v1196_v34 = vpack.c.bf16 %v8842_v23, %v8842_v23 }
 0x149   : > { %v1793_v38 = vrot.slane %v649_v41, 2  ;;  %v1811_v12 = vrot.slane %v585_v25, 6  ;;  %v1812_v21 = vrot.slane %v618_v33, 4  ;;  %v1813_v24 = vrot.slane %v650_v49, 2  ;;  %3204 = vst [vmem:[#allocation1 + $0x23] ss:$4 sm:$0xff] %v2286_v48 }
 0x14a   : > { %v8853_v26 = vld.sshfl [vmem:[#allocation1] sm:$0xff pattern:$0x73625140]  ;;  %v8855_v47 = vld.sshfl [vmem:[#allocation1 + $0x8] sm:$0xff pattern:$0x73625140]  ;;  %v1133_v25 = vpack.c.bf16 %v8832_v3, %v8832_v3  ;;  %v2462_v33 = vsel %vm1916_vm2, %v8766_v44, %v8779_v22  ;;  %v2296_v1 = vsel %vm1908_vm0, %v550_v55, %v1751_v29  ;;  %v2299_v45 = vsel %vm1912_vm1, %v1752_v52, %v1753_v32 }
 0x14b   : > { %v8861_v17 = vld [vmem:[#allocation2 + $0xda] sm:$0xf]  ;;  %v8866_v13 = vld.sshfl [vmem:[#allocation1 + $0x10] sm:$0xff pattern:$0x73625140]  ;;  %v1134_v6 = vpack.c.bf16 %v8844_v51, %v8844_v51  ;;  %v10519_v3 = vpack.c.bf16 %v8530_v35, %v8530_v35  ;;  %v2343_v53 = vsel %vm1908_vm0, %v551_v61, %v1771_v54  ;;  %v2346_v48 = vsel %vm1912_vm1, %v1772_v39, %v1773_v19  ;;  %v6590_v44 = vld [vmem:[%s10153_s3 + $0x238] sm:$0xff] }
 0x14c   : > { %v8868_v59 = vld.sshfl [vmem:[#allocation1 + $0x18] sm:$0xff pattern:$0x73625140]  ;;  %v825_v41 = vld [vmem:[#allocation2 + $0xa1] sm:$0xf]  ;;  %v6547_v22 = vld [vmem:[%s10153_s3 + $0xe0] sm:$0xff]  ;;  %v1197_v35 = vpack.c.bf16 %v8846_v0, %v8846_v0  ;;  %v2390_v19 = vsel %vm1908_vm0, %v552_v30, %v1791_v9  ;;  %v2393_v23 = vsel %vm1912_vm1, %v1792_v43, %v1793_v38  ;;  %v2300_v32 = vsel %vm1916_vm2, %v2296_v1, %v2299_v45  ;;  %4958 = vmatpush.bf16.msra.mxu0 %v6590_v44 }
 0x14d   : > { %3244 = vst [vmem:[#allocation1] ss:$4 sm:$0xff] %v2321_v58  ;;  %v857_v49 = vld [vmem:[#allocation2 + $0xa2] sm:$0xf]  ;;  %v1786_v31 = vrot.slane %v10519_v3, 6  ;;  %v6565_v58 = vld [vmem:[%s10153_s3 + $0x170] sm:$0xff]  ;;  %v2437_v54 = vsel %vm1908_vm0, %v553_v27, %v1811_v12  ;;  %v2440_v39 = vsel %vm1912_vm1, %v1812_v21, %v1813_v24  ;;  %4816 = vmatpush.bf16.msrb.mxu3 %v6547_v22  ;;  %v1165_v43 = vpack.c.bf16 %v8861_v17, %v8861_v17 }
 0x14e   : > { %3245 = vst [vmem:[#allocation1 + $0x1] ss:$4 sm:$0xff] %v2368_v57  ;;  %v1787_v55 = vrot.slane %v1261_v7, 4  ;;  %v890_v61 = vld [vmem:[#allocation2 + $0xa8] sm:$0xf]  ;;  %v6572_v29 = vld [vmem:[%s10153_s3 + $0x1a8] sm:$0xff]  ;;  %v2331_v0 = vsel %vm1908_vm0, %v1196_v34, %v8413_v15  ;;  %v2347_v38 = vsel %vm1916_vm2, %v2343_v53, %v2346_v48  ;;  %4872 = vmatpush.bf16.msrb.mxu1 %v6565_v58  ;;  %v841_v24 = vpack.c.bf16 %v825_v41, %v825_v41 }
 0x14f   : > { %3246 = vst [vmem:[#allocation1 + $0x2] ss:$4 sm:$0xff] %v2415_v56  ;;  %v8902_v52 = vld [vmem:[#allocation2 + $0xe2] sm:$0xf]  ;;  %v6589_v9 = vld [vmem:[%s10153_s3 + $0x230] sm:$0xff]  ;;  %4902 = vmatpush.bf16.msrb.mxu2 %v6572_v29  ;;  %v873_v30 = vpack.c.bf16 %v857_v49, %v857_v49  ;;  %v906_v56 = vpack.c.bf16 %v890_v61, %v890_v61  ;;  %v2394_v27 = vsel %vm1916_vm2, %v2390_v19, %v2393_v23  ;;  %v10522_v45 = vld [vmem:[#allocation13_spill] sm:$0xff] }
 0x150   : > { %3247 = vst [vmem:[#allocation1 + $0x3] ss:$4 sm:$0xff] %v2462_v33  ;;  %v8915_v7 = vld.sshfl [vmem:[#allocation1 + $0x20] sm:$0xff pattern:$0x73625140]  ;;  %v1166_v34 = vpack.c.bf16 %v8902_v52, %v8902_v52  ;;  %v10523_v3 = vpack.c.bf16 %v10522_v45, %v10522_v45  ;;  %v2441_v22 = vsel %vm1916_vm2, %v2437_v54, %v2440_v39  ;;  %v10526_v58 = vld [vmem:[#allocation40_spill] sm:$0xff]  ;;  %v2378_v52 = vsel %vm1908_vm0, %v1197_v35, %v1786_v31 }
 0x151   : > { %v8917_v57 = vld.sshfl [vmem:[#allocation1 + $0x28] sm:$0xff pattern:$0x73625140]  ;;  %v794_v12 = vld [vmem:[#allocation2 + $0xa8] sm:$0xf]  ;;  %v10524_v48 = vld [vmem:[#allocation38_spill] sm:$0xff]  ;;  %v10527_v61 = vpack.c.bf16 %v10526_v58, %v10526_v58  ;;  %4959 = vmatpush.bf16.msra.mxu0 %v6589_v9 }
 0x152   : > { %10520 = vst [vmem:[#allocation50_spill] sm:$0xff] %v8917_v57  ;;  %v1050_v21 = vld [vmem:[#allocation2 + $0xc2] sm:$0xf]  ;;  %v8920_v33 = vld.sshfl [vmem:[#allocation1 + $0x30] sm:$0xff pattern:$0x73625140]  ;;  %v10525_v41 = vpack.c.bf16 %v10524_v48, %v10524_v48 }
 0x153   : > { %10521 = vst [vmem:[#allocation51_spill] sm:$0xff] %v8920_v33  ;;  %v795_v17 = vld [vmem:[#allocation2 + $0xb0] sm:$0xf]  ;;  %v8922_v1 = vld [vmem:[#allocation2 + $0xca] sm:$0xf]  ;;  %v1797_v53 = vrot.slane %v10523_v3, 6  ;;  %v1066_v58 = vpack.c.bf16 %v1050_v21, %v1050_v21 }
 0x154   : > { %v8924_v15 = vld [vmem:[#allocation2 + $0xd2] sm:$0xf]  ;;  %v1798_v49 = vrot.slane %v10525_v41, 4  ;;  %v793_v44 = vld [vmem:[#allocation2 + $0xa0] sm:$0xf]  ;;  %v1799_v19 = vrot.slane %v10527_v61, 2  ;;  %v10532_v41 = vpack.c.bf16 %v8487_v60, %v8487_v60  ;;  %v2380_v61 = vsel %vm1916_vm2, %v2378_v52, %v1787_v55 }
 0x155   : > { %3216 = vst [vmem:[#allocation1 + $0x20] ss:$4 sm:$0xff] %v2300_v32  ;;  %v8941_v23 = vrot.slane %v1101_v42, 6  ;;  %v8943_v29 = vrot.slane %v1133_v25, 4  ;;  %v10528_v45 = vld [vmem:[#allocation37_spill] sm:$0xff]  ;;  %v10530_v32 = vld [vmem:[#allocation39_spill] sm:$0xff]  ;;  %v2333_v42 = vsel %vm1916_vm2, %v2331_v0, %v8415_v63  ;;  %v809_v25 = vpack.c.bf16 %v793_v44, %v793_v44 }
 0x156   : > { %3217 = vst [vmem:[#allocation1 + $0x21] ss:$4 sm:$0xff] %v2347_v38  ;;  %v10529_v3 = vpack.c.bf16 %v10528_v45, %v10528_v45  ;;  %v10531_v39 = vpack.c.bf16 %v10530_v32, %v10530_v32  ;;  %v1819_v40 = vrot.slane %v10532_v41, 2  ;;  %v1777_v31 = vrot.slane %v841_v24, 6  ;;  %v10533_v32 = vld [vmem:[#allocation25_spill] sm:$0xff]  ;;  %v10534_v60 = vld [vmem:[#allocation7_spill] sm:$0xff] }
 0x157   : > { %3218 = vst [vmem:[#allocation1 + $0x22] ss:$4 sm:$0xff] %v2394_v27  ;;  %v1778_v35 = vrot.slane %v873_v30, 4  ;;  %v1779_v9 = vrot.slane %v906_v56, 2  ;;  %v810_v38 = vpack.c.bf16 %v794_v12, %v794_v12  ;;  %v811_v41 = vpack.c.bf16 %v795_v17, %v795_v17  ;;  %v1053_v55 = vld [vmem:[#allocation2 + $0xda] sm:$0xf] }
 0x158   : > { %v1817_v54 = vrot.slane %v10529_v3, 6  ;;  %v1818_v48 = vrot.slane %v10531_v39, 4  ;;  %3219 = vst [vmem:[#allocation1 + $0x23] ss:$4 sm:$0xff] %v2441_v22  ;;  %v2427_v39 = vsel %vm1916_vm2, %v10534_v60, %v10533_v32  ;;  %v1067_v63 = vpack.c.bf16 %v8922_v1, %v8922_v1  ;;  %v10535_v56 = vld [vmem:[#allocation11_spill] sm:$0xff]  ;;  %v10553_v33 = vld [vmem:[#allocation12_spill] sm:$0xff] }
 0x159   : > { %v8958_v45 = vld.sshfl [vmem:[#allocation1] sm:$0xff pattern:$0x73625140]  ;;  %v8960_v3 = vld.sshfl [vmem:[#allocation1 + $0x8] sm:$0xff pattern:$0x73625140]  ;;  %v1068_v0 = vpack.c.bf16 %v8924_v15, %v8924_v15  ;;  %v10536_v27 = vpack.c.bf16 %v10535_v56, %v10535_v56  ;;  %v2313_v1 = vsel %vm1912_vm1, %v8399_v37, %v8404_v8  ;;  %v2357_v5 = vsel %vm1908_vm0, %v809_v25, %v1777_v31 }
 0x15a   : > { %v8969_v24 = vld.sshfl [vmem:[#allocation1 + $0x10] sm:$0xff pattern:$0x73625140]  ;;  %v8971_v12 = vld.sshfl [vmem:[#allocation1 + $0x18] sm:$0xff pattern:$0x73625140]  ;;  %v2324_v44 = vsel %vm1908_vm0, %v1066_v58, %v8406_v16  ;;  %v2404_v37 = vsel %vm1908_vm0, %v810_v38, %v1797_v53  ;;  %v2407_v8 = vsel %vm1912_vm1, %v1798_v49, %v1799_v19  ;;  %v2451_v22 = vsel %vm1908_vm0, %v811_v41, %v1817_v54 }
 0x15b   : > { %v1805_v21 = vrot.slane %v1165_v43, 2  ;;  %v1823_v30 = vrot.slane %v1102_v2, 6  ;;  %v2310_v17 = vsel %vm1908_vm0, %v10536_v27, %v8376_v20  ;;  %3260 = vst [vmem:[#allocation1] ss:$4 sm:$0xff] %v2333_v42  ;;  %v1824_v15 = vrot.slane %v1134_v6, 4 }
 0x15c   : > { %v1825_v43 = vrot.slane %v1166_v34, 2  ;;  %3261 = vst [vmem:[#allocation1 + $0x1] ss:$4 sm:$0xff] %v2380_v61  ;;  %v2360_v2 = vsel %vm1912_vm1, %v1778_v35, %v1779_v9  ;;  %v2327_v20 = vsel %vm1912_vm1, %v8408_v4, %v8411_v14  ;;  %v441_v51 = vld [vmem:[#allocation2 + $0x91] sm:$0xf]  ;;  %v1069_v6 = vpack.c.bf16 %v1053_v55, %v1053_v55 }
 0x15d   : > { %3262 = vst [vmem:[#allocation1 + $0x2] ss:$4 sm:$0xff] %v2427_v39  ;;  %v2314_v34 = vsel %vm1916_vm2, %v2310_v17, %v2313_v1  ;;  %v2454_v52 = vsel %vm1912_vm1, %v1818_v48, %v1819_v40  ;;  %v8999_v42 = vld [vmem:[#allocation2 + $0x90] sm:$0xf]  ;;  %v9001_v16 = vld [vmem:[#allocation2 + $0x99] sm:$0xf]  ;;  %v2361_v14 = vsel %vm1916_vm2, %v2357_v5, %v2360_v2  ;;  %v9013_v54 = vsel %vm1916_vm2, %v2324_v44, %v2327_v20 }
 0x15e   : > { %v473_v25 = vld [vmem:[#allocation2 + $0x92] sm:$0xf]  ;;  %v9003_v31 = vld [vmem:[#allocation2 + $0x9a] sm:$0xf]  ;;  %v9008_v19 = vld [vmem:[#allocation2 + $0xa1] sm:$0xf]  ;;  %v9017_v48 = vsel %vm1908_vm0, %v1067_v63, %v8456_v46  ;;  %v2408_v40 = vsel %vm1916_vm2, %v2404_v37, %v2407_v8  ;;  %v9027_v32 = vsel %vm1912_vm1, %v8458_v18, %v8792_v36  ;;  %v9031_v60 = vsel %vm1908_vm0, %v1068_v0, %v8941_v23 }
 0x15f   : > { %v506_v4 = vld [vmem:[#allocation2 + $0x98] sm:$0xf]  ;;  %v9006_v49 = vld.sshfl [vmem:[#allocation1 + $0x28] sm:$0xff pattern:$0x73625140]  ;;  %v9035_v46 = vsel %vm1912_vm1, %v8943_v29, %v1805_v21  ;;  %v2455_v39 = vsel %vm1916_vm2, %v2451_v22, %v2454_v52  ;;  %v9041_v56 = vsel %vm1908_vm0, %v1069_v6, %v1823_v30  ;;  %v457_v36 = vpack.c.bf16 %v441_v51, %v441_v51  ;;  %v6546_v2 = vld [vmem:[%s10153_s3 + $0xd8] sm:$0xff] }
 0x160   : > { %v3224_v53 = vld.sshfl [vmem:[#allocation1 + $0x20] sm:$0xff pattern:$0x73625140]  ;;  %v9010_v35 = vld [vmem:[#allocation2 + $0xa2] sm:$0xf]  ;;  %v489_v23 = vpack.c.bf16 %v473_v25, %v473_v25  ;;  %v522_v27 = vpack.c.bf16 %v506_v4, %v506_v4  ;;  %v2468_v29 = vsel %vm1912_vm1, %v1824_v15, %v1825_v43  ;;  %v425_v1 = vpack.c.bf16 %v8999_v42, %v8999_v42  ;;  %4817 = vmatpush.bf16.msrb.mxu3 %v6546_v2  ;;  %v6545_v52 = vld [vmem:[%s10153_s3 + $0xd0] sm:$0xff] }
 0x161   : > { %v9020_v9 = vld.sshfl [vmem:[#allocation1 + $0x30] sm:$0xff pattern:$0x73625140]  ;;  %v9022_v38 = vld.sshfl [vmem:[#allocation1 + $0x38] sm:$0xff pattern:$0x73625140]  ;;  %4860 = vmatmul.bf16.gmra.mxu0 %v3224_v53  ;;  %v458_v30 = vpack.c.bf16 %v9001_v16, %v9001_v16  ;;  %v490_v5 = vpack.c.bf16 %v9003_v31, %v9003_v31  ;;  %v459_v15 = vpack.c.bf16 %v9008_v19, %v9008_v19  ;;  %v491_v43 = vpack.c.bf16 %v9010_v35, %v9010_v35 }
 0x162   : > { %v444_v58 = vld [vmem:[#allocation2 + $0xa9] sm:$0xf]  ;;  %3232 = vst [vmem:[#allocation1 + $0x20] ss:$4 sm:$0xff] %v2314_v34  ;;  %v9038_v41 = vld [vmem:[#allocation2 + $0x98] sm:$0xf] }
 0x163   : > { %v476_v61 = vld [vmem:[#allocation2 + $0xaa] sm:$0xf]  ;;  %v507_v63 = vld [vmem:[#allocation2 + $0xa0] sm:$0xf]  ;;  %3233 = vst [vmem:[#allocation1 + $0x21] ss:$4 sm:$0xff] %v2361_v14  ;;  %v460_v6 = vpack.c.bf16 %v444_v58, %v444_v58  ;;  %v426_v16 = vpack.c.bf16 %v9038_v41, %v9038_v41 }
 0x164   : > { %v508_v55 = vld [vmem:[#allocation2 + $0xa8] sm:$0xf]  ;;  %v9043_v18 = vld [vmem:[#allocation2 + $0xa0] sm:$0xf]  ;;  %v509_v0 = vld [vmem:[#allocation2 + $0xb0] sm:$0xf]  ;;  %v523_v44 = vpack.c.bf16 %v507_v63, %v507_v63  ;;  %v492_v34 = vpack.c.bf16 %v476_v61, %v476_v61  ;;  %4818 = vmatpush.bf16.msrb.mxu3 %v6545_v52 }
 0x165   : > { %v1215_v17 = vld [vmem:[#allocation2 + $0xe9] sm:$0xf]  ;;  %3234 = vst [vmem:[#allocation1 + $0x22] ss:$4 sm:$0xff] %v2408_v40  ;;  %v524_v20 = vpack.c.bf16 %v508_v55, %v508_v55  ;;  %v6564_v37 = vld [vmem:[%s10153_s3 + $0x168] sm:$0xff]  ;;  %v6571_v8 = vld [vmem:[%s10153_s3 + $0x1a0] sm:$0xff]  ;;  %v525_v22 = vpack.c.bf16 %v509_v0, %v509_v0  ;;  %v427_v19 = vpack.c.bf16 %v9043_v18, %v9043_v18 }
 0x166   : > { %v9046_v21 = vld [vmem:[#allocation2 + $0xa8] sm:$0xf]  ;;  %3235 = vst [vmem:[#allocation1 + $0x23] ss:$4 sm:$0xff] %v2455_v39  ;;  %v6588_v51 = vld [vmem:[%s10153_s3 + $0x228] sm:$0xff]  ;;  %v1231_v42 = vpack.c.bf16 %v1215_v17, %v1215_v17  ;;  %v1828_v25 = vrot.slane %v457_v36, 6  ;;  %4873 = vmatpush.bf16.msrb.mxu1 %v6564_v37  ;;  %4903 = vmatpush.bf16.msrb.mxu2 %v6571_v8 }
 0x167   : > { %v1829_v31 = vrot.slane %v489_v23, 4  ;;  %v1830_v4 = vrot.slane %v522_v27, 2  ;;  %v6563_v14 = vld [vmem:[%s10153_s3 + $0x160] sm:$0xff]  ;;  %v6570_v53 = vld [vmem:[%s10153_s3 + $0x198] sm:$0xff]  ;;  %v428_v35 = vpack.c.bf16 %v9046_v21, %v9046_v21  ;;  %v1848_v40 = vrot.slane %v458_v30, 6  ;;  %4960 = vmatpush.bf16.msra.mxu0 %v6588_v51  ;;  %v6544_v18 = vld [vmem:[%s10153_s3 + $0xc8] sm:$0xff] }
 0x168   : > { %v1849_v58 = vrot.slane %v490_v5, 4  ;;  %v6587_v61 = vld [vmem:[%s10153_s3 + $0x220] sm:$0xff]  ;;  %v1183_v39 = vld [vmem:[#allocation2 + $0xe8] sm:$0xf]  ;;  %v1850_v41 = vrot.slane %v523_v44, 2  ;;  %v1868_v63 = vrot.slane %v459_v15, 6  ;;  %v2477_v21 = vsel %vm1908_vm0, %v425_v1, %v1828_v25  ;;  %4819 = vmatpush.bf16.msrb.mxu3 %v6544_v18 }
 0x169   : > { %v1869_v55 = vrot.slane %v491_v43, 4  ;;  %v1870_v36 = vrot.slane %v524_v20, 2  ;;  %v1888_v23 = vrot.slane %v460_v6, 6  ;;  %v9088_v0 = vrot.slane %v492_v34, 4  ;;  %v9097_v5 = vld [vmem:[#allocation2 + $0x9a] sm:$0xf] }
 0x16a   : > { %v9090_v27 = vrot.slane %v525_v22, 2  ;;  %v1826_v17 = vrot.slane %v1231_v42, 6  ;;  %v2480_v30 = vsel %vm1912_vm1, %v1829_v31, %v1830_v4  ;;  %4874 = vmatpush.bf16.msrb.mxu1 %v6563_v14  ;;  %4904 = vmatpush.bf16.msrb.mxu2 %v6570_v53  ;;  %v9099_v2 = vld [vmem:[#allocation2 + $0xa2] sm:$0xf]  ;;  %v1199_v44 = vpack.c.bf16 %v1183_v39, %v1183_v39  ;;  %v604_v1 = vld [vmem:[#allocation2 + $0xa8] sm:$0xf] }
 0x16b   : > { %v603_v15 = vld [vmem:[#allocation2 + $0xa0] sm:$0xf]  ;;  %v2375_v20 = vsel %vm1916_vm2, %v9017_v48, %v9027_v32  ;;  %4961 = vmatpush.bf16.msra.mxu0 %v6587_v61  ;;  %v2422_v51 = vsel %vm1916_vm2, %v9031_v60, %v9035_v46  ;;  %v2469_v6 = vsel %vm1916_vm2, %v9041_v56, %v2468_v29  ;;  %v9118_v52 = vsel %vm1908_vm0, %v426_v16, %v1848_v40  ;;  %v9120_v48 = vld [vmem:[#allocation2 + $0x99] sm:$0xf]  ;;  %v572_v32 = vld [vmem:[#allocation2 + $0xaa] sm:$0xf] }
 0x16c   : > { %v635_v43 = vld [vmem:[#allocation2 + $0xa1] sm:$0xf]  ;;  %v605_v42 = vld [vmem:[#allocation2 + $0xb0] sm:$0xf]  ;;  %v9124_v25 = vsel %vm1916_vm2, %v2477_v21, %v2480_v30  ;;  %v9127_v60 = vsel %vm1912_vm1, %v1849_v58, %v1850_v41  ;;  %v9130_v46 = vsel %vm1908_vm0, %v427_v19, %v1868_v63  ;;  %v636_v29 = vld [vmem:[#allocation2 + $0xa9] sm:$0xf]  ;;  %v9133_v31 = vsel %vm1912_vm1, %v1869_v55, %v1870_v36 }
 0x16d   : > { %v9104_v37 = vld.sshfl [vmem:[#allocation1 + $0x20] sm:$0xff pattern:$0x73625140]  ;;  %v9106_v8 = vld.sshfl [vmem:[#allocation1 + $0x28] sm:$0xff pattern:$0x73625140]  ;;  %v9136_v4 = vsel %vm1908_vm0, %v428_v35, %v1888_v23  ;;  %v2472_v53 = vsel %vm1908_vm0, %v1199_v44, %v1826_v17  ;;  %v586_v58 = vpack.c.bf16 %v9097_v5, %v9097_v5  ;;  %v587_v35 = vpack.c.bf16 %v9099_v2, %v9099_v2 }
 0x16e   : > { %v9113_v34 = vld.sshfl [vmem:[#allocation1 + $0x30] sm:$0xff pattern:$0x73625140]  ;;  %v9115_v22 = vld.sshfl [vmem:[#allocation1 + $0x38] sm:$0xff pattern:$0x73625140]  ;;  %v619_v39 = vpack.c.bf16 %v603_v15, %v603_v15  ;;  %v651_v63 = vpack.c.bf16 %v635_v43, %v635_v43  ;;  %v620_v36 = vpack.c.bf16 %v604_v1, %v604_v1  ;;  %v652_v23 = vpack.c.bf16 %v636_v29, %v636_v29 }
 0x16f   : > { %3248 = vst [vmem:[#allocation1 + $0x20] ss:$4 sm:$0xff] %v9013_v54  ;;  %v573_v56 = vld [vmem:[#allocation2 + $0xb2] sm:$0xf]  ;;  %v1247_v16 = vld [vmem:[#allocation2 + $0xea] sm:$0xf]  ;;  %v554_v17 = vpack.c.bf16 %v9120_v48, %v9120_v48  ;;  %v588_v21 = vpack.c.bf16 %v572_v32, %v572_v32  ;;  %v621_v30 = vpack.c.bf16 %v605_v42, %v605_v42  ;;  %v2621_v42 = vsel %vm1912_vm1, %v9088_v0, %v9090_v27 }
 0x170   : > { %3249 = vst [vmem:[#allocation1 + $0x21] ss:$4 sm:$0xff] %v2375_v20  ;;  %v637_v54 = vld [vmem:[#allocation2 + $0xb1] sm:$0xf]  ;;  %v1263_v14 = vpack.c.bf16 %v1247_v16, %v1247_v16  ;;  %v6569_v40 = vld [vmem:[%s10153_s3 + $0x190] sm:$0xff]  ;;  %v6543_v15 = vld [vmem:[%s10153_s3 + $0xc0] sm:$0xff]  ;;  %v589_v1 = vpack.c.bf16 %v573_v56, %v573_v56 }
 0x171   : > { %v6562_v19 = vld [vmem:[%s10153_s3 + $0x158] sm:$0xff]  ;;  %3250 = vst [vmem:[#allocation1 + $0x22] ss:$4 sm:$0xff] %v2422_v51  ;;  %v606_v61 = vld [vmem:[#allocation2 + $0xb8] sm:$0xf]  ;;  %4905 = vmatpush.bf16.msrb.mxu2 %v6569_v40  ;;  %v653_v5 = vpack.c.bf16 %v637_v54, %v637_v54  ;;  %v6561_v43 = vld [vmem:[%s10153_s3 + $0x150] sm:$0xff]  ;;  %4820 = vmatpush.bf16.msrb.mxu3 %v6543_v15 }
 0x172   : > { %v638_v41 = vld [vmem:[#allocation2 + $0xb9] sm:$0xf]  ;;  %3251 = vst [vmem:[#allocation1 + $0x23] ss:$4 sm:$0xff] %v2469_v6  ;;  %v539_v55 = vld [vmem:[#allocation2 + $0xa1] sm:$0xf]  ;;  %4875 = vmatpush.bf16.msrb.mxu1 %v6562_v19  ;;  %v622_v51 = vpack.c.bf16 %v606_v61, %v606_v61 }
 0x173   : > { %v1827_v18 = vrot.slane %v1263_v14, 4  ;;  %v6586_v2 = vld [vmem:[%s10153_s3 + $0x218] sm:$0xff]  ;;  %v540_v44 = vld [vmem:[#allocation2 + $0xa9] sm:$0xf]  ;;  %v654_v6 = vpack.c.bf16 %v638_v41, %v638_v41  ;;  %v6568_v32 = vld [vmem:[%s10153_s3 + $0x188] sm:$0xff]  ;;  %v1831_v29 = vrot.slane %v586_v58, 6  ;;  %v555_v14 = vpack.c.bf16 %v539_v55, %v539_v55 }
 0x174   : > { %v541_v20 = vld [vmem:[#allocation2 + $0xb1] sm:$0xf]  ;;  %v1832_v16 = vrot.slane %v619_v39, 4  ;;  %v1833_v54 = vrot.slane %v651_v63, 2  ;;  %v1851_v19 = vrot.slane %v587_v35, 6  ;;  %v1852_v40 = vrot.slane %v620_v36, 4  ;;  %4962 = vmatpush.bf16.msra.mxu0 %v6586_v2 }
 0x175   : > { %v2474_v48 = vsel %vm1916_vm2, %v2472_v53, %v1827_v18  ;;  %v1853_v56 = vrot.slane %v652_v23, 2  ;;  %v6585_v53 = vld [vmem:[%s10153_s3 + $0x210] sm:$0xff]  ;;  %v6582_v61 = vld [vmem:[%s10153_s3 + $0x1f8] sm:$0xff]  ;;  %v556_v41 = vpack.c.bf16 %v540_v44, %v540_v44  ;;  %v1871_v0 = vrot.slane %v588_v21, 6  ;;  %4906 = vmatpush.bf16.msrb.mxu2 %v6568_v32  ;;  %v6560_v35 = vld [vmem:[%s10153_s3 + $0x148] sm:$0xff] }
 0x176   : > { %3263 = vst [vmem:[#allocation1 + $0x3] ss:$4 sm:$0xff] %v2474_v48  ;;  %v1872_v27 = vrot.slane %v621_v30, 4  ;;  %v1873_v58 = vrot.slane %v653_v5, 2  ;;  %4876 = vmatpush.bf16.msrb.mxu1 %v6561_v43  ;;  %v6567_v39 = vld [vmem:[%s10153_s3 + $0x180] sm:$0xff]  ;;  %v557_v63 = vpack.c.bf16 %v541_v20, %v541_v20  ;;  %v1891_v55 = vrot.slane %v589_v1, 6  ;;  %4929 = vmatpush.bf16.msra.mxu3 %v6582_v61 }
 0x177   : > { %v1892_v36 = vrot.slane %v622_v51, 4  ;;  %v1893_v23 = vrot.slane %v654_v6, 2  ;;  %v6584_v18 = vld [vmem:[%s10153_s3 + $0x208] sm:$0xff]  ;;  %v6581_v21 = vld [vmem:[%s10153_s3 + $0x1f0] sm:$0xff]  ;;  %v2528_v30 = vsel %vm1916_vm2, %v9118_v52, %v9127_v60  ;;  %v2484_v15 = vsel %vm1908_vm0, %v554_v17, %v1831_v29  ;;  %v6579_v61 = vld [vmem:[%s10153_s3 + $0x1e0] sm:$0xff] }
 0x178   : > { %v2487_v43 = vsel %vm1912_vm1, %v1832_v16, %v1833_v54  ;;  %v2575_v44 = vsel %vm1916_vm2, %v9130_v46, %v9133_v31  ;;  %v2531_v51 = vsel %vm1908_vm0, %v555_v14, %v1851_v19  ;;  %v2534_v52 = vsel %vm1912_vm1, %v1852_v40, %v1853_v56  ;;  %4963 = vmatpush.bf16.msra.mxu0 %v6585_v53  ;;  %v6559_v46 = vld [vmem:[%s10153_s3 + $0x140] sm:$0xff]  ;;  %v6580_v53 = vld [vmem:[%s10153_s3 + $0x1e8] sm:$0xff] }
 0x179   : > { %v9188_v5 = vld.sshfl [vmem:[#allocation1 + $0x20] sm:$0xff pattern:$0x73625140]  ;;  %v9190_v2 = vld.sshfl [vmem:[#allocation1 + $0x28] sm:$0xff pattern:$0x73625140]  ;;  %v2622_v60 = vsel %vm1916_vm2, %v9136_v4, %v2621_v42  ;;  %v2578_v17 = vsel %vm1908_vm0, %v556_v41, %v1871_v0  ;;  %v2581_v6 = vsel %vm1912_vm1, %v1872_v27, %v1873_v58  ;;  %4907 = vmatpush.bf16.msrb.mxu2 %v6567_v39  ;;  %v2488_v31 = vsel %vm1916_vm2, %v2484_v15, %v2487_v43 }
 0x17a   : > { %10537 = vst [vmem:[#allocation13_spill] sm:$0xff] %v9190_v2  ;;  %v9197_v20 = vld.sshfl [vmem:[#allocation1 + $0x30] sm:$0xff pattern:$0x73625140]  ;;  %4877 = vmatpush.bf16.msrb.mxu1 %v6560_v35  ;;  %v2625_v48 = vsel %vm1908_vm0, %v557_v63, %v1891_v55  ;;  %v2628_v32 = vsel %vm1912_vm1, %v1892_v36, %v1893_v23  ;;  %4930 = vmatpush.bf16.msra.mxu3 %v6581_v21  ;;  %v6583_v54 = vld [vmem:[%s10153_s3 + $0x200] sm:$0xff]  ;;  %v6606_v0 = vld [vmem:[%s10153_s3 + $0x2b8] sm:$0xff] }
 0x17b   : > { %v9199_v1 = vld.sshfl [vmem:[#allocation1 + $0x38] sm:$0xff pattern:$0x73625140]  ;;  %v2582_v29 = vsel %vm1916_vm2, %v2578_v17, %v2581_v6  ;;  %v2629_v14 = vsel %vm1916_vm2, %v2625_v48, %v2628_v32  ;;  %v10542_v27 = vld [vmem:[#allocation36_spill] sm:$0xff]  ;;  %v10543_v58 = vld [vmem:[#allocation26_spill] sm:$0xff] }
 0x17c   : > { %10538 = vst [vmem:[#allocation38_spill] sm:$0xff] %v9199_v1  ;;  %4964 = vmatpush.bf16.msra.mxu0 %v6584_v18  ;;  %v6578_v35 = vld [vmem:[%s10153_s3 + $0x1d8] sm:$0xff]  ;;  %v6605_v63 = vld [vmem:[%s10153_s3 + $0x2b0] sm:$0xff]  ;;  %v10545_v23 = vld [vmem:[#allocation30_spill] sm:$0xff] }
 0x17d   : > { %3264 = vst [vmem:[#allocation1 + $0x20] ss:$4 sm:$0xff] %v9124_v25  ;;  %v9214_v4 = vld.sshfl [vmem:[#allocation1] sm:$0xff pattern:$0x73625140]  ;;  %v2535_v25 = vsel %vm1916_vm2, %v2531_v51, %v2534_v52  ;;  %5016 = vmatpush.bf16.msra.mxu2 %v6606_v0  ;;  %v6598_v39 = vld [vmem:[%s10153_s3 + $0x278] sm:$0xff] }
 0x17e   : > { %3265 = vst [vmem:[#allocation1 + $0x21] ss:$4 sm:$0xff] %v2528_v30  ;;  %v9217_v42 = vld.sshfl [vmem:[#allocation1 + $0x8] sm:$0xff pattern:$0x73625140]  ;;  %4878 = vmatpush.bf16.msrb.mxu1 %v6559_v46  ;;  %4931 = vmatpush.bf16.msra.mxu3 %v6580_v53  ;;  %v10544_v55 = vld [vmem:[#allocation20_spill] sm:$0xff]  ;;  %v9263_v46 = vpop.f32.mrf.mxu0 }
 0x17f   : > { %10539 = vst [vmem:[#allocation40_spill] sm:$0xff] %v9214_v4  ;;  %v9220_v16 = vld.sshfl [vmem:[#allocation1 + $0x10] sm:$0xff pattern:$0x73625140]  ;;  %v6622_v18 = vld [vmem:[%s10153_s3 + $0x338] sm:$0xff]  ;;  %v6604_v30 = vld [vmem:[%s10153_s3 + $0x2a8] sm:$0xff] }
 0x180   : > { %3266 = vst [vmem:[#allocation1 + $0x22] ss:$4 sm:$0xff] %v2575_v44  ;;  %4965 = vmatpush.bf16.msra.mxu0 %v6583_v54  ;;  %v6577_v36 = vld [vmem:[%s10153_s3 + $0x1d0] sm:$0xff]  ;;  %v700_v43 = vld [vmem:[#allocation2 + $0xc0] sm:$0xf] }
 0x181   : > { %10540 = vst [vmem:[#allocation37_spill] sm:$0xff] %v9217_v42  ;;  %5017 = vmatpush.bf16.msra.mxu2 %v6605_v63  ;;  %v6597_v21 = vld [vmem:[%s10153_s3 + $0x270] sm:$0xff]  ;;  %v702_v51 = vld [vmem:[#allocation2 + $0xd0] sm:$0xf]  ;;  %v703_v52 = vld [vmem:[#allocation2 + $0xd8] sm:$0xf] }
 0x182   : > { %3267 = vst [vmem:[#allocation1 + $0x23] ss:$4 sm:$0xff] %v2622_v60  ;;  %4932 = vmatpush.bf16.msra.mxu3 %v6579_v61  ;;  %4987 = vmatpush.bf16.msra.mxu1 %v6598_v39  ;;  %v6621_v15 = vld [vmem:[%s10153_s3 + $0x330] sm:$0xff]  ;;  %v716_v60 = vpack.c.bf16 %v700_v43, %v700_v43  ;;  %v732_v17 = vld [vmem:[#allocation2 + $0xc1] sm:$0xf]  ;;  %v718_v53 = vpack.c.bf16 %v702_v51, %v702_v51  ;;  %v6603_v63 = vld [vmem:[%s10153_s3 + $0x2a0] sm:$0xff] }
 0x183   : > { %10541 = vst [vmem:[#allocation39_spill] sm:$0xff] %v9220_v16  ;;  %v701_v44 = vld [vmem:[#allocation2 + $0xc8] sm:$0xf]  ;;  %v669_v32 = vld [vmem:[#allocation2 + $0xb2] sm:$0xf]  ;;  %v6596_v39 = vld [vmem:[%s10153_s3 + $0x268] sm:$0xff] }
 0x184   : > { %3275 = vst [vmem:[#allocation1] ss:$4 sm:$0xff] %v2488_v31  ;;  %5074 = vmatpush.bf16.msrb.mxu0 %v6622_v18  ;;  %v733_v6 = vld [vmem:[#allocation2 + $0xc9] sm:$0xf]  ;;  %v667_v31 = vld [vmem:[#allocation2 + $0xa2] sm:$0xf]  ;;  %v717_v54 = vpack.c.bf16 %v701_v44, %v701_v44 }
 0x185   : > { %3276 = vst [vmem:[#allocation1 + $0x1] ss:$4 sm:$0xff] %v2535_v25  ;;  %5018 = vmatpush.bf16.msra.mxu2 %v6604_v30  ;;  %v668_v48 = vld [vmem:[#allocation2 + $0xaa] sm:$0xf]  ;;  %v748_v25 = vpack.c.bf16 %v732_v17, %v732_v17  ;;  %v1834_v18 = vrot.slane %v716_v60, 6  ;;  %v6595_v51 = vld [vmem:[%s10153_s3 + $0x260] sm:$0xff]  ;;  %v685_v17 = vpack.c.bf16 %v669_v32, %v669_v32 }
 0x186   : > { %3277 = vst [vmem:[#allocation1 + $0x2] ss:$4 sm:$0xff] %v2582_v29  ;;  %4933 = vmatpush.bf16.msra.mxu3 %v6578_v35  ;;  %4988 = vmatpush.bf16.msra.mxu1 %v6597_v21  ;;  %v9265_v29 = vld [vmem:[#allocation2 + $0xba] sm:$0xf]  ;;  %v765_v0 = vld [vmem:[#allocation2 + $0xca] sm:$0xf]  ;;  %v684_v30 = vpack.c.bf16 %v668_v48, %v668_v48 }
 0x187   : > { %3278 = vst [vmem:[#allocation1 + $0x3] ss:$4 sm:$0xff] %v2629_v14  ;;  %v734_v14 = vld [vmem:[#allocation2 + $0xd1] sm:$0xf]  ;;  %v6576_v35 = vld [vmem:[%s10153_s3 + $0x1c8] sm:$0xff]  ;;  %v1835_v44 = vrot.slane %v748_v25, 4  ;;  %v686_v25 = vpack.c.bf16 %v9265_v29, %v9265_v29 }
 0x188   : > { %5075 = vmatpush.bf16.msrb.mxu0 %v6621_v15  ;;  %v750_v61 = vpack.c.bf16 %v734_v14, %v734_v14  ;;  %v10547_v21 = vld [vmem:[#allocation47_spill] sm:$0xff]  ;;  %v719_v15 = vpack.c.bf16 %v703_v52, %v703_v52  ;;  %v6575_v60 = vld [vmem:[%s10153_s3 + $0x1c0] sm:$0xff]  ;;  %v6602_v52 = vld [vmem:[%s10153_s3 + $0x298] sm:$0xff] }
 0x189   : > { %v3271_v19 = vld.sshfl [vmem:[#allocation1 + $0x20] sm:$0xff pattern:$0x73625140]  ;;  %v3273_v40 = vld.sshfl [vmem:[#allocation1 + $0x30] sm:$0xff pattern:$0x73625140]  ;;  %5019 = vmatpush.bf16.msra.mxu2 %v6603_v63 }
 0x18a   : > { %4749 = vmatmul.bf16.gmra.mxu3 %v3271_v19  ;;  %4807 = vmatmul.bf16.gmra.mxu2 %v3273_v40  ;;  %v3272_v56 = vld.sshfl [vmem:[#allocation1 + $0x28] sm:$0xff pattern:$0x73625140]  ;;  %v735_v19 = vld [vmem:[#allocation2 + $0xd9] sm:$0xf]  ;;  %v749_v40 = vpack.c.bf16 %v733_v6, %v733_v6 }
 0x18b   : > { %4778 = vmatmul.bf16.gmra.mxu1 %v3272_v56  ;;  %4934 = vmatpush.bf16.msra.mxu3 %v6577_v36  ;;  %v683_v56 = vpack.c.bf16 %v667_v31, %v667_v31  ;;  %v781_v36 = vpack.c.bf16 %v765_v0, %v765_v0  ;;  %v751_v43 = vpack.c.bf16 %v735_v19, %v735_v19  ;;  %v1854_v31 = vrot.slane %v717_v54, 6  ;;  %v6619_v48 = vld [vmem:[%s10153_s3 + $0x320] sm:$0xff]  ;;  %v1025_v4 = vld [vmem:[#allocation2 + $0x109] sm:$0xf] }
 0x18c   : > { %4989 = vmatpush.bf16.msra.mxu1 %v6596_v39  ;;  %v1855_v14 = vrot.slane %v749_v40, 4  ;;  %v767_v19 = vld [vmem:[#allocation2 + $0xda] sm:$0xf]  ;;  %v1874_v40 = vrot.slane %v718_v53, 6  ;;  %v1875_v0 = vrot.slane %v750_v61, 4  ;;  %v4764_v53 = vpop.f32.mrf.mxu1  ;;  %v6594_v61 = vld [vmem:[%s10153_s3 + $0x258] sm:$0xff] }
 0x18d   : > { %v2491_v32 = vsel %vm1908_vm0, %v683_v56, %v1834_v18  ;;  %v783_v54 = vpack.c.bf16 %v767_v19, %v767_v19  ;;  %v2538_v63 = vsel %vm1908_vm0, %v684_v30, %v1854_v31  ;;  %v9308_v18 = vpop.f32.mrf.mxu0  ;;  %5020 = vmatpush.bf16.msra.mxu2 %v6602_v52  ;;  %v6593_v31 = vld [vmem:[%s10153_s3 + $0x250] sm:$0xff]  ;;  %v6614_v52 = vld [vmem:[%s10153_s3 + $0x2f8] sm:$0xff]  ;;  %v6599_v19 = vld [vmem:[%s10153_s3 + $0x280] sm:$0xff] }
 0x18e   : > { %v3283_v41 = vld.sshfl [vmem:[#allocation1] sm:$0xff pattern:$0x73625140] }
 0x18f   : > { %4865 = vmatmul.bf16.gmra.mxu0 %v3283_v41  ;;  %v764_v41 = vld [vmem:[#allocation2 + $0xc2] sm:$0xf]  ;;  %4935 = vmatpush.bf16.msra.mxu3 %v6576_v35  ;;  %v1895_v35 = vrot.slane %v751_v43, 4  ;;  %v1896_v29 = vrot.slane %v783_v54, 2  ;;  %v6618_v43 = vld [vmem:[%s10153_s3 + $0x318] sm:$0xff]  ;;  %v6613_v54 = vld [vmem:[%s10153_s3 + $0x2f0] sm:$0xff] }
 0x190   : > { %4990 = vmatpush.bf16.msra.mxu1 %v6595_v51 }
 0x191   : > { %v2635_v51 = vsel %vm1912_vm1, %v1895_v35, %v1896_v29  ;;  %v6612_v29 = vld [vmem:[%s10153_s3 + $0x2e8] sm:$0xff] }
 0x193   : > { %4936 = vmatpush.bf16.msra.mxu3 %v6575_v60  ;;  %v4765_v60 = vadd.f32 %v4764_v53, %v9263_v46  ;;  %v6617_v46 = vld [vmem:[%s10153_s3 + $0x310] sm:$0xff] }
 0x194   : > { %4991 = vmatpush.bf16.msra.mxu1 %v6594_v61 }
 0x198   : > { %4992 = vmatpush.bf16.msra.mxu1 %v6593_v31  ;;  %v10550_v31 = vld [vmem:[#allocation18_spill] sm:$0xff] }
 0x19a   : > { %4821 = vmatmul.bf16.vlgmr.msrb.gmra.mxu3 %v10542_v27  ;;  %4908 = vmatmul.bf16.vlgmr.msrb.gmra.mxu2 %v10543_v58  ;;  %v766_v27 = vld [vmem:[#allocation2 + $0xd2] sm:$0xf]  ;;  %v10546_v58 = vld [vmem:[#allocation34_spill] sm:$0xff] }
 0x19b   : > { %4879 = vmatmul.bf16.vlgmr.msrb.gmra.mxu1 %v10544_v55  ;;  %v780_v55 = vpack.c.bf16 %v764_v41, %v764_v41  ;;  %v1856_v41 = vrot.slane %v781_v36, 2  ;;  %5045 = vmatpush.bf16.msrb.mxu3 %v6614_v52  ;;  %v6654_v52 = vld [vmem:[%s10153_s3 + $0x438] sm:$0xff] }
 0x19d   : > { %v1836_v6 = vrot.slane %v780_v55, 2  ;;  %v9300_v55 = vld.sshfl [vmem:[#allocation1 + $0x38] sm:$0xff pattern:$0x73625140]  ;;  %v2541_v56 = vsel %vm1912_vm1, %v1855_v14, %v1856_v41  ;;  %v6600_v14 = vld [vmem:[%s10153_s3 + $0x288] sm:$0xff] }
 0x19f   : > { %4966 = vmatmul.bf16.vlgmr.msra.gmra.mxu0 %v10545_v23  ;;  %v782_v23 = vpack.c.bf16 %v766_v27, %v766_v27  ;;  %v2494_v39 = vsel %vm1912_vm1, %v1835_v44, %v1836_v6  ;;  %5046 = vmatpush.bf16.msrb.mxu3 %v6613_v54  ;;  %v829_v54 = vld [vmem:[#allocation2 + $0xd1] sm:$0xf] }
 0x1a0   : > { %v2495_v36 = vsel %vm1916_vm2, %v2491_v32, %v2494_v39  ;;  %v6591_v32 = vld [vmem:[%s10153_s3 + $0x240] sm:$0xff]  ;;  %v3285_v39 = vld.sshfl [vmem:[#allocation1 + $0x10] sm:$0xff pattern:$0x73625140] }
 0x1a1   : > { %v1876_v27 = vrot.slane %v782_v23, 2  ;;  %v4793_v23 = vpop.f32.mrf.mxu2  ;;  %3279 = vst [vmem:[#allocation1 + $0x20] ss:$4 sm:$0xff] %v2495_v36 }
 0x1a2   : > { %v9323_v6 = vadd.f32 %v4793_v23, %v4765_v60  ;;  %v6630_v60 = vld [vmem:[%s10153_s3 + $0x378] sm:$0xff] }
 0x1a3   : > { %5047 = vmatpush.bf16.msrb.mxu3 %v6612_v29  ;;  %v797_v29 = vld [vmem:[#allocation2 + $0xd0] sm:$0xf] }
 0x1a9   : > { %v9347_v41 = vpop.f32.mrf.mxu2 }
 0x1aa   : > { %4826 = vmatmul.bf16.gmra.mxu3 %v10546_v58  ;;  %4913 = vmatmul.bf16.gmra.mxu2 %v8392_v11  ;;  %v6620_v11 = vld [vmem:[%s10153_s3 + $0x328] sm:$0xff]  ;;  %v1894_v58 = vrot.slane %v719_v15, 6  ;;  %v6601_v15 = vld [vmem:[%s10153_s3 + $0x290] sm:$0xff] }
 0x1ab   : > { %4884 = vmatmul.bf16.gmra.mxu1 %v10547_v21  ;;  %5076 = vmatpush.bf16.msrb.mxu0 %v6620_v11  ;;  %v2542_v21 = vsel %vm1916_vm2, %v2538_v63, %v2541_v56  ;;  %v2588_v11 = vsel %vm1912_vm1, %v1875_v0, %v1876_v27  ;;  %v3284_v63 = vld.sshfl [vmem:[#allocation1 + $0x8] sm:$0xff pattern:$0x73625140] }
 0x1ac   : > { %v2632_v30 = vsel %vm1908_vm0, %v686_v25, %v1894_v58  ;;  %3280 = vst [vmem:[#allocation1 + $0x21] ss:$4 sm:$0xff] %v2542_v21  ;;  %5021 = vmatpush.bf16.msra.mxu2 %v6601_v15  ;;  %v6592_v25 = vld [vmem:[%s10153_s3 + $0x248] sm:$0xff] }
 0x1ad   : > { %4993 = vmatpush.bf16.msra.mxu1 %v6592_v25  ;;  %v6629_v25 = vld [vmem:[%s10153_s3 + $0x370] sm:$0xff] }
 0x1af   : > { %4971 = vmatmul.bf16.gmra.mxu0 %v8674_v50  ;;  %v2585_v50 = vsel %vm1908_vm0, %v685_v17, %v1874_v40  ;;  %v2636_v17 = vsel %vm1916_vm2, %v2632_v30, %v2635_v51  ;;  %v6610_v51 = vld [vmem:[%s10153_s3 + $0x2d8] sm:$0xff] }
 0x1b0   : > { %5077 = vmatpush.bf16.msrb.mxu0 %v6619_v48  ;;  %v2589_v44 = vsel %vm1916_vm2, %v2585_v50, %v2588_v11  ;;  %3282 = vst [vmem:[#allocation1 + $0x23] ss:$4 sm:$0xff] %v2636_v17  ;;  %5022 = vmatpush.bf16.msra.mxu2 %v6600_v14  ;;  %v9339_v48 = vpop.f32.mrf.mxu1  ;;  %v6611_v50 = vld [vmem:[%s10153_s3 + $0x2e0] sm:$0xff]  ;;  %v6637_v17 = vld [vmem:[%s10153_s3 + $0x3b0] sm:$0xff] }
 0x1b1   : > { %3281 = vst [vmem:[#allocation1 + $0x22] ss:$4 sm:$0xff] %v2589_v44  ;;  %4994 = vmatpush.bf16.msra.mxu1 %v6591_v32  ;;  %v4798_v0 = vpop.f32.mrf.mxu2  ;;  %5048 = vmatpush.bf16.msrb.mxu3 %v6611_v50  ;;  %v10549_v44 = vld [vmem:[#allocation19_spill] sm:$0xff]  ;;  %v6609_v14 = vld [vmem:[%s10153_s3 + $0x2d0] sm:$0xff]  ;;  %v845_v50 = vpack.c.bf16 %v829_v54, %v829_v54 }
 0x1b2   : > { %v828_v32 = vld [vmem:[#allocation2 + $0xc9] sm:$0xf] }
 0x1b3   : > { %v896_v54 = vld [vmem:[#allocation2 + $0xe8] sm:$0xf] }
 0x1b4   : > { %5078 = vmatpush.bf16.msrb.mxu0 %v6618_v43  ;;  %5023 = vmatpush.bf16.msra.mxu2 %v6599_v19  ;;  %v10548_v43 = vld [vmem:[#allocation28_spill] sm:$0xff]  ;;  %v6636_v19 = vld [vmem:[%s10153_s3 + $0x3a8] sm:$0xff] }
 0x1b5   : > { %5049 = vmatpush.bf16.msrb.mxu3 %v6610_v51  ;;  %5103 = vmatpush.bf16.msrb.mxu1 %v6630_v60  ;;  %v862_v51 = vld [vmem:[#allocation2 + $0xda] sm:$0xf]  ;;  %v863_v60 = vld [vmem:[#allocation2 + $0xe2] sm:$0xf] }
 0x1b8   : > { %5079 = vmatpush.bf16.msrb.mxu0 %v6617_v46  ;;  %v4769_v40 = vpop.f32.mrf.mxu1  ;;  %v3287_v56 = vld.sshfl [vmem:[#allocation1 + $0x20] sm:$0xff pattern:$0x73625140]  ;;  %v10551_v46 = vld [vmem:[#allocation33_spill] sm:$0xff] }
 0x1b9   : > { %v9373_v36 = vpop.f32.mrf.mxu2  ;;  %5050 = vmatpush.bf16.msrb.mxu3 %v6609_v14  ;;  %5104 = vmatpush.bf16.msrb.mxu1 %v6629_v25  ;;  %v878_v14 = vpack.c.bf16 %v862_v51, %v862_v51  ;;  %v894_v25 = vld [vmem:[#allocation2 + $0xd8] sm:$0xf]  ;;  %v1857_v51 = vrot.slane %v845_v50, 6 }
 0x1ba   : > { %4831 = vmatmul.bf16.gmra.mxu3 %v8768_v10  ;;  %4918 = vmatmul.bf16.gmra.mxu2 %v9020_v9  ;;  %v4740_v10 = vpop.f32.mrf.mxu0  ;;  %v6616_v9 = vld [vmem:[%s10153_s3 + $0x308] sm:$0xff] }
 0x1bb   : > { %4889 = vmatmul.bf16.gmra.mxu1 %v9006_v49  ;;  %v6615_v49 = vld [vmem:[%s10153_s3 + $0x300] sm:$0xff]  ;;  %v4770_v27 = vadd.f32 %v4769_v40, %v4740_v10  ;;  %v6653_v10 = vld [vmem:[%s10153_s3 + $0x430] sm:$0xff]  ;;  %v831_v40 = vld [vmem:[#allocation2 + $0xe1] sm:$0xf] }
 0x1bc   : > { %5080 = vmatpush.bf16.msrb.mxu0 %v6616_v9 }
 0x1bd   : > { %v9365_v35 = vadd.f32 %v4798_v0, %v4770_v27  ;;  %v4745_v61 = vpop.f32.mrf.mxu3  ;;  %v844_v0 = vpack.c.bf16 %v828_v32, %v828_v32  ;;  %v860_v27 = vld [vmem:[#allocation2 + $0xca] sm:$0xf]  ;;  %v6608_v32 = vld [vmem:[%s10153_s3 + $0x2c8] sm:$0xff] }
 0x1be   : > { %5051 = vmatpush.bf16.msrb.mxu3 %v6608_v32  ;;  %v6651_v32 = vld [vmem:[%s10153_s3 + $0x420] sm:$0xff] }
 0x1bf   : > { %4976 = vmatmul.bf16.gmra.mxu0 %v8853_v26 }
 0x1c0   : > { %5081 = vmatpush.bf16.msrb.mxu0 %v6615_v49  ;;  %v9371_v26 = vpop.f32.mrf.mxu1  ;;  %v830_v49 = vld [vmem:[#allocation2 + $0xd9] sm:$0xf] }
 0x1c1   : > { %v4803_v11 = vpop.f32.mrf.mxu2 }
 0x1c2   : > { %v9363_v58 = vpop.f32.mrf.mxu0 }
 0x1c4   : > { %5190 = vmatpush.bf16.msra.mxu0 %v6654_v52  ;;  %v893_v52 = vld [vmem:[#allocation2 + $0xd0] sm:$0xf] }
 0x1c8   : > { %v4774_v23 = vpop.f32.mrf.mxu1  ;;  %5191 = vmatpush.bf16.msra.mxu0 %v6653_v10  ;;  %v10552_v10 = vld [vmem:[#allocation48_spill] sm:$0xff] }
 0x1c9   : > { %v4775_v21 = vadd.f32 %v4774_v23, %v4745_v61  ;;  %v799_v23 = vld [vmem:[#allocation2 + $0xe0] sm:$0xf] }
 0x1ca   : > { %4836 = vmatmul.bf16.gmra.mxu3 %v9300_v55  ;;  %4923 = vmatmul.bf16.gmra.mxu2 %v3285_v39  ;;  %v6638_v55 = vld [vmem:[%s10153_s3 + $0x3b8] sm:$0xff]  ;;  %v9381_v53 = vpop.f32.mrf.mxu0 }
 0x1cb   : > { %4894 = vmatmul.bf16.gmra.mxu1 %v3284_v63  ;;  %5132 = vmatpush.bf16.msrb.mxu2 %v6638_v55  ;;  %v9383_v30 = vadd.f32 %v4803_v11, %v4775_v21  ;;  %v861_v39 = vld [vmem:[#allocation2 + $0xd2] sm:$0xf]  ;;  %v796_v63 = vld [vmem:[#allocation2 + $0xc8] sm:$0xf]  ;;  %v876_v55 = vpack.c.bf16 %v860_v27, %v860_v27  ;;  %v813_v11 = vpack.c.bf16 %v797_v29, %v797_v29  ;;  %v6635_v29 = vld [vmem:[%s10153_s3 + $0x3a0] sm:$0xff] }
 0x1cc   : > { %v877_v61 = vpack.c.bf16 %v861_v39, %v861_v39  ;;  %v812_v21 = vpack.c.bf16 %v796_v63, %v796_v63  ;;  %v1837_v39 = vrot.slane %v844_v0, 6  ;;  %v6628_v63 = vld [vmem:[%s10153_s3 + $0x368] sm:$0xff] }
 0x1cd   : > { %5105 = vmatpush.bf16.msrb.mxu1 %v6628_v63  ;;  %v6626_v63 = vld [vmem:[%s10153_s3 + $0x358] sm:$0xff] }
 0x1cf   : > { %4981 = vmatmul.bf16.gmra.mxu0 %v3287_v56  ;;  %5133 = vmatpush.bf16.msrb.mxu2 %v6637_v17  ;;  %v798_v56 = vld [vmem:[#allocation2 + $0xd8] sm:$0xf] }
 0x1d0   : > { %v814_v17 = vpack.c.bf16 %v798_v56, %v798_v56  ;;  %v912_v56 = vpack.c.bf16 %v896_v54, %v896_v54  ;;  %v2498_v54 = vsel %vm1908_vm0, %v812_v21, %v1837_v39 }
 0x1d2   : > { %v9385_v15 = vpop.f32.mrf.mxu0  ;;  %v1899_v42 = vrot.slane %v912_v56, 2  ;;  %v6646_v56 = vld [vmem:[%s10153_s3 + $0x3f8] sm:$0xff] }
 0x1d3   : > { %5134 = vmatpush.bf16.msrb.mxu2 %v6636_v19  ;;  %v895_v19 = vld [vmem:[#allocation2 + $0xe0] sm:$0xf] }
 0x1d4   : > { %v911_v27 = vpack.c.bf16 %v895_v19, %v895_v19 }
 0x1d7   : > { %5135 = vmatpush.bf16.msrb.mxu2 %v6635_v29  ;;  %v6633_v29 = vld [vmem:[%s10153_s3 + $0x390] sm:$0xff] }
 0x1da   : > { %4937 = vmatmul.bf16.vlgmr.msra.gmra.mxu3 %v10548_v43  ;;  %5024 = vmatmul.bf16.vlgmr.msra.gmra.mxu2 %v10549_v44  ;;  %v9415_v9 = vpop.f32.mrf.mxu0  ;;  %v846_v43 = vpack.c.bf16 %v830_v49, %v830_v49  ;;  %v847_v44 = vpack.c.bf16 %v831_v40, %v831_v40  ;;  %v909_v49 = vpack.c.bf16 %v893_v52, %v893_v52 }
 0x1db   : > { %4995 = vmatmul.bf16.vlgmr.msra.gmra.mxu1 %v10550_v31  ;;  %v815_v31 = vpack.c.bf16 %v799_v23, %v799_v23  ;;  %v910_v40 = vpack.c.bf16 %v894_v25, %v894_v25  ;;  %v1838_v23 = vrot.slane %v876_v55, 4  ;;  %v1878_v25 = vrot.slane %v878_v14, 4 }
 0x1dc   : > { %v1839_v0 = vrot.slane %v909_v49, 2  ;;  %v1897_v16 = vrot.slane %v847_v44, 6  ;;  %v2545_v55 = vsel %vm1908_vm0, %v813_v11, %v1857_v51  ;;  %v6634_v44 = vld [vmem:[%s10153_s3 + $0x398] sm:$0xff]  ;;  %v6607_v49 = vld [vmem:[%s10153_s3 + $0x2c0] sm:$0xff] }
 0x1dd   : > { %v1859_v52 = vrot.slane %v910_v40, 2  ;;  %v3286_v11 = vld.sshfl [vmem:[#allocation1 + $0x18] sm:$0xff pattern:$0x73625140]  ;;  %5136 = vmatpush.bf16.msrb.mxu2 %v6634_v44  ;;  %5052 = vmatpush.bf16.msrb.mxu3 %v6607_v49  ;;  %v6631_v51 = vld [vmem:[%s10153_s3 + $0x380] sm:$0xff] }
 0x1de   : > { %v2501_v50 = vsel %vm1912_vm1, %v1838_v23, %v1839_v0  ;;  %v6624_v23 = vld [vmem:[%s10153_s3 + $0x348] sm:$0xff] }
 0x1df   : > { %5082 = vmatmul.bf16.vlgmr.msrb.gmra.mxu0 %v10551_v46  ;;  %v879_v46 = vpack.c.bf16 %v863_v60, %v863_v60  ;;  %v1858_v60 = vrot.slane %v877_v61, 4  ;;  %v2502_v14 = vsel %vm1916_vm2, %v2498_v54, %v2501_v50  ;;  %v3288_v54 = vld.sshfl [vmem:[#allocation1 + $0x28] sm:$0xff pattern:$0x73625140] }
 0x1e0   : > { %3291 = vst [vmem:[#allocation1] ss:$4 sm:$0xff] %v2502_v14  ;;  %v6644_v50 = vld [vmem:[%s10153_s3 + $0x3e8] sm:$0xff] }
 0x1e1   : > { %v1898_v1 = vrot.slane %v879_v46, 4  ;;  %v2548_v61 = vsel %vm1912_vm1, %v1858_v60, %v1859_v52  ;;  %5137 = vmatpush.bf16.msrb.mxu2 %v6633_v29  ;;  %5161 = vmatpush.bf16.msra.mxu3 %v6646_v56  ;;  %v9501_v60 = vpop.f32.mrf.mxu1  ;;  %v6645_v52 = vld [vmem:[%s10153_s3 + $0x3f0] sm:$0xff]  ;;  %v10555_v29 = vld [vmem:[#allocation14_spill] sm:$0xff] }
 0x1e2   : > { %v9432_v19 = vpop.f32.mrf.mxu0 }
 0x1e3   : > { %v2642_v39 = vsel %vm1912_vm1, %v1898_v1, %v1899_v42  ;;  %v6650_v1 = vld [vmem:[%s10153_s3 + $0x418] sm:$0xff] }
 0x1e5   : > { %5162 = vmatpush.bf16.msra.mxu3 %v6645_v52 }
 0x1e9   : > { %5163 = vmatpush.bf16.msra.mxu3 %v6644_v50  ;;  %v6686_v50 = vld [vmem:[%s10153_s3 + $0x538] sm:$0xff] }
 0x1ea   : > { %4942 = vmatmul.bf16.gmra.mxu3 %v10552_v10  ;;  %5029 = vmatmul.bf16.gmra.mxu2 %v8696_v62  ;;  %v6652_v62 = vld [vmem:[%s10153_s3 + $0x428] sm:$0xff]  ;;  %v1879_v10 = vrot.slane %v911_v27, 2  ;;  %v2639_v27 = vsel %vm1908_vm0, %v815_v31, %v1897_v16  ;;  %v9468_v42 = vpop.f32.mrf.mxu0  ;;  %v6625_v16 = vld [vmem:[%s10153_s3 + $0x350] sm:$0xff] }
 0x1eb   : > { %5000 = vmatmul.bf16.gmra.mxu1 %v8676_v28  ;;  %v1877_v28 = vrot.slane %v846_v43, 6  ;;  %5192 = vmatpush.bf16.msra.mxu0 %v6652_v62  ;;  %v6627_v43 = vld [vmem:[%s10153_s3 + $0x360] sm:$0xff]  ;;  %v6632_v31 = vld [vmem:[%s10153_s3 + $0x388] sm:$0xff]  ;;  %v6649_v62 = vld [vmem:[%s10153_s3 + $0x410] sm:$0xff] }
 0x1ec   : > { %v2595_v46 = vsel %vm1912_vm1, %v1878_v25, %v1879_v10  ;;  %5106 = vmatpush.bf16.msrb.mxu1 %v6627_v43  ;;  %5138 = vmatpush.bf16.msrb.mxu2 %v6632_v31  ;;  %v3289_v25 = vld.sshfl [vmem:[#allocation1 + $0x30] sm:$0xff pattern:$0x73625140]  ;;  %v10556_v31 = vld [vmem:[#allocation35_spill] sm:$0xff] }
 0x1ed   : > { %v2592_v21 = vsel %vm1908_vm0, %v814_v17, %v1877_v28  ;;  %v2643_v17 = vsel %vm1916_vm2, %v2639_v27, %v2642_v39  ;;  %v9510_v28 = vpop.f32.mrf.mxu2  ;;  %v6670_v27 = vld [vmem:[%s10153_s3 + $0x4b8] sm:$0xff] }
 0x1ee   : > { %v2596_v40 = vsel %vm1916_vm2, %v2592_v21, %v2595_v46  ;;  %3294 = vst [vmem:[#allocation1 + $0x3] ss:$4 sm:$0xff] %v2643_v17  ;;  %v6643_v46 = vld [vmem:[%s10153_s3 + $0x3e0] sm:$0xff] }
 0x1ef   : > { %5087 = vmatmul.bf16.gmra.mxu0 %v10553_v33  ;;  %v2549_v33 = vsel %vm1916_vm2, %v2545_v55, %v2548_v61  ;;  %3293 = vst [vmem:[#allocation1 + $0x2] ss:$4 sm:$0xff] %v2596_v40  ;;  %5164 = vmatpush.bf16.msra.mxu3 %v6643_v46  ;;  %v6661_v46 = vld [vmem:[%s10153_s3 + $0x470] sm:$0xff] }
 0x1f0   : > { %3292 = vst [vmem:[#allocation1 + $0x1] ss:$4 sm:$0xff] %v2549_v33  ;;  %5193 = vmatpush.bf16.msra.mxu0 %v6651_v32  ;;  %5107 = vmatpush.bf16.msrb.mxu1 %v6626_v63  ;;  %v10554_v63 = vld [vmem:[#allocation21_spill] sm:$0xff] }
 0x1f1   : > { %5139 = vmatpush.bf16.msrb.mxu2 %v6631_v51  ;;  %v10557_v51 = vld [vmem:[#allocation27_spill] sm:$0xff] }
 0x1f2   : > { %v9503_v0 = vpop.f32.mrf.mxu0 }
 0x1f4   : > { %5194 = vmatpush.bf16.msra.mxu0 %v6650_v1  ;;  %5108 = vmatpush.bf16.msrb.mxu1 %v6625_v16  ;;  %v6642_v1 = vld [vmem:[%s10153_s3 + $0x3d8] sm:$0xff] }
 0x1f5   : > { %5248 = vmatpush.bf16.msra.mxu2 %v6670_v27  ;;  %5165 = vmatpush.bf16.msra.mxu3 %v6642_v1  ;;  %v6685_v27 = vld [vmem:[%s10153_s3 + $0x530] sm:$0xff] }
 0x1f7   : > { %v3299_v61 = vld.sshfl [vmem:[#allocation1] sm:$0xff pattern:$0x73625140] }
 0x1f8   : > { %5195 = vmatpush.bf16.msra.mxu0 %v6649_v62  ;;  %5109 = vmatpush.bf16.msrb.mxu1 %v6624_v23 }
 0x1fa   : > { %4947 = vmatmul.bf16.gmra.mxu3 %v9022_v38  ;;  %5034 = vmatmul.bf16.gmra.mxu2 %v8866_v13  ;;  %v6648_v13 = vld [vmem:[%s10153_s3 + $0x408] sm:$0xff]  ;;  %v6647_v38 = vld [vmem:[%s10153_s3 + $0x400] sm:$0xff] }
 0x1fb   : > { %5005 = vmatmul.bf16.gmra.mxu1 %v8855_v47  ;;  %v6623_v47 = vld [vmem:[%s10153_s3 + $0x340] sm:$0xff] }
 0x1fc   : > { %5196 = vmatpush.bf16.msra.mxu0 %v6648_v13  ;;  %5110 = vmatpush.bf16.msrb.mxu1 %v6623_v47  ;;  %v6662_v13 = vld [vmem:[%s10153_s3 + $0x478] sm:$0xff]  ;;  %v6669_v47 = vld [vmem:[%s10153_s3 + $0x4b0] sm:$0xff] }
 0x1fd   : > { %5249 = vmatpush.bf16.msra.mxu2 %v6669_v47  ;;  %v9575_v47 = vadd.f32 %v9371_v26, %v9363_v58 }
 0x1ff   : > { %5092 = vmatmul.bf16.gmra.mxu0 %v9104_v37  ;;  %v9508_v37 = vpop.f32.mrf.mxu3 }
 0x200   : > { %5197 = vmatpush.bf16.msra.mxu0 %v6647_v38  ;;  %v4767_v38 = vadd.f32 %v9339_v48, %v9308_v18  ;;  %5219 = vmatpush.bf16.msra.mxu1 %v6662_v13  ;;  %v990_v13 = vld [vmem:[#allocation2 + $0xf0] sm:$0xf] }
 0x204   : > { %5306 = vmatpush.bf16.msrb.mxu0 %v6686_v50  ;;  %5220 = vmatpush.bf16.msra.mxu1 %v6661_v46  ;;  %v10558_v50 = vld [vmem:[#allocation8_spill] sm:$0xff]  ;;  %v10560_v46 = vld [vmem:[#allocation41_spill] sm:$0xff] }
 0x208   : > { %v4779_v10 = vpop.f32.mrf.mxu1  ;;  %5307 = vmatpush.bf16.msrb.mxu0 %v6685_v27 }
 0x20a   : > { %4952 = vmatmul.bf16.gmra.mxu3 %v3286_v11  ;;  %5039 = vmatmul.bf16.gmra.mxu2 %v3289_v25 }
 0x20b   : > { %5010 = vmatmul.bf16.gmra.mxu1 %v3288_v54 }
 0x20c   : > { %v9515_v55 = vpop.f32.mrf.mxu0 }
 0x20d   : > { %v4750_v43 = vpop.f32.mrf.mxu3  ;;  %v4808_v44 = vpop.f32.mrf.mxu2 }
 0x20e   : > { %v4780_v14 = vadd.f32 %v4779_v10, %v4750_v43 }
 0x20f   : > { %5097 = vmatmul.bf16.gmra.mxu0 %v3299_v61  ;;  %v4796_v61 = vadd.f32 %v9347_v41, %v4767_v38 }
 0x210   : > { %v9517_v33 = vadd.f32 %v4808_v44, %v4780_v14  ;;  %v4781_v21 = vpop.f32.mrf.mxu1  ;;  %v958_v44 = vld [vmem:[#allocation2 + $0xda] sm:$0xf]  ;;  %v959_v14 = vld [vmem:[#allocation2 + $0xe2] sm:$0xf] }
 0x214   : > { %v9522_v11 = vpop.f32.mrf.mxu0 }
 0x215   : > { %v4752_v32 = vpop.f32.mrf.mxu3  ;;  %v4810_v49 = vpop.f32.mrf.mxu2 }
 0x216   : > { %v4782_v40 = vadd.f32 %v4781_v21, %v4752_v32  ;;  %v6668_v32 = vld [vmem:[%s10153_s3 + $0x4a8] sm:$0xff] }
 0x217   : > { %5250 = vmatpush.bf16.msra.mxu2 %v6668_v32  ;;  %v6667_v32 = vld [vmem:[%s10153_s3 + $0x4a0] sm:$0xff] }
 0x218   : > { %v9527_v39 = vadd.f32 %v4810_v49, %v4782_v40  ;;  %v4880_v17 = vpop.f32.mrf.mxu1  ;;  %v960_v49 = vld [vmem:[#allocation2 + $0xea] sm:$0xf]  ;;  %v974_v40 = vpack.c.bf16 %v958_v44, %v958_v44  ;;  %v992_v44 = vld [vmem:[#allocation2 + $0x100] sm:$0xf] }
 0x219   : > { %v976_v38 = vpack.c.bf16 %v960_v49, %v960_v49  ;;  %v6684_v49 = vld [vmem:[%s10153_s3 + $0x528] sm:$0xff] }
 0x21a   : > { %5053 = vmatmul.bf16.vlgmr.msrb.gmra.mxu3 %v10554_v63  ;;  %5140 = vmatmul.bf16.vlgmr.msrb.gmra.mxu2 %v10555_v29  ;;  %v926_v63 = vld [vmem:[#allocation2 + $0xd9] sm:$0xf]  ;;  %v975_v29 = vpack.c.bf16 %v959_v14, %v959_v14  ;;  %v993_v14 = vld [vmem:[#allocation2 + $0x108] sm:$0xf]  ;;  %v1860_v58 = vrot.slane %v974_v40, 6  ;;  %v1008_v40 = vpack.c.bf16 %v992_v44, %v992_v44 }
 0x21b   : > { %5111 = vmatmul.bf16.vlgmr.msrb.gmra.mxu1 %v10556_v31  ;;  %5251 = vmatpush.bf16.msra.mxu2 %v6667_v32  ;;  %v1900_v2 = vrot.slane %v976_v38, 6 }
 0x21c   : > { %v9534_v16 = vpop.f32.mrf.mxu0  ;;  %5308 = vmatpush.bf16.msrb.mxu0 %v6684_v49 }
 0x21d   : > { %v4822_v62 = vpop.f32.mrf.mxu3  ;;  %v4909_v56 = vpop.f32.mrf.mxu2 }
 0x21e   : > { %v4823_v23 = vadd.f32 %v4822_v62, %v9323_v6  ;;  %v6641_v6 = vld [vmem:[%s10153_s3 + $0x3d0] sm:$0xff]  ;;  %v927_v62 = vld [vmem:[#allocation2 + $0xe1] sm:$0xf] }
 0x21f   : > { %5198 = vmatmul.bf16.vlgmr.msra.gmra.mxu0 %v10557_v51  ;;  %5166 = vmatpush.bf16.msra.mxu3 %v6641_v6  ;;  %v942_v51 = vpack.c.bf16 %v926_v63, %v926_v63 }
 0x220   : > { %v4852_v52 = vadd.f32 %v9381_v53, %v4823_v23  ;;  %v4882_v25 = vpop.f32.mrf.mxu1  ;;  %v957_v53 = vld [vmem:[#allocation2 + $0xd2] sm:$0xf] }
 0x221   : > { %v973_v41 = vpack.c.bf16 %v957_v53, %v957_v53  ;;  %v943_v53 = vpack.c.bf16 %v927_v62, %v927_v62  ;;  %v1022_v62 = vld [vmem:[#allocation2 + $0xf1] sm:$0xf] }
 0x222   : > { %v4881_v10 = vadd.f32 %v4880_v17, %v4852_v52  ;;  %v925_v17 = vld [vmem:[#allocation2 + $0xd1] sm:$0xf]  ;;  %v991_v52 = vld [vmem:[#allocation2 + $0xf8] sm:$0xf] }
 0x223   : > { %v941_v23 = vpack.c.bf16 %v925_v17, %v925_v17  ;;  %v1840_v6 = vrot.slane %v973_v41, 6  ;;  %v1880_v17 = vrot.slane %v975_v29, 6 }
 0x224   : > { %v9551_v54 = vpop.f32.mrf.mxu0  ;;  %v9557_v43 = vadd.f32 %v4909_v56, %v4881_v10  ;;  %v9571_v56 = vld [vmem:[#allocation2 + $0xe9] sm:$0xf]  ;;  %v1006_v10 = vpack.c.bf16 %v990_v13, %v990_v13  ;;  %v1023_v13 = vld [vmem:[#allocation2 + $0xf9] sm:$0xf] }
 0x225   : > { %v4824_v18 = vpop.f32.mrf.mxu3  ;;  %v4911_v48 = vpop.f32.mrf.mxu2  ;;  %v944_v41 = vpack.c.bf16 %v9571_v56, %v9571_v56  ;;  %v1038_v56 = vpack.c.bf16 %v1022_v62, %v1022_v62  ;;  %v1039_v44 = vpack.c.bf16 %v1023_v13, %v1023_v13 }
 0x226   : > { %v4825_v21 = vadd.f32 %v4824_v18, %v4796_v61  ;;  %v10559_v61 = vld [vmem:[#allocation42_spill] sm:$0xff]  ;;  %v6640_v18 = vld [vmem:[%s10153_s3 + $0x3c8] sm:$0xff]  ;;  %v1841_v27 = vrot.slane %v1006_v10, 4 }
 0x227   : > { %5167 = vmatpush.bf16.msra.mxu3 %v6640_v18  ;;  %v1041_v18 = vpack.c.bf16 %v1025_v4, %v1025_v4  ;;  %v2599_v4 = vsel %vm1908_vm0, %v943_v53, %v1880_v17 }
 0x228   : > { %v4854_v1 = vadd.f32 %v9385_v15, %v4825_v21  ;;  %v9569_v31 = vpop.f32.mrf.mxu1  ;;  %v1007_v21 = vpack.c.bf16 %v991_v52, %v991_v52  ;;  %v1024_v52 = vld [vmem:[#allocation2 + $0x101] sm:$0xf] }
 0x229   : > { %v1040_v10 = vpack.c.bf16 %v1024_v52, %v1024_v52  ;;  %v1902_v49 = vrot.slane %v1041_v18, 2 }
 0x22a   : > { %v4883_v15 = vadd.f32 %v4882_v25, %v4854_v1  ;;  %5058 = vmatmul.bf16.gmra.mxu3 %v10558_v50  ;;  %5145 = vmatmul.bf16.gmra.mxu2 %v10559_v61  ;;  %v6660_v25 = vld [vmem:[%s10153_s3 + $0x468] sm:$0xff]  ;;  %v1009_v1 = vpack.c.bf16 %v993_v14, %v993_v14  ;;  %v2505_v50 = vsel %vm1908_vm0, %v941_v23, %v1840_v6  ;;  %v1861_v29 = vrot.slane %v1007_v21, 4  ;;  %v6659_v23 = vld [vmem:[%s10153_s3 + $0x460] sm:$0xff] }
 0x22b   : > { %5116 = vmatmul.bf16.gmra.mxu1 %v10560_v46  ;;  %v2552_v61 = vsel %vm1908_vm0, %v942_v51, %v1860_v58  ;;  %v1881_v14 = vrot.slane %v1008_v40, 4  ;;  %v6666_v51 = vld [vmem:[%s10153_s3 + $0x498] sm:$0xff]  ;;  %v6683_v6 = vld [vmem:[%s10153_s3 + $0x520] sm:$0xff]  ;;  %v1842_v21 = vrot.slane %v1038_v56, 2  ;;  %v1882_v58 = vrot.slane %v1040_v10, 2 }
 0x22c   : > { %v9582_v26 = vpop.f32.mrf.mxu0  ;;  %v9596_v63 = vadd.f32 %v4911_v48, %v4883_v15  ;;  %5221 = vmatpush.bf16.msra.mxu1 %v6660_v25  ;;  %v10561_v15 = vld [vmem:[#allocation4_spill] sm:$0xff]  ;;  %v1901_v32 = vrot.slane %v1009_v1, 4  ;;  %v2646_v40 = vsel %vm1908_vm0, %v944_v41, %v1900_v2  ;;  %5252 = vmatpush.bf16.msra.mxu2 %v6666_v51  ;;  %v9618_v56 = vld.sshfl [vmem:[#allocation1 + $0x38] sm:$0xff pattern:$0x73625140]  ;;  %v4801_v1 = vadd.f32 %v9373_v36, %v9575_v47  ;;  %v6664_v36 = vld [vmem:[%s10153_s3 + $0x488] sm:$0xff] }
 0x22d   : > { %v4827_v46 = vpop.f32.mrf.mxu3  ;;  %v4914_v57 = vpop.f32.mrf.mxu2  ;;  %v2508_v62 = vsel %vm1912_vm1, %v1841_v27, %v1842_v21  ;;  %v2602_v52 = vsel %vm1912_vm1, %v1881_v14, %v1882_v58  ;;  %5309 = vmatpush.bf16.msrb.mxu0 %v6683_v6  ;;  %v6682_v10 = vld [vmem:[%s10153_s3 + $0x518] sm:$0xff]  ;;  %v6681_v14 = vld [vmem:[%s10153_s3 + $0x510] sm:$0xff]  ;;  %v6663_v21 = vld [vmem:[%s10153_s3 + $0x480] sm:$0xff] }
 0x22e   : > { %v4828_v48 = vadd.f32 %v4827_v46, %v9365_v35  ;;  %v1862_v35 = vrot.slane %v1039_v44, 2  ;;  %v2509_v53 = vsel %vm1916_vm2, %v2505_v50, %v2508_v62  ;;  %v2603_v41 = vsel %vm1916_vm2, %v2599_v4, %v2602_v52  ;;  %v6678_v51 = vld [vmem:[%s10153_s3 + $0x4f8] sm:$0xff]  ;;  %v6655_v4 = vld [vmem:[%s10153_s3 + $0x440] sm:$0xff]  ;;  %v3301_v52 = vld.sshfl [vmem:[#allocation1 + $0x10] sm:$0xff pattern:$0x73625140] }
 0x22f   : > { %5203 = vmatmul.bf16.gmra.mxu0 %v10561_v15  ;;  %v2649_v27 = vsel %vm1912_vm1, %v1901_v32, %v1902_v49  ;;  %3295 = vst [vmem:[#allocation1 + $0x20] ss:$4 sm:$0xff] %v2509_v53  ;;  %v6679_v49 = vld [vmem:[%s10153_s3 + $0x500] sm:$0xff]  ;;  %v3300_v53 = vld.sshfl [vmem:[#allocation1 + $0x8] sm:$0xff pattern:$0x73625140] }
 0x230   : > { %v4857_v38 = vadd.f32 %v9415_v9, %v4828_v48  ;;  %v4887_v25 = vpop.f32.mrf.mxu1  ;;  %5222 = vmatpush.bf16.msra.mxu1 %v6659_v23  ;;  %v2555_v13 = vsel %vm1912_vm1, %v1861_v29, %v1862_v35  ;;  %v6639_v9 = vld [vmem:[%s10153_s3 + $0x3c0] sm:$0xff]  ;;  %v2650_v50 = vsel %vm1916_vm2, %v2646_v40, %v2649_v27  ;;  %3297 = vst [vmem:[#allocation1 + $0x22] ss:$4 sm:$0xff] %v2603_v41 }
 0x231   : > { %v2556_v2 = vsel %vm1916_vm2, %v2552_v61, %v2555_v13  ;;  %5168 = vmatpush.bf16.msra.mxu3 %v6639_v9  ;;  %v6665_v61 = vld [vmem:[%s10153_s3 + $0x490] sm:$0xff]  ;;  %3298 = vst [vmem:[#allocation1 + $0x23] ss:$4 sm:$0xff] %v2650_v50  ;;  %5310 = vmatpush.bf16.msrb.mxu0 %v6682_v10 }
 0x232   : > { %v4886_v46 = vadd.f32 %v9569_v31, %v4857_v38  ;;  %v6658_v31 = vld [vmem:[%s10153_s3 + $0x458] sm:$0xff]  ;;  %3296 = vst [vmem:[#allocation1 + $0x21] ss:$4 sm:$0xff] %v2556_v2  ;;  %5253 = vmatpush.bf16.msra.mxu2 %v6665_v61  ;;  %v4777_v38 = vadd.f32 %v9501_v60, %v9508_v37 }
 0x234   : > { %v9626_v17 = vpop.f32.mrf.mxu0  ;;  %v9634_v44 = vadd.f32 %v4914_v57, %v4886_v46  ;;  %5223 = vmatpush.bf16.msra.mxu1 %v6658_v31  ;;  %v6657_v57 = vld [vmem:[%s10153_s3 + $0x450] sm:$0xff]  ;;  %v4806_v62 = vadd.f32 %v9510_v28, %v4777_v38  ;;  %v6676_v28 = vld [vmem:[%s10153_s3 + $0x4e8] sm:$0xff] }
 0x235   : > { %v4829_v29 = vpop.f32.mrf.mxu3  ;;  %v4916_v48 = vpop.f32.mrf.mxu2  ;;  %5311 = vmatpush.bf16.msrb.mxu0 %v6681_v14  ;;  %5277 = vmatpush.bf16.msrb.mxu3 %v6678_v51  ;;  %v10563_v51 = vld [vmem:[#allocation16_spill] sm:$0xff] }
 0x236   : > { %v4830_v15 = vadd.f32 %v4829_v29, %v4801_v1  ;;  %5254 = vmatpush.bf16.msra.mxu2 %v6664_v36  ;;  %v6675_v29 = vld [vmem:[%s10153_s3 + $0x4e0] sm:$0xff]  ;;  %v6701_v38 = vld [vmem:[%s10153_s3 + $0x5b0] sm:$0xff] }
 0x238   : > { %v4859_v47 = vadd.f32 %v9432_v19, %v4830_v15  ;;  %v4890_v18 = vpop.f32.mrf.mxu1  ;;  %5224 = vmatpush.bf16.msra.mxu1 %v6657_v57  ;;  %v6656_v19 = vld [vmem:[%s10153_s3 + $0x448] sm:$0xff] }
 0x239   : > { %v3303_v27 = vld.sshfl [vmem:[#allocation1 + $0x20] sm:$0xff pattern:$0x73625140] }
 0x23a   : > { %v4888_v23 = vadd.f32 %v4887_v25, %v4859_v47  ;;  %5063 = vmatmul.bf16.gmra.mxu3 %v8868_v59  ;;  %5150 = vmatmul.bf16.gmra.mxu2 %v9113_v34  ;;  %v6680_v34 = vld [vmem:[%s10153_s3 + $0x508] sm:$0xff] }
 0x23b   : > { %5121 = vmatmul.bf16.gmra.mxu1 %v9106_v8  ;;  %5255 = vmatpush.bf16.msra.mxu2 %v6663_v21 }
 0x23c   : > { %v9658_v6 = vpop.f32.mrf.mxu0  ;;  %v9667_v59 = vadd.f32 %v4916_v48, %v4888_v23  ;;  %5225 = vmatpush.bf16.msra.mxu1 %v6656_v19  ;;  %5312 = vmatpush.bf16.msrb.mxu0 %v6680_v34  ;;  %v10562_v23 = vld [vmem:[#allocation15_spill] sm:$0xff]  ;;  %v6674_v19 = vld [vmem:[%s10153_s3 + $0x4d8] sm:$0xff] }
 0x23d   : > { %v4832_v35 = vpop.f32.mrf.mxu3  ;;  %v4919_v58 = vpop.f32.mrf.mxu2 }
 0x23e   : > { %v4833_v8 = vadd.f32 %v4832_v35, %v9383_v30 }
 0x23f   : > { %5208 = vmatmul.bf16.gmra.mxu0 %v8958_v45  ;;  %v6677_v45 = vld [vmem:[%s10153_s3 + $0x4f0] sm:$0xff] }
 0x240   : > { %v4862_v25 = vadd.f32 %v9468_v42, %v4833_v8  ;;  %v4892_v32 = vpop.f32.mrf.mxu1  ;;  %5226 = vmatpush.bf16.msra.mxu1 %v6655_v4  ;;  %5313 = vmatpush.bf16.msrb.mxu0 %v6679_v49  ;;  %v10565_v8 = vld [vmem:[#allocation17_spill] sm:$0xff] }
 0x241   : > { %5278 = vmatpush.bf16.msrb.mxu3 %v6677_v45  ;;  %v6694_v4 = vld [vmem:[%s10153_s3 + $0x578] sm:$0xff] }
 0x242   : > { %v4891_v30 = vadd.f32 %v4890_v18, %v4862_v25  ;;  %v6718_v45 = vld [vmem:[%s10153_s3 + $0x638] sm:$0xff] }
 0x244   : > { %v9686_v40 = vpop.f32.mrf.mxu0  ;;  %v9689_v13 = vadd.f32 %v4919_v58, %v4891_v30  ;;  %5335 = vmatpush.bf16.msrb.mxu1 %v6694_v4  ;;  %5422 = vmatpush.bf16.msra.mxu0 %v6718_v45 }
 0x245   : > { %v4834_v42 = vpop.f32.mrf.mxu3  ;;  %v4921_v60 = vpop.f32.mrf.mxu2  ;;  %5279 = vmatpush.bf16.msrb.mxu3 %v6676_v28 }
 0x246   : > { %v4835_v37 = vadd.f32 %v4834_v42, %v4806_v62 }
 0x248   : > { %v4864_v46 = vadd.f32 %v9503_v0, %v4835_v37  ;;  %v4895_v9 = vpop.f32.mrf.mxu1  ;;  %v1088_v37 = vld [vmem:[#allocation2 + $0x100] sm:$0xf] }
 0x249   : > { %5280 = vmatpush.bf16.msrb.mxu3 %v6675_v29  ;;  %v9756_v29 = vld [vmem:[#allocation2 + $0x10a] sm:$0xf] }
 0x24a   : > { %v4893_v2 = vadd.f32 %v4892_v32, %v4864_v46  ;;  %5068 = vmatmul.bf16.gmra.mxu3 %v9618_v56  ;;  %5155 = vmatmul.bf16.gmra.mxu2 %v3301_v52  ;;  %v1089_v52 = vld [vmem:[#allocation2 + $0x108] sm:$0xf] }
 0x24b   : > { %5126 = vmatmul.bf16.gmra.mxu1 %v3300_v53  ;;  %v6700_v53 = vld [vmem:[%s10153_s3 + $0x5a8] sm:$0xff] }
 0x24c   : > { %v9696_v41 = vpop.f32.mrf.mxu0  ;;  %v9698_v31 = vadd.f32 %v4921_v60, %v4893_v2  ;;  %v1090_v2 = vld [vmem:[#allocation2 + $0x110] sm:$0xf] }
 0x24d   : > { %v4837_v1 = vpop.f32.mrf.mxu3  ;;  %v4924_v50 = vpop.f32.mrf.mxu2  ;;  %5281 = vmatpush.bf16.msrb.mxu3 %v6674_v19  ;;  %v10567_v19 = vld [vmem:[#allocation9_spill] sm:$0xff] }
 0x24e   : > { %v4838_v0 = vadd.f32 %v4837_v1, %v9517_v33  ;;  %v6702_v33 = vld [vmem:[%s10153_s3 + $0x5b8] sm:$0xff]  ;;  %v6717_v1 = vld [vmem:[%s10153_s3 + $0x630] sm:$0xff] }
 0x24f   : > { %5213 = vmatmul.bf16.gmra.mxu0 %v3303_v27  ;;  %5364 = vmatpush.bf16.msrb.mxu2 %v6702_v33  ;;  %v1104_v27 = vpack.c.bf16 %v1088_v37, %v1088_v37  ;;  %v1106_v33 = vpack.c.bf16 %v1090_v2, %v1090_v2 }
 0x250   : > { %v4867_v61 = vadd.f32 %v9515_v55, %v4838_v0  ;;  %v4897_v56 = vpop.f32.mrf.mxu1  ;;  %v1055_v0 = vld [vmem:[#allocation2 + $0xfa] sm:$0xf]  ;;  %5423 = vmatpush.bf16.msra.mxu0 %v6717_v1 }
 0x252   : > { %v4896_v10 = vadd.f32 %v4895_v9, %v4867_v61  ;;  %v6693_v9 = vld [vmem:[%s10153_s3 + $0x570] sm:$0xff]  ;;  %v1105_v61 = vpack.c.bf16 %v1089_v52, %v1089_v52 }
 0x253   : > { %5365 = vmatpush.bf16.msrb.mxu2 %v6701_v38  ;;  %5336 = vmatpush.bf16.msrb.mxu1 %v6693_v9  ;;  %v10568_v38 = vld [vmem:[#allocation5_spill] sm:$0xff]  ;;  %v1152_v9 = vld [vmem:[#allocation2 + $0x102] sm:$0xf] }
 0x254   : > { %v9705_v48 = vpop.f32.mrf.mxu0  ;;  %v9707_v15 = vadd.f32 %v4924_v50, %v4896_v10  ;;  %v1054_v50 = vld [vmem:[#allocation2 + $0xf2] sm:$0xf]  ;;  %v1056_v10 = vld [vmem:[#allocation2 + $0x102] sm:$0xf] }
 0x255   : > { %v4839_v57 = vpop.f32.mrf.mxu3  ;;  %v4926_v36 = vpop.f32.mrf.mxu2 }
 0x256   : > { %v4840_v47 = vadd.f32 %v4839_v57, %v9527_v39  ;;  %v10564_v39 = vld [vmem:[#allocation29_spill] sm:$0xff]  ;;  %v1070_v57 = vpack.c.bf16 %v1054_v50, %v1054_v50 }
 0x257   : > { %5366 = vmatpush.bf16.msrb.mxu2 %v6700_v53  ;;  %v1153_v53 = vld [vmem:[#allocation2 + $0x10a] sm:$0xf]  ;;  %v1154_v50 = vld [vmem:[#allocation2 + $0x112] sm:$0xf] }
 0x258   : > { %v4869_v55 = vadd.f32 %v9522_v11, %v4840_v47  ;;  %v4996_v18 = vpop.f32.mrf.mxu1  ;;  %v1119_v47 = vld [vmem:[#allocation2 + $0xf9] sm:$0xf] }
 0x25a   : > { %v4898_v14 = vadd.f32 %v4897_v56, %v4869_v55  ;;  %5169 = vmatmul.bf16.vlgmr.msra.gmra.mxu3 %v10562_v23  ;;  %5256 = vmatmul.bf16.vlgmr.msra.gmra.mxu2 %v10563_v51  ;;  %v1120_v55 = vld [vmem:[#allocation2 + $0x101] sm:$0xf]  ;;  %v10566_v51 = vld [vmem:[#allocation32_spill] sm:$0xff] }
 0x25b   : > { %5227 = vmatmul.bf16.vlgmr.msra.gmra.mxu1 %v10564_v39  ;;  %v1072_v39 = vpack.c.bf16 %v1056_v10, %v1056_v10  ;;  %v1169_v10 = vpack.c.bf16 %v1153_v53, %v1153_v53  ;;  %v6714_v53 = vld [vmem:[%s10153_s3 + $0x618] sm:$0xff] }
 0x25c   : > { %v9719_v21 = vpop.f32.mrf.mxu0  ;;  %v9722_v34 = vadd.f32 %v4926_v36, %v4898_v14  ;;  %v1071_v36 = vpack.c.bf16 %v1055_v0, %v1055_v0 }
 0x25d   : > { %v4938_v35 = vpop.f32.mrf.mxu3  ;;  %v5025_v11 = vpop.f32.mrf.mxu2 }
 0x25e   : > { %v4939_v58 = vadd.f32 %v4938_v35, %v9557_v43  ;;  %v6673_v43 = vld [vmem:[%s10153_s3 + $0x4d0] sm:$0xff] }
 0x25f   : > { %5314 = vmatmul.bf16.vlgmr.msrb.gmra.mxu0 %v10565_v8  ;;  %5282 = vmatpush.bf16.msrb.mxu3 %v6673_v43  ;;  %v1121_v35 = vld [vmem:[#allocation2 + $0x109] sm:$0xf]  ;;  %v1863_v8 = vrot.slane %v1104_v27, 6  ;;  %v1073_v43 = vpack.c.bf16 %v9756_v29, %v9756_v29  ;;  %v10569_v29 = vld [vmem:[#allocation46_spill] sm:$0xff] }
 0x260   : > { %v4968_v25 = vadd.f32 %v9534_v16, %v4939_v58  ;;  %v4998_v32 = vpop.f32.mrf.mxu1  ;;  %v1087_v16 = vld [vmem:[#allocation2 + $0xf8] sm:$0xf]  ;;  %v1136_v58 = vpack.c.bf16 %v1120_v55, %v1120_v55  ;;  %v1137_v45 = vpack.c.bf16 %v1121_v35, %v1121_v35 }
 0x261   : > { %v1103_v28 = vpack.c.bf16 %v1087_v16, %v1087_v16  ;;  %v1883_v16 = vrot.slane %v1105_v61, 6 }
 0x262   : > { %v4997_v49 = vadd.f32 %v4996_v18, %v4968_v25  ;;  %v1135_v18 = vpack.c.bf16 %v1119_v47, %v1119_v47  ;;  %v6692_v25 = vld [vmem:[%s10153_s3 + $0x568] sm:$0xff]  ;;  %v1864_v61 = vrot.slane %v1136_v58, 4  ;;  %v1170_v47 = vpack.c.bf16 %v1154_v50, %v1154_v50 }
 0x263   : > { %v1843_v14 = vrot.slane %v1103_v28, 6  ;;  %v2559_v28 = vsel %vm1908_vm0, %v1071_v36, %v1863_v8  ;;  %5337 = vmatpush.bf16.msrb.mxu1 %v6692_v25  ;;  %v1884_v55 = vrot.slane %v1137_v45, 4  ;;  %v6698_v36 = vld [vmem:[%s10153_s3 + $0x598] sm:$0xff]  ;;  %v6696_v50 = vld [vmem:[%s10153_s3 + $0x588] sm:$0xff] }
 0x264   : > { %v9736_v30 = vpop.f32.mrf.mxu0  ;;  %v9741_v62 = vadd.f32 %v5025_v11, %v4997_v49  ;;  %v1122_v11 = vld [vmem:[#allocation2 + $0x111] sm:$0xf]  ;;  %v6716_v49 = vld [vmem:[%s10153_s3 + $0x628] sm:$0xff] }
 0x265   : > { %v4940_v42 = vpop.f32.mrf.mxu3  ;;  %v5027_v60 = vpop.f32.mrf.mxu2  ;;  %v1138_v52 = vpack.c.bf16 %v1122_v11, %v1122_v11  ;;  %v2512_v2 = vsel %vm1908_vm0, %v1070_v57, %v1843_v14  ;;  %5424 = vmatpush.bf16.msra.mxu0 %v6716_v49  ;;  %v6691_v57 = vld [vmem:[%s10153_s3 + $0x560] sm:$0xff]  ;;  %v1905_v11 = vrot.slane %v1170_v47, 2  ;;  %v9799_v49 = vld.sshfl [vmem:[#allocation1 + $0x18] sm:$0xff pattern:$0x73625140] }
 0x266   : > { %v4941_v46 = vadd.f32 %v4940_v42, %v9596_v63  ;;  %v1844_v42 = vrot.slane %v1135_v18, 4  ;;  %v1903_v18 = vrot.slane %v1106_v33, 6  ;;  %v6715_v14 = vld [vmem:[%s10153_s3 + $0x620] sm:$0xff] }
 0x267   : > { %v1904_v35 = vrot.slane %v1138_v52, 4  ;;  %5338 = vmatpush.bf16.msrb.mxu1 %v6691_v57 }
 0x268   : > { %v4970_v63 = vadd.f32 %v9551_v54, %v4941_v46  ;;  %v9754_v56 = vpop.f32.mrf.mxu1  ;;  %v6672_v54 = vld [vmem:[%s10153_s3 + $0x4c8] sm:$0xff]  ;;  %v1151_v46 = vld [vmem:[#allocation2 + $0xfa] sm:$0xf]  ;;  %v2653_v58 = vsel %vm1908_vm0, %v1073_v43, %v1903_v18 }
 0x269   : > { %5283 = vmatpush.bf16.msrb.mxu3 %v6672_v54  ;;  %v1167_v0 = vpack.c.bf16 %v1151_v46, %v1151_v46  ;;  %5425 = vmatpush.bf16.msra.mxu0 %v6715_v14  ;;  %v6687_v18 = vld [vmem:[%s10153_s3 + $0x540] sm:$0xff] }
 0x26a   : > { %v4999_v23 = vadd.f32 %v4998_v32, %v4970_v63  ;;  %5174 = vmatmul.bf16.gmra.mxu3 %v10566_v51  ;;  %5261 = vmatmul.bf16.gmra.mxu2 %v10567_v19  ;;  %v6699_v32 = vld [vmem:[%s10153_s3 + $0x5a0] sm:$0xff]  ;;  %v1168_v63 = vpack.c.bf16 %v1152_v9, %v1152_v9  ;;  %v1885_v51 = vrot.slane %v1169_v10, 2  ;;  %v2606_v19 = vsel %vm1908_vm0, %v1072_v39, %v1883_v16  ;;  %v6697_v9 = vld [vmem:[%s10153_s3 + $0x590] sm:$0xff] }
 0x26b   : > { %5232 = vmatmul.bf16.gmra.mxu1 %v10568_v38  ;;  %5367 = vmatpush.bf16.msrb.mxu2 %v6699_v32  ;;  %v6713_v10 = vld [vmem:[%s10153_s3 + $0x610] sm:$0xff]  ;;  %v6711_v14 = vld [vmem:[%s10153_s3 + $0x600] sm:$0xff] }
 0x26c   : > { %v9763_v4 = vpop.f32.mrf.mxu0  ;;  %v9777_v37 = vadd.f32 %v5027_v60, %v4999_v23  ;;  %v1845_v23 = vrot.slane %v1167_v0, 2  ;;  %v2609_v25 = vsel %vm1912_vm1, %v1884_v55, %v1885_v51 }
 0x26d   : > { %v4943_v27 = vpop.f32.mrf.mxu3  ;;  %v5030_v1 = vpop.f32.mrf.mxu2  ;;  %v2610_v45 = vsel %vm1916_vm2, %v2606_v19, %v2609_v25  ;;  %5426 = vmatpush.bf16.msra.mxu0 %v6714_v53 }
 0x26e   : > { %v4944_v60 = vadd.f32 %v4943_v27, %v9634_v44  ;;  %v1865_v44 = vrot.slane %v1168_v63, 2  ;;  %v2515_v8 = vsel %vm1912_vm1, %v1844_v42, %v1845_v23  ;;  %v2656_v42 = vsel %vm1912_vm1, %v1904_v35, %v1905_v11  ;;  %3309 = vst [vmem:[#allocation1 + $0x2] ss:$4 sm:$0xff] %v2610_v45  ;;  %v3304_v11 = vld.sshfl [vmem:[#allocation1 + $0x28] sm:$0xff pattern:$0x73625140] }
 0x26f   : > { %5319 = vmatmul.bf16.gmra.mxu0 %v10569_v29  ;;  %5368 = vmatpush.bf16.msrb.mxu2 %v6698_v36  ;;  %v2516_v39 = vsel %vm1916_vm2, %v2512_v2, %v2515_v8  ;;  %v2657_v46 = vsel %vm1916_vm2, %v2653_v58, %v2656_v42  ;;  %v6695_v29 = vld [vmem:[%s10153_s3 + $0x580] sm:$0xff]  ;;  %v6708_v8 = vld [vmem:[%s10153_s3 + $0x5e8] sm:$0xff] }
 0x270   : > { %v4973_v33 = vadd.f32 %v9582_v26, %v4944_v60  ;;  %v5003_v54 = vpop.f32.mrf.mxu1  ;;  %v2562_v38 = vsel %vm1912_vm1, %v1864_v61, %v1865_v44  ;;  %v6671_v26 = vld [vmem:[%s10153_s3 + $0x4c0] sm:$0xff]  ;;  %3307 = vst [vmem:[#allocation1] ss:$4 sm:$0xff] %v2516_v39  ;;  %v6710_v61 = vld [vmem:[%s10153_s3 + $0x5f8] sm:$0xff] }
 0x271   : > { %v2563_v43 = vsel %vm1916_vm2, %v2559_v28, %v2562_v38  ;;  %5284 = vmatpush.bf16.msrb.mxu3 %v6671_v26  ;;  %3310 = vst [vmem:[#allocation1 + $0x3] ss:$4 sm:$0xff] %v2657_v46  ;;  %5427 = vmatpush.bf16.msra.mxu0 %v6713_v10  ;;  %v6707_v45 = vld [vmem:[%s10153_s3 + $0x5e0] sm:$0xff] }
 0x272   : > { %v5002_v32 = vadd.f32 %v9754_v56, %v4973_v33  ;;  %v6690_v56 = vld [vmem:[%s10153_s3 + $0x558] sm:$0xff]  ;;  %3308 = vst [vmem:[#allocation1 + $0x1] ss:$4 sm:$0xff] %v2563_v43  ;;  %v3305_v33 = vld.sshfl [vmem:[#allocation1 + $0x30] sm:$0xff pattern:$0x73625140] }
 0x273   : > { %5339 = vmatpush.bf16.msrb.mxu1 %v6690_v56  ;;  %5369 = vmatpush.bf16.msrb.mxu2 %v6697_v9 }
 0x274   : > { %v9807_v16 = vpop.f32.mrf.mxu0  ;;  %v9813_v52 = vadd.f32 %v5030_v1, %v5002_v32  ;;  %v6689_v1 = vld [vmem:[%s10153_s3 + $0x550] sm:$0xff] }
 0x275   : > { %v4945_v2 = vpop.f32.mrf.mxu3  ;;  %v5032_v28 = vpop.f32.mrf.mxu2  ;;  %5393 = vmatpush.bf16.msra.mxu3 %v6710_v61  ;;  %v10573_v61 = vld [vmem:[#allocation43_spill] sm:$0xff] }
 0x276   : > { %v4946_v27 = vadd.f32 %v4945_v2, %v9667_v59 }
 0x277   : > { %5340 = vmatpush.bf16.msrb.mxu1 %v6689_v1  ;;  %5370 = vmatpush.bf16.msrb.mxu2 %v6696_v50  ;;  %v10571_v1 = vld [vmem:[#allocation23_spill] sm:$0xff]  ;;  %v6706_v50 = vld [vmem:[%s10153_s3 + $0x5d8] sm:$0xff] }
 0x278   : > { %v4975_v0 = vadd.f32 %v9626_v17, %v4946_v27  ;;  %v5006_v63 = vpop.f32.mrf.mxu1  ;;  %v6688_v17 = vld [vmem:[%s10153_s3 + $0x548] sm:$0xff] }
 0x279   : > { %v3315_v25 = vld.sshfl [vmem:[#allocation1] sm:$0xff pattern:$0x73625140]  ;;  %v10570_v27 = vld [vmem:[#allocation31_spill] sm:$0xff] }
 0x27a   : > { %v5004_v59 = vadd.f32 %v5003_v54, %v4975_v0  ;;  %5179 = vmatmul.bf16.gmra.mxu3 %v9115_v22  ;;  %5266 = vmatmul.bf16.gmra.mxu2 %v8969_v24  ;;  %v6712_v24 = vld [vmem:[%s10153_s3 + $0x608] sm:$0xff]  ;;  %v10572_v0 = vld [vmem:[#allocation22_spill] sm:$0xff] }
 0x27b   : > { %5237 = vmatmul.bf16.gmra.mxu1 %v8960_v3  ;;  %5371 = vmatpush.bf16.msrb.mxu2 %v6695_v29  ;;  %v9913_v29 = vld [vmem:[%s10153_s3 + $0x6b0] sm:$0xff] }
 0x27c   : > { %v9838_v60 = vpop.f32.mrf.mxu0  ;;  %v9847_v22 = vadd.f32 %v5032_v28, %v5004_v59  ;;  %5341 = vmatpush.bf16.msrb.mxu1 %v6688_v17  ;;  %5428 = vmatpush.bf16.msra.mxu0 %v6712_v24  ;;  %v6726_v17 = vld [vmem:[%s10153_s3 + $0x678] sm:$0xff] }
 0x27d   : > { %v4948_v47 = vpop.f32.mrf.mxu3  ;;  %v5035_v55 = vpop.f32.mrf.mxu2 }
 0x27e   : > { %v4949_v3 = vadd.f32 %v4948_v47, %v9689_v13  ;;  %v6709_v13 = vld [vmem:[%s10153_s3 + $0x5f0] sm:$0xff] }
 0x27f   : > { %5324 = vmatmul.bf16.gmra.mxu0 %v9188_v5  ;;  %5394 = vmatpush.bf16.msra.mxu3 %v6709_v13 }
 0x280   : > { %v4978_v57 = vadd.f32 %v9658_v6, %v4949_v3  ;;  %v5008_v36 = vpop.f32.mrf.mxu1  ;;  %5342 = vmatpush.bf16.msrb.mxu1 %v6687_v18  ;;  %5429 = vmatpush.bf16.msra.mxu0 %v6711_v14  ;;  %v1216_v14 = vld [vmem:[#allocation2 + $0x101] sm:$0xf] }
 0x282   : > { %v5007_v23 = vadd.f32 %v5006_v63, %v4978_v57 }
 0x283   : > { %5395 = vmatpush.bf16.msra.mxu3 %v6708_v8 }
 0x284   : > { %v9864_v5 = vpop.f32.mrf.mxu0  ;;  %v9866_v44 = vadd.f32 %v5035_v55, %v5007_v23  ;;  %6743 = vmatpush.bf16.msra.mxu1 %v6726_v17  ;;  %5451 = vmatpush.bf16.msrb.mxu0 %v6726_v17  ;;  %v1217_v23 = vld [vmem:[#allocation2 + $0x109] sm:$0xf]  ;;  %v9949_v17 = vld [vmem:[%s10153_s3 + $0x6a0] sm:$0xff] }
 0x285   : > { %v4950_v51 = vpop.f32.mrf.mxu3  ;;  %v5037_v6 = vpop.f32.mrf.mxu2 }
 0x286   : > { %v4951_v19 = vadd.f32 %v4950_v51, %v9698_v31  ;;  %v6725_v51 = vld [vmem:[%s10153_s3 + $0x670] sm:$0xff] }
 0x287   : > { %5396 = vmatpush.bf16.msra.mxu3 %v6707_v45 }
 0x288   : > { %v4980_v54 = vadd.f32 %v9686_v40, %v4951_v19  ;;  %v5011_v35 = vpop.f32.mrf.mxu1  ;;  %v1219_v19 = vld [vmem:[#allocation2 + $0x119] sm:$0xf]  ;;  %6744 = vmatpush.bf16.msra.mxu1 %v6725_v51  ;;  %5452 = vmatpush.bf16.msrb.mxu0 %v6725_v51 }
 0x28a   : > { %v5009_v58 = vadd.f32 %v5008_v36, %v4980_v54  ;;  %5184 = vmatmul.bf16.gmra.mxu3 %v9799_v49  ;;  %5271 = vmatmul.bf16.gmra.mxu2 %v3305_v33  ;;  %v1232_v33 = vpack.c.bf16 %v1216_v14, %v1216_v14  ;;  %v1233_v54 = vpack.c.bf16 %v1217_v23, %v1217_v23 }
 0x28b   : > { %5242 = vmatmul.bf16.gmra.mxu1 %v3304_v11  ;;  %5397 = vmatpush.bf16.msra.mxu3 %v6706_v50  ;;  %v1185_v11 = vld [vmem:[#allocation2 + $0x108] sm:$0xf] }
 0x28c   : > { %v9874_v38 = vpop.f32.mrf.mxu0  ;;  %v9876_v32 = vadd.f32 %v5037_v6, %v5009_v58  ;;  %v9931_v6 = vld [vmem:[%s10153_s3 + $0x6a8] sm:$0xff]  ;;  %v1186_v58 = vld [vmem:[#allocation2 + $0x110] sm:$0xf] }
 0x28d   : > { %v4953_v31 = vpop.f32.mrf.mxu3  ;;  %v5040_v26 = vpop.f32.mrf.mxu2  ;;  %v1202_v45 = vpack.c.bf16 %v1186_v58, %v1186_v58 }
 0x28e   : > { %v4954_v40 = vadd.f32 %v4953_v31, %v9707_v15  ;;  %v9891_v15 = vld [vmem:[%s10153_s3 + $0x6b8] sm:$0xff] }
 0x28f   : > { %5329 = vmatmul.bf16.gmra.mxu0 %v3315_v25  ;;  %5480 = vmatpush.bf16.msra.mxu2 %v9891_v15  ;;  %v1235_v25 = vpack.c.bf16 %v1219_v19, %v1219_v19  ;;  %v9954_v19 = vld.sshfl [vmem:[#allocation1 + $0x38] sm:$0xff pattern:$0x73625140] }
 0x290   : > { %v4983_v39 = vadd.f32 %v9696_v41, %v4954_v40  ;;  %v5013_v49 = vpop.f32.mrf.mxu1 }
 0x291   : > { %v1906_v23 = vrot.slane %v1235_v25, 6  ;;  %v6723_v25 = vld [vmem:[%s10153_s3 + $0x660] sm:$0xff] }
 0x292   : > { %v5012_v43 = vadd.f32 %v5011_v35, %v4983_v39  ;;  %v1184_v35 = vld [vmem:[#allocation2 + $0x100] sm:$0xf]  ;;  %v1201_v39 = vpack.c.bf16 %v1185_v11, %v1185_v11 }
 0x293   : > { %5481 = vmatpush.bf16.msra.mxu2 %v9913_v29  ;;  %v1200_v40 = vpack.c.bf16 %v1184_v35, %v1184_v35 }
 0x294   : > { %v9883_v42 = vpop.f32.mrf.mxu0  ;;  %v9885_v56 = vadd.f32 %v5040_v26, %v5012_v43  ;;  %v1187_v26 = vld [vmem:[#allocation2 + $0x118] sm:$0xf]  ;;  %v1249_v43 = vld [vmem:[#allocation2 + $0x10a] sm:$0xf] }
 0x295   : > { %v4955_v46 = vpop.f32.mrf.mxu3  ;;  %v5042_v9 = vpop.f32.mrf.mxu2 }
 0x296   : > { %v4956_v53 = vadd.f32 %v4955_v46, %v9722_v34  ;;  %v1203_v46 = vpack.c.bf16 %v1187_v26, %v1187_v26 }
 0x297   : > { %5482 = vmatpush.bf16.msra.mxu2 %v9931_v6 }
 0x298   : > { %v4985_v41 = vadd.f32 %v9705_v48, %v4956_v53  ;;  %v5112_v2 = vpop.f32.mrf.mxu1  ;;  %v2660_v26 = vsel %vm1908_vm0, %v1203_v46, %v1906_v23  ;;  %v3317_v23 = vld.sshfl [vmem:[#allocation1 + $0x10] sm:$0xff pattern:$0x73625140] }
 0x29a   : > { %v5014_v28 = vadd.f32 %v5013_v49, %v4985_v41  ;;  %5285 = vmatmul.bf16.vlgmr.msrb.gmra.mxu3 %v10570_v27  ;;  %5372 = vmatmul.bf16.vlgmr.msrb.gmra.mxu2 %v10571_v1  ;;  %v1248_v49 = vld [vmem:[#allocation2 + $0x102] sm:$0xf]  ;;  %v1265_v41 = vpack.c.bf16 %v1249_v43, %v1249_v43  ;;  %v1251_v1 = vld [vmem:[#allocation2 + $0x11a] sm:$0xf] }
 0x29b   : > { %5343 = vmatmul.bf16.vlgmr.msrb.gmra.mxu1 %v10572_v0  ;;  %v1264_v53 = vpack.c.bf16 %v1248_v49, %v1248_v49  ;;  %v10575_v27 = vld [vmem:[#allocation3_spill] sm:$0xff]  ;;  %v1846_v0 = vrot.slane %v1232_v33, 6  ;;  %5483 = vmatpush.bf16.msra.mxu2 %v9949_v17  ;;  %v6703_v49 = vld [vmem:[%s10153_s3 + $0x5c0] sm:$0xff] }
 0x29c   : > { %v9900_v34 = vpop.f32.mrf.mxu0  ;;  %v9903_v63 = vadd.f32 %v5042_v9, %v5014_v28  ;;  %v1250_v9 = vld [vmem:[#allocation2 + $0x112] sm:$0xf] }
 0x29d   : > { %v5054_v48 = vpop.f32.mrf.mxu3  ;;  %v5141_v10 = vpop.f32.mrf.mxu2  ;;  %v10574_v28 = vld [vmem:[#allocation49_spill] sm:$0xff]  ;;  %v1266_v50 = vpack.c.bf16 %v1250_v9, %v1250_v9 }
 0x29e   : > { %v5055_v59 = vadd.f32 %v5054_v48, %v9741_v62  ;;  %v6705_v62 = vld [vmem:[%s10153_s3 + $0x5d0] sm:$0xff]  ;;  %v1866_v48 = vrot.slane %v1233_v54, 6 }
 0x29f   : > { %5430 = vmatmul.bf16.vlgmr.msra.gmra.mxu0 %v10573_v61  ;;  %5398 = vmatpush.bf16.msra.mxu3 %v6705_v62  ;;  %v6724_v61 = vld [vmem:[%s10153_s3 + $0x668] sm:$0xff]  ;;  %v1887_v14 = vrot.slane %v1266_v50, 4 }
 0x2a0   : > { %v5084_v24 = vadd.f32 %v9719_v21, %v5055_v59  ;;  %v5114_v47 = vpop.f32.mrf.mxu1  ;;  %v1218_v21 = vld [vmem:[#allocation2 + $0x111] sm:$0xf]  ;;  %v10576_v59 = vld [vmem:[#allocation6_spill] sm:$0xff]  ;;  %5453 = vmatpush.bf16.msrb.mxu0 %v6724_v61  ;;  %v2566_v35 = vsel %vm1908_vm0, %v1201_v39, %v1866_v48  ;;  %6745 = vmatpush.bf16.msra.mxu1 %v6724_v61  ;;  %v10578_v48 = vld [vmem:[#allocation40_spill] sm:$0xff] }
 0x2a1   : > { %v1234_v8 = vpack.c.bf16 %v1218_v21, %v1218_v21  ;;  %v2519_v21 = vsel %vm1908_vm0, %v1200_v40, %v1846_v0 }
 0x2a2   : > { %v5113_v55 = vadd.f32 %v5112_v2, %v5084_v24  ;;  %v1267_v24 = vpack.c.bf16 %v1251_v1, %v1251_v1  ;;  %v6720_v1 = vld [vmem:[%s10153_s3 + $0x648] sm:$0xff] }
 0x2a3   : > { %v1886_v62 = vrot.slane %v1234_v8, 6 }
 0x2a4   : > { %v9920_v3 = vpop.f32.mrf.mxu0  ;;  %v9922_v18 = vadd.f32 %v5141_v10, %v5113_v55  ;;  %v1867_v55 = vrot.slane %v1265_v41, 4  ;;  %v1907_v33 = vrot.slane %v1267_v24, 4  ;;  %5454 = vmatpush.bf16.msrb.mxu0 %v6723_v25  ;;  %6746 = vmatpush.bf16.msra.mxu1 %v6723_v25  ;;  %v6721_v41 = vld [vmem:[%s10153_s3 + $0x650] sm:$0xff] }
 0x2a5   : > { %v5056_v57 = vpop.f32.mrf.mxu3  ;;  %v5143_v36 = vpop.f32.mrf.mxu2 }
 0x2a6   : > { %v5057_v13 = vadd.f32 %v5056_v57, %v9777_v37  ;;  %v2568_v58 = vsel %vm1916_vm2, %v2566_v35, %v1867_v55  ;;  %v2662_v40 = vsel %vm1916_vm2, %v2660_v26, %v1907_v33 }
 0x2a7   : > { %3312 = vst [vmem:[#allocation1 + $0x21] ss:$4 sm:$0xff] %v2568_v58 }
 0x2a8   : > { %v5086_v31 = vadd.f32 %v9736_v30, %v5057_v13  ;;  %v5117_v37 = vpop.f32.mrf.mxu1  ;;  %v6704_v30 = vld [vmem:[%s10153_s3 + $0x5c8] sm:$0xff]  ;;  %3314 = vst [vmem:[#allocation1 + $0x23] ss:$4 sm:$0xff] %v2662_v40  ;;  %v10580_v40 = vld [vmem:[#allocation45_spill] sm:$0xff] }
 0x2a9   : > { %5399 = vmatpush.bf16.msra.mxu3 %v6704_v30 }
 0x2aa   : > { %v5115_v2 = vadd.f32 %v5114_v47, %v5086_v31  ;;  %5290 = vmatmul.bf16.gmra.mxu3 %v10574_v28  ;;  %5377 = vmatmul.bf16.gmra.mxu2 %v10575_v27  ;;  %v1847_v47 = vrot.slane %v1264_v53, 4  ;;  %v6730_v31 = vld [vmem:[%s10153_s3 + $0x698] sm:$0xff] }
 0x2ab   : > { %5348 = vmatmul.bf16.gmra.mxu1 %v10576_v59  ;;  %5484 = vmatpush.bf16.msra.mxu2 %v6730_v31  ;;  %v6719_v59 = vld [vmem:[%s10153_s3 + $0x640] sm:$0xff] }
 0x2ac   : > { %v9940_v10 = vpop.f32.mrf.mxu0  ;;  %v9951_v57 = vadd.f32 %v5143_v36, %v5115_v2  ;;  %v2521_v54 = vsel %vm1916_vm2, %v2519_v21, %v1847_v47  ;;  %v2613_v36 = vsel %vm1908_vm0, %v1202_v45, %v1886_v62  ;;  %v6722_v45 = vld [vmem:[%s10153_s3 + $0x658] sm:$0xff]  ;;  %v6728_v2 = vld [vmem:[%s10153_s3 + $0x688] sm:$0xff]  ;;  %vm5551_vm0 = vcmask 1040384  }
 0x2ad   : > { %v5059_v13 = vpop.f32.mrf.mxu3  ;;  %v5146_v51 = vpop.f32.mrf.mxu2  ;;  %v2615_v8 = vsel %vm1916_vm2, %v2613_v36, %v1887_v14  ;;  %3311 = vst [vmem:[#allocation1 + $0x20] ss:$4 sm:$0xff] %v2521_v54  ;;  %5400 = vmatpush.bf16.msra.mxu3 %v6703_v49  ;;  %5455 = vmatpush.bf16.msrb.mxu0 %v6722_v45  ;;  %v3316_v21 = vld.sshfl [vmem:[#allocation1 + $0x8] sm:$0xff pattern:$0x73625140] }
 0x2ae   : > { %v5060_v11 = vadd.f32 %v5059_v13, %v9813_v52  ;;  %3313 = vst [vmem:[#allocation1 + $0x22] ss:$4 sm:$0xff] %v2615_v8  ;;  %6747 = vmatpush.bf16.msra.mxu1 %v6722_v45 }
 0x2af   : > { %5435 = vmatmul.bf16.gmra.mxu0 %v8915_v7 }
 0x2b0   : > { %v5089_v52 = vadd.f32 %v9763_v4, %v5060_v11  ;;  %v5119_v7 = vpop.f32.mrf.mxu1  ;;  %v6729_v4 = vld [vmem:[%s10153_s3 + $0x690] sm:$0xff] }
 0x2b1   : > { %5485 = vmatpush.bf16.msra.mxu2 %v6729_v4  ;;  %6751 = vmatpush.bf16.msrb.mxu3 %v9891_v15  ;;  %v10577_v15 = vld [vmem:[#allocation13_spill] sm:$0xff] }
 0x2b2   : > { %v5118_v39 = vadd.f32 %v5117_v37, %v5089_v52  ;;  %5456 = vmatpush.bf16.msrb.mxu0 %v6721_v41  ;;  %6748 = vmatpush.bf16.msra.mxu1 %v6721_v41 }
 0x2b4   : > { %v9976_v43 = vpop.f32.mrf.mxu0  ;;  %v9984_v46 = vadd.f32 %v5146_v51, %v5118_v39  ;;  %v10581_v39 = vld [vmem:[#allocation50_spill] sm:$0xff] }
 0x2b5   : > { %v5061_v9 = vpop.f32.mrf.mxu3  ;;  %v5148_v37 = vpop.f32.mrf.mxu2  ;;  %5486 = vmatpush.bf16.msra.mxu2 %v6728_v2  ;;  %6752 = vmatpush.bf16.msrb.mxu3 %v9913_v29 }
 0x2b6   : > { %v5062_v53 = vadd.f32 %v5061_v9, %v9847_v22  ;;  %5457 = vmatpush.bf16.msrb.mxu0 %v6720_v1  ;;  %6749 = vmatpush.bf16.msra.mxu1 %v6720_v1 }
 0x2b8   : > { %v5091_v28 = vadd.f32 %v9807_v16, %v5062_v53  ;;  %v5122_v27 = vpop.f32.mrf.mxu1  ;;  %v6727_v16 = vld [vmem:[%s10153_s3 + $0x680] sm:$0xff] }
 0x2b9   : > { %5487 = vmatpush.bf16.msra.mxu2 %v6727_v16  ;;  %6753 = vmatpush.bf16.msrb.mxu3 %v9931_v6 }
 0x2ba   : > { %v5120_v30 = vadd.f32 %v5119_v7, %v5091_v28  ;;  %5295 = vmatmul.bf16.gmra.mxu3 %v8971_v12  ;;  %5382 = vmatmul.bf16.gmra.mxu2 %v9197_v20 }
 0x2bb   : > { %5353 = vmatmul.bf16.gmra.mxu1 %v10577_v15  ;;  %5458 = vmatpush.bf16.msrb.mxu0 %v6719_v59 }
 0x2bc   : > { %v9997_v22 = vpop.f32.mrf.mxu0  ;;  %v10007_v50 = vadd.f32 %v5148_v37, %v5120_v30  ;;  %6750 = vmatpush.bf16.msra.mxu1 %v6719_v59  ;;  %v10582_v37 = vld [vmem:[#allocation44_spill] sm:$0xff] }
 0x2bd   : > { %v5064_v12 = vpop.f32.mrf.mxu3  ;;  %v5151_v0 = vpop.f32.mrf.mxu2  ;;  %6754 = vmatpush.bf16.msrb.mxu3 %v9949_v17  ;;  %v3319_v17 = vld.sshfl [vmem:[#allocation1 + $0x20] sm:$0xff pattern:$0x73625140] }
 0x2be   : > { %v5065_v20 = vadd.f32 %v5064_v12, %v9866_v44  ;;  %v10583_v12 = vld [vmem:[#allocation10_spill] sm:$0xff] }
 0x2bf   : > { %5440 = vmatmul.bf16.gmra.mxu0 %v10578_v48 }
 0x2c0   : > { %v5094_v61 = vadd.f32 %v9838_v60, %v5065_v20  ;;  %v5124_v29 = vpop.f32.mrf.mxu1 }
 0x2c1   : > { %6755 = vmatpush.bf16.msrb.mxu3 %v6730_v31 }
 0x2c2   : > { %v5123_v24 = vadd.f32 %v5122_v27, %v5094_v61 }
 0x2c4   : > { %v10016_v47 = vpop.f32.mrf.mxu0  ;;  %v10019_v55 = vadd.f32 %v5151_v0, %v5123_v24 }
 0x2c5   : > { %v5066_v44 = vpop.f32.mrf.mxu3  ;;  %v5153_v62 = vpop.f32.mrf.mxu2  ;;  %6756 = vmatpush.bf16.msrb.mxu3 %v6729_v4 }
 0x2c6   : > { %v5067_v14 = vadd.f32 %v5066_v44, %v9876_v32 }
 0x2c8   : > { %v5096_v6 = vadd.f32 %v9864_v5, %v5067_v14  ;;  %v5127_v60 = vpop.f32.mrf.mxu1 }
 0x2c9   : > { %6757 = vmatpush.bf16.msrb.mxu3 %v6728_v2 }
 0x2ca   : > { %v5125_v13 = vadd.f32 %v5124_v29, %v5096_v6  ;;  %5300 = vmatmul.bf16.gmra.mxu3 %v9954_v19  ;;  %5387 = vmatmul.bf16.gmra.mxu2 %v3317_v23 }
 0x2cb   : > { %5358 = vmatmul.bf16.gmra.mxu1 %v3316_v21  ;;  %v3320_v21 = vld.sshfl [vmem:[#allocation1 + $0x28] sm:$0xff pattern:$0x73625140] }
 0x2cc   : > { %v10024_v51 = vpop.f32.mrf.mxu0  ;;  %v10026_v33 = vadd.f32 %v5153_v62, %v5125_v13 }
 0x2cd   : > { %v5069_v54 = vpop.f32.mrf.mxu3  ;;  %v5156_v35 = vpop.f32.mrf.mxu2  ;;  %6758 = vmatpush.bf16.msrb.mxu3 %v6727_v16 }
 0x2ce   : > { %v5070_v32 = vadd.f32 %v5069_v54, %v9885_v56  ;;  %v10579_v56 = vld [vmem:[#allocation24_spill] sm:$0xff] }
 0x2cf   : > { %5445 = vmatmul.bf16.gmra.mxu0 %v3319_v17  ;;  %v10586_v17 = vld [vmem:[#allocation38_spill] sm:$0xff] }
 0x2d0   : > { %v5099_v5 = vadd.f32 %v9874_v38, %v5070_v32  ;;  %v5129_v36 = vpop.f32.mrf.mxu1 }
 0x2d2   : > { %v5128_v11 = vadd.f32 %v5127_v60, %v5099_v5 }
 0x2d4   : > { %v10030_v58 = vpop.f32.mrf.mxu0  ;;  %v10032_v19 = vadd.f32 %v5156_v35, %v5128_v11 }
 0x2d5   : > { %v5071_v8 = vpop.f32.mrf.mxu3  ;;  %v5158_v25 = vpop.f32.mrf.mxu2 }
 0x2d6   : > { %v5072_v31 = vadd.f32 %v5071_v8, %v9903_v63 }
 0x2d8   : > { %v5101_v26 = vadd.f32 %v9883_v42, %v5072_v31  ;;  %v5228_v52 = vpop.f32.mrf.mxu1 }
 0x2da   : > { %v5130_v7 = vadd.f32 %v5129_v36, %v5101_v26  ;;  %5401 = vmatmul.bf16.vlgmr.msra.gmra.mxu3 %v10579_v56  ;;  %5488 = vmatmul.bf16.vlgmr.msra.gmra.mxu2 %v10580_v40 }
 0x2db   : > { %5464 = vmatmul.bf16.vlgmr.msra.gmra.mxu1 %v10581_v39 }
 0x2dc   : > { %v10038_v38 = vpop.f32.mrf.mxu0  ;;  %v10041_v49 = vadd.f32 %v5158_v25, %v5130_v7 }
 0x2dd   : > { %v5170_v45 = vpop.f32.mrf.mxu3  ;;  %v5257_v4 = vpop.f32.mrf.mxu2 }
 0x2de   : > { %v5171_v9 = vadd.f32 %v5170_v45, %v9922_v18  ;;  %v10584_v18 = vld [vmem:[#allocation51_spill] sm:$0xff] }
 0x2df   : > { %5459 = vmatmul.bf16.vlgmr.msrb.gmra.mxu0 %v10582_v37 }
 0x2e0   : > { %v5200_v42 = vadd.f32 %v9900_v34, %v5171_v9  ;;  %v5230_v63 = vpop.f32.mrf.mxu1  ;;  %v10585_v34 = vld [vmem:[#allocation37_spill] sm:$0xff] }
 0x2e2   : > { %v5229_v53 = vadd.f32 %v5228_v52, %v5200_v42  ;;  %v3318_v52 = vld.sshfl [vmem:[#allocation1 + $0x18] sm:$0xff pattern:$0x73625140] }
 0x2e4   : > { %v10046_v41 = vpop.f32.mrf.mxu0  ;;  %v10048_v2 = vadd.f32 %v5257_v4, %v5229_v53 }
 0x2e5   : > { %v5172_v28 = vpop.f32.mrf.mxu3  ;;  %v5259_v27 = vpop.f32.mrf.mxu2 }
 0x2e6   : > { %v5173_v30 = vadd.f32 %v5172_v28, %v9951_v57 }
 0x2e8   : > { %v5202_v15 = vadd.f32 %v9920_v3, %v5173_v30  ;;  %v5233_v1 = vpop.f32.mrf.mxu1 }
 0x2ea   : > { %v5231_v16 = vadd.f32 %v5230_v63, %v5202_v15  ;;  %5406 = vmatmul.bf16.gmra.mxu3 %v10583_v12  ;;  %5493 = vmatmul.bf16.gmra.mxu2 %v10584_v18 }
 0x2eb   : > { %5469 = vmatmul.bf16.gmra.mxu1 %v10585_v34 }
 0x2ec   : > { %v10054_v0 = vpop.f32.mrf.mxu0  ;;  %v10057_v20 = vadd.f32 %v5259_v27, %v5231_v16 }
 0x2ed   : > { %v5175_v48 = vpop.f32.mrf.mxu3  ;;  %v5262_v59 = vpop.f32.mrf.mxu2 }
 0x2ee   : > { %v5176_v61 = vadd.f32 %v5175_v48, %v9984_v46  ;;  %v10587_v46 = vld [vmem:[#allocation39_spill] sm:$0xff] }
 0x2f0   : > { %v5205_v57 = vadd.f32 %v9940_v10, %v5176_v61  ;;  %v5235_v29 = vpop.f32.mrf.mxu1 }
 0x2f2   : > { %v5234_v3 = vadd.f32 %v5233_v1, %v5205_v57 }
 0x2f4   : > { %v10061_v24 = vpop.f32.mrf.mxu0  ;;  %v10063_v44 = vadd.f32 %v5262_v59, %v5234_v3 }
 0x2f5   : > { %v5177_v62 = vpop.f32.mrf.mxu3  ;;  %v5264_v14 = vpop.f32.mrf.mxu2 }
 0x2f6   : > { %v5178_v23 = vadd.f32 %v5177_v62, %v10007_v50 }
 0x2f8   : > { %v5207_v6 = vadd.f32 %v9976_v43, %v5178_v23  ;;  %v5238_v60 = vpop.f32.mrf.mxu1 }
 0x2fa   : > { %v5236_v13 = vadd.f32 %v5235_v29, %v5207_v6  ;;  %5411 = vmatmul.bf16.gmra.mxu3 %v10586_v17  ;;  %5498 = vmatmul.bf16.gmra.mxu2 %v10587_v46 }
 0x2fb   : > { %5474 = vmatmul.bf16.gmra.mxu1 %v3320_v21 }
 0x2fc   : > { %v10069_v10 = vpop.f32.mrf.mxu0  ;;  %v5265_v54 = vadd.f32 %v5264_v14, %v5236_v13 }
 0x2fd   : > { %v5180_v35 = vpop.f32.mrf.mxu3  ;;  %v5267_v32 = vpop.f32.mrf.mxu2 }
 0x2fe   : > { %v5181_v5 = vadd.f32 %v5180_v35, %v10019_v55 }
 0x300   : > { %v5210_v36 = vadd.f32 %v9997_v22, %v5181_v5  ;;  %v5240_v50 = vpop.f32.mrf.mxu1 }
 0x302   : > { %v5239_v11 = vadd.f32 %v5238_v60, %v5210_v36 }
 0x304   : > { %v10073_v43 = vpop.f32.mrf.mxu0  ;;  %v5268_v8 = vadd.f32 %v5267_v32, %v5239_v11 }
 0x305   : > { %v5182_v25 = vpop.f32.mrf.mxu3  ;;  %v5269_v31 = vpop.f32.mrf.mxu2 }
 0x306   : > { %v5183_v26 = vadd.f32 %v5182_v25, %v10026_v33 }
 0x308   : > { %v5212_v7 = vadd.f32 %v10016_v47, %v5183_v26  ;;  %v5243_v56 = vpop.f32.mrf.mxu1  ;;  %v3321_v47 = vld.sshfl [vmem:[#allocation1 + $0x30] sm:$0xff pattern:$0x73625140] }
 0x30a   : > { %v5241_v40 = vadd.f32 %v5240_v50, %v5212_v7  ;;  %5416 = vmatmul.bf16.gmra.mxu3 %v3318_v52 }
 0x30c   : > { %v5330_v39 = vpop.f32.mrf.mxu0  ;;  %v5270_v45 = vadd.f32 %v5269_v31, %v5241_v40 }
 0x30d   : > { %v5185_v55 = vpop.f32.mrf.mxu3  ;;  %v5272_v4 = vpop.f32.mrf.mxu2 }
 0x30e   : > { %v5186_v22 = vadd.f32 %v5185_v55, %v10032_v19 }
 0x310   : > { %v5215_v9 = vadd.f32 %v10024_v51, %v5186_v22  ;;  %v5245_v37 = vpop.f32.mrf.mxu1 }
 0x312   : > { %v5244_v42 = vadd.f32 %v5243_v56, %v5215_v9 }
 0x314   : > { %v5332_v63 = vpop.f32.mrf.mxu0  ;;  %v5273_v53 = vadd.f32 %v5272_v4, %v5244_v42 }
 0x315   : > { %v5187_v28 = vpop.f32.mrf.mxu3  ;;  %v5274_v33 = vpop.f32.mrf.mxu2 }
 0x316   : > { %v5188_v27 = vadd.f32 %v5187_v28, %v10041_v49 }
 0x318   : > { %v5217_v30 = vadd.f32 %v10030_v58, %v5188_v27  ;;  %v5344_v15 = vpop.f32.mrf.mxu1 }
 0x31a   : > { %v5246_v1 = vadd.f32 %v5245_v37, %v5217_v30  ;;  %5503 = vmatmul.bf16.vlgmr.msrb.gmra.mxu3 %v3321_v47 }
 0x31c   : > { %v5431_v16 = vpop.f32.mrf.mxu0  ;;  %v5275_v12 = vadd.f32 %v5274_v33, %v5246_v1 }
 0x31d   : > { %v5286_v18 = vpop.f32.mrf.mxu3  ;;  %v5373_v19 = vpop.f32.mrf.mxu2 }
 0x31e   : > { %v5287_v51 = vadd.f32 %v5286_v18, %v10048_v2 }
 0x320   : > { %v5316_v34 = vadd.f32 %v10038_v38, %v5287_v51  ;;  %v5346_v48 = vpop.f32.mrf.mxu1 }
 0x324   : > { %v5433_v59 = vpop.f32.mrf.mxu0 }
 0x325   : > { %v5288_v61 = vpop.f32.mrf.mxu3  ;;  %v5375_v57 = vpop.f32.mrf.mxu2 }
 0x326   : > { %v5289_v49 = vadd.f32 %v5288_v61, %v10057_v20 }
 0x328   : > { %v5318_v29 = vadd.f32 %v10046_v41, %v5289_v49  ;;  %v5349_v58 = vpop.f32.mrf.mxu1 }
 0x32a   : > { %v5347_v27 = vadd.f32 %v5346_v48, %v5318_v29 }
 0x32c   : > { %v10085_v3 = vpop.f32.mrf.mxu0  ;;  %v5376_v1 = vadd.f32 %v5375_v57, %v5347_v27 }
 0x32d   : > { %v5291_v62 = vpop.f32.mrf.mxu3  ;;  %v5378_v14 = vpop.f32.mrf.mxu2 }
 0x32e   : > { %v5292_v23 = vadd.f32 %v5291_v62, %v10063_v44 }
 0x330   : > { %v5321_v6 = vadd.f32 %v10054_v0, %v5292_v23  ;;  %v10089_v2 = vpop.f32.mrf.mxu1 }
 0x334   : > { %v10091_v38 = vpop.f32.mrf.mxu0 }
 0x335   : > { %v5293_v60 = vpop.f32.mrf.mxu3  ;;  %v10093_v21 = vpop.f32.mrf.mxu2 }
 0x336   : > { %v5294_v13 = vadd.f32 %v5293_v60, %v5265_v54 }
 0x338   : > { %v5323_v20 = vadd.f32 %v10061_v24, %v5294_v13  ;;  %v10096_v41 = vpop.f32.mrf.mxu1 }
 0x33c   : > { %v10098_v17 = vpop.f32.mrf.mxu0 }
 0x33d   : > { %v5296_v46 = vpop.f32.mrf.mxu3  ;;  %v10100_v35 = vpop.f32.mrf.mxu2 }
 0x33e   : > { %v5297_v44 = vadd.f32 %v5296_v46, %v5268_v8  ;;  %v5352_v46 = vadd.f32 %v10089_v2, %v5323_v20 }
 0x340   : > { %v10103_v0 = vadd.f32 %v10069_v10, %v5297_v44  ;;  %v10105_v32 = vpop.f32.mrf.mxu1 }
 0x344   : > { %v10107_v5 = vpop.f32.mrf.mxu0 }
 0x345   : > { %v5298_v36 = vpop.f32.mrf.mxu3  ;;  %v10109_v50 = vpop.f32.mrf.mxu2 }
 0x346   : > { %v5299_v54 = vadd.f32 %v5298_v36, %v5270_v45  ;;  %v5345_v45 = vadd.f32 %v5344_v15, %v5316_v34 }
 0x348   : > { %v10112_v24 = vadd.f32 %v10073_v43, %v5299_v54  ;;  %v5359_v25 = vpop.f32.mrf.mxu1  ;;  %v5374_v37 = vadd.f32 %v5373_v19, %v5345_v45 }
 0x34c   : > { %v10114_v11 = vpop.f32.mrf.mxu0 }
 0x34d   : > { %v5301_v31 = vpop.f32.mrf.mxu3  ;;  %v5388_v26 = vpop.f32.mrf.mxu2 }
 0x34e   : > { %v5302_v8 = vadd.f32 %v5301_v31, %v5273_v53 }
 0x350   : > { %v5331_v52 = vadd.f32 %v5330_v39, %v5302_v8  ;;  %v5361_v22 = vpop.f32.mrf.mxu1 }
 0x352   : > { %v5360_v10 = vadd.f32 %v5359_v25, %v5331_v52  ;;  %v5355_v52 = vadd.f32 %v10096_v41, %v10103_v0 }
 0x354   : > { %v10116_v7 = vpop.f32.mrf.mxu0  ;;  %v10118_v56 = vadd.f32 %v5388_v26, %v5360_v10 }
 0x355   : > { %v5303_v40 = vpop.f32.mrf.mxu3  ;;  %v5390_v55 = vpop.f32.mrf.mxu2 }
 0x356   : > { %v5304_v4 = vadd.f32 %v5303_v40, %v5275_v12 }
 0x358   : > { %v5333_v43 = vadd.f32 %v5332_v63, %v5304_v4  ;;  %v5350_v63 = vadd.f32 %v5349_v58, %v5321_v6  ;;  %v5465_v19 = vpop.f32.mrf.mxu1 }
 0x35a   : > { %v5362_v9 = vadd.f32 %v5361_v22, %v5333_v43  ;;  %v5379_v62 = vadd.f32 %v5378_v14, %v5350_v63 }
 0x35c   : > { %v10120_v42 = vadd.f32 %v5390_v55, %v5362_v9  ;;  %v5460_v28 = vpop.f32.mrf.mxu0  ;;  %v5357_v9 = vadd.f32 %v10105_v32, %v10112_v24 }
 0x35d   : > { %v5402_v33 = vpop.f32.mrf.mxu3  ;;  %v5489_v53 = vpop.f32.mrf.mxu2 }
 0x35e   : > { %v5403_v39 = vadd.f32 %v5402_v33, %v5374_v37  ;;  %v5386_v0 = vadd.f32 %v10109_v50, %v5357_v9 }
 0x360   : > { %v5432_v47 = vadd.f32 %v5431_v16, %v5403_v39  ;;  %v5467_v58 = vpop.f32.mrf.mxu1 }
 0x362   : > { %v5461_v30 = vadd.f32 %v5460_v28, %v5432_v47 }
 0x364   : > { %v5490_v18 = vadd.f32 %v5489_v53, %v5461_v30  ;;  %v5462_v34 = vpop.f32.mrf.mxu0 }
 0x365   : > { %v5404_v51 = vpop.f32.mrf.mxu3  ;;  %v5491_v12 = vpop.f32.mrf.mxu2 }
 0x366   : > { %5509 = vst [vmem:[%s6827_s28] sm:$0xff] %v5490_v18  ;;  %v5405_v15 = vadd.f32 %v5404_v51, %v5376_v1  ;;  %v5530_v48 = vmul.f32 %v5490_v18, %v5490_v18 }
 0x368   : > { %v5434_v61 = vadd.f32 %v5433_v59, %v5405_v15  ;;  %v5381_v59 = vadd.f32 %v10093_v21, %v5352_v46  ;;  %v5470_v55 = vpop.f32.mrf.mxu1 }
 0x36a   : > { %v5463_v49 = vadd.f32 %v5462_v34, %v5434_v61 }
 0x36c   : > { %v5492_v23 = vadd.f32 %v5491_v12, %v5463_v49 }
 0x36d   : > { %v5407_v60 = vpop.f32.mrf.mxu3  ;;  %v5494_v13 = vpop.f32.mrf.mxu2 }
 0x36e   : > { %5510 = vst [vmem:[%s6827_s28 + $0x8] sm:$0xff] %v5492_v23  ;;  %v5517_v16 = vadd.f32 %v5492_v23, %v5490_v18  ;;  %v5531_v57 = vmul.f32 %v5492_v23, %v5492_v23  ;;  %v5408_v29 = vadd.f32 %v5407_v60, %v5379_v62 }
 0x370   : > { %v5538_v44 = vadd.f32 %v5531_v57, %v5530_v48  ;;  %v5437_v36 = vadd.f32 %v10085_v3, %v5408_v29  ;;  %v5384_v3 = vadd.f32 %v10100_v35, %v5355_v52  ;;  %v5472_v27 = vpop.f32.mrf.mxu1 }
 0x372   : > { %v5466_v54 = vadd.f32 %v5465_v19, %v5437_v36 }
 0x374   : > { %v5495_v14 = vadd.f32 %v5494_v13, %v5466_v54 }
 0x375   : > { %v5409_v6 = vpop.f32.mrf.mxu3  ;;  %v5496_v25 = vpop.f32.mrf.mxu2 }
 0x376   : > { %5511 = vst [vmem:[%s6827_s28 + $0x10] sm:$0xff] %v5495_v14  ;;  %v5518_v31 = vadd.f32 %v5517_v16, %v5495_v14  ;;  %v5532_v26 = vmul.f32 %v5495_v14, %v5495_v14  ;;  %v5410_v8 = vadd.f32 %v5409_v6, %v5381_v59 }
 0x378   : > { %v5539_v10 = vadd.f32 %v5538_v44, %v5532_v26  ;;  %v5439_v2 = vadd.f32 %v10091_v38, %v5410_v8  ;;  %v5475_v61 = vpop.f32.mrf.mxu1 }
 0x37a   : > { %v5468_v20 = vadd.f32 %v5467_v58, %v5439_v2 }
 0x37c   : > { %v5497_v40 = vadd.f32 %v5496_v25, %v5468_v20 }
 0x37d   : > { %v5412_v21 = vpop.f32.mrf.mxu3  ;;  %v5499_v43 = vpop.f32.mrf.mxu2 }
 0x37e   : > { %5512 = vst [vmem:[%s6827_s28 + $0x18] sm:$0xff] %v5497_v40  ;;  %v5519_v4 = vadd.f32 %v5518_v31, %v5497_v40  ;;  %v5533_v22 = vmul.f32 %v5497_v40, %v5497_v40  ;;  %v5413_v45 = vadd.f32 %v5412_v21, %v5384_v3 }
 0x380   : > { %v5540_v37 = vadd.f32 %v5539_v10, %v5533_v22  ;;  %v5442_v41 = vadd.f32 %v10098_v17, %v5413_v45  ;;  %v5477_v13 = vpop.f32.mrf.mxu1 }
 0x382   : > { %v5471_v38 = vadd.f32 %v5470_v55, %v5442_v41 }
 0x384   : > { %v5500_v35 = vadd.f32 %v5499_v43, %v5471_v38 }
 0x385   : > { %v5414_v28 = vpop.f32.mrf.mxu3  ;;  %v5501_v1 = vpop.f32.mrf.mxu2 }
 0x386   : > { %5513 = vst [vmem:[%s6827_s28 + $0x20] sm:$0xff] %v5500_v35  ;;  %v5520_v33 = vadd.f32 %v5519_v4, %v5500_v35  ;;  %v5534_v53 = vmul.f32 %v5500_v35, %v5500_v35  ;;  %v5415_v39 = vadd.f32 %v5414_v28, %v5386_v0 }
 0x388   : > { %v5541_v47 = vadd.f32 %v5540_v37, %v5534_v53  ;;  %v5444_v30 = vadd.f32 %v10107_v5, %v5415_v39 }
 0x38a   : > { %v5473_v18 = vadd.f32 %v5472_v27, %v5444_v30 }
 0x38c   : > { %v5502_v32 = vadd.f32 %v5501_v1, %v5473_v18 }
 0x38d   : > { %v5417_v24 = vpop.f32.mrf.mxu3 }
 0x38e   : > { %5514 = vst [vmem:[%s6827_s28 + $0x28] sm:$0xff] %v5502_v32  ;;  %v5521_v17 = vadd.f32 %v5520_v33, %v5502_v32  ;;  %v5535_v51 = vmul.f32 %v5502_v32, %v5502_v32  ;;  %v5418_v50 = vadd.f32 %v5417_v24, %v10118_v56 }
 0x390   : > { %v5542_v12 = vadd.f32 %v5541_v47, %v5535_v51  ;;  %v5447_v15 = vadd.f32 %v10114_v11, %v5418_v50 }
 0x392   : > { %v5476_v19 = vadd.f32 %v5475_v61, %v5447_v15 }
 0x395   : > { %v5419_v34 = vpop.f32.mrf.mxu3 }
 0x396   : > { %v5420_v63 = vadd.f32 %v5419_v34, %v10120_v42 }
 0x398   : > { %v5449_v5 = vadd.f32 %v10116_v7, %v5420_v63 }
 0x39a   : > { %v5478_v16 = vadd.f32 %v5477_v13, %v5449_v5 }
 0x39d   : > { %v5504_v49 = vpop.f32.mrf.mxu3 }
 0x39e   : > { %v5505_v62 = vadd.f32 %v5504_v49, %v5476_v19 }
 0x3a0   : > { %5515 = vst [vmem:[%s6827_s28 + $0x30] sm:$0xff] %v5505_v62  ;;  %v5522_v23 = vadd.f32 %v5521_v17, %v5505_v62  ;;  %v5536_v60 = vmul.f32 %v5505_v62, %v5505_v62 }
 0x3a2   : > { %v5543_v48 = vadd.f32 %v5542_v12, %v5536_v60 }
 0x3a5   : > { %v5506_v56 = vpop.f32.mrf.mxu3 }
 0x3a6   : > { %v5507_v57 = vadd.f32 %v5506_v56, %v5478_v16 }
 0x3a8   : > { %5516 = vst [vmem:[%s6827_s28 + $0x38] sm:$0xff] %v5507_v57  ;;  %v5523_v11 = vadd.f32 %v5522_v23, %v5507_v57  ;;  %v5537_v29 = vmul.f32 %v5507_v57, %v5507_v57 }
 0x3aa   : > { %v5524_v46 = vrot.slane %v5523_v11, 4  ;;  %v5544_v42 = vadd.f32 %v5543_v48, %v5537_v29 }
 0x3ac   : > { %v5525_v44 = vadd.f32 %v5524_v46, %v5523_v11  ;;  %v5545_v36 = vrot.slane %v5544_v42, 4 }
 0x3ae   : > { %v5526_v7 = vrot.slane %v5525_v44, 2  ;;  %v5546_v54 = vadd.f32 %v5545_v36, %v5544_v42 }
 0x3b0   : > { %v5527_v58 = vadd.f32 %v5526_v7, %v5525_v44  ;;  %v5547_v59 = vrot.slane %v5546_v54, 2 }
 0x3b2   : > { %v5528_v14 = vrot.slane %v5527_v58, 1  ;;  %v5548_v6 = vadd.f32 %v5547_v59, %v5546_v54 }
 0x3b4   : > { %v5549_v25 = vrot.slane %v5548_v6, 1  ;;  %v5529_v31 = vadd.f32 %v5528_v14, %v5527_v58 }
 0x3b6   : > { %v5550_v26 = vadd.f32 %v5549_v25, %v5548_v6 }
 0x3b8   : > { %v5552_v8 = vsel %vm5551_vm0, %v5529_v31, %v5550_v26 }
 0x3b9   : > { %5553 = vst [vmem:[%s6832_s6] sm:$0x3] %v5552_v8 }
 0x3ba PF: > { %s16_s18 = sadd.s32 1, %s6778_s18  }
 0x3bb   : > { %p13_p5 = scmp.ge.s32.totalorder %s16_s18, 4  }
 0x3bd   :  { %15 = sbr.rel (!%p13_p5) target bundleno = 1 (0x1), region = 97 }

</bundles_post_ra>
